<compile_context>
chip_gen: v7x
topology: tpu7x:2x2x1
jax: 0.10.0
libtpu: 0.0.40
codegen_flags: <defaults>
</compile_context>

<pallas_src>
import numpy as np
import jax
import jax.numpy as jnp
from jax.experimental import pallas as pl
from jax.experimental.pallas import tpu as pltpu

EMBED_DIM = 300      # hardcoded in the PyTorch module: nn.Embedding(vocab, 300)
EMBED_PAD = 384      # 300 zero-padded to a lane-friendly multiple of 128
LSTM_HIDDEN = 512    # hardcoded: nn.LSTM(300, 512, 2, batch_first=True, bidirectional=True)


def _round_up(x, m):
    return ((x + m - 1) // m) * m


def _vmem_capacity_bytes():
    # Generation-aware sizing; fall back to the smallest (v7x per-TC) capacity if the query fails.
    try:
        return int(pltpu.get_tpu_info().vmem_capacity_bytes)
    except Exception:
        return 64 * 1024 * 1024


_VMEM_CAP = _vmem_capacity_bytes()
VMEM_LIMIT = int(min(_VMEM_CAP * 3 // 4, 112 * 1024 * 1024))   # ~48 MiB on v7x, 96 MiB on v5e/v6e


def _qatt_row_limit(L):
    # Max Q_ATT row-tile from actual per-row VMEM bytes (double-buffered bf16 inputs,
    # in-kernel f32 temps, double-buffered f32 output), with a 2x safety margin.
    H, Dp = LSTM_HIDDEN, EMBED_PAD
    per_row = (2 * (2 * L * H * 2 + L * Dp * 2 + 4)
               + 3 * L * H * 4
               + 2 * Dp * 4)
    return max(8, min(256, (VMEM_LIMIT // 2) // per_row))


def _choose_tiling(n_rows, L):
    # Np: padded row count (multiple of 16 so the scan can split into two parallel chunks).
    # tm: largest multiple-of-8 divisor of Np that fits the Q_ATT VMEM budget.
    Np = _round_up(max(n_rows, 16), 16)
    limit = _qatt_row_limit(L)
    tm, d = 8, 8
    while d <= min(limit, Np):
        if Np % d == 0:
            tm = d
        d += 8
    n_chunks = 2
    while (Np // n_chunks) > 512 and Np % (n_chunks * 16) == 0:
        n_chunks *= 2
    return Np, tm, n_chunks


# --------------------------------------------------------------------------- #
# Row-tiled matmul(+bias) kernels.  Used to hoist the LSTM input projections
# (the bulk of LSTM FLOPs) out of the serial recurrent loop.  Outputs bf16.
# --------------------------------------------------------------------------- #
def _matmul_bias_kernel(x_ref, w_ref, b_ref, o_ref):
    acc = jnp.dot(x_ref[...], w_ref[...], preferred_element_type=jnp.float32)
    o_ref[...] = (acc + b_ref[...]).astype(o_ref.dtype)


def matmul_bias(x, w, b, *, tm=256, out_dtype=jnp.bfloat16):
    # x: (M, K) bf16, w: (K, N) bf16, b: (1, N) f32 -> (M, N) out_dtype
    M, K = x.shape
    N = w.shape[1]
    tm = min(tm, _round_up(M, 8))
    Mp = _round_up(M, tm)
    if Mp != M:
        x = jnp.pad(x, ((0, Mp - M), (0, 0)))
    out = pl.pallas_call(
        _matmul_bias_kernel,
        out_shape=jax.ShapeDtypeStruct((Mp, N), out_dtype),
        grid=(Mp // tm,),
        in_specs=[
            pl.BlockSpec((tm, K), lambda i: (i, 0)),
            pl.BlockSpec((K, N), lambda i: (0, 0)),
            pl.BlockSpec((1, N), lambda i: (0, 0)),
        ],
        out_specs=pl.BlockSpec((tm, N), lambda i: (i, 0)),
        compiler_params=pltpu.CompilerParams(
            dimension_semantics=("parallel",), vmem_limit_bytes=VMEM_LIMIT),
    )(x, w, b)
    return out[:M] if Mp != M else out


def _matmul2_bias_kernel(a_ref, b_ref, wa_ref, wb_ref, bias_ref, o_ref):
    acc = jnp.dot(a_ref[...], wa_ref[...], preferred_element_type=jnp.float32)
    acc = acc + jnp.dot(b_ref[...], wb_ref[...], preferred_element_type=jnp.float32)
    o_ref[...] = (acc + bias_ref[...]).astype(o_ref.dtype)


def matmul2_bias(a, b, wa, wb, bias, *, tm=256, out_dtype=jnp.bfloat16):
    # Fused (a @ wa + b @ wb + bias): replaces concat([h_fwd, h_bwd]) @ W with no HBM concat.
    M, Ka = a.shape
    Kb = b.shape[1]
    N = wa.shape[1]
    tm = min(tm, _round_up(M, 8))
    Mp = _round_up(M, tm)
    if Mp != M:
        a = jnp.pad(a, ((0, Mp - M), (0, 0)))
        b = jnp.pad(b, ((0, Mp - M), (0, 0)))
    out = pl.pallas_call(
        _matmul2_bias_kernel,
        out_shape=jax.ShapeDtypeStruct((Mp, N), out_dtype),
        grid=(Mp // tm,),
        in_specs=[
            pl.BlockSpec((tm, Ka), lambda i: (i, 0)),
            pl.BlockSpec((tm, Kb), lambda i: (i, 0)),
            pl.BlockSpec((Ka, N), lambda i: (0, 0)),
            pl.BlockSpec((Kb, N), lambda i: (0, 0)),
            pl.BlockSpec((1, N), lambda i: (0, 0)),
        ],
        out_specs=pl.BlockSpec((tm, N), lambda i: (i, 0)),
        compiler_params=pltpu.CompilerParams(
            dimension_semantics=("parallel",), vmem_limit_bytes=VMEM_LIMIT),
    )(a, b, wa, wb, bias)
    return out[:M] if Mp != M else out


# --------------------------------------------------------------------------- #
# Fused bidirectional recurrent scan.  Input projections already folded into
# the gates tensor; only the small h_prev @ W_hh matmuls run per timestep.
# Backward direction is handled entirely through index maps:
#   * reads its gates at time L-1-t (no XLA reverse),
#   * state update gated on per-row validity (packed-sequence semantics),
#   * output written back at time L-1-t (no XLA un-reverse),
# and the pad-position output mask is folded into the store.
# Grid = (row_chunks [parallel], time [arbitrary]) so v7x uses both cores.
# --------------------------------------------------------------------------- #
def _bilstm_step_kernel(gf_ref, gb_ref, mf_ref, mr_ref, wf_ref, wb_ref,
                        of_ref, ob_ref, hf_sc, cf_sc, hb_sc, cb_sc):
    H = wf_ref.shape[0]
    t = pl.program_id(1)

    @pl.when(t == 0)
    def _():
        hf_sc[...] = jnp.zeros_like(hf_sc)
        cf_sc[...] = jnp.zeros_like(cf_sc)
        hb_sc[...] = jnp.zeros_like(hb_sc)
        cb_sc[...] = jnp.zeros_like(cb_sc)

    mf = mf_ref[0]                      # (chunk, 1) validity at time t
    mr = mr_ref[0]                      # (chunk, 1) validity at time L-1-t

    # ---- forward direction (time t); pads follow valid tokens, outputs masked ----
    gates = gf_ref[0].astype(jnp.float32) + jnp.dot(
        hf_sc[...].astype(jnp.bfloat16), wf_ref[...], preferred_element_type=jnp.float32)
    i = jax.nn.sigmoid(gates[:, 0 * H:1 * H])       # PyTorch gate order: i, f, g, o
    f = jax.nn.sigmoid(gates[:, 1 * H:2 * H])
    g = jnp.tanh(gates[:, 2 * H:3 * H])
    o = jax.nn.sigmoid(gates[:, 3 * H:4 * H])
    c = f * cf_sc[...] + i * g
    h = o * jnp.tanh(c)
    cf_sc[...] = c
    hf_sc[...] = h
    of_ref[0, :, :] = (h * mf).astype(of_ref.dtype)

    # ---- backward direction (time L-1-t); skip leading pads via gated state update ----
    gates = gb_ref[0].astype(jnp.float32) + jnp.dot(
        hb_sc[...].astype(jnp.bfloat16), wb_ref[...], preferred_element_type=jnp.float32)
    i = jax.nn.sigmoid(gates[:, 0 * H:1 * H])
    f = jax.nn.sigmoid(gates[:, 1 * H:2 * H])
    g = jnp.tanh(gates[:, 2 * H:3 * H])
    o = jax.nn.sigmoid(gates[:, 3 * H:4 * H])
    c = f * cb_sc[...] + i * g
    h = o * jnp.tanh(c)
    valid = mr > 0.0
    cb_sc[...] = jnp.where(valid, c, cb_sc[...])
    hb_sc[...] = jnp.where(valid, h, hb_sc[...])
    ob_ref[0, :, :] = (h * mr).astype(ob_ref.dtype)


def _bilstm_scan(gates, mask_tm, whh_f, whh_b, *, n_chunks):
    # gates: (L, Np, 8H) bf16 (fwd gates cols [0:4H], bwd gates cols [4H:8H]);
    # mask_tm: (L, Np, 1) f32 validity-from-lengths -> (h_fwd, h_bwd), each (L, Np, H) bf16.
    L, Np, H8 = gates.shape
    H = H8 // 8
    chunk = Np // n_chunks
    return pl.pallas_call(
        _bilstm_step_kernel,
        out_shape=(jax.ShapeDtypeStruct((L, Np, H), jnp.bfloat16),
                   jax.ShapeDtypeStruct((L, Np, H), jnp.bfloat16)),
        grid=(n_chunks, L),
        in_specs=[
            pl.BlockSpec((1, chunk, 4 * H), lambda c, t: (t, c, 0)),            # fwd gates
            pl.BlockSpec((1, chunk, 4 * H), lambda c, t: (L - 1 - t, c, 1)),    # bwd gates (reversed)
            pl.BlockSpec((1, chunk, 1), lambda c, t: (t, c, 0)),                # mask @ t
            pl.BlockSpec((1, chunk, 1), lambda c, t: (L - 1 - t, c, 0)),        # mask @ L-1-t
            pl.BlockSpec((H, 4 * H), lambda c, t: (0, 0)),                      # W_hh fwd
            pl.BlockSpec((H, 4 * H), lambda c, t: (0, 0)),                      # W_hh bwd
        ],
        out_specs=[
            pl.BlockSpec((1, chunk, H), lambda c, t: (t, c, 0)),                # h_fwd
            pl.BlockSpec((1, chunk, H), lambda c, t: (L - 1 - t, c, 0)),        # h_bwd (un-reversed)
        ],
        scratch_shapes=[pltpu.VMEM((chunk, H), jnp.float32)] * 4,
        compiler_params=pltpu.CompilerParams(
            dimension_semantics=("parallel", "arbitrary"),
            vmem_limit_bytes=VMEM_LIMIT),
    )(gates, gates, mask_tm, mask_tm, whh_f, whh_b)


def bilstm_forward(x_tm, mask_tm, lstm_params, *, n_chunks):
    # Emulates the 2-layer packed (DynamicRNN) bidirectional LSTM, time-major throughout.
    # x_tm: (L, Np, EMBED_PAD) bf16; mask_tm: (L, Np, 1) f32.
    L, Np, Dp = x_tm.shape
    H = LSTM_HIDDEN
    lp0, lp1 = lstm_params
    # TODO(synk): inter-layer LSTM dropout (p=0.5) only fires in train mode; eval semantics here.
    g0 = matmul_bias(x_tm.reshape(L * Np, Dp), lp0['w_in'], lp0['b_in']).reshape(L, Np, 8 * H)
    hf0, hb0 = _bilstm_scan(g0, mask_tm, lp0['whh_f'], lp0['whh_b'], n_chunks=n_chunks)
    g1 = matmul2_bias(hf0.reshape(L * Np, H), hb0.reshape(L * Np, H),
                      lp1['w_in_f'], lp1['w_in_b'], lp1['b_in']).reshape(L, Np, 8 * H)
    hf1, hb1 = _bilstm_scan(g1, mask_tm, lp1['whh_f'], lp1['whh_b'], n_chunks=n_chunks)
    return hf1, hb1


# --------------------------------------------------------------------------- #
# Q_ATT (self-attention over question words), reading time-major inputs
# directly (no HBM transpose), tiled over question rows.
# --------------------------------------------------------------------------- #
def _q_att_kernel(encf_ref, encb_ref, emb_ref, notpad_ref,
                  w1f_ref, w1b_ref, b1_ref, wa_ref, feat_ref):
    L, TM, H = encf_ref.shape
    ef = encf_ref[...].reshape(L * TM, H)
    eb = encb_ref[...].reshape(L * TM, H)
    # att_embed Linear(1024, 512) split over fwd/bwd halves (no concat), then ReLU.
    x = (jnp.dot(ef, w1f_ref[...], preferred_element_type=jnp.float32)
         + jnp.dot(eb, w1b_ref[...], preferred_element_type=jnp.float32)
         + b1_ref[...])
    x = jnp.maximum(x, 0.0)
    ss = jnp.sum(x * x, axis=-1, keepdims=True)
    x = x * jax.lax.rsqrt(jnp.maximum(ss, 1e-24))            # F.normalize(p=2, eps=1e-12)
    # Linear(512, 1) as broadcast-mul + lane reduce; its (zero) bias cancels under softmax.
    logits = jnp.sum(x.reshape(L, TM, H) * wa_ref[...], axis=-1, keepdims=True)   # (L, TM, 1)
    logits = logits - jnp.max(logits, axis=0, keepdims=True)
    # softmax -> pad mask -> renormalize  ==  masked softmax (single normalization)
    e = jnp.exp(logits) * notpad_ref[...]
    denom = jnp.maximum(jnp.sum(e, axis=0, keepdims=True), 1e-20)   # guard zero-length rows
    att = e / denom
    feat_ref[...] = jnp.sum(att * emb_ref[...].astype(jnp.float32), axis=0)


def q_att_ref(enc_f, enc_b, emb_tm, notpad_tm, p, *, tm):
    # enc_f/enc_b: (L, Np, H) bf16; emb_tm: (L, Np, EMBED_PAD) bf16; notpad_tm: (L, Np, 1) f32.
    L, Np, H = enc_f.shape
    Dp = emb_tm.shape[-1]
    assert Np % tm == 0
    return pl.pallas_call(
        _q_att_kernel,
        out_shape=jax.ShapeDtypeStruct((Np, Dp), jnp.float32),
        grid=(Np // tm,),
        in_specs=[
            pl.BlockSpec((L, tm, H), lambda i: (0, i, 0)),
            pl.BlockSpec((L, tm, H), lambda i: (0, i, 0)),
            pl.BlockSpec((L, tm, Dp), lambda i: (0, i, 0)),
            pl.BlockSpec((L, tm, 1), lambda i: (0, i, 0)),
            pl.BlockSpec((H, H), lambda i: (0, 0)),
            pl.BlockSpec((H, H), lambda i: (0, 0)),
            pl.BlockSpec((1, H), lambda i: (0, 0)),
            pl.BlockSpec((1, H), lambda i: (0, 0)),
        ],
        out_specs=pl.BlockSpec((tm, Dp), lambda i: (i, 0)),
        compiler_params=pltpu.CompilerParams(
            dimension_semantics=("parallel",), vmem_limit_bytes=VMEM_LIMIT),
    )(enc_f, enc_b, emb_tm, notpad_tm, p['w1f_t'], p['w1b_t'], p['b1'], p['wa'])


# --------------------------------------------------------------------------- #
# RvA visual attention fused with the final torch.bmm(img_att, img), batched
# over TB batch elements per grid step (no per-b Python unroll).
# --------------------------------------------------------------------------- #
def _rva_kernel(img_ref, qf_ref, wv_ref, bv_ref, wq_ref, bq_ref, wa_ref, feat_ref):
    TB, P, Fp = img_ref.shape
    R, Dp = qf_ref.shape[1], qf_ref.shape[2]
    H = wv_ref.shape[-1]
    img = img_ref[...]                                                   # (TB, P, Fp) f32
    v = (jnp.dot(img.reshape(TB * P, Fp).astype(jnp.bfloat16), wv_ref[...],
                 preferred_element_type=jnp.float32) + bv_ref[...]).reshape(TB, 1, P, H)
    q = (jnp.dot(qf_ref[...].reshape(TB * R, Dp).astype(jnp.bfloat16), wq_ref[...],
                 preferred_element_type=jnp.float32) + bq_ref[...]).reshape(TB, R, 1, H)
    x = q * v                                                            # (TB, R, P, H)
    ss = jnp.sum(x * x, axis=-1, keepdims=True)
    x = x * jax.lax.rsqrt(jnp.maximum(ss, 1e-24))                        # F.normalize(p=2)
    logits = jnp.sum(x * wa_ref[...], axis=-1)                           # Linear(512,1); bias cancels
    logits = logits - jnp.max(logits, axis=-1, keepdims=True)
    e = jnp.exp(logits)
    att = e / jnp.sum(e, axis=-1, keepdims=True)                         # (TB, R, P)
    # torch.bmm(img_att, img) as one batched contraction over P.
    feat_ref[...] = jnp.einsum('brp,bpf->brf', att, img,
                               preferred_element_type=jnp.float32)


def rva_module(img, ques_feat, p, *, tb=8):
    # TODO(synk): only the base question-guided visual-attention path of RvA_MODULE is
    # implemented (the recursive history-pair gating source is not provided).
    B, P, F = img.shape
    R = ques_feat.shape[1]
    Fp = p['wv_t'].shape[0]
    H = p['wv_t'].shape[1]
    if Fp != F:
        img = jnp.pad(img, ((0, 0), (0, 0), (0, Fp - F)))                # lane-dense output slab
    TB = min(tb, B)
    Bp = _round_up(B, TB)
    if Bp != B:
        img = jnp.pad(img, ((0, Bp - B), (0, 0), (0, 0)))
        ques_feat = jnp.pad(ques_feat, ((0, Bp - B), (0, 0), (0, 0)))
    Dp = ques_feat.shape[-1]
    feat = pl.pallas_call(
        _rva_kernel,
        out_shape=jax.ShapeDtypeStruct((Bp, R, Fp), jnp.float32),
        grid=(Bp // TB,),
        in_specs=[
            pl.BlockSpec((TB, P, Fp), lambda b: (b, 0, 0)),
            pl.BlockSpec((TB, R, Dp), lambda b: (b, 0, 0)),
            pl.BlockSpec((Fp, H), lambda b: (0, 0)),
            pl.BlockSpec((1, H), lambda b: (0, 0)),
            pl.BlockSpec((Dp, H), lambda b: (0, 0)),
            pl.BlockSpec((1, H), lambda b: (0, 0)),
            pl.BlockSpec((1, H), lambda b: (0, 0)),
        ],
        out_specs=pl.BlockSpec((TB, R, Fp), lambda b: (b, 0, 0)),
        compiler_params=pltpu.CompilerParams(
            dimension_semantics=("parallel",), vmem_limit_bytes=VMEM_LIMIT),
    )(img, ques_feat, p['wv_t'], p['bv'], p['wq_t'], p['bq'], p['wa'])
    return feat[:B, :, :F]


# --------------------------------------------------------------------------- #
# Parameters (deterministic synthetic init, mirrors the __init__ shapes).
# --------------------------------------------------------------------------- #
def init_params(key, vocab_size, img_feature_size):
    keys = iter(jax.random.split(key, 64))
    nxt = lambda: next(keys)
    H = LSTM_HIDDEN

    def kaiming_t(in_f, out_f, pad_to=None):          # transposed Linear weight, bf16 for the MXU
        bound = float(np.sqrt(6.0 / in_f))            # nn.init.kaiming_uniform
        w = jax.random.uniform(nxt(), (out_f, in_f), jnp.float32, -bound, bound).T
        if pad_to is not None and pad_to > in_f:
            w = jnp.pad(w, ((0, pad_to - in_f), (0, 0)))
        return w.astype(jnp.bfloat16)

    def kaiming_row(in_f):                            # Linear(in_f, 1) weight as an f32 row
        bound = float(np.sqrt(6.0 / in_f))
        return jax.random.uniform(nxt(), (1, in_f), jnp.float32, -bound, bound)

    def lstm_direction(d_in, h, pad_to=None):
        k = float(1.0 / np.sqrt(h))
        wih = jax.random.uniform(nxt(), (4 * h, d_in), jnp.float32, -k, k).T     # (d_in, 4H)
        whh = jax.random.uniform(nxt(), (4 * h, h), jnp.float32, -k, k).T        # (H, 4H)
        bih = jax.random.uniform(nxt(), (4 * h,), jnp.float32, -k, k)
        bhh = jax.random.uniform(nxt(), (4 * h,), jnp.float32, -k, k)
        if pad_to is not None and pad_to > d_in:
            wih = jnp.pad(wih, ((0, pad_to - d_in), (0, 0)))
        return wih, whh, bih + bhh

    # word embedding (padding_idx=0 row zeroed), feature dim zero-padded 300 -> 384, bf16 storage
    embed = jax.random.normal(nxt(), (vocab_size, EMBED_DIM), jnp.float32)
    embed = embed.at[0].set(0.0)
    embed = jnp.pad(embed, ((0, 0), (0, EMBED_PAD - EMBED_DIM))).astype(jnp.bfloat16)

    # LSTM layer 0 (input 300 padded to 384)
    wf0, rf0, bf0 = lstm_direction(EMBED_DIM, H, pad_to=EMBED_PAD)
    wb0, rb0, bb0 = lstm_direction(EMBED_DIM, H, pad_to=EMBED_PAD)
    layer0 = {
        'w_in': jnp.concatenate([wf0, wb0], axis=1).astype(jnp.bfloat16),   # (384, 8H)
        'b_in': jnp.concatenate([bf0, bb0])[None, :],                       # (1, 8H) f32
        'whh_f': rf0.astype(jnp.bfloat16),                                  # (H, 4H)
        'whh_b': rb0.astype(jnp.bfloat16),
    }
    # LSTM layer 1 (input = [h_fwd, h_bwd] of size 1024, consumed as two GEMM operands)
    wf1, rf1, bf1 = lstm_direction(2 * H, H)
    wb1, rb1, bb1 = lstm_direction(2 * H, H)
    w_in1 = jnp.concatenate([wf1, wb1], axis=1)                             # (1024, 8H)
    layer1 = {
        'w_in_f': w_in1[:H].astype(jnp.bfloat16),                           # rows hit by h_fwd
        'w_in_b': w_in1[H:].astype(jnp.bfloat16),                           # rows hit by h_bwd
        'b_in': jnp.concatenate([bf1, bb1])[None, :],
        'whh_f': rf1.astype(jnp.bfloat16),
        'whh_b': rb1.astype(jnp.bfloat16),
    }

    w1_t = kaiming_t(2 * H, H)                        # Q_ATT embed Linear(1024, 512); bias init 0
    q_att = {
        'w1f_t': w1_t[:H],
        'w1b_t': w1_t[H:],
        'b1': jnp.zeros((1, H), jnp.float32),
        'wa': kaiming_row(H),                         # Linear(512, 1); zero bias folded out
    }

    F = img_feature_size
    Fp = F if F % 128 == 0 else _round_up(F, 128)
    att = {
        'wv_t': kaiming_t(F, H, pad_to=Fp),           # V_embed: Linear(F, 512), rows zero-padded
        'bv': jnp.zeros((1, H), jnp.float32),
        'wq_t': kaiming_t(EMBED_DIM, H, pad_to=EMBED_PAD),   # Q_embed: Linear(300, 512)
        'bq': jnp.zeros((1, H), jnp.float32),
        'wa': kaiming_row(H),                         # att: Linear(512, 1); bias folded out
    }
    return {'embed': embed, 'lstm': (layer0, layer1), 'q_att': q_att, 'att': att}


# --------------------------------------------------------------------------- #
# Full forward pass (token gather / padding in JAX, all hot paths in Pallas).
# --------------------------------------------------------------------------- #
def rva_encoder_forward(params, batch):
    ques = batch['ques']             # (B, R, L) int32
    ques_len = batch['ques_len']     # (B, R) int32
    img = batch['img_feat']          # (B, P, F) float32

    B, R, L = ques.shape
    N = B * R
    Np, tm, n_chunks = _choose_tiling(N, L)

    ques_flat = ques.reshape(N, L)
    lengths = ques_len.reshape(N).astype(jnp.int32)
    if Np != N:
        ques_flat = jnp.pad(ques_flat, ((0, Np - N), (0, 0)))
        lengths = jnp.pad(lengths, (0, Np - N))

    ques_tm = ques_flat.T                                                # (L, Np) time-major tokens
    notpad_tm = (ques_tm != 0).astype(jnp.float32)[:, :, None]           # (L, Np, 1)
    valid_tm = (jnp.arange(L, dtype=jnp.int32)[:, None]
                < lengths[None, :]).astype(jnp.float32)[:, :, None]      # (L, Np, 1)

    # init_q_embed: embedding lookup directly in time-major layout (bf16, 300 padded to 384)
    emb_tm = params['embed'][ques_tm]                                    # (L, Np, 384) bf16

    # 2-layer packed bidirectional LSTM (DynamicRNN); outputs stay time-major, pads zeroed
    hf, hb = bilstm_forward(emb_tm, valid_tm, params['lstm'], n_chunks=n_chunks)

    # Q_ATT_ref (only the attended word-embedding feature is used downstream)
    ques_ref_feat = q_att_ref(hf, hb, emb_tm, notpad_tm, params['q_att'], tm=tm)   # (Np, 384)
    ques_feat = ques_ref_feat[:N].reshape(B, R, EMBED_PAD)

    # RvA_MODULE (base visual attention) + torch.bmm(img_att, img)
    img_feat = rva_module(img, ques_feat, params['att'])                 # (B, R, F)
    return img_feat


if __name__ == "__main__":
    B, R, L = 2, 3, 8        # batch, dialog rounds, max question length
    VOCAB = 40
    P, F = 16, 64            # image proposals, image feature size

    key = jax.random.PRNGKey(0)
    k_param, k_tok, k_img = jax.random.split(key, 3)

    params = init_params(k_param, VOCAB, F)

    ques_len = jnp.array([[8, 5, 3], [6, 8, 4]], dtype=jnp.int32)        # max == L
    tok = jax.random.randint(k_tok, (B, R, L), 1, VOCAB, dtype=jnp.int32)
    pos = jnp.arange(L)[None, None, :]
    ques = jnp.where(pos < ques_len[:, :, None], tok, 0)                 # zero-padded questions

    img_feat_in = jax.random.normal(k_img, (B, P, F), jnp.float32)

    batch = {'ques': ques, 'ques_len': ques_len, 'img_feat': img_feat_in}
    out = rva_encoder_forward(params, batch)
    out = jax.block_until_ready(out)

    assert out.shape == (B, R, F), out.shape
    assert bool(jnp.all(jnp.isfinite(out)))
    print("KERNEL_OK")
</pallas_src>

<mosaic_0001>
module attributes {stable_mosaic.version = 11 : i64} {
  func.func @_matmul_bias_kernel(%arg0: i32, %arg1: memref<128x384xbf16, #tpu.memory_space<vmem>>, %arg2: memref<384x4096xbf16, #tpu.memory_space<vmem>>, %arg3: memref<1x4096xf32, #tpu.memory_space<vmem>>, %arg4: memref<128x4096xbf16, #tpu.memory_space<vmem>>) attributes {dimension_semantics = [#tpu.dimension_semantics<parallel>], iteration_bounds = array<i64: 1>, scalar_prefetch = 0 : i64, scratch_operands = 0 : i64, tpu.core_type = #tpu.core_type<tc>, window_params = [{transform_indices = @transform_0, window_bounds = array<i64: 128, 384>}, {pipeline_mode = #tpu.pipeline_mode<synchronous>, transform_indices = @transform_1, window_bounds = array<i64: 384, 4096>}, {pipeline_mode = #tpu.pipeline_mode<synchronous>, transform_indices = @transform_2, window_bounds = array<i64: 1, 4096>}, {transform_indices = @transform_3, window_bounds = array<i64: 128, 4096>}]} {
    %c0 = arith.constant 0 : index
    %c0_0 = arith.constant 0 : index
    %0 = vector.load %arg1[%c0, %c0_0] : memref<128x384xbf16, #tpu.memory_space<vmem>>, vector<128x384xbf16>
    %c0_1 = arith.constant 0 : index
    %c0_2 = arith.constant 0 : index
    %1 = vector.load %arg2[%c0_1, %c0_2] : memref<384x4096xbf16, #tpu.memory_space<vmem>>, vector<384x4096xbf16>
    %cst = arith.constant dense<0.000000e+00> : vector<128x4096xf32>
    %2 = tpu.matmul %0, %1, %cst {dimension_numbers = #tpu.dot_dimension_numbers<[1], [0], [0], [1], [0, 0, 1, 1], [], []>} : vector<128x384xbf16>, vector<384x4096xbf16>, vector<128x4096xf32> -> vector<128x4096xf32>
    %c0_3 = arith.constant 0 : index
    %c0_4 = arith.constant 0 : index
    %3 = vector.load %arg3[%c0_3, %c0_4] : memref<1x4096xf32, #tpu.memory_space<vmem>>, vector<1x4096xf32>
    %4 = vector.broadcast %3 : vector<1x4096xf32> to vector<128x4096xf32>
    %5 = arith.addf %2, %4 : vector<128x4096xf32>
    %6 = arith.truncf %5 : vector<128x4096xf32> to vector<128x4096xbf16>
    %c0_5 = arith.constant 0 : index
    %c0_6 = arith.constant 0 : index
    %7 = vector.load %arg4[%c0_5, %c0_6] : memref<128x4096xbf16, #tpu.memory_space<vmem>>, vector<128x4096xbf16>
    tpu.vector_store %arg4[%c0_5, %c0_6], %6 {strides = array<i32>} : memref<128x4096xbf16, #tpu.memory_space<vmem>>, vector<128x4096xbf16>,
    return
  }
  func.func @transform_0(%arg0: i32) -> (i32, i32) {
    %c0_i32 = arith.constant 0 : i32
    %c0_i32_0 = arith.constant 0 : i32
    return %arg0, %c0_i32 : i32, i32
  }
  func.func @transform_1(%arg0: i32) -> (i32, i32) {
    %c0_i32 = arith.constant 0 : i32
    %c0_i32_0 = arith.constant 0 : i32
    %c0_i32_1 = arith.constant 0 : i32
    return %c0_i32, %c0_i32_0 : i32, i32
  }
  func.func @transform_2(%arg0: i32) -> (i32, i32) {
    %c0_i32 = arith.constant 0 : i32
    %c0_i32_0 = arith.constant 0 : i32
    %c0_i32_1 = arith.constant 0 : i32
    return %c0_i32, %c0_i32_0 : i32, i32
  }
  func.func @transform_3(%arg0: i32) -> (i32, i32) {
    %c0_i32 = arith.constant 0 : i32
    %c0_i32_0 = arith.constant 0 : i32
    return %arg0, %c0_i32 : i32, i32
  }
}

</mosaic_0001>

<bundles_post_ra>
// kernel: tpu_custom_call.1
= control target key start
LH: loop header
LB: loop body
LE: loop exit
PB: predicated region body
PF: predicated region fallthrough
CT: control target
= control target key end

     0   :  { %8 = vsyncpa [#allocation3], 0  ;;  %s14361_s0 = inlined_call_operand.hbm [shape: bf16[128,384], index: 0, kind: input, shape index: {}]   ;;  %s14362_s1 = inlined_call_operand.hbm [shape: bf16[384,4096], index: 1, kind: input, shape index: {}]   ;;  %s14363_s2 = inlined_call_operand.hbm [shape: f32[1,4096], index: 2, kind: input, shape index: {}]   ;;  %s14364_s3 = inlined_call_operand.hbm [shape: bf16[128,4096], index: 3, kind: output, shape index: {}]  }
   0x1   :  { %9 = vsyncpa [#allocation6], 0 }
   0x2   :  { %10 = vsyncpa [#allocation4], 0  ;;  %s13020_s12 = smov [#allocation5]   ;;  %s12926_s16 = scalar_lea.hbm %s14362_s1, 98304 }
   0x3   :  { %s28_s13 = sshll.u32 %s13020_s12, 4  ;;  %p12927_p0 = scmp.ne.s32.totalorder %s14362_s1, %s12926_s16  ;;  %s29_s13 = int_to_ptr.vmem [resolvable:$true] %s28_s13 }
   0x4   :  { %p12930_p1 = scmp.lt.u32.totalorder %s12926_s16, %s14362_s1 }
   0x6   :  { %p12932_p2 = pnand %p12930_p1, %p12927_p0 }
   0x8   :  { %12935 = shalt.err (!%p12932_p2)
}
   0x9   :  { %s12936_s21 = scalar_lea.vmem %s29_s13, 98304  ;;  %p12941_p4 = scmp.lt.s32.totalorder %s29_s13, %s29_s13 }
   0xa   :  { %p12937_p3 = scmp.ne.s32.totalorder %s29_s13, %s12936_s21  ;;  %p12942_p5 = scmp.lt.s32.totalorder %s12936_s21, %s12936_s21 }
   0xc   :  { %p12943_p6 = por %p12942_p5, %p12941_p4 }
   0xe   :  { %p12944_p7 = pnand %p12943_p6, %p12937_p3 }
  0x10   :  { %12947 = shalt.err (!%p12944_p7)
}
  0x11   :  { %s13021_s22 = smov 2048   ;;  %s13022_s23 = smov 128  }
  0x12   :  { %34 = dma.hbm_to_vmem [thread:$0]  %s14362_s1, 98304, %s29_s13, [#allocation6], %s13021_s22, %s13021_s22, %s13022_s23  }
  0x13   :  { %s13023_s26 = smov [#allocation2]   ;;  %s12948_s30 = scalar_lea.hbm %s14361_s0, 3072 }
  0x14   :  { %s16_s27 = sshll.u32 %s13023_s26, 4  ;;  %p12949_p8 = scmp.ne.s32.totalorder %s14361_s0, %s12948_s30  ;;  %s17_s27 = int_to_ptr.vmem [resolvable:$true] %s16_s27 }
  0x15   :  { %p12952_p9 = scmp.lt.u32.totalorder %s12948_s30, %s14361_s0 }
  0x17   :  { %p12954_p10 = pnand %p12952_p9, %p12949_p8 }
  0x19   :  { %12957 = shalt.err (!%p12954_p10)
}
  0x1a   :  { %s12958_s8 = scalar_lea.vmem %s17_s27, 3072  ;;  %p12963_p12 = scmp.lt.s32.totalorder %s17_s27, %s17_s27 }
  0x1b   :  { %p12959_p11 = scmp.ne.s32.totalorder %s17_s27, %s12958_s8  ;;  %p12964_p13 = scmp.lt.s32.totalorder %s12958_s8, %s12958_s8 }
  0x1d   :  { %p12965_p0 = por %p12964_p13, %p12963_p12 }
  0x1f   :  { %p12966_p1 = pnand %p12965_p0, %p12959_p11 }
  0x21   :  { %12969 = shalt.err (!%p12966_p1)
}
  0x22   :  { %s13024_s1 = smov 192   ;;  %s13025_s9 = smov 12  }
  0x23   :  { %22 = dma.hbm_to_vmem [thread:$0]  %s14361_s0, 3072, %s17_s27, [#allocation3], %s13024_s1, %s13024_s1, %s13025_s9  }
  0x24   :  { %s13026_s12 = smov [#allocation7]   ;;  %s12970_s16 = scalar_lea.hbm %s14363_s2, 512 }
  0x25   :  { %s41_s13 = sshll.u32 %s13026_s12, 4  ;;  %p12971_p2 = scmp.ne.s32.totalorder %s14363_s2, %s12970_s16  ;;  %s42_s13 = int_to_ptr.vmem [resolvable:$true] %s41_s13 }
  0x26   :  { %p12974_p3 = scmp.lt.u32.totalorder %s12970_s16, %s14363_s2 }
  0x28   :  { %p12976_p4 = pnand %p12974_p3, %p12971_p2 }
  0x2a   :  { %12979 = shalt.err (!%p12976_p4)
}
  0x2b   :  { %s12980_s21 = scalar_lea.vmem %s42_s13, 512  ;;  %p12985_p6 = scmp.lt.s32.totalorder %s42_s13, %s42_s13 }
  0x2c   :  { %p12981_p5 = scmp.ne.s32.totalorder %s42_s13, %s12980_s21  ;;  %p12986_p7 = scmp.lt.s32.totalorder %s12980_s21, %s12980_s21 }
  0x2e   :  { %p12987_p8 = por %p12986_p7, %p12985_p6 }
  0x30   :  { %p12988_p9 = pnand %p12987_p8, %p12981_p5 }
  0x32   :  { %12991 = shalt.err (!%p12988_p9)
}
  0x33   :  { %44 = dma.hbm_to_vmem [thread:$0]  %s14363_s2, 512, %s42_s13, [#allocation6]  }
  0x34   :  { %13014 = dma.done.wait [#allocation3], 3072  }
  0x35   :  { %13015 = vsyncadd [#allocation3], 4294964224 }
  0x36   :  { %13016 = dma.done.wait [#allocation6], 98816  }
  0x37   :  { %13017 = vsyncadd [#allocation6], 4294868480  ;;  %v87_v0 = vld [vmem:[#allocation5] sm:$0xff]  ;;  %v88_v2 = vld [vmem:[#allocation5 + $0x8] sm:$0xff]  ;;  %s13028_s2 = smov [#allocation8]  }
  0x38   :  { %v103_v1 = vld [vmem:[#allocation5 + $0x80] sm:$0xff]  ;;  %v104_v4 = vld [vmem:[#allocation5 + $0x88] sm:$0xff]  ;;  %s10404_s25 = sshll.u32 %s13028_s2, 4  ;;  %s10405_s25 = int_to_ptr.vmem [resolvable:$true] %s10404_s25 }
  0x39   :  { %v10442_v3 = vcombine.high %v87_v0, %v103_v1  ;;  %v10441_v5 = vcombine.low %v87_v0, %v103_v1  ;;  %v119_v6 = vld [vmem:[#allocation5 + $0x100] sm:$0xff]  ;;  %v10444_v8 = vcombine.high %v88_v2, %v104_v4  ;;  %v10443_v9 = vcombine.low %v88_v2, %v104_v4  ;;  %v120_v11 = vld [vmem:[#allocation5 + $0x108] sm:$0xff]  ;;  %s12992_s26 = scalar_lea.vmem %s10405_s25, 32768  ;;  %p12997_p11 = scmp.lt.s32.totalorder %s10405_s25, %s10405_s25 }
  0x3a   :  { %v135_v7 = vld [vmem:[#allocation5 + $0x180] sm:$0xff]  ;;  %v136_v12 = vld [vmem:[#allocation5 + $0x188] sm:$0xff]  ;;  %p12993_p10 = scmp.ne.s32.totalorder %s10405_s25, %s12992_s26  ;;  %p12998_p12 = scmp.lt.s32.totalorder %s12992_s26, %s12992_s26 }
  0x3b   :  { %v10474_v10 = vcombine.high %v119_v6, %v135_v7  ;;  %v151_v13 = vld [vmem:[#allocation5 + $0x200] sm:$0xff]  ;;  %4991 = vmatprep.subr.bf16.mxu0 %v10442_v3  ;;  %v10476_v14 = vcombine.high %v120_v11, %v136_v12  ;;  %v152_v16 = vld [vmem:[#allocation5 + $0x208] sm:$0xff]  ;;  %5217 = vmatprep.subr.bf16.mxu1 %v10444_v8  ;;  %v10473_v18 = vcombine.low %v119_v6, %v135_v7 }
  0x3c   :  { %v167_v15 = vld [vmem:[#allocation5 + $0x280] sm:$0xff]  ;;  %v168_v17 = vld [vmem:[#allocation5 + $0x288] sm:$0xff]  ;;  %4992 = vmatpush1.bf16.msra.mxu0 %v10441_v5  ;;  %5218 = vmatpush1.bf16.msra.mxu1 %v10443_v9  ;;  %v10475_v19 = vcombine.low %v120_v11, %v136_v12  ;;  %p12999_p13 = por %p12998_p12, %p12997_p11 }
  0x3d   :  { %4993 = vmatprep.subr.bf16.mxu0 %v10474_v10  ;;  %v10506_v20 = vcombine.high %v151_v13, %v167_v15  ;;  %5219 = vmatprep.subr.bf16.mxu1 %v10476_v14  ;;  %v10508_v21 = vcombine.high %v152_v16, %v168_v17  ;;  %v183_v22 = vld [vmem:[#allocation5 + $0x300] sm:$0xff]  ;;  %v184_v24 = vld [vmem:[#allocation5 + $0x308] sm:$0xff]  ;;  %v10505_v26 = vcombine.low %v151_v13, %v167_v15 }
  0x3e   :  { %v199_v23 = vld [vmem:[#allocation5 + $0x380] sm:$0xff]  ;;  %v200_v25 = vld [vmem:[#allocation5 + $0x388] sm:$0xff]  ;;  %v10507_v27 = vcombine.low %v152_v16, %v168_v17  ;;  %p13000_p0 = pnand %p12999_p13, %p12993_p10 }
  0x3f   :  { %v10538_v28 = vcombine.high %v183_v22, %v199_v23  ;;  %v10540_v29 = vcombine.high %v184_v24, %v200_v25  ;;  %v215_v30 = vld [vmem:[#allocation5 + $0x400] sm:$0xff]  ;;  %v216_v32 = vld [vmem:[#allocation5 + $0x408] sm:$0xff]  ;;  %v10537_v34 = vcombine.low %v183_v22, %v199_v23  ;;  %v10539_v35 = vcombine.low %v184_v24, %v200_v25 }
  0x40   :  { %4994 = vmatpush1.bf16.msra.mxu0 %v10473_v18  ;;  %5220 = vmatpush1.bf16.msra.mxu1 %v10475_v19  ;;  %v231_v31 = vld [vmem:[#allocation5 + $0x480] sm:$0xff]  ;;  %v232_v33 = vld [vmem:[#allocation5 + $0x488] sm:$0xff] }
  0x41   :  { %4995 = vmatprep.subr.bf16.mxu0 %v10506_v20  ;;  %5221 = vmatprep.subr.bf16.mxu1 %v10508_v21  ;;  %v10570_v36 = vcombine.high %v215_v30, %v231_v31  ;;  %v10572_v37 = vcombine.high %v216_v32, %v232_v33  ;;  %v247_v38 = vld [vmem:[#allocation5 + $0x500] sm:$0xff]  ;;  %v248_v40 = vld [vmem:[#allocation5 + $0x508] sm:$0xff]  ;;  %v10569_v42 = vcombine.low %v215_v30, %v231_v31 }
  0x42   :  { %v263_v39 = vld [vmem:[#allocation5 + $0x580] sm:$0xff]  ;;  %v264_v41 = vld [vmem:[#allocation5 + $0x588] sm:$0xff]  ;;  %v10571_v43 = vcombine.low %v216_v32, %v232_v33 }
  0x43   :  { %v10602_v44 = vcombine.high %v247_v38, %v263_v39  ;;  %v10604_v45 = vcombine.high %v248_v40, %v264_v41  ;;  %v279_v46 = vld [vmem:[#allocation5 + $0x600] sm:$0xff]  ;;  %v280_v48 = vld [vmem:[#allocation5 + $0x608] sm:$0xff]  ;;  %v10601_v50 = vcombine.low %v247_v38, %v263_v39  ;;  %v10603_v51 = vcombine.low %v248_v40, %v264_v41 }
  0x44   :  { %4996 = vmatpush1.bf16.msra.mxu0 %v10505_v26  ;;  %5222 = vmatpush1.bf16.msra.mxu1 %v10507_v27  ;;  %v295_v47 = vld [vmem:[#allocation5 + $0x680] sm:$0xff]  ;;  %v296_v49 = vld [vmem:[#allocation5 + $0x688] sm:$0xff] }
  0x45   :  { %4997 = vmatprep.subr.bf16.mxu0 %v10538_v28  ;;  %5223 = vmatprep.subr.bf16.mxu1 %v10540_v29  ;;  %v10634_v52 = vcombine.high %v279_v46, %v295_v47  ;;  %v10636_v53 = vcombine.high %v280_v48, %v296_v49  ;;  %v311_v54 = vld [vmem:[#allocation5 + $0x700] sm:$0xff]  ;;  %v312_v57 = vld [vmem:[#allocation5 + $0x708] sm:$0xff]  ;;  %v10633_v59 = vcombine.low %v279_v46, %v295_v47 }
  0x46   :  { %v327_v55 = vld [vmem:[#allocation5 + $0x780] sm:$0xff]  ;;  %v328_v58 = vld [vmem:[#allocation5 + $0x788] sm:$0xff]  ;;  %v10635_v60 = vcombine.low %v280_v48, %v296_v49 }
  0x47   :  { %v12754_v56 = vld [vmem:[#allocation2 + $0x4] ss:$12 sps:$4 sm:$0xff]   ;;  %v10666_v61 = vcombine.high %v311_v54, %v327_v55  ;;  %v10668_v62 = vcombine.high %v312_v57, %v328_v58  ;;  %v344_v1 = vld [vmem:[#allocation5 + $0x808] sm:$0xff]  ;;  %v10665_v3 = vcombine.low %v311_v54, %v327_v55  ;;  %v10667_v4 = vcombine.low %v312_v57, %v328_v58 }
  0x48   :  { %4998 = vmatpush1.bf16.msra.mxu0 %v10537_v34  ;;  %5224 = vmatpush1.bf16.msra.mxu1 %v10539_v35  ;;  %v343_v63 = vld [vmem:[#allocation5 + $0x800] sm:$0xff]  ;;  %v360_v2 = vld [vmem:[#allocation5 + $0x888] sm:$0xff] }
  0x49   :  { %4999 = vmatprep.subr.bf16.mxu0 %v10570_v36  ;;  %5225 = vmatprep.subr.bf16.mxu1 %v10572_v37  ;;  %v359_v0 = vld [vmem:[#allocation5 + $0x880] sm:$0xff]  ;;  %v10700_v6 = vcombine.high %v344_v1, %v360_v2  ;;  %v376_v9 = vld [vmem:[#allocation5 + $0x908] sm:$0xff]  ;;  %v10699_v12 = vcombine.low %v344_v1, %v360_v2 }
  0x4a   :  { %5023 = vmatprep.mubr.bf16.mxu0 %v12754_v56  ;;  %5249 = vmatprep.mubr.bf16.mxu1 %v12754_v56  ;;  %v10698_v5 = vcombine.high %v343_v63, %v359_v0  ;;  %v375_v7 = vld [vmem:[#allocation5 + $0x900] sm:$0xff]  ;;  %v392_v10 = vld [vmem:[#allocation5 + $0x988] sm:$0xff]  ;;  %v10697_v11 = vcombine.low %v343_v63, %v359_v0 }
  0x4b   :  { %v391_v8 = vld [vmem:[#allocation5 + $0x980] sm:$0xff]  ;;  %v10732_v14 = vcombine.high %v376_v9, %v392_v10  ;;  %v408_v17 = vld [vmem:[#allocation5 + $0xa08] sm:$0xff]  ;;  %v10731_v20 = vcombine.low %v376_v9, %v392_v10 }
  0x4c   :  { %5000 = vmatpush1.bf16.msra.mxu0 %v10569_v42  ;;  %5226 = vmatpush1.bf16.msra.mxu1 %v10571_v43  ;;  %v10730_v13 = vcombine.high %v375_v7, %v391_v8  ;;  %v407_v15 = vld [vmem:[#allocation5 + $0xa00] sm:$0xff]  ;;  %v424_v18 = vld [vmem:[#allocation5 + $0xa88] sm:$0xff]  ;;  %v10729_v19 = vcombine.low %v375_v7, %v391_v8 }
  0x4d   :  { %5001 = vmatprep.subr.bf16.mxu0 %v10602_v44  ;;  %5227 = vmatprep.subr.bf16.mxu1 %v10604_v45  ;;  %v423_v16 = vld [vmem:[#allocation5 + $0xa80] sm:$0xff]  ;;  %v10764_v22 = vcombine.high %v408_v17, %v424_v18  ;;  %v440_v25 = vld [vmem:[#allocation5 + $0xb08] sm:$0xff]  ;;  %v10763_v28 = vcombine.low %v408_v17, %v424_v18 }
  0x4e   :  { %v10762_v21 = vcombine.high %v407_v15, %v423_v16  ;;  %v439_v23 = vld [vmem:[#allocation5 + $0xb00] sm:$0xff]  ;;  %v456_v26 = vld [vmem:[#allocation5 + $0xb88] sm:$0xff]  ;;  %v10761_v27 = vcombine.low %v407_v15, %v423_v16 }
  0x4f   :  { %v455_v24 = vld [vmem:[#allocation5 + $0xb80] sm:$0xff]  ;;  %v10796_v30 = vcombine.high %v440_v25, %v456_v26  ;;  %v472_v33 = vld [vmem:[#allocation5 + $0xc08] sm:$0xff]  ;;  %v10795_v36 = vcombine.low %v440_v25, %v456_v26 }
  0x50   :  { %5002 = vmatpush1.bf16.msra.mxu0 %v10601_v50  ;;  %5228 = vmatpush1.bf16.msra.mxu1 %v10603_v51  ;;  %v10794_v29 = vcombine.high %v439_v23, %v455_v24  ;;  %v471_v31 = vld [vmem:[#allocation5 + $0xc00] sm:$0xff]  ;;  %v488_v34 = vld [vmem:[#allocation5 + $0xc88] sm:$0xff]  ;;  %v10793_v35 = vcombine.low %v439_v23, %v455_v24 }
  0x51   :  { %5003 = vmatprep.subr.bf16.mxu0 %v10634_v52  ;;  %5229 = vmatprep.subr.bf16.mxu1 %v10636_v53  ;;  %v487_v32 = vld [vmem:[#allocation5 + $0xc80] sm:$0xff]  ;;  %v10828_v39 = vcombine.high %v472_v33, %v488_v34  ;;  %v504_v41 = vld [vmem:[#allocation5 + $0xd08] sm:$0xff]  ;;  %v10827_v44 = vcombine.low %v472_v33, %v488_v34 }
  0x52   :  { %v10826_v37 = vcombine.high %v471_v31, %v487_v32  ;;  %v503_v38 = vld [vmem:[#allocation5 + $0xd00] sm:$0xff]  ;;  %v520_v42 = vld [vmem:[#allocation5 + $0xd88] sm:$0xff]  ;;  %v10825_v43 = vcombine.low %v471_v31, %v487_v32 }
  0x53   :  { %v519_v40 = vld [vmem:[#allocation5 + $0xd80] sm:$0xff]  ;;  %v10860_v47 = vcombine.high %v504_v41, %v520_v42  ;;  %v536_v49 = vld [vmem:[#allocation5 + $0xe08] sm:$0xff]  ;;  %v10859_v52 = vcombine.low %v504_v41, %v520_v42  ;;  %v13104_v42 = vld [vmem:[#allocation2 + $0x30] ss:$12 sps:$4 sm:$0xff]  }
  0x54   :  { %5004 = vmatpush1.bf16.msra.mxu0 %v10633_v59  ;;  %5230 = vmatpush1.bf16.msra.mxu1 %v10635_v60  ;;  %v10858_v45 = vcombine.high %v503_v38, %v519_v40  ;;  %v535_v46 = vld [vmem:[#allocation5 + $0xe00] sm:$0xff]  ;;  %v552_v50 = vld [vmem:[#allocation5 + $0xe88] sm:$0xff]  ;;  %v10857_v51 = vcombine.low %v503_v38, %v519_v40 }
  0x55   :  { %5005 = vmatprep.subr.bf16.mxu0 %v10666_v61  ;;  %5231 = vmatprep.subr.bf16.mxu1 %v10668_v62  ;;  %v551_v48 = vld [vmem:[#allocation5 + $0xe80] sm:$0xff]  ;;  %v10892_v54 = vcombine.high %v536_v49, %v552_v50  ;;  %v568_v57 = vld [vmem:[#allocation5 + $0xf08] sm:$0xff]  ;;  %v10891_v60 = vcombine.low %v536_v49, %v552_v50 }
  0x56   :  { %v10890_v53 = vcombine.high %v535_v46, %v551_v48  ;;  %v567_v55 = vld [vmem:[#allocation5 + $0xf00] sm:$0xff]  ;;  %v584_v58 = vld [vmem:[#allocation5 + $0xf88] sm:$0xff]  ;;  %v10889_v59 = vcombine.low %v535_v46, %v551_v48 }
  0x57   :  { %v583_v56 = vld [vmem:[#allocation5 + $0xf80] sm:$0xff]  ;;  %v10924_v62 = vcombine.high %v568_v57, %v584_v58  ;;  %v600_v1 = vld [vmem:[#allocation5 + $0x1008] sm:$0xff] }
  0x58   :  { %5006 = vmatpush1.bf16.msra.mxu0 %v10665_v3  ;;  %5232 = vmatpush1.bf16.msra.mxu1 %v10667_v4  ;;  %v10922_v61 = vcombine.high %v567_v55, %v583_v56  ;;  %v599_v63 = vld [vmem:[#allocation5 + $0x1000] sm:$0xff]  ;;  %v616_v2 = vld [vmem:[#allocation5 + $0x1088] sm:$0xff]  ;;  %v10921_v3 = vcombine.low %v567_v55, %v583_v56  ;;  %v10923_v4 = vcombine.low %v568_v57, %v584_v58 }
  0x59   :  { %5007 = vmatprep.subr.bf16.mxu0 %v10698_v5  ;;  %5233 = vmatprep.subr.bf16.mxu1 %v10700_v6  ;;  %v615_v0 = vld [vmem:[#allocation5 + $0x1080] sm:$0xff]  ;;  %v10956_v6 = vcombine.high %v600_v1, %v616_v2  ;;  %v744_v38 = vld [vmem:[#allocation5 + $0x1488] sm:$0xff] }
  0x5a   :  { %v10954_v5 = vcombine.high %v599_v63, %v615_v0  ;;  %v13088_v7 = vld [vmem:[#allocation2] ss:$12 sps:$4 sm:$0xff]   ;;  %v10953_v10 = vcombine.low %v599_v63, %v615_v0  ;;  %v13096_v25 = vld [vmem:[#allocation2 + $0x18] ss:$12 sps:$4 sm:$0xff]  }
  0x5b   :  { %v631_v8 = vld [vmem:[#allocation5 + $0x1100] sm:$0xff]  ;;  %v13106_v46 = vld [vmem:[#allocation2 + $0x4c] ss:$12 sps:$4 sm:$0xff]  }
  0x5c   :  { %5008 = vmatpush1.bf16.msra.mxu0 %v10697_v11  ;;  %5234 = vmatpush1.bf16.msra.mxu1 %v10699_v12  ;;  %v647_v9 = vld [vmem:[#allocation5 + $0x1180] sm:$0xff]  ;;  %v632_v11 = vld [vmem:[#allocation5 + $0x1108] sm:$0xff] }
  0x5d   :  { %5009 = vmatprep.subr.bf16.mxu0 %v10730_v13  ;;  %5235 = vmatprep.subr.bf16.mxu1 %v10732_v14  ;;  %v648_v12 = vld [vmem:[#allocation5 + $0x1188] sm:$0xff]  ;;  %v10955_v13 = vcombine.low %v600_v1, %v616_v2  ;;  %v10986_v15 = vcombine.high %v631_v8, %v647_v9  ;;  %v663_v16 = vld [vmem:[#allocation5 + $0x1200] sm:$0xff] }
  0x5e   :  { %v13090_v14 = vld [vmem:[#allocation2 + $0x1c] ss:$12 sps:$4 sm:$0xff]   ;;  %v679_v17 = vld [vmem:[#allocation5 + $0x1280] sm:$0xff]  ;;  %v10988_v18 = vcombine.high %v632_v11, %v648_v12 }
  0x5f   :  { %v11018_v23 = vcombine.high %v663_v16, %v679_v17  ;;  %v695_v26 = vld [vmem:[#allocation5 + $0x1300] sm:$0xff]  ;;  %v11017_v31 = vcombine.low %v663_v16, %v679_v17  ;;  %v776_v48 = vld [vmem:[#allocation5 + $0x1588] sm:$0xff] }
  0x60   :  { %5010 = vmatpush1.bf16.msra.mxu0 %v10729_v19  ;;  %5236 = vmatpush1.bf16.msra.mxu1 %v10731_v20  ;;  %v664_v19 = vld [vmem:[#allocation5 + $0x1208] sm:$0xff]  ;;  %v839_v63 = vld [vmem:[#allocation5 + $0x1780] sm:$0xff] }
  0x61   :  { %5011 = vmatprep.subr.bf16.mxu0 %v10762_v21  ;;  %5237 = vmatprep.subr.bf16.mxu1 %v10764_v22  ;;  %v680_v20 = vld [vmem:[#allocation5 + $0x1288] sm:$0xff]  ;;  %v10985_v21 = vcombine.low %v631_v8, %v647_v9  ;;  %v10987_v22 = vcombine.low %v632_v11, %v648_v12  ;;  %v13114_v0 = vld [vmem:[#allocation2 + $0x64] ss:$12 sps:$4 sm:$0xff]   ;;  %v106_v11 = vld [vmem:[#allocation5 + $0x98] sm:$0xff] }
  0x62   :  { %v11020_v24 = vcombine.high %v664_v19, %v680_v20  ;;  %v11019_v32 = vcombine.low %v664_v19, %v680_v20  ;;  %v792_v55 = vld [vmem:[#allocation5 + $0x1608] sm:$0xff]  ;;  %v89_v8 = vld [vmem:[#allocation5 + $0x10] sm:$0xff]  ;;  %v13128_v19 = vld [vmem:[#allocation2 + $0x78] ss:$12 sps:$4 sm:$0xff]  }
  0x63   :  { %v808_v56 = vld [vmem:[#allocation5 + $0x1688] sm:$0xff]  ;;  %v105_v9 = vld [vmem:[#allocation5 + $0x90] sm:$0xff] }
  0x64   :  { %5012 = vmatpush1.bf16.msra.mxu0 %v10761_v27  ;;  %5238 = vmatpush1.bf16.msra.mxu1 %v10763_v28  ;;  %v711_v27 = vld [vmem:[#allocation5 + $0x1380] sm:$0xff]  ;;  %v824_v1 = vld [vmem:[#allocation5 + $0x1708] sm:$0xff] }
  0x65   :  { %5013 = vmatprep.subr.bf16.mxu0 %v10794_v29  ;;  %5239 = vmatprep.subr.bf16.mxu1 %v10796_v30  ;;  %v13098_v28 = vld [vmem:[#allocation2 + $0x34] ss:$12 sps:$4 sm:$0xff]   ;;  %v696_v29 = vld [vmem:[#allocation5 + $0x1308] sm:$0xff]  ;;  %v11050_v33 = vcombine.high %v695_v26, %v711_v27 }
  0x66   :  { %v712_v30 = vld [vmem:[#allocation5 + $0x1388] sm:$0xff]  ;;  %v13130_v20 = vld [vmem:[#allocation2 + $0x94] ss:$12 sps:$4 sm:$0xff]  }
  0x67   :  { %v11052_v34 = vcombine.high %v696_v29, %v712_v30  ;;  %v11051_v40 = vcombine.low %v696_v29, %v712_v30  ;;  %v840_v2 = vld [vmem:[#allocation5 + $0x1788] sm:$0xff]  ;;  %v122_v30 = vld [vmem:[#allocation5 + $0x118] sm:$0xff] }
  0x68   :  { %5014 = vmatpush1.bf16.msra.mxu0 %v10793_v35  ;;  %5240 = vmatpush1.bf16.msra.mxu1 %v10795_v36  ;;  %v727_v35 = vld [vmem:[#allocation5 + $0x1400] sm:$0xff]  ;;  %v13150_v29 = vld [vmem:[#allocation2 + $0x8] ss:$12 sps:$4 sm:$0xff]  }
  0x69   :  { %5015 = vmatprep.subr.bf16.mxu0 %v10826_v37  ;;  %5241 = vmatprep.subr.bf16.mxu1 %v10828_v39  ;;  %v743_v36 = vld [vmem:[#allocation5 + $0x1480] sm:$0xff]  ;;  %v728_v37 = vld [vmem:[#allocation5 + $0x1408] sm:$0xff]  ;;  %v11049_v39 = vcombine.low %v695_v26, %v711_v27  ;;  %v121_v26 = vld [vmem:[#allocation5 + $0x110] sm:$0xff] }
  0x6a   :  { %v11082_v41 = vcombine.high %v727_v35, %v743_v36  ;;  %v11081_v49 = vcombine.low %v727_v35, %v743_v36  ;;  %v11083_v50 = vcombine.low %v728_v37, %v744_v38  ;;  %v13120_v16 = vld [vmem:[#allocation2 + $0x60] ss:$12 sps:$4 sm:$0xff]   ;;  %v137_v27 = vld [vmem:[#allocation5 + $0x190] sm:$0xff] }
  0x6b   :  { %v153_v36 = vld [vmem:[#allocation5 + $0x210] sm:$0xff] }
  0x6c   :  { %5016 = vmatpush1.bf16.msra.mxu0 %v10825_v43  ;;  %5242 = vmatpush1.bf16.msra.mxu1 %v10827_v44  ;;  %v11084_v43 = vcombine.high %v728_v37, %v744_v38  ;;  %v759_v44 = vld [vmem:[#allocation5 + $0x1500] sm:$0xff]  ;;  %v169_v37 = vld [vmem:[#allocation5 + $0x290] sm:$0xff]  ;;  %v154_v38 = vld [vmem:[#allocation5 + $0x218] sm:$0xff] }
  0x6d   :  { %5017 = vmatprep.subr.bf16.mxu0 %v10858_v45  ;;  %5243 = vmatprep.subr.bf16.mxu1 %v10860_v47  ;;  %v775_v45 = vld [vmem:[#allocation5 + $0x1580] sm:$0xff]  ;;  %v760_v47 = vld [vmem:[#allocation5 + $0x1508] sm:$0xff] }
  0x6e   :  { %v11113_v57 = vcombine.low %v759_v44, %v775_v45  ;;  %v11115_v58 = vcombine.low %v760_v47, %v776_v48 }
  0x70   :  { %5018 = vmatpush1.bf16.msra.mxu0 %v10857_v51  ;;  %5244 = vmatpush1.bf16.msra.mxu1 %v10859_v52  ;;  %v11114_v51 = vcombine.high %v759_v44, %v775_v45  ;;  %v11116_v52 = vcombine.high %v760_v47, %v776_v48  ;;  %v185_v45 = vld [vmem:[#allocation5 + $0x310] sm:$0xff]  ;;  %v13156_v48 = vld [vmem:[#allocation2 + $0x20] ss:$12 sps:$4 sm:$0xff]  }
  0x71   :  { %5019 = vmatprep.subr.bf16.mxu0 %v10890_v53  ;;  %5245 = vmatprep.subr.bf16.mxu1 %v10892_v54  ;;  %v791_v53 = vld [vmem:[#allocation5 + $0x1600] sm:$0xff]  ;;  %v201_v47 = vld [vmem:[#allocation5 + $0x390] sm:$0xff] }
  0x72   :  { %v807_v54 = vld [vmem:[#allocation5 + $0x1680] sm:$0xff] }
  0x74   :  { %5020 = vmatpush1.bf16.msra.mxu0 %v10889_v59  ;;  %5246 = vmatpush1.bf16.msra.mxu1 %v10891_v60  ;;  %v11146_v59 = vcombine.high %v791_v53, %v807_v54  ;;  %v13112_v60 = vld [vmem:[#allocation2 + $0x48] ss:$12 sps:$4 sm:$0xff]  }
  0x75   :  { %5021 = vmatprep.subr.bf16.mxu0 %v10922_v61  ;;  %5247 = vmatprep.subr.bf16.mxu1 %v10924_v62  ;;  %v11148_v61 = vcombine.high %v792_v55, %v808_v56  ;;  %v823_v62 = vld [vmem:[#allocation5 + $0x1700] sm:$0xff] }
  0x76   :  { %v11177_v12 = vcombine.low %v823_v62, %v839_v63 }
  0x78   :  { %5022 = vmatpush1.bf16.msra.mxu0 %v10921_v3  ;;  %5248 = vmatpush1.bf16.msra.mxu1 %v10923_v4  ;;  %v11145_v3 = vcombine.low %v791_v53, %v807_v54  ;;  %v11147_v4 = vcombine.low %v792_v55, %v808_v56  ;;  %v10542_v53 = vcombine.high %v185_v45, %v201_v47  ;;  %v217_v55 = vld [vmem:[#allocation5 + $0x410] sm:$0xff] }
  0x79   :  { %5104 = vmatprep.subr.bf16.mxu0 %v10954_v5  ;;  %5330 = vmatprep.subr.bf16.mxu1 %v10956_v6  ;;  %v11178_v5 = vcombine.high %v823_v62, %v839_v63  ;;  %v11180_v6 = vcombine.high %v824_v1, %v840_v2  ;;  %v233_v56 = vld [vmem:[#allocation5 + $0x490] sm:$0xff] }
  0x7a   :  { %v10574_v62 = vcombine.high %v217_v55, %v233_v56 }
  0x7b   :  { %5024 = vmatmul.mubr.bf16.vlgmr.msra.gmra.mrb[0].mxu0 %v13088_v7  ;;  %5250 = vmatmul.mubr.bf16.vlgmr.msra.gmra.mrb[0].mxu1 %v13088_v7 }
  0x7c   :  { %5105 = vmatpush1.bf16.msra.mxu0 %v10953_v10  ;;  %5331 = vmatpush1.bf16.msra.mxu1 %v10955_v13  ;;  %v90_v10 = vld [vmem:[#allocation5 + $0x18] sm:$0xff]  ;;  %v11179_v13 = vcombine.low %v824_v1, %v840_v2  ;;  %v249_v1 = vld [vmem:[#allocation5 + $0x510] sm:$0xff] }
  0x7d   :  { %5033 = vmatprep.mubr.bf16.mxu0 %v13090_v14  ;;  %5259 = vmatprep.mubr.bf16.mxu1 %v13090_v14  ;;  %v10448_v17 = vcombine.high %v90_v10, %v106_v11  ;;  %v265_v2 = vld [vmem:[#allocation5 + $0x590] sm:$0xff] }
  0x7e   :  { %5106 = vmatprep.subr.bf16.mxu0 %v10986_v15  ;;  %5332 = vmatprep.subr.bf16.mxu1 %v10988_v18  ;;  %v10446_v15 = vcombine.high %v89_v8, %v105_v9  ;;  %v13122_v18 = vld [vmem:[#allocation2 + $0x7c] ss:$12 sps:$4 sm:$0xff]  }
  0x80   :  { %5107 = vmatpush1.bf16.msra.mxu0 %v10985_v21  ;;  %5333 = vmatpush1.bf16.msra.mxu1 %v10987_v22  ;;  %v13136_v21 = vld [vmem:[#allocation2 + $0x90] ss:$12 sps:$4 sm:$0xff]   ;;  %v13138_v22 = vld [vmem:[#allocation2 + $0xac] ss:$12 sps:$4 sm:$0xff]  }
  0x81   :  { %5108 = vmatprep.subr.bf16.mxu0 %v11018_v23  ;;  %5334 = vmatprep.subr.bf16.mxu1 %v11020_v24  ;;  %v13144_v23 = vld [vmem:[#allocation2 + $0xa8] ss:$12 sps:$4 sm:$0xff]   ;;  %v13027_v24 = vmov 0  }
  0x83   :  { %5034 = vmatmul.mubr.bf16.gmra.mrb[4].mxu0 %v13096_v25  ;;  %5260 = vmatmul.mubr.bf16.gmra.mrb[4].mxu1 %v13096_v25 }
  0x84   :  { %5043 = vmatprep.mubr.bf16.mxu0 %v13098_v28  ;;  %5269 = vmatprep.mubr.bf16.mxu1 %v13098_v28 }
  0x85   :  { %5109 = vmatpush1.bf16.msra.mxu0 %v11017_v31  ;;  %5335 = vmatpush1.bf16.msra.mxu1 %v11019_v32  ;;  %v138_v31 = vld [vmem:[#allocation5 + $0x198] sm:$0xff]  ;;  %v10445_v32 = vcombine.low %v89_v8, %v105_v9  ;;  %v10606_v9 = vcombine.high %v249_v1, %v265_v2 }
  0x86   :  { %5110 = vmatprep.subr.bf16.mxu0 %v11050_v33  ;;  %5336 = vmatprep.subr.bf16.mxu1 %v11052_v34  ;;  %v10447_v33 = vcombine.low %v90_v10, %v106_v11  ;;  %v10478_v34 = vcombine.high %v121_v26, %v137_v27  ;;  %v10480_v35 = vcombine.high %v122_v30, %v138_v31  ;;  %v281_v11 = vld [vmem:[#allocation5 + $0x610] sm:$0xff] }
  0x89   :  { %5111 = vmatpush1.bf16.msra.mxu0 %v11049_v39  ;;  %5337 = vmatpush1.bf16.msra.mxu1 %v11051_v40  ;;  %v170_v39 = vld [vmem:[#allocation5 + $0x298] sm:$0xff]  ;;  %v10477_v40 = vcombine.low %v121_v26, %v137_v27 }
  0x8a   :  { %5112 = vmatprep.subr.bf16.mxu0 %v11082_v41  ;;  %5338 = vmatprep.subr.bf16.mxu1 %v11084_v43  ;;  %v10479_v41 = vcombine.low %v122_v30, %v138_v31  ;;  %v10510_v43 = vcombine.high %v153_v36, %v169_v37  ;;  %v10512_v44 = vcombine.high %v154_v38, %v170_v39  ;;  %v313_v31 = vld [vmem:[#allocation5 + $0x710] sm:$0xff] }
  0x8b   :  { %5044 = vmatmul.mubr.bf16.gmra.mrb[8].mxu0 %v13104_v42  ;;  %5270 = vmatmul.mubr.bf16.gmra.mrb[8].mxu1 %v13104_v42 }
  0x8c   :  { %5053 = vmatprep.mubr.bf16.mxu0 %v13106_v46  ;;  %5279 = vmatprep.mubr.bf16.mxu1 %v13106_v46 }
  0x8d   :  { %5113 = vmatpush1.bf16.msra.mxu0 %v11081_v49  ;;  %5339 = vmatpush1.bf16.msra.mxu1 %v11083_v50  ;;  %v186_v49 = vld [vmem:[#allocation5 + $0x318] sm:$0xff] }
  0x8e   :  { %5114 = vmatprep.subr.bf16.mxu0 %v11114_v51  ;;  %5340 = vmatprep.subr.bf16.mxu1 %v11116_v52  ;;  %v202_v50 = vld [vmem:[#allocation5 + $0x398] sm:$0xff]  ;;  %v10509_v51 = vcombine.low %v153_v36, %v169_v37  ;;  %v10511_v52 = vcombine.low %v154_v38, %v170_v39 }
  0x8f   :  { %v10544_v54 = vcombine.high %v186_v49, %v202_v50 }
  0x91   :  { %5115 = vmatpush1.bf16.msra.mxu0 %v11113_v57  ;;  %5341 = vmatpush1.bf16.msra.mxu1 %v11115_v58  ;;  %v218_v57 = vld [vmem:[#allocation5 + $0x418] sm:$0xff] }
  0x92   :  { %5116 = vmatprep.subr.bf16.mxu0 %v11146_v59  ;;  %5342 = vmatprep.subr.bf16.mxu1 %v11148_v61  ;;  %v234_v58 = vld [vmem:[#allocation5 + $0x498] sm:$0xff]  ;;  %v10541_v59 = vcombine.low %v185_v45, %v201_v47  ;;  %v10543_v61 = vcombine.low %v186_v49, %v202_v50 }
  0x93   :  { %5054 = vmatmul.mubr.bf16.gmra.mrb[12].mxu0 %v13112_v60  ;;  %5280 = vmatmul.mubr.bf16.gmra.mrb[12].mxu1 %v13112_v60  ;;  %v10576_v63 = vcombine.high %v218_v57, %v234_v58  ;;  %v10575_v8 = vcombine.low %v218_v57, %v234_v58 }
  0x94   :  { %5063 = vmatprep.mubr.bf16.mxu0 %v13114_v0  ;;  %5289 = vmatprep.mubr.bf16.mxu1 %v13114_v0 }
  0x95   :  { %5117 = vmatpush1.bf16.msra.mxu0 %v11145_v3  ;;  %5343 = vmatpush1.bf16.msra.mxu1 %v11147_v4  ;;  %v13162_v3 = vld [vmem:[#allocation2 + $0x38] ss:$12 sps:$4 sm:$0xff]  }
  0x96   :  { %5118 = vmatprep.subr.bf16.mxu0 %v11178_v5  ;;  %5344 = vmatprep.subr.bf16.mxu1 %v11180_v6  ;;  %v250_v4 = vld [vmem:[#allocation5 + $0x518] sm:$0xff]  ;;  %v10573_v6 = vcombine.low %v217_v55, %v233_v56 }
  0x97   :  { %v266_v5 = vld [vmem:[#allocation5 + $0x598] sm:$0xff] }
  0x98   :  { %v10608_v10 = vcombine.high %v250_v4, %v266_v5  ;;  %v10607_v26 = vcombine.low %v250_v4, %v266_v5  ;;  %v394_v55 = vld [vmem:[#allocation5 + $0x998] sm:$0xff] }
  0x99   :  { %5119 = vmatpush1.bf16.msra.mxu0 %v11177_v12  ;;  %5345 = vmatpush1.bf16.msra.mxu1 %v11179_v13  ;;  %v297_v12 = vld [vmem:[#allocation5 + $0x690] sm:$0xff]  ;;  %v282_v13 = vld [vmem:[#allocation5 + $0x618] sm:$0xff] }
  0x9a   :  { %5443 = vmatprep.subr.bf16.mxu0 %v10446_v15  ;;  %5669 = vmatprep.subr.bf16.mxu1 %v10448_v17  ;;  %v298_v15 = vld [vmem:[#allocation5 + $0x698] sm:$0xff]  ;;  %v10605_v17 = vcombine.low %v249_v1, %v265_v2  ;;  %v10638_v27 = vcombine.high %v281_v11, %v297_v12  ;;  %v10637_v36 = vcombine.low %v281_v11, %v297_v12 }
  0x9b   :  { %5064 = vmatmul.mubr.bf16.gmra.mrb[16].mxu0 %v13120_v16  ;;  %5290 = vmatmul.mubr.bf16.gmra.mrb[16].mxu1 %v13120_v16  ;;  %v10640_v30 = vcombine.high %v282_v13, %v298_v15  ;;  %v10639_v37 = vcombine.low %v282_v13, %v298_v15  ;;  %v426_v1 = vld [vmem:[#allocation5 + $0xa98] sm:$0xff] }
  0x9c   :  { %5073 = vmatprep.mubr.bf16.mxu0 %v13122_v18  ;;  %5299 = vmatprep.mubr.bf16.mxu1 %v13122_v18  ;;  %v442_v11 = vld [vmem:[#allocation5 + $0xb18] sm:$0xff] }
  0x9d   :  { %v458_v12 = vld [vmem:[#allocation5 + $0xb98] sm:$0xff] }
  0xa3   :  { %5074 = vmatmul.mubr.bf16.gmra.mrb[20].mxu0 %v13128_v19  ;;  %5300 = vmatmul.mubr.bf16.gmra.mrb[20].mxu1 %v13128_v19 }
  0xa4   :  { %5083 = vmatprep.mubr.bf16.mxu0 %v13130_v20  ;;  %5309 = vmatprep.mubr.bf16.mxu1 %v13130_v20 }
  0xab   :  { %5084 = vmatmul.mubr.bf16.gmra.mrb[24].mxu0 %v13136_v21  ;;  %5310 = vmatmul.mubr.bf16.gmra.mrb[24].mxu1 %v13136_v21 }
  0xac   :  { %5093 = vmatprep.mubr.bf16.mxu0 %v13138_v22  ;;  %5319 = vmatprep.mubr.bf16.mxu1 %v13138_v22 }
  0xb3   :  { %5094 = vmatmul.mubr.bf16.gmra.mrb[28].mxu0 %v13144_v23  ;;  %5320 = vmatmul.mubr.bf16.gmra.mrb[28].mxu1 %v13144_v23 }
  0xb4   :  { %5136 = vmatprep.mubr.bf16.mxu0 %v13027_v24  ;;  %5362 = vmatprep.mubr.bf16.mxu1 %v13027_v24 }
  0xbb   :  { %5137 = vmatmul.mubr.bf16.vlgmr.msra.gmra.mrb[0].mxu0 %v13150_v29  ;;  %5363 = vmatmul.mubr.bf16.vlgmr.msra.gmra.mrb[0].mxu1 %v13150_v29 }
  0xbc   :  { %5444 = vmatpush1.bf16.msra.mxu0 %v10445_v32  ;;  %5670 = vmatpush1.bf16.msra.mxu1 %v10447_v33  ;;  %v329_v32 = vld [vmem:[#allocation5 + $0x790] sm:$0xff] }
  0xbd   :  { %5445 = vmatprep.subr.bf16.mxu0 %v10478_v34  ;;  %5671 = vmatprep.subr.bf16.mxu1 %v10480_v35  ;;  %v13168_v33 = vld [vmem:[#allocation2 + $0x50] ss:$12 sps:$4 sm:$0xff]   ;;  %v10670_v38 = vcombine.high %v313_v31, %v329_v32  ;;  %v10669_v45 = vcombine.low %v313_v31, %v329_v32 }
  0xbe   :  { %5146 = vmatprep.mubr.bf16.mxu0 %v13027_v24  ;;  %5372 = vmatprep.mubr.bf16.mxu1 %v13027_v24  ;;  %v314_v34 = vld [vmem:[#allocation5 + $0x718] sm:$0xff] }
  0xbf   :  { %v330_v35 = vld [vmem:[#allocation5 + $0x798] sm:$0xff] }
  0xc0   :  { %5446 = vmatpush1.bf16.msra.mxu0 %v10477_v40  ;;  %5672 = vmatpush1.bf16.msra.mxu1 %v10479_v41  ;;  %v10672_v39 = vcombine.high %v314_v34, %v330_v35  ;;  %v345_v40 = vld [vmem:[#allocation5 + $0x810] sm:$0xff]  ;;  %v10671_v47 = vcombine.low %v314_v34, %v330_v35  ;;  %v474_v31 = vld [vmem:[#allocation5 + $0xc18] sm:$0xff]  ;;  %v10799_v35 = vcombine.low %v442_v11, %v458_v12 }
  0xc1   :  { %5447 = vmatprep.subr.bf16.mxu0 %v10510_v43  ;;  %5673 = vmatprep.subr.bf16.mxu1 %v10512_v44  ;;  %v361_v41 = vld [vmem:[#allocation5 + $0x890] sm:$0xff]  ;;  %v346_v43 = vld [vmem:[#allocation5 + $0x818] sm:$0xff] }
  0xc2   :  { %v362_v44 = vld [vmem:[#allocation5 + $0x898] sm:$0xff]  ;;  %v10702_v49 = vcombine.high %v345_v40, %v361_v41  ;;  %v10701_v56 = vcombine.low %v345_v40, %v361_v41 }
  0xc3   :  { %5147 = vmatmul.mubr.bf16.gmra.mrb[4].mxu0 %v13156_v48  ;;  %5373 = vmatmul.mubr.bf16.gmra.mrb[4].mxu1 %v13156_v48  ;;  %v10704_v50 = vcombine.high %v346_v43, %v362_v44  ;;  %v10703_v57 = vcombine.low %v346_v43, %v362_v44  ;;  %v490_v32 = vld [vmem:[#allocation5 + $0xc98] sm:$0xff] }
  0xc4   :  { %5448 = vmatpush1.bf16.msra.mxu0 %v10509_v51  ;;  %5674 = vmatpush1.bf16.msra.mxu1 %v10511_v52  ;;  %v377_v51 = vld [vmem:[#allocation5 + $0x910] sm:$0xff]  ;;  %v13186_v40 = vld [vmem:[#allocation2 + $0x98] ss:$12 sps:$4 sm:$0xff]  }
  0xc5   :  { %5449 = vmatprep.subr.bf16.mxu0 %v10542_v53  ;;  %5675 = vmatprep.subr.bf16.mxu1 %v10544_v54  ;;  %v393_v52 = vld [vmem:[#allocation5 + $0x990] sm:$0xff]  ;;  %v378_v54 = vld [vmem:[#allocation5 + $0x918] sm:$0xff] }
  0xc6   :  { %5156 = vmatprep.mubr.bf16.mxu0 %v13027_v24  ;;  %5382 = vmatprep.mubr.bf16.mxu1 %v13027_v24  ;;  %v13174_v53 = vld [vmem:[#allocation2 + $0x68] ss:$12 sps:$4 sm:$0xff]   ;;  %v10734_v58 = vcombine.high %v377_v51, %v393_v52  ;;  %v10733_v2 = vcombine.low %v377_v51, %v393_v52  ;;  %v10735_v4 = vcombine.low %v378_v54, %v394_v55  ;;  %v506_v41 = vld [vmem:[#allocation5 + $0xd18] sm:$0xff] }
  0xc7   :  { %v522_v43 = vld [vmem:[#allocation5 + $0xd98] sm:$0xff]  ;;  %v553_v51 = vld [vmem:[#allocation5 + $0xe90] sm:$0xff] }
  0xc8   :  { %5450 = vmatpush1.bf16.msra.mxu0 %v10541_v59  ;;  %5676 = vmatpush1.bf16.msra.mxu1 %v10543_v61  ;;  %v10736_v59 = vcombine.high %v378_v54, %v394_v55  ;;  %v409_v61 = vld [vmem:[#allocation5 + $0xa10] sm:$0xff]  ;;  %v538_v52 = vld [vmem:[#allocation5 + $0xe18] sm:$0xff] }
  0xc9   :  { %5451 = vmatprep.subr.bf16.mxu0 %v10574_v62  ;;  %5677 = vmatprep.subr.bf16.mxu1 %v10576_v63  ;;  %v425_v62 = vld [vmem:[#allocation5 + $0xa90] sm:$0xff]  ;;  %v410_v63 = vld [vmem:[#allocation5 + $0xa18] sm:$0xff] }
  0xca   :  { %v10766_v5 = vcombine.high %v409_v61, %v425_v62  ;;  %v10765_v13 = vcombine.low %v409_v61, %v425_v62  ;;  %v10767_v15 = vcombine.low %v410_v63, %v426_v1  ;;  %v554_v54 = vld [vmem:[#allocation5 + $0xe98] sm:$0xff]  ;;  %v585_v61 = vld [vmem:[#allocation5 + $0xf90] sm:$0xff] }
  0xcb   :  { %5157 = vmatmul.mubr.bf16.gmra.mrb[8].mxu0 %v13162_v3  ;;  %5383 = vmatmul.mubr.bf16.gmra.mrb[8].mxu1 %v13162_v3  ;;  %v13192_v62 = vld [vmem:[#allocation2 + $0xb0] ss:$12 sps:$4 sm:$0xff]  }
  0xcc   :  { %5452 = vmatpush1.bf16.msra.mxu0 %v10573_v6  ;;  %5678 = vmatpush1.bf16.msra.mxu1 %v10575_v8  ;;  %v10768_v6 = vcombine.high %v410_v63, %v426_v1  ;;  %v441_v8 = vld [vmem:[#allocation5 + $0xb10] sm:$0xff]  ;;  %v570_v63 = vld [vmem:[#allocation5 + $0xf18] sm:$0xff] }
  0xcd   :  { %5453 = vmatprep.subr.bf16.mxu0 %v10606_v9  ;;  %5679 = vmatprep.subr.bf16.mxu1 %v10608_v10  ;;  %v457_v9 = vld [vmem:[#allocation5 + $0xb90] sm:$0xff]  ;;  %v13180_v10 = vld [vmem:[#allocation2 + $0x80] ss:$12 sps:$4 sm:$0xff]   ;;  %v586_v1 = vld [vmem:[#allocation5 + $0xf98] sm:$0xff] }
  0xce   :  { %5166 = vmatprep.mubr.bf16.mxu0 %v13027_v24  ;;  %5392 = vmatprep.mubr.bf16.mxu1 %v13027_v24  ;;  %v10797_v34 = vcombine.low %v441_v8, %v457_v9 }
  0xd0   :  { %5454 = vmatpush1.bf16.msra.mxu0 %v10605_v17  ;;  %5680 = vmatpush1.bf16.msra.mxu1 %v10607_v26  ;;  %v10798_v17 = vcombine.high %v441_v8, %v457_v9  ;;  %v10800_v26 = vcombine.high %v442_v11, %v458_v12  ;;  %v601_v8 = vld [vmem:[#allocation5 + $0x1010] sm:$0xff]  ;;  %v602_v11 = vld [vmem:[#allocation5 + $0x1018] sm:$0xff] }
  0xd1   :  { %5455 = vmatprep.subr.bf16.mxu0 %v10638_v27  ;;  %5681 = vmatprep.subr.bf16.mxu1 %v10640_v30  ;;  %v473_v27 = vld [vmem:[#allocation5 + $0xc10] sm:$0xff]  ;;  %v618_v12 = vld [vmem:[#allocation5 + $0x1098] sm:$0xff] }
  0xd2   :  { %v489_v30 = vld [vmem:[#allocation5 + $0xc90] sm:$0xff] }
  0xd3   :  { %5167 = vmatmul.mubr.bf16.gmra.mrb[12].mxu0 %v13168_v33  ;;  %5393 = vmatmul.mubr.bf16.gmra.mrb[12].mxu1 %v13168_v33  ;;  %v10829_v44 = vcombine.low %v473_v27, %v489_v30  ;;  %v617_v9 = vld [vmem:[#allocation5 + $0x1090] sm:$0xff] }
  0xd4   :  { %5456 = vmatpush1.bf16.msra.mxu0 %v10637_v36  ;;  %5682 = vmatpush1.bf16.msra.mxu1 %v10639_v37  ;;  %v10830_v36 = vcombine.high %v473_v27, %v489_v30  ;;  %v10832_v37 = vcombine.high %v474_v31, %v490_v32  ;;  %v10960_v27 = vcombine.high %v602_v11, %v618_v12  ;;  %v633_v30 = vld [vmem:[#allocation5 + $0x1110] sm:$0xff] }
  0xd5   :  { %5457 = vmatprep.subr.bf16.mxu0 %v10670_v38  ;;  %5683 = vmatprep.subr.bf16.mxu1 %v10672_v39  ;;  %v505_v38 = vld [vmem:[#allocation5 + $0xd10] sm:$0xff] }
  0xd6   :  { %5176 = vmatprep.mubr.bf16.mxu0 %v13027_v24  ;;  %5402 = vmatprep.mubr.bf16.mxu1 %v13027_v24  ;;  %v521_v39 = vld [vmem:[#allocation5 + $0xd90] sm:$0xff] }
  0xd7   :  { %v10861_v55 = vcombine.low %v505_v38, %v521_v39 }
  0xd8   :  { %5458 = vmatpush1.bf16.msra.mxu0 %v10669_v45  ;;  %5684 = vmatpush1.bf16.msra.mxu1 %v10671_v47  ;;  %v10831_v45 = vcombine.low %v474_v31, %v490_v32  ;;  %v10862_v47 = vcombine.high %v505_v38, %v521_v39  ;;  %v649_v31 = vld [vmem:[#allocation5 + $0x1190] sm:$0xff]  ;;  %v10957_v32 = vcombine.low %v601_v8, %v617_v9 }
  0xd9   :  { %5459 = vmatprep.subr.bf16.mxu0 %v10702_v49  ;;  %5685 = vmatprep.subr.bf16.mxu1 %v10704_v50  ;;  %v10864_v49 = vcombine.high %v506_v41, %v522_v43  ;;  %v537_v50 = vld [vmem:[#allocation5 + $0xe10] sm:$0xff] }
  0xda   :  { %v665_v38 = vld [vmem:[#allocation5 + $0x1210] sm:$0xff] }
  0xdb   :  { %5177 = vmatmul.mubr.bf16.gmra.mrb[16].mxu0 %v13174_v53  ;;  %5403 = vmatmul.mubr.bf16.gmra.mrb[16].mxu1 %v13174_v53  ;;  %v681_v39 = vld [vmem:[#allocation5 + $0x1290] sm:$0xff] }
  0xdc   :  { %5460 = vmatpush1.bf16.msra.mxu0 %v10701_v56  ;;  %5686 = vmatpush1.bf16.msra.mxu1 %v10703_v57  ;;  %v10863_v56 = vcombine.low %v506_v41, %v522_v43  ;;  %v10894_v57 = vcombine.high %v537_v50, %v553_v51  ;;  %v666_v43 = vld [vmem:[#allocation5 + $0x1218] sm:$0xff] }
  0xdd   :  { %5461 = vmatprep.subr.bf16.mxu0 %v10734_v58  ;;  %5687 = vmatprep.subr.bf16.mxu1 %v10736_v59  ;;  %v10896_v58 = vcombine.high %v538_v52, %v554_v54  ;;  %v569_v59 = vld [vmem:[#allocation5 + $0xf10] sm:$0xff] }
  0xde   :  { %5186 = vmatprep.mubr.bf16.mxu0 %v13027_v24  ;;  %5412 = vmatprep.mubr.bf16.mxu1 %v13027_v24 }
  0xe0   :  { %5462 = vmatpush1.bf16.msra.mxu0 %v10733_v2  ;;  %5688 = vmatpush1.bf16.msra.mxu1 %v10735_v4  ;;  %v10893_v2 = vcombine.low %v537_v50, %v553_v51  ;;  %v10895_v4 = vcombine.low %v538_v52, %v554_v54  ;;  %v697_v51 = vld [vmem:[#allocation5 + $0x1310] sm:$0xff]  ;;  %v698_v54 = vld [vmem:[#allocation5 + $0x1318] sm:$0xff] }
  0xe1   :  { %5463 = vmatprep.subr.bf16.mxu0 %v10766_v5  ;;  %5689 = vmatprep.subr.bf16.mxu1 %v10768_v6  ;;  %v10926_v5 = vcombine.high %v569_v59, %v585_v61  ;;  %v10928_v6 = vcombine.high %v570_v63, %v586_v1  ;;  %v713_v52 = vld [vmem:[#allocation5 + $0x1390] sm:$0xff] }
  0xe3   :  { %5187 = vmatmul.mubr.bf16.gmra.mrb[20].mxu0 %v13180_v10  ;;  %5413 = vmatmul.mubr.bf16.gmra.mrb[20].mxu1 %v13180_v10 }
  0xe4   :  { %5464 = vmatpush1.bf16.msra.mxu0 %v10765_v13  ;;  %5690 = vmatpush1.bf16.msra.mxu1 %v10767_v15  ;;  %v10925_v13 = vcombine.low %v569_v59, %v585_v61  ;;  %v10927_v15 = vcombine.low %v570_v63, %v586_v1  ;;  %v729_v59 = vld [vmem:[#allocation5 + $0x1410] sm:$0xff]  ;;  %v746_v63 = vld [vmem:[#allocation5 + $0x1498] sm:$0xff]  ;;  %v11053_v1 = vcombine.low %v697_v51, %v713_v52 }
  0xe5   :  { %5465 = vmatprep.subr.bf16.mxu0 %v10798_v17  ;;  %5691 = vmatprep.subr.bf16.mxu1 %v10800_v26  ;;  %v10958_v17 = vcombine.high %v601_v8, %v617_v9  ;;  %v13196_v26 = vld [vmem:[#allocation2 + $0x4] ss:$12 sps:$4 sm:$0xff]   ;;  %v762_v9 = vld [vmem:[#allocation5 + $0x1518] sm:$0xff] }
  0xe6   :  { %5196 = vmatprep.mubr.bf16.mxu0 %v13027_v24  ;;  %5422 = vmatprep.mubr.bf16.mxu1 %v13027_v24  ;;  %v745_v61 = vld [vmem:[#allocation5 + $0x1490] sm:$0xff] }
  0xe7   :  { %v777_v8 = vld [vmem:[#allocation5 + $0x1590] sm:$0xff] }
  0xe8   :  { %5466 = vmatpush1.bf16.msra.mxu0 %v10797_v34  ;;  %5692 = vmatpush1.bf16.msra.mxu1 %v10799_v35  ;;  %v634_v34 = vld [vmem:[#allocation5 + $0x1118] sm:$0xff] }
  0xe9   :  { %5467 = vmatprep.subr.bf16.mxu0 %v10830_v36  ;;  %5693 = vmatprep.subr.bf16.mxu1 %v10832_v37  ;;  %v650_v35 = vld [vmem:[#allocation5 + $0x1198] sm:$0xff]  ;;  %v10959_v36 = vcombine.low %v602_v11, %v618_v12  ;;  %v10990_v37 = vcombine.high %v633_v30, %v649_v31 }
  0xea   :  { %v10992_v41 = vcombine.high %v634_v34, %v650_v35  ;;  %v778_v11 = vld [vmem:[#allocation5 + $0x1598] sm:$0xff] }
  0xeb   :  { %5197 = vmatmul.mubr.bf16.gmra.mrb[24].mxu0 %v13186_v40  ;;  %5423 = vmatmul.mubr.bf16.gmra.mrb[24].mxu1 %v13186_v40 }
  0xec   :  { %5468 = vmatpush1.bf16.msra.mxu0 %v10829_v44  ;;  %5694 = vmatpush1.bf16.msra.mxu1 %v10831_v45  ;;  %v682_v44 = vld [vmem:[#allocation5 + $0x1298] sm:$0xff]  ;;  %v10989_v45 = vcombine.low %v633_v30, %v649_v31 }
  0xed   :  { %5469 = vmatprep.subr.bf16.mxu0 %v10862_v47  ;;  %5695 = vmatprep.subr.bf16.mxu1 %v10864_v49  ;;  %v10991_v47 = vcombine.low %v634_v34, %v650_v35  ;;  %v11022_v49 = vcombine.high %v665_v38, %v681_v39  ;;  %v11024_v50 = vcombine.high %v666_v43, %v682_v44  ;;  %v810_v30 = vld [vmem:[#allocation5 + $0x1698] sm:$0xff] }
  0xee   :  { %5206 = vmatprep.mubr.bf16.mxu0 %v13027_v24  ;;  %5432 = vmatprep.mubr.bf16.mxu1 %v13027_v24 }
  0xf0   :  { %5470 = vmatpush1.bf16.msra.mxu0 %v10861_v55  ;;  %5696 = vmatpush1.bf16.msra.mxu1 %v10863_v56  ;;  %v714_v55 = vld [vmem:[#allocation5 + $0x1398] sm:$0xff]  ;;  %v11021_v56 = vcombine.low %v665_v38, %v681_v39 }
  0xf1   :  { %5471 = vmatprep.subr.bf16.mxu0 %v10894_v57  ;;  %5697 = vmatprep.subr.bf16.mxu1 %v10896_v58  ;;  %v11054_v57 = vcombine.high %v697_v51, %v713_v52  ;;  %v11056_v58 = vcombine.high %v698_v54, %v714_v55  ;;  %v826_v38 = vld [vmem:[#allocation5 + $0x1718] sm:$0xff] }
  0xf2   :  { %v842_v39 = vld [vmem:[#allocation5 + $0x1798] sm:$0xff] }
  0xf3   :  { %5207 = vmatmul.mubr.bf16.gmra.mrb[28].mxu0 %v13192_v62  ;;  %5433 = vmatmul.mubr.bf16.gmra.mrb[28].mxu1 %v13192_v62  ;;  %v11183_v51 = vcombine.low %v826_v38, %v842_v39 }
  0xf4   :  { %5472 = vmatpush1.bf16.msra.mxu0 %v10893_v2  ;;  %5698 = vmatpush1.bf16.msra.mxu1 %v10895_v4  ;;  %v11055_v2 = vcombine.low %v698_v54, %v714_v55  ;;  %v11086_v4 = vcombine.high %v729_v59, %v745_v61 }
  0xf5   :  { %5473 = vmatprep.subr.bf16.mxu0 %v10926_v5  ;;  %5699 = vmatprep.subr.bf16.mxu1 %v10928_v6  ;;  %v761_v6 = vld [vmem:[#allocation5 + $0x1510] sm:$0xff] }
  0xf6   :  { %5475 = vmatprep.mubr.bf16.mxu0 %v13196_v26  ;;  %5701 = vmatprep.mubr.bf16.mxu1 %v13196_v26  ;;  %v11117_v31 = vcombine.low %v761_v6, %v777_v8 }
  0xf8   :  { %5474 = vmatpush1.bf16.msra.mxu0 %v10925_v13  ;;  %5700 = vmatpush1.bf16.msra.mxu1 %v10927_v15  ;;  %v11118_v13 = vcombine.high %v761_v6, %v777_v8  ;;  %v793_v15 = vld [vmem:[#allocation5 + $0x1610] sm:$0xff]  ;;  %v219_v8 = vld [vmem:[#allocation5 + $0x420] sm:$0xff] }
  0xf9   :  { %5556 = vmatprep.subr.bf16.mxu0 %v10958_v17  ;;  %5782 = vmatprep.subr.bf16.mxu1 %v10960_v27  ;;  %v809_v17 = vld [vmem:[#allocation5 + $0x1690] sm:$0xff]  ;;  %v794_v27 = vld [vmem:[#allocation5 + $0x1618] sm:$0xff] }
  0xfa   :  { %v11150_v34 = vcombine.high %v793_v15, %v809_v17  ;;  %v11152_v35 = vcombine.high %v794_v27, %v810_v30 }
  0xfb   :  { %5476 = vmatmul.mubr.bf16.vlgmr.msra.gmra.mrb[32].mxu0 %v13088_v7  ;;  %5702 = vmatmul.mubr.bf16.vlgmr.msra.gmra.mrb[32].mxu1 %v13088_v7  ;;  %v11023_v7 = vcombine.low %v666_v43, %v682_v44  ;;  %v91_v44 = vld [vmem:[#allocation5 + $0x20] sm:$0xff] }
  0xfc   :  { %5557 = vmatpush1.bf16.msra.mxu0 %v10957_v32  ;;  %5783 = vmatpush1.bf16.msra.mxu1 %v10959_v36  ;;  %v11119_v32 = vcombine.low %v762_v9, %v778_v11  ;;  %v825_v36 = vld [vmem:[#allocation5 + $0x1710] sm:$0xff] }
  0xfd   :  { %5485 = vmatprep.mubr.bf16.mxu0 %v13090_v14  ;;  %5711 = vmatprep.mubr.bf16.mxu1 %v13090_v14  ;;  %v730_v14 = vld [vmem:[#allocation5 + $0x1418] sm:$0xff] }
  0xfe   :  { %5558 = vmatprep.subr.bf16.mxu0 %v10990_v37  ;;  %5784 = vmatprep.subr.bf16.mxu1 %v10992_v41  ;;  %v11088_v5 = vcombine.high %v730_v14, %v746_v63  ;;  %v11087_v12 = vcombine.low %v730_v14, %v746_v63  ;;  %v841_v37 = vld [vmem:[#allocation5 + $0x1790] sm:$0xff]  ;;  %v11151_v41 = vcombine.low %v794_v27, %v810_v30  ;;  %v187_v14 = vld [vmem:[#allocation5 + $0x320] sm:$0xff]  ;;  %v252_v30 = vld [vmem:[#allocation5 + $0x528] sm:$0xff] }
  0xff   :  { %v11182_v43 = vcombine.high %v825_v36, %v841_v37  ;;  %v203_v63 = vld [vmem:[#allocation5 + $0x3a0] sm:$0xff] }
 0x100   :  { %5559 = vmatpush1.bf16.msra.mxu0 %v10989_v45  ;;  %5785 = vmatpush1.bf16.msra.mxu1 %v10991_v47  ;;  %v107_v45 = vld [vmem:[#allocation5 + $0xa0] sm:$0xff]  ;;  %v92_v47 = vld [vmem:[#allocation5 + $0x28] sm:$0xff] }
 0x101   :  { %5560 = vmatprep.subr.bf16.mxu0 %v11022_v49  ;;  %5786 = vmatprep.subr.bf16.mxu1 %v11024_v50  ;;  %v108_v49 = vld [vmem:[#allocation5 + $0xa8] sm:$0xff]  ;;  %v11181_v50 = vcombine.low %v825_v36, %v841_v37  ;;  %v10450_v52 = vcombine.high %v91_v44, %v107_v45  ;;  %v267_v27 = vld [vmem:[#allocation5 + $0x5a0] sm:$0xff] }
 0x102   :  { %v10452_v54 = vcombine.high %v92_v47, %v108_v49  ;;  %v283_v36 = vld [vmem:[#allocation5 + $0x620] sm:$0xff] }
 0x103   :  { %5486 = vmatmul.mubr.bf16.gmra.mrb[36].mxu0 %v13096_v25  ;;  %5712 = vmatmul.mubr.bf16.gmra.mrb[36].mxu1 %v13096_v25  ;;  %v11085_v25 = vcombine.low %v729_v59, %v745_v61  ;;  %v299_v37 = vld [vmem:[#allocation5 + $0x6a0] sm:$0xff] }
 0x104   :  { %5495 = vmatprep.mubr.bf16.mxu0 %v13098_v28  ;;  %5721 = vmatprep.mubr.bf16.mxu1 %v13098_v28  ;;  %v11120_v28 = vcombine.high %v762_v9, %v778_v11  ;;  %v235_v9 = vld [vmem:[#allocation5 + $0x4a0] sm:$0xff]  ;;  %v220_v11 = vld [vmem:[#allocation5 + $0x428] sm:$0xff] }
 0x105   :  { %5561 = vmatpush1.bf16.msra.mxu0 %v11021_v56  ;;  %5787 = vmatpush1.bf16.msra.mxu1 %v11023_v7  ;;  %v155_v56 = vld [vmem:[#allocation5 + $0x220] sm:$0xff] }
 0x106   :  { %5562 = vmatprep.subr.bf16.mxu0 %v11054_v57  ;;  %5788 = vmatprep.subr.bf16.mxu1 %v11056_v58  ;;  %v171_v7 = vld [vmem:[#allocation5 + $0x2a0] sm:$0xff]  ;;  %v172_v57 = vld [vmem:[#allocation5 + $0x2a8] sm:$0xff] }
 0x107   :  { %v10514_v59 = vcombine.high %v155_v56, %v171_v7 }
 0x109   :  { %5563 = vmatpush1.bf16.msra.mxu0 %v11053_v1  ;;  %5789 = vmatpush1.bf16.msra.mxu1 %v11055_v2  ;;  %v188_v1 = vld [vmem:[#allocation5 + $0x328] sm:$0xff] }
 0x10a   :  { %5564 = vmatprep.subr.bf16.mxu0 %v11086_v4  ;;  %5790 = vmatprep.subr.bf16.mxu1 %v11088_v5  ;;  %v204_v2 = vld [vmem:[#allocation5 + $0x3a8] sm:$0xff]  ;;  %v10513_v4 = vcombine.low %v155_v56, %v171_v7  ;;  %v10546_v5 = vcombine.high %v187_v14, %v203_v63  ;;  %v395_v56 = vld [vmem:[#allocation5 + $0x9a0] sm:$0xff] }
 0x10b   :  { %5496 = vmatmul.mubr.bf16.gmra.mrb[40].mxu0 %v13104_v42  ;;  %5722 = vmatmul.mubr.bf16.gmra.mrb[40].mxu1 %v13104_v42  ;;  %v11149_v42 = vcombine.low %v793_v15, %v809_v17  ;;  %v10548_v6 = vcombine.high %v188_v1, %v204_v2  ;;  %v251_v17 = vld [vmem:[#allocation5 + $0x520] sm:$0xff]  ;;  %v380_v7 = vld [vmem:[#allocation5 + $0x928] sm:$0xff] }
 0x10c   :  { %5505 = vmatprep.mubr.bf16.mxu0 %v13106_v46  ;;  %5731 = vmatprep.mubr.bf16.mxu1 %v13106_v46  ;;  %v11184_v46 = vcombine.high %v826_v38, %v842_v39  ;;  %v284_v38 = vld [vmem:[#allocation5 + $0x628] sm:$0xff] }
 0x10d   :  { %5565 = vmatpush1.bf16.msra.mxu0 %v11085_v25  ;;  %5791 = vmatpush1.bf16.msra.mxu1 %v11087_v12  ;;  %v236_v25 = vld [vmem:[#allocation5 + $0x4a8] sm:$0xff]  ;;  %v10545_v12 = vcombine.low %v187_v14, %v203_v63 }
 0x10e   :  { %5566 = vmatprep.subr.bf16.mxu0 %v11118_v13  ;;  %5792 = vmatprep.subr.bf16.mxu1 %v11120_v28  ;;  %v10547_v13 = vcombine.low %v188_v1, %v204_v2  ;;  %v10578_v28 = vcombine.high %v219_v8, %v235_v9  ;;  %v10580_v15 = vcombine.high %v220_v11, %v236_v25  ;;  %v300_v39 = vld [vmem:[#allocation5 + $0x6a8] sm:$0xff] }
 0x10f   :  { %v412_v14 = vld [vmem:[#allocation5 + $0xa28] sm:$0xff] }
 0x110   :  { %v428_v63 = vld [vmem:[#allocation5 + $0xaa8] sm:$0xff] }
 0x111   :  { %5567 = vmatpush1.bf16.msra.mxu0 %v11117_v31  ;;  %5793 = vmatpush1.bf16.msra.mxu1 %v11119_v32  ;;  %v268_v31 = vld [vmem:[#allocation5 + $0x5a8] sm:$0xff]  ;;  %v10577_v32 = vcombine.low %v219_v8, %v235_v9 }
 0x112   :  { %5568 = vmatprep.subr.bf16.mxu0 %v11150_v34  ;;  %5794 = vmatprep.subr.bf16.mxu1 %v11152_v35  ;;  %v10610_v34 = vcombine.high %v251_v17, %v267_v27  ;;  %v10612_v35 = vcombine.high %v252_v30, %v268_v31  ;;  %v444_v8 = vld [vmem:[#allocation5 + $0xb28] sm:$0xff] }
 0x113   :  { %5506 = vmatmul.mubr.bf16.gmra.mrb[44].mxu0 %v13112_v60  ;;  %5732 = vmatmul.mubr.bf16.gmra.mrb[44].mxu1 %v13112_v60  ;;  %v123_v60 = vld [vmem:[#allocation5 + $0x120] sm:$0xff]  ;;  %v460_v9 = vld [vmem:[#allocation5 + $0xba8] sm:$0xff] }
 0x114   :  { %5515 = vmatprep.mubr.bf16.mxu0 %v13114_v0  ;;  %5741 = vmatprep.mubr.bf16.mxu1 %v13114_v0  ;;  %v139_v0 = vld [vmem:[#allocation5 + $0x1a0] sm:$0xff] }
 0x115   :  { %5569 = vmatpush1.bf16.msra.mxu0 %v11149_v42  ;;  %5795 = vmatpush1.bf16.msra.mxu1 %v11151_v41  ;;  %v10482_v55 = vcombine.high %v123_v60, %v139_v0  ;;  %v10609_v42 = vcombine.low %v251_v17, %v267_v27  ;;  %v10611_v41 = vcombine.low %v252_v30, %v268_v31  ;;  %v492_v17 = vld [vmem:[#allocation5 + $0xca8] sm:$0xff] }
 0x116   :  { %5570 = vmatprep.subr.bf16.mxu0 %v11182_v43  ;;  %5796 = vmatprep.subr.bf16.mxu1 %v11184_v46  ;;  %v10642_v43 = vcombine.high %v283_v36, %v299_v37  ;;  %v10644_v46 = vcombine.high %v284_v38, %v300_v39  ;;  %v10803_v30 = vcombine.low %v444_v8, %v460_v9 }
 0x119   :  { %5571 = vmatpush1.bf16.msra.mxu0 %v11181_v50  ;;  %5797 = vmatpush1.bf16.msra.mxu1 %v11183_v51  ;;  %v10641_v50 = vcombine.low %v283_v36, %v299_v37  ;;  %v524_v36 = vld [vmem:[#allocation5 + $0xda8] sm:$0xff] }
 0x11a   :  { %5895 = vmatprep.subr.bf16.mxu0 %v10450_v52  ;;  %6121 = vmatprep.subr.bf16.mxu1 %v10452_v54  ;;  %v347_v54 = vld [vmem:[#allocation5 + $0x820] sm:$0xff] }
 0x11b   :  { %5516 = vmatmul.mubr.bf16.gmra.mrb[48].mxu0 %v13120_v16  ;;  %5742 = vmatmul.mubr.bf16.gmra.mrb[48].mxu1 %v13120_v16  ;;  %v124_v16 = vld [vmem:[#allocation5 + $0x128] sm:$0xff] }
 0x11c   :  { %5525 = vmatprep.mubr.bf16.mxu0 %v13122_v18  ;;  %5751 = vmatprep.mubr.bf16.mxu1 %v13122_v18  ;;  %v140_v18 = vld [vmem:[#allocation5 + $0x1a8] sm:$0xff] }
 0x11d   :  { %v10483_v58 = vcombine.low %v124_v16, %v140_v18 }
 0x123   :  { %5526 = vmatmul.mubr.bf16.gmra.mrb[52].mxu0 %v13128_v19  ;;  %5752 = vmatmul.mubr.bf16.gmra.mrb[52].mxu1 %v13128_v19  ;;  %v10449_v19 = vcombine.low %v91_v44, %v107_v45  ;;  %v315_v44 = vld [vmem:[#allocation5 + $0x720] sm:$0xff] }
 0x124   :  { %5535 = vmatprep.mubr.bf16.mxu0 %v13130_v20  ;;  %5761 = vmatprep.mubr.bf16.mxu1 %v13130_v20  ;;  %v10451_v20 = vcombine.low %v92_v47, %v108_v49  ;;  %v331_v45 = vld [vmem:[#allocation5 + $0x7a0] sm:$0xff]  ;;  %v316_v47 = vld [vmem:[#allocation5 + $0x728] sm:$0xff] }
 0x125   :  { %v332_v49 = vld [vmem:[#allocation5 + $0x7a8] sm:$0xff]  ;;  %v10674_v51 = vcombine.high %v315_v44, %v331_v45 }
 0x126   :  { %v10676_v52 = vcombine.high %v316_v47, %v332_v49 }
 0x12b   :  { %5536 = vmatmul.mubr.bf16.gmra.mrb[56].mxu0 %v13136_v21  ;;  %5762 = vmatmul.mubr.bf16.gmra.mrb[56].mxu1 %v13136_v21  ;;  %v10484_v21 = vcombine.high %v124_v16, %v140_v18  ;;  %v364_v16 = vld [vmem:[#allocation5 + $0x8a8] sm:$0xff]  ;;  %v10673_v18 = vcombine.low %v315_v44, %v331_v45 }
 0x12c   :  { %5545 = vmatprep.mubr.bf16.mxu0 %v13138_v22  ;;  %5771 = vmatprep.mubr.bf16.mxu1 %v13138_v22  ;;  %v156_v22 = vld [vmem:[#allocation5 + $0x228] sm:$0xff] }
 0x12d   :  { %v10516_v61 = vcombine.high %v156_v22, %v172_v57 }
 0x133   :  { %5546 = vmatmul.mubr.bf16.gmra.mrb[60].mxu0 %v13144_v23  ;;  %5772 = vmatmul.mubr.bf16.gmra.mrb[60].mxu1 %v13144_v23  ;;  %v10481_v23 = vcombine.low %v123_v60, %v139_v0  ;;  %v363_v60 = vld [vmem:[#allocation5 + $0x8a0] sm:$0xff]  ;;  %v348_v0 = vld [vmem:[#allocation5 + $0x828] sm:$0xff] }
 0x134   :  { %5588 = vmatprep.mubr.bf16.mxu0 %v13027_v24  ;;  %5814 = vmatprep.mubr.bf16.mxu1 %v13027_v24 }
 0x13b   :  { %5589 = vmatmul.mubr.bf16.vlgmr.msra.gmra.mrb[32].mxu0 %v13150_v29  ;;  %5815 = vmatmul.mubr.bf16.vlgmr.msra.gmra.mrb[32].mxu1 %v13150_v29  ;;  %v10515_v29 = vcombine.low %v156_v22, %v172_v57  ;;  %v396_v22 = vld [vmem:[#allocation5 + $0x9a8] sm:$0xff]  ;;  %v10705_v57 = vcombine.low %v347_v54, %v363_v60 }
 0x13c   :  { %5896 = vmatpush1.bf16.msra.mxu0 %v10449_v19  ;;  %6122 = vmatpush1.bf16.msra.mxu1 %v10451_v20  ;;  %v10675_v19 = vcombine.low %v316_v47, %v332_v49  ;;  %v10706_v20 = vcombine.high %v347_v54, %v363_v60  ;;  %v10739_v2 = vcombine.low %v380_v7, %v396_v22 }
 0x13d   :  { %5897 = vmatprep.subr.bf16.mxu0 %v10482_v55  ;;  %6123 = vmatprep.subr.bf16.mxu1 %v10484_v21  ;;  %v10708_v55 = vcombine.high %v348_v0, %v364_v16  ;;  %v379_v21 = vld [vmem:[#allocation5 + $0x920] sm:$0xff] }
 0x13e   :  { %5598 = vmatprep.mubr.bf16.mxu0 %v13027_v24  ;;  %5824 = vmatprep.mubr.bf16.mxu1 %v13027_v24  ;;  %v10737_v1 = vcombine.low %v379_v21, %v395_v56 }
 0x140   :  { %5898 = vmatpush1.bf16.msra.mxu0 %v10481_v23  ;;  %6124 = vmatpush1.bf16.msra.mxu1 %v10483_v58  ;;  %v10738_v23 = vcombine.high %v379_v21, %v395_v56  ;;  %v10740_v58 = vcombine.high %v380_v7, %v396_v22  ;;  %v635_v22 = vld [vmem:[#allocation5 + $0x1120] sm:$0xff] }
 0x141   :  { %5899 = vmatprep.subr.bf16.mxu0 %v10514_v59  ;;  %6125 = vmatprep.subr.bf16.mxu1 %v10516_v61  ;;  %v411_v59 = vld [vmem:[#allocation5 + $0xa20] sm:$0xff] }
 0x142   :  { %v427_v61 = vld [vmem:[#allocation5 + $0xaa0] sm:$0xff] }
 0x143   :  { %5599 = vmatmul.mubr.bf16.gmra.mrb[36].mxu0 %v13156_v48  ;;  %5825 = vmatmul.mubr.bf16.gmra.mrb[36].mxu1 %v13156_v48  ;;  %v10579_v48 = vcombine.low %v220_v11, %v236_v25  ;;  %v10769_v11 = vcombine.low %v411_v59, %v427_v61 }
 0x144   :  { %5900 = vmatpush1.bf16.msra.mxu0 %v10513_v4  ;;  %6126 = vmatpush1.bf16.msra.mxu1 %v10515_v29  ;;  %v10770_v4 = vcombine.high %v411_v59, %v427_v61  ;;  %v10772_v29 = vcombine.high %v412_v14, %v428_v63  ;;  %v667_v61 = vld [vmem:[#allocation5 + $0x1220] sm:$0xff] }
 0x145   :  { %5901 = vmatprep.subr.bf16.mxu0 %v10546_v5  ;;  %6127 = vmatprep.subr.bf16.mxu1 %v10548_v6  ;;  %v443_v5 = vld [vmem:[#allocation5 + $0xb20] sm:$0xff] }
 0x146   :  { %5608 = vmatprep.mubr.bf16.mxu0 %v13027_v24  ;;  %5834 = vmatprep.mubr.bf16.mxu1 %v13027_v24  ;;  %v459_v6 = vld [vmem:[#allocation5 + $0xba0] sm:$0xff] }
 0x147   :  { %v10802_v25 = vcombine.high %v443_v5, %v459_v6  ;;  %v10801_v27 = vcombine.low %v443_v5, %v459_v6 }
 0x148   :  { %5902 = vmatpush1.bf16.msra.mxu0 %v10545_v12  ;;  %6128 = vmatpush1.bf16.msra.mxu1 %v10547_v13  ;;  %v10804_v12 = vcombine.high %v444_v8, %v460_v9  ;;  %v475_v13 = vld [vmem:[#allocation5 + $0xc20] sm:$0xff]  ;;  %v863_v9 = vlaneseq }
 0x149   :  { %5903 = vmatprep.subr.bf16.mxu0 %v10578_v28  ;;  %6129 = vmatprep.subr.bf16.mxu1 %v10580_v15  ;;  %v491_v28 = vld [vmem:[#allocation5 + $0xca0] sm:$0xff]  ;;  %v476_v15 = vld [vmem:[#allocation5 + $0xc28] sm:$0xff] }
 0x14a   :  { %v10834_v31 = vcombine.high %v475_v13, %v491_v28  ;;  %v10833_v37 = vcombine.low %v475_v13, %v491_v28 }
 0x14b   :  { %5609 = vmatmul.mubr.bf16.gmra.mrb[40].mxu0 %v13162_v3  ;;  %5835 = vmatmul.mubr.bf16.gmra.mrb[40].mxu1 %v13162_v3  ;;  %v10643_v3 = vcombine.low %v284_v38, %v300_v39 }
 0x14c   :  { %5904 = vmatpush1.bf16.msra.mxu0 %v10577_v32  ;;  %6130 = vmatpush1.bf16.msra.mxu1 %v10579_v48  ;;  %v10836_v32 = vcombine.high %v476_v15, %v492_v17  ;;  %v507_v48 = vld [vmem:[#allocation5 + $0xd20] sm:$0xff] }
 0x14d   :  { %5905 = vmatprep.subr.bf16.mxu0 %v10610_v34  ;;  %6131 = vmatprep.subr.bf16.mxu1 %v10612_v35  ;;  %v523_v34 = vld [vmem:[#allocation5 + $0xda0] sm:$0xff]  ;;  %v508_v35 = vld [vmem:[#allocation5 + $0xd28] sm:$0xff] }
 0x14e   :  { %5618 = vmatprep.mubr.bf16.mxu0 %v13027_v24  ;;  %5844 = vmatprep.mubr.bf16.mxu1 %v13027_v24  ;;  %v10866_v38 = vcombine.high %v507_v48, %v523_v34  ;;  %v10868_v39 = vcombine.high %v508_v35, %v524_v36  ;;  %v10865_v44 = vcombine.low %v507_v48, %v523_v34  ;;  %v12790_v48 = vld [vmem:[#allocation2 + $0x34] ss:$12 sps:$4 sm:$0xff]   ;;  %v732_v34 = vld [vmem:[#allocation5 + $0x1428] sm:$0xff] }
 0x14f   :  { %v10867_v45 = vcombine.low %v508_v35, %v524_v36  ;;  %v748_v35 = vld [vmem:[#allocation5 + $0x14a8] sm:$0xff] }
 0x150   :  { %5906 = vmatpush1.bf16.msra.mxu0 %v10609_v42  ;;  %6132 = vmatpush1.bf16.msra.mxu1 %v10611_v41  ;;  %v539_v42 = vld [vmem:[#allocation5 + $0xe20] sm:$0xff] }
 0x151   :  { %5907 = vmatprep.subr.bf16.mxu0 %v10642_v43  ;;  %6133 = vmatprep.subr.bf16.mxu1 %v10644_v46  ;;  %v555_v41 = vld [vmem:[#allocation5 + $0xea0] sm:$0xff]  ;;  %v540_v43 = vld [vmem:[#allocation5 + $0xe28] sm:$0xff] }
 0x152   :  { %v556_v46 = vld [vmem:[#allocation5 + $0xea8] sm:$0xff]  ;;  %v10898_v47 = vcombine.high %v539_v42, %v555_v41  ;;  %v10897_v54 = vcombine.low %v539_v42, %v555_v41  ;;  %v763_v42 = vld [vmem:[#allocation5 + $0x1520] sm:$0xff] }
 0x153   :  { %5619 = vmatmul.mubr.bf16.gmra.mrb[44].mxu0 %v13168_v33  ;;  %5845 = vmatmul.mubr.bf16.gmra.mrb[44].mxu1 %v13168_v33  ;;  %v10707_v33 = vcombine.low %v348_v0, %v364_v16  ;;  %v10900_v49 = vcombine.high %v540_v43, %v556_v46  ;;  %v603_v16 = vld [vmem:[#allocation5 + $0x1020] sm:$0xff] }
 0x154   :  { %5908 = vmatpush1.bf16.msra.mxu0 %v10641_v50  ;;  %6134 = vmatpush1.bf16.msra.mxu1 %v10643_v3  ;;  %v571_v50 = vld [vmem:[#allocation5 + $0xf20] sm:$0xff] }
 0x155   :  { %5909 = vmatprep.subr.bf16.mxu0 %v10674_v51  ;;  %6135 = vmatprep.subr.bf16.mxu1 %v10676_v52  ;;  %v587_v3 = vld [vmem:[#allocation5 + $0xfa0] sm:$0xff]  ;;  %v572_v51 = vld [vmem:[#allocation5 + $0xf28] sm:$0xff] }
 0x156   :  { %5628 = vmatprep.mubr.bf16.mxu0 %v13027_v24  ;;  %5854 = vmatprep.mubr.bf16.mxu1 %v13027_v24  ;;  %v588_v52 = vld [vmem:[#allocation5 + $0xfa8] sm:$0xff]  ;;  %v10930_v60 = vcombine.high %v571_v50, %v587_v3  ;;  %v779_v41 = vld [vmem:[#allocation5 + $0x15a0] sm:$0xff] }
 0x157   :  { %v10932_v0 = vcombine.high %v572_v51, %v588_v52  ;;  %v10931_v21 = vcombine.low %v572_v51, %v588_v52  ;;  %v11122_v51 = vcombine.high %v763_v42, %v779_v41  ;;  %v12791_v52 = vld [vmem:[#allocation2 + $0x30] ss:$12 sps:$4 sm:$0xff]  }
 0x158   :  { %5910 = vmatpush1.bf16.msra.mxu0 %v10673_v18  ;;  %6136 = vmatpush1.bf16.msra.mxu1 %v10675_v19  ;;  %v619_v18 = vld [vmem:[#allocation5 + $0x10a0] sm:$0xff]  ;;  %v604_v19 = vld [vmem:[#allocation5 + $0x1028] sm:$0xff] }
 0x159   :  { %5911 = vmatprep.subr.bf16.mxu0 %v10706_v20  ;;  %6137 = vmatprep.subr.bf16.mxu1 %v10708_v55  ;;  %v620_v20 = vld [vmem:[#allocation5 + $0x10a8] sm:$0xff]  ;;  %v10929_v55 = vcombine.low %v571_v50, %v587_v3  ;;  %v10962_v56 = vcombine.high %v603_v16, %v619_v18  ;;  %v11091_v3 = vcombine.low %v732_v34, %v748_v35 }
 0x15a   :  { %v10964_v7 = vcombine.high %v604_v19, %v620_v20 }
 0x15b   :  { %5629 = vmatmul.mubr.bf16.gmra.mrb[48].mxu0 %v13174_v53  ;;  %5855 = vmatmul.mubr.bf16.gmra.mrb[48].mxu1 %v13174_v53  ;;  %v10771_v53 = vcombine.low %v412_v14, %v428_v63  ;;  %v683_v14 = vld [vmem:[#allocation5 + $0x12a0] sm:$0xff] }
 0x15c   :  { %5912 = vmatpush1.bf16.msra.mxu0 %v10705_v57  ;;  %6138 = vmatpush1.bf16.msra.mxu1 %v10707_v33  ;;  %v651_v57 = vld [vmem:[#allocation5 + $0x11a0] sm:$0xff]  ;;  %v10961_v33 = vcombine.low %v603_v16, %v619_v18  ;;  %v11026_v6 = vcombine.high %v667_v61, %v683_v14  ;;  %v11025_v13 = vcombine.low %v667_v61, %v683_v14 }
 0x15d   :  { %5913 = vmatprep.subr.bf16.mxu0 %v10738_v23  ;;  %6139 = vmatprep.subr.bf16.mxu1 %v10740_v58  ;;  %v636_v23 = vld [vmem:[#allocation5 + $0x1128] sm:$0xff]  ;;  %v10994_v59 = vcombine.high %v635_v22, %v651_v57 }
 0x15e   :  { %5638 = vmatprep.mubr.bf16.mxu0 %v13027_v24  ;;  %5864 = vmatprep.mubr.bf16.mxu1 %v13027_v24  ;;  %v652_v58 = vld [vmem:[#allocation5 + $0x11a8] sm:$0xff] }
 0x15f   :  { %v12787_v63 = vld [vmem:[#allocation2] ss:$12 sps:$4 sm:$0xff]   ;;  %v10995_v5 = vcombine.low %v636_v23, %v652_v58 }
 0x160   :  { %5914 = vmatpush1.bf16.msra.mxu0 %v10737_v1  ;;  %6140 = vmatpush1.bf16.msra.mxu1 %v10739_v2  ;;  %v10996_v1 = vcombine.high %v636_v23, %v652_v58  ;;  %v668_v2 = vld [vmem:[#allocation5 + $0x1228] sm:$0xff]  ;;  %v13295_v23 = vld [vmem:[#allocation5 + $0x17a0] sm:$0xff] }
 0x161   :  { %5915 = vmatprep.subr.bf16.mxu0 %v10770_v4  ;;  %6141 = vmatprep.subr.bf16.mxu1 %v10772_v29  ;;  %v684_v4 = vld [vmem:[#allocation5 + $0x12a8] sm:$0xff] }
 0x162   :  { %v12788_v29 = vld [vmem:[#allocation2 + $0x1c] ss:$12 sps:$4 sm:$0xff]   ;;  %v11028_v8 = vcombine.high %v668_v2, %v684_v4  ;;  %v11027_v28 = vcombine.low %v668_v2, %v684_v4 }
 0x163   :  { %5639 = vmatmul.mubr.bf16.gmra.mrb[52].mxu0 %v13180_v10  ;;  %5865 = vmatmul.mubr.bf16.gmra.mrb[52].mxu1 %v13180_v10  ;;  %v10835_v10 = vcombine.low %v476_v15, %v492_v17  ;;  %v12789_v17 = vld [vmem:[#allocation2 + $0x18] ss:$12 sps:$4 sm:$0xff]  }
 0x164   :  { %5916 = vmatpush1.bf16.msra.mxu0 %v10769_v11  ;;  %6142 = vmatpush1.bf16.msra.mxu1 %v10771_v53  ;;  %v699_v11 = vld [vmem:[#allocation5 + $0x1320] sm:$0xff] }
 0x165   :  { %5917 = vmatprep.subr.bf16.mxu0 %v10802_v25  ;;  %6143 = vmatprep.subr.bf16.mxu1 %v10804_v12  ;;  %v715_v53 = vld [vmem:[#allocation5 + $0x13a0] sm:$0xff]  ;;  %v700_v25 = vld [vmem:[#allocation5 + $0x1328] sm:$0xff] }
 0x166   :  { %5648 = vmatprep.mubr.bf16.mxu0 %v13027_v24  ;;  %5874 = vmatprep.mubr.bf16.mxu1 %v13027_v24  ;;  %v716_v12 = vld [vmem:[#allocation5 + $0x13a8] sm:$0xff]  ;;  %v11058_v15 = vcombine.high %v699_v11, %v715_v53  ;;  %v11057_v36 = vcombine.low %v699_v11, %v715_v53 }
 0x168   :  { %5918 = vmatpush1.bf16.msra.mxu0 %v10801_v27  ;;  %6144 = vmatpush1.bf16.msra.mxu1 %v10803_v30  ;;  %v13264_v27 = vshrl.u32 %v863_v9, 7  ;;  %v11060_v30 = vcombine.high %v700_v25, %v716_v12 }
 0x169   :  { %5919 = vmatprep.subr.bf16.mxu0 %v10834_v31  ;;  %6145 = vmatprep.subr.bf16.mxu1 %v10836_v32  ;;  %v731_v31 = vld [vmem:[#allocation5 + $0x1420] sm:$0xff] }
 0x16a   :  { %v747_v32 = vld [vmem:[#allocation5 + $0x14a0] sm:$0xff] }
 0x16b   :  { %5649 = vmatmul.mubr.bf16.gmra.mrb[56].mxu0 %v13186_v40  ;;  %5875 = vmatmul.mubr.bf16.gmra.mrb[56].mxu1 %v13186_v40  ;;  %v10899_v40 = vcombine.low %v540_v43, %v556_v46  ;;  %v855_v43 = vld [vmem:[#allocation7] sm:$0xff]  ;;  %v13270_v46 = vsub.s32 2, %v13264_v27  ;;  %v11089_v50 = vcombine.low %v731_v31, %v747_v32 }
 0x16c   :  { %5920 = vmatpush1.bf16.msra.mxu0 %v10833_v37  ;;  %6146 = vmatpush1.bf16.msra.mxu1 %v10835_v10  ;;  %v11059_v37 = vcombine.low %v700_v25, %v716_v12  ;;  %v11090_v10 = vcombine.high %v731_v31, %v747_v32  ;;  %v13308_v32 = vld [vmem:[#allocation5 + $0x30] sm:$0xff] }
 0x16d   :  { %5921 = vmatprep.subr.bf16.mxu0 %v10866_v38  ;;  %6147 = vmatprep.subr.bf16.mxu1 %v10868_v39  ;;  %v13267_v38 = vsub.s32 0, %v13264_v27  ;;  %v11092_v39 = vcombine.high %v732_v34, %v748_v35  ;;  %v13284_v16 = vrot.slane %v855_v43, %v13270_v46  ;;  %v12794_v35 = vld [vmem:[#allocation2 + $0x64] ss:$12 sps:$4 sm:$0xff]  }
 0x16e   :  { %5658 = vmatprep.mubr.bf16.mxu0 %v13027_v24  ;;  %5884 = vmatprep.mubr.bf16.mxu1 %v13027_v24 }
 0x170   :  { %5922 = vmatpush1.bf16.msra.mxu0 %v10865_v44  ;;  %6148 = vmatpush1.bf16.msra.mxu1 %v10867_v45  ;;  %v13273_v44 = vsub.s32 1, %v13264_v27  ;;  %v764_v45 = vld [vmem:[#allocation5 + $0x1528] sm:$0xff] }
 0x171   :  { %5923 = vmatprep.subr.bf16.mxu0 %v10898_v47  ;;  %6149 = vmatprep.subr.bf16.mxu1 %v10900_v49  ;;  %v780_v47 = vld [vmem:[#allocation5 + $0x15a8] sm:$0xff]  ;;  %v13276_v49 = vsub.s32 3, %v13264_v27 }
 0x172   :  { %v13287_v18 = vrot.slane %v855_v43, %v13273_v44 }
 0x173   :  { %5659 = vmatmul.mubr.bf16.gmra.mrb[60].mxu0 %v13192_v62  ;;  %5885 = vmatmul.mubr.bf16.gmra.mrb[60].mxu1 %v13192_v62  ;;  %v10963_v62 = vcombine.low %v604_v19, %v620_v20  ;;  %v12792_v19 = vld [vmem:[#allocation2 + $0x4c] ss:$12 sps:$4 sm:$0xff]  }
 0x174   :  { %5924 = vmatpush1.bf16.msra.mxu0 %v10897_v54  ;;  %6150 = vmatpush1.bf16.msra.mxu1 %v10899_v40  ;;  %v13279_v54 = vrot.slane %v855_v43, %v13267_v38  ;;  %v11124_v40 = vcombine.high %v764_v45, %v780_v47  ;;  %v796_v20 = vld [vmem:[#allocation5 + $0x1628] sm:$0xff] }
 0x175   :  { %5925 = vmatprep.subr.bf16.mxu0 %v10930_v60  ;;  %6151 = vmatprep.subr.bf16.mxu1 %v10932_v0  ;;  %v13281_v60 = vld [vmem:[#allocation5 + $0x1620] sm:$0xff] }
 0x176   :  { %5927 = vmatprep.mubr.bf16.mxu0 %v13196_v26  ;;  %6153 = vmatprep.mubr.bf16.mxu1 %v13196_v26  ;;  %v10993_v26 = vcombine.low %v635_v22, %v651_v57  ;;  %v811_v0 = vld [vmem:[#allocation5 + $0x16a0] sm:$0xff]  ;;  %v11123_v22 = vcombine.low %v764_v45, %v780_v47 }
 0x177   :  { %v11154_v57 = vcombine.high %v13281_v60, %v811_v0  ;;  %v11153_v4 = vcombine.low %v13281_v60, %v811_v0 }
 0x178   :  { %5926 = vmatpush1.bf16.msra.mxu0 %v10929_v55  ;;  %6152 = vmatpush1.bf16.msra.mxu1 %v10931_v21  ;;  %v812_v55 = vld [vmem:[#allocation5 + $0x16a8] sm:$0xff]  ;;  %v13290_v21 = vrot.slane %v855_v43, %v13276_v49 }
 0x179   :  { %6008 = vmatprep.subr.bf16.mxu0 %v10962_v56  ;;  %6234 = vmatprep.subr.bf16.mxu1 %v10964_v7  ;;  %v11121_v56 = vcombine.low %v763_v42, %v779_v41  ;;  %v11156_v61 = vcombine.high %v796_v20, %v812_v55  ;;  %v11155_v11 = vcombine.low %v796_v20, %v812_v55 }
 0x17b   :  { %5928 = vmatmul.mubr.bf16.vlgmr.msra.gmra.mrb[64].mxu0 %v12787_v63  ;;  %6154 = vmatmul.mubr.bf16.vlgmr.msra.gmra.mrb[64].mxu1 %v12787_v63 }
 0x17c   :  { %6009 = vmatpush1.bf16.msra.mxu0 %v10961_v33  ;;  %6235 = vmatpush1.bf16.msra.mxu1 %v10963_v62  ;;  %v13293_v33 = vld [vmem:[#allocation5 + $0x1720] sm:$0xff] }
 0x17d   :  { %5937 = vmatprep.mubr.bf16.mxu0 %v12788_v29  ;;  %6163 = vmatprep.mubr.bf16.mxu1 %v12788_v29  ;;  %v844_v29 = vld [vmem:[#allocation5 + $0x17a8] sm:$0xff]  ;;  %v11186_v53 = vcombine.high %v13293_v33, %v13295_v23 }
 0x17e   :  { %6010 = vmatprep.subr.bf16.mxu0 %v10994_v59  ;;  %6236 = vmatprep.subr.bf16.mxu1 %v10996_v1 }
 0x180   :  { %6011 = vmatpush1.bf16.msra.mxu0 %v10993_v26  ;;  %6237 = vmatpush1.bf16.msra.mxu1 %v10995_v5  ;;  %v828_v26 = vld [vmem:[#allocation5 + $0x1728] sm:$0xff] }
 0x181   :  { %6012 = vmatprep.subr.bf16.mxu0 %v11026_v6  ;;  %6238 = vmatprep.subr.bf16.mxu1 %v11028_v8  ;;  %v11188_v31 = vcombine.high %v828_v26, %v844_v29  ;;  %v11187_v41 = vcombine.low %v828_v26, %v844_v29 }
 0x183   :  { %5938 = vmatmul.mubr.bf16.gmra.mrb[68].mxu0 %v12789_v17  ;;  %6164 = vmatmul.mubr.bf16.gmra.mrb[68].mxu1 %v12789_v17 }
 0x184   :  { %5947 = vmatprep.mubr.bf16.mxu0 %v12790_v48  ;;  %6173 = vmatprep.mubr.bf16.mxu1 %v12790_v48  ;;  %v13310_v48 = vld [vmem:[#allocation5 + $0xb0] sm:$0xff] }
 0x185   :  { %6013 = vmatpush1.bf16.msra.mxu0 %v11025_v13  ;;  %6239 = vmatpush1.bf16.msra.mxu1 %v11027_v28  ;;  %v10454_v43 = vcombine.high %v13308_v32, %v13310_v48 }
 0x186   :  { %6014 = vmatprep.subr.bf16.mxu0 %v11058_v15  ;;  %6240 = vmatprep.subr.bf16.mxu1 %v11060_v30  ;;  %v12793_v30 = vld [vmem:[#allocation2 + $0x48] ss:$12 sps:$4 sm:$0xff]  }
 0x189   :  { %6015 = vmatpush1.bf16.msra.mxu0 %v11057_v36  ;;  %6241 = vmatpush1.bf16.msra.mxu1 %v11059_v37  ;;  %v13312_v36 = vld [vmem:[#allocation5 + $0x38] sm:$0xff] }
 0x18a   :  { %6016 = vmatprep.subr.bf16.mxu0 %v11090_v10  ;;  %6242 = vmatprep.subr.bf16.mxu1 %v11092_v39  ;;  %v13314_v37 = vld [vmem:[#allocation5 + $0xb8] sm:$0xff]  ;;  %v11185_v39 = vcombine.low %v13293_v33, %v13295_v23 }
 0x18b   :  { %5948 = vmatmul.mubr.bf16.gmra.mrb[72].mxu0 %v12791_v52  ;;  %6174 = vmatmul.mubr.bf16.gmra.mrb[72].mxu1 %v12791_v52 }
 0x18c   :  { %5957 = vmatprep.mubr.bf16.mxu0 %v12792_v19  ;;  %6183 = vmatprep.mubr.bf16.mxu1 %v12792_v19 }
 0x18d   :  { %6017 = vmatpush1.bf16.msra.mxu0 %v11089_v50  ;;  %6243 = vmatpush1.bf16.msra.mxu1 %v11091_v3  ;;  %v10456_v3 = vcombine.high %v13312_v36, %v13314_v37 }
 0x18e   :  { %v5138_v7 = vpop.f32.mrb[0].mxu0  ;;  %6018 = vmatprep.subr.bf16.mxu0 %v11122_v51  ;;  %v5364_v62 = vpop.f32.mrb[0].mxu1  ;;  %6244 = vmatprep.subr.bf16.mxu1 %v11124_v40 }
 0x18f   :  { %v11721_v58 = vadd.f32 %v5138_v7, %v13279_v54  ;;  %v5140_v59 = vpop.f32.mrb[1].mxu0  ;;  %v11753_v14 = vadd.f32 %v5364_v62, %v13284_v16  ;;  %v5366_v1 = vpop.f32.mrb[1].mxu1 }
 0x190   :  { %v11722_v63 = vadd.f32 %v5140_v59, %v13287_v18  ;;  %v5142_v2 = vpop.f32.mrb[2].mxu0  ;;  %v11754_v5 = vadd.f32 %v5366_v1, %v13290_v21  ;;  %v5368_v8 = vpop.f32.mrb[2].mxu1  ;;  %v12796_v59 = vld [vmem:[#allocation2 + $0x7c] ss:$12 sps:$4 sm:$0xff]  }
 0x191   :  { %v11723_v6 = vadd.f32 %v5142_v2, %v13279_v54  ;;  %v5144_v9 = vpop.f32.mrb[3].mxu0  ;;  %6019 = vmatpush1.bf16.msra.mxu0 %v11121_v56  ;;  %v11755_v12 = vadd.f32 %v5368_v8, %v13284_v16  ;;  %v5370_v28 = vpop.f32.mrb[3].mxu1  ;;  %6245 = vmatpush1.bf16.msra.mxu1 %v11123_v22 }
 0x192   :  { %v11465_v25 = vpack.c.bf16 %v11722_v63, %v11721_v58  ;;  %v11724_v13 = vadd.f32 %v5144_v9, %v13287_v18  ;;  %6020 = vmatprep.subr.bf16.mxu0 %v11154_v57  ;;  %v11466_v15 = vpack.c.bf16 %v11754_v5, %v11753_v14  ;;  %v11756_v17 = vadd.f32 %v5370_v28, %v13290_v21  ;;  %v12795_v58 = vld [vmem:[#allocation2 + $0x60] ss:$12 sps:$4 sm:$0xff]  }
 0x193   :  { %5958 = vmatmul.mubr.bf16.gmra.mrb[76].mxu0 %v12793_v30  ;;  %6246 = vmatprep.subr.bf16.mxu1 %v11156_v61 }
 0x194   :  { %10143 = vst [vmem:[#allocation8] sm:$0xff] %v11465_v25  ;;  %v11481_v34 = vpack.c.bf16 %v11724_v13, %v11723_v6  ;;  %6184 = vmatmul.mubr.bf16.gmra.mrb[76].mxu1 %v12793_v30  ;;  %5967 = vmatprep.mubr.bf16.mxu0 %v12794_v35  ;;  %10144 = vst [vmem:[#allocation8 + $0x8] sm:$0xff] %v11466_v15  ;;  %v11482_v10 = vpack.c.bf16 %v11756_v17, %v11755_v12  ;;  %v12797_v17 = vld [vmem:[#allocation2 + $0x78] ss:$12 sps:$4 sm:$0xff]  }
 0x195   :  { %6193 = vmatprep.mubr.bf16.mxu1 %v12794_v35  ;;  %6021 = vmatpush1.bf16.msra.mxu0 %v11153_v4 }
 0x196   :  { %10159 = vst [vmem:[#allocation8 + $0x80] sm:$0xff] %v11481_v34  ;;  %v5148_v42 = vpop.f32.mrb[4].mxu0  ;;  %6247 = vmatpush1.bf16.msra.mxu1 %v11155_v11  ;;  %6022 = vmatprep.subr.bf16.mxu0 %v11186_v53  ;;  %10160 = vst [vmem:[#allocation8 + $0x88] sm:$0xff] %v11482_v10  ;;  %v5374_v47 = vpop.f32.mrb[4].mxu1 }
 0x197   :  { %v11725_v45 = vadd.f32 %v5148_v42, %v13279_v54  ;;  %v5150_v50 = vpop.f32.mrb[5].mxu0  ;;  %6248 = vmatprep.subr.bf16.mxu1 %v11188_v31  ;;  %v11757_v51 = vadd.f32 %v5374_v47, %v13284_v16  ;;  %v5376_v40 = vpop.f32.mrb[5].mxu1  ;;  %v12798_v31 = vld [vmem:[#allocation2 + $0x94] ss:$12 sps:$4 sm:$0xff]  }
 0x198   :  { %v11726_v52 = vadd.f32 %v5150_v50, %v13287_v18  ;;  %v5152_v60 = vpop.f32.mrb[6].mxu0  ;;  %v11758_v0 = vadd.f32 %v5376_v40, %v13290_v21  ;;  %v5378_v20 = vpop.f32.mrb[6].mxu1 }
 0x199   :  { %v11727_v19 = vadd.f32 %v5152_v60, %v13279_v54  ;;  %v5154_v55 = vpop.f32.mrb[7].mxu0  ;;  %6023 = vmatpush1.bf16.msra.mxu0 %v11185_v39  ;;  %v11759_v7 = vadd.f32 %v5378_v20, %v13284_v16  ;;  %v5380_v57 = vpop.f32.mrb[7].mxu1 }
 0x19a   :  { %v11497_v56 = vpack.c.bf16 %v11726_v52, %v11725_v45  ;;  %v11728_v22 = vadd.f32 %v5154_v55, %v13287_v18  ;;  %6249 = vmatpush1.bf16.msra.mxu1 %v11187_v41  ;;  %6347 = vmatprep.subr.bf16.mxu0 %v10454_v43  ;;  %v11498_v33 = vpack.c.bf16 %v11758_v0, %v11757_v51 }
 0x19b   :  { %v11760_v23 = vadd.f32 %v5380_v57, %v13290_v21  ;;  %5968 = vmatmul.mubr.bf16.gmra.mrb[80].mxu0 %v12795_v58  ;;  %6573 = vmatprep.subr.bf16.mxu1 %v10456_v3 }
 0x19c   :  { %10175 = vst [vmem:[#allocation8 + $0x100] sm:$0xff] %v11497_v56  ;;  %v11513_v62 = vpack.c.bf16 %v11728_v22, %v11727_v19  ;;  %6194 = vmatmul.mubr.bf16.gmra.mrb[80].mxu1 %v12795_v58  ;;  %5977 = vmatprep.mubr.bf16.mxu0 %v12796_v59  ;;  %10176 = vst [vmem:[#allocation8 + $0x108] sm:$0xff] %v11498_v33  ;;  %v12799_v56 = vld [vmem:[#allocation2 + $0x90] ss:$12 sps:$4 sm:$0xff]   ;;  %v12800_v22 = vld [vmem:[#allocation2 + $0xac] ss:$12 sps:$4 sm:$0xff]  }
 0x19d   :  { %v11514_v61 = vpack.c.bf16 %v11760_v23, %v11759_v7  ;;  %6203 = vmatprep.mubr.bf16.mxu1 %v12796_v59 }
 0x19e   :  { %10191 = vst [vmem:[#allocation8 + $0x180] sm:$0xff] %v11513_v62  ;;  %v5158_v14 = vpop.f32.mrb[8].mxu0  ;;  %v5384_v1 = vpop.f32.mrb[8].mxu1 }
 0x19f   :  { %10192 = vst [vmem:[#allocation8 + $0x188] sm:$0xff] %v11514_v61  ;;  %v11729_v63 = vadd.f32 %v5158_v14, %v13279_v54  ;;  %v5160_v2 = vpop.f32.mrb[9].mxu0  ;;  %v11761_v4 = vadd.f32 %v5384_v1, %v13284_v16  ;;  %v5386_v29 = vpop.f32.mrb[9].mxu1 }
 0x1a0   :  { %v11730_v26 = vadd.f32 %v5160_v2, %v13287_v18  ;;  %v5162_v5 = vpop.f32.mrb[10].mxu0  ;;  %v11762_v6 = vadd.f32 %v5386_v29, %v13290_v21  ;;  %v5388_v9 = vpop.f32.mrb[10].mxu1 }
 0x1a1   :  { %v11731_v8 = vadd.f32 %v5162_v5, %v13279_v54  ;;  %v5164_v11 = vpop.f32.mrb[11].mxu0  ;;  %v11763_v25 = vadd.f32 %v5388_v9, %v13284_v16  ;;  %v5390_v13 = vpop.f32.mrb[11].mxu1 }
 0x1a2   :  { %v11529_v53 = vpack.c.bf16 %v11730_v26, %v11729_v63  ;;  %v11732_v12 = vadd.f32 %v5164_v11, %v13287_v18  ;;  %v11530_v28 = vpack.c.bf16 %v11762_v6, %v11761_v4  ;;  %v11764_v15 = vadd.f32 %v5390_v13, %v13290_v21 }
 0x1a3   :  { %5978 = vmatmul.mubr.bf16.gmra.mrb[84].mxu0 %v12797_v17 }
 0x1a4   :  { %10207 = vst [vmem:[#allocation8 + $0x200] sm:$0xff] %v11529_v53  ;;  %v11545_v30 = vpack.c.bf16 %v11732_v12, %v11731_v8  ;;  %6204 = vmatmul.mubr.bf16.gmra.mrb[84].mxu1 %v12797_v17  ;;  %5987 = vmatprep.mubr.bf16.mxu0 %v12798_v31  ;;  %10208 = vst [vmem:[#allocation8 + $0x208] sm:$0xff] %v11530_v28  ;;  %v11546_v34 = vpack.c.bf16 %v11764_v15, %v11763_v25  ;;  %v12801_v53 = vld [vmem:[#allocation2 + $0xa8] ss:$12 sps:$4 sm:$0xff]  }
 0x1a5   :  { %6213 = vmatprep.mubr.bf16.mxu1 %v12798_v31  ;;  %v125_v28 = vld [vmem:[#allocation5 + $0x130] sm:$0xff] }
 0x1a6   :  { %10223 = vst [vmem:[#allocation8 + $0x280] sm:$0xff] %v11545_v30  ;;  %v5168_v35 = vpop.f32.mrb[12].mxu0  ;;  %10224 = vst [vmem:[#allocation8 + $0x288] sm:$0xff] %v11546_v34  ;;  %v5394_v39 = vpop.f32.mrb[12].mxu1  ;;  %v141_v15 = vld [vmem:[#allocation5 + $0x1b0] sm:$0xff]  ;;  %v126_v34 = vld [vmem:[#allocation5 + $0x138] sm:$0xff] }
 0x1a7   :  { %v11733_v10 = vadd.f32 %v5168_v35, %v13279_v54  ;;  %v5170_v42 = vpop.f32.mrb[13].mxu0  ;;  %v11765_v41 = vadd.f32 %v5394_v39, %v13284_v16  ;;  %v5396_v45 = vpop.f32.mrb[13].mxu1  ;;  %v142_v35 = vld [vmem:[#allocation5 + $0x1b8] sm:$0xff] }
 0x1a8   :  { %v11734_v43 = vadd.f32 %v5170_v42, %v13287_v18  ;;  %v5172_v47 = vpop.f32.mrb[14].mxu0  ;;  %v11766_v50 = vadd.f32 %v5396_v45, %v13290_v21  ;;  %v5398_v51 = vpop.f32.mrb[14].mxu1 }
 0x1a9   :  { %v11735_v3 = vadd.f32 %v5172_v47, %v13279_v54  ;;  %v5174_v52 = vpop.f32.mrb[15].mxu0  ;;  %v11767_v60 = vadd.f32 %v5398_v51, %v13284_v16  ;;  %v5400_v19 = vpop.f32.mrb[15].mxu1  ;;  %v10455_v51 = vcombine.low %v13312_v36, %v13314_v37  ;;  %v10485_v37 = vcombine.low %v125_v28, %v141_v15 }
 0x1aa   :  { %v11561_v40 = vpack.c.bf16 %v11734_v43, %v11733_v10  ;;  %v11736_v0 = vadd.f32 %v5174_v52, %v13287_v18  ;;  %v11562_v20 = vpack.c.bf16 %v11766_v50, %v11765_v41  ;;  %v11768_v55 = vadd.f32 %v5400_v19, %v13290_v21 }
 0x1ab   :  { %5988 = vmatmul.mubr.bf16.gmra.mrb[88].mxu0 %v12799_v56  ;;  %v10453_v43 = vcombine.low %v13308_v32, %v13310_v48  ;;  %v10486_v52 = vcombine.high %v125_v28, %v141_v15  ;;  %v13369_v32 = vld [vmem:[#allocation5 + $0x2b0] sm:$0xff] }
 0x1ac   :  { %10239 = vst [vmem:[#allocation8 + $0x300] sm:$0xff] %v11561_v40  ;;  %v11577_v7 = vpack.c.bf16 %v11736_v0, %v11735_v3  ;;  %6214 = vmatmul.mubr.bf16.gmra.mrb[88].mxu1 %v12799_v56  ;;  %5997 = vmatprep.mubr.bf16.mxu0 %v12800_v22  ;;  %10240 = vst [vmem:[#allocation8 + $0x308] sm:$0xff] %v11562_v20  ;;  %v11578_v57 = vpack.c.bf16 %v11768_v55, %v11767_v60  ;;  %v13367_v55 = vld [vmem:[#allocation5 + $0x230] sm:$0xff] }
 0x1ad   :  { %6223 = vmatprep.mubr.bf16.mxu1 %v12800_v22  ;;  %v10488_v20 = vcombine.high %v126_v34, %v142_v35  ;;  %v158_v22 = vld [vmem:[#allocation5 + $0x238] sm:$0xff] }
 0x1ae   :  { %10255 = vst [vmem:[#allocation8 + $0x380] sm:$0xff] %v11577_v7  ;;  %v5178_v33 = vpop.f32.mrb[16].mxu0  ;;  %10256 = vst [vmem:[#allocation8 + $0x388] sm:$0xff] %v11578_v57  ;;  %v5404_v58 = vpop.f32.mrb[16].mxu1  ;;  %v12802_v7 = vld [vmem:[#allocation2 + $0x8] ss:$12 sps:$4 sm:$0xff]  }
 0x1af   :  { %v11737_v23 = vadd.f32 %v5178_v33, %v13279_v54  ;;  %v5180_v62 = vpop.f32.mrb[17].mxu0  ;;  %v11769_v59 = vadd.f32 %v5404_v58, %v13284_v16  ;;  %v5406_v14 = vpop.f32.mrb[17].mxu1  ;;  %v174_v57 = vld [vmem:[#allocation5 + $0x2b8] sm:$0xff]  ;;  %v10518_v58 = vcombine.high %v13367_v55, %v13369_v32 }
 0x1b0   :  { %v11738_v61 = vadd.f32 %v5180_v62, %v13287_v18  ;;  %v5182_v63 = vpop.f32.mrb[18].mxu0  ;;  %v11770_v1 = vadd.f32 %v5406_v14, %v13290_v21  ;;  %v5408_v4 = vpop.f32.mrb[18].mxu1  ;;  %v13377_v14 = vld [vmem:[#allocation5 + $0x3b0] sm:$0xff] }
 0x1b1   :  { %v11739_v2 = vadd.f32 %v5182_v63, %v13279_v54  ;;  %v5184_v26 = vpop.f32.mrb[19].mxu0  ;;  %v11771_v5 = vadd.f32 %v5408_v4, %v13284_v16  ;;  %v5410_v8 = vpop.f32.mrb[19].mxu1  ;;  %v13381_v4 = vld [vmem:[#allocation5 + $0x338] sm:$0xff] }
 0x1b2   :  { %v11593_v29 = vpack.c.bf16 %v11738_v61, %v11737_v23  ;;  %v11740_v6 = vadd.f32 %v5184_v26, %v13287_v18  ;;  %v11594_v9 = vpack.c.bf16 %v11770_v1, %v11769_v59  ;;  %v11772_v11 = vadd.f32 %v5410_v8, %v13290_v21  ;;  %v13375_v61 = vld [vmem:[#allocation5 + $0x330] sm:$0xff]  ;;  %v13383_v26 = vld [vmem:[#allocation5 + $0x3b8] sm:$0xff] }
 0x1b3   :  { %5998 = vmatmul.mubr.bf16.gmra.mrb[92].mxu0 %v12801_v53  ;;  %v10487_v23 = vcombine.low %v126_v34, %v142_v35  ;;  %v10520_v59 = vcombine.high %v158_v22, %v174_v57  ;;  %v10550_v28 = vcombine.high %v13375_v61, %v13377_v14  ;;  %v10552_v34 = vcombine.high %v13381_v4, %v13383_v26  ;;  %v13397_v35 = vld [vmem:[#allocation5 + $0x430] sm:$0xff] }
 0x1b4   :  { %10271 = vst [vmem:[#allocation8 + $0x400] sm:$0xff] %v11593_v29  ;;  %v11609_v25 = vpack.c.bf16 %v11740_v6, %v11739_v2  ;;  %6224 = vmatmul.mubr.bf16.gmra.mrb[92].mxu1 %v12801_v53  ;;  %6040 = vmatprep.mubr.bf16.mxu0 %v13027_v24  ;;  %10272 = vst [vmem:[#allocation8 + $0x408] sm:$0xff] %v11594_v9  ;;  %v11610_v12 = vpack.c.bf16 %v11772_v11, %v11771_v5 }
 0x1b5   :  { %6266 = vmatprep.mubr.bf16.mxu1 %v13027_v24  ;;  %v10517_v9 = vcombine.low %v13367_v55, %v13369_v32  ;;  %v10519_v11 = vcombine.low %v158_v22, %v174_v57 }
 0x1b6   :  { %10287 = vst [vmem:[#allocation8 + $0x480] sm:$0xff] %v11609_v25  ;;  %v5188_v13 = vpop.f32.mrb[20].mxu0  ;;  %10288 = vst [vmem:[#allocation8 + $0x488] sm:$0xff] %v11610_v12  ;;  %v5414_v30 = vpop.f32.mrb[20].mxu1 }
 0x1b7   :  { %v11741_v17 = vadd.f32 %v5188_v13, %v13279_v54  ;;  %v5190_v31 = vpop.f32.mrb[21].mxu0  ;;  %v11773_v10 = vadd.f32 %v5414_v30, %v13284_v16  ;;  %v5416_v42 = vpop.f32.mrb[21].mxu1 }
 0x1b8   :  { %v11742_v39 = vadd.f32 %v5190_v31, %v13287_v18  ;;  %v5192_v41 = vpop.f32.mrb[22].mxu0  ;;  %v11774_v45 = vadd.f32 %v5416_v42, %v13290_v21  ;;  %v5418_v50 = vpop.f32.mrb[22].mxu1 }
 0x1b9   :  { %v11743_v47 = vadd.f32 %v5192_v41, %v13279_v54  ;;  %v5194_v3 = vpop.f32.mrb[23].mxu0  ;;  %v11775_v60 = vadd.f32 %v5418_v50, %v13284_v16  ;;  %v5420_v19 = vpop.f32.mrb[23].mxu1  ;;  %v12803_v41 = vld [vmem:[#allocation2 + $0x20] ss:$12 sps:$4 sm:$0xff]   ;;  %v10549_v50 = vcombine.low %v13375_v61, %v13377_v14 }
 0x1ba   :  { %v11625_v40 = vpack.c.bf16 %v11742_v39, %v11741_v17  ;;  %v11744_v0 = vadd.f32 %v5194_v3, %v13287_v18  ;;  %v11626_v48 = vpack.c.bf16 %v11774_v45, %v11773_v10  ;;  %v11776_v56 = vadd.f32 %v5420_v19, %v13290_v21  ;;  %v13399_v10 = vld [vmem:[#allocation5 + $0x4b0] sm:$0xff]  ;;  %v238_v45 = vld [vmem:[#allocation5 + $0x4b8] sm:$0xff] }
 0x1bb   :  { %6041 = vmatmul.mubr.bf16.vlgmr.msra.gmra.mrb[64].mxu0 %v12802_v7  ;;  %v269_v19 = vld [vmem:[#allocation5 + $0x5b0] sm:$0xff] }
 0x1bc   :  { %10303 = vst [vmem:[#allocation8 + $0x500] sm:$0xff] %v11625_v40  ;;  %v11641_v36 = vpack.c.bf16 %v11744_v0, %v11743_v47  ;;  %6267 = vmatmul.mubr.bf16.vlgmr.msra.gmra.mrb[64].mxu1 %v12802_v7  ;;  %6348 = vmatpush1.bf16.msra.mxu0 %v10453_v43  ;;  %10304 = vst [vmem:[#allocation8 + $0x508] sm:$0xff] %v11626_v48  ;;  %v11642_v33 = vpack.c.bf16 %v11776_v56, %v11775_v60  ;;  %v222_v43 = vld [vmem:[#allocation5 + $0x438] sm:$0xff]  ;;  %v253_v0 = vld [vmem:[#allocation5 + $0x530] sm:$0xff] }
 0x1bd   :  { %6574 = vmatpush1.bf16.msra.mxu1 %v10455_v51  ;;  %6349 = vmatprep.subr.bf16.mxu0 %v10486_v52  ;;  %v10551_v51 = vcombine.low %v13381_v4, %v13383_v26  ;;  %v10582_v52 = vcombine.high %v13397_v35, %v13399_v10  ;;  %v10584_v60 = vcombine.high %v222_v43, %v238_v45  ;;  %v254_v48 = vld [vmem:[#allocation5 + $0x538] sm:$0xff]  ;;  %v285_v26 = vld [vmem:[#allocation5 + $0x630] sm:$0xff] }
 0x1be   :  { %10319 = vst [vmem:[#allocation8 + $0x580] sm:$0xff] %v11641_v36  ;;  %v5198_v62 = vpop.f32.mrb[24].mxu0  ;;  %6575 = vmatprep.subr.bf16.mxu1 %v10488_v20  ;;  %6050 = vmatprep.mubr.bf16.mxu0 %v13027_v24  ;;  %10320 = vst [vmem:[#allocation8 + $0x588] sm:$0xff] %v11642_v33  ;;  %v5424_v1 = vpop.f32.mrb[24].mxu1  ;;  %v270_v56 = vld [vmem:[#allocation5 + $0x5b8] sm:$0xff]  ;;  %v10583_v33 = vcombine.low %v222_v43, %v238_v45  ;;  %v10614_v61 = vcombine.high %v253_v0, %v269_v19 }
 0x1bf   :  { %v11745_v63 = vadd.f32 %v5198_v62, %v13279_v54  ;;  %v5200_v2 = vpop.f32.mrb[25].mxu0  ;;  %6276 = vmatprep.mubr.bf16.mxu1 %v13027_v24  ;;  %v11777_v29 = vadd.f32 %v5424_v1, %v13284_v16  ;;  %v5426_v6 = vpop.f32.mrb[25].mxu1  ;;  %v10616_v4 = vcombine.high %v254_v48, %v270_v56 }
 0x1c0   :  { %v11746_v5 = vadd.f32 %v5200_v2, %v13287_v18  ;;  %v5202_v8 = vpop.f32.mrb[26].mxu0  ;;  %6350 = vmatpush1.bf16.msra.mxu0 %v10485_v37  ;;  %v11778_v53 = vadd.f32 %v5426_v6, %v13290_v21  ;;  %v5428_v12 = vpop.f32.mrb[26].mxu1  ;;  %v10581_v37 = vcombine.low %v13397_v35, %v13399_v10  ;;  %v349_v35 = vld [vmem:[#allocation5 + $0x830] sm:$0xff] }
 0x1c1   :  { %v11747_v25 = vadd.f32 %v5202_v8, %v13279_v54  ;;  %6576 = vmatpush1.bf16.msra.mxu1 %v10487_v23  ;;  %v5204_v13 = vpop.f32.mrb[27].mxu0  ;;  %6351 = vmatprep.subr.bf16.mxu0 %v10518_v58  ;;  %v11779_v17 = vadd.f32 %v5428_v12, %v13284_v16  ;;  %v5430_v31 = vpop.f32.mrb[27].mxu1  ;;  %v12804_v8 = vld [vmem:[#allocation2 + $0x38] ss:$12 sps:$4 sm:$0xff]   ;;  %v317_v12 = vld [vmem:[#allocation5 + $0x730] sm:$0xff] }
 0x1c2   :  { %v11657_v15 = vpack.c.bf16 %v11746_v5, %v11745_v63  ;;  %v11748_v30 = vadd.f32 %v5204_v13, %v13287_v18  ;;  %6577 = vmatprep.subr.bf16.mxu1 %v10520_v59  ;;  %v11658_v39 = vpack.c.bf16 %v11778_v53, %v11777_v29  ;;  %v11780_v42 = vadd.f32 %v5430_v31, %v13290_v21  ;;  %v301_v29 = vld [vmem:[#allocation5 + $0x6b0] sm:$0xff] }
 0x1c3   :  { %6051 = vmatmul.mubr.bf16.gmra.mrb[68].mxu0 %v12803_v41  ;;  %v10613_v53 = vcombine.low %v253_v0, %v269_v19  ;;  %v333_v13 = vld [vmem:[#allocation5 + $0x7b0] sm:$0xff] }
 0x1c4   :  { %10335 = vst [vmem:[#allocation8 + $0x600] sm:$0xff] %v11657_v15  ;;  %v11673_v47 = vpack.c.bf16 %v11748_v30, %v11747_v25  ;;  %6277 = vmatmul.mubr.bf16.gmra.mrb[68].mxu1 %v12803_v41  ;;  %6352 = vmatpush1.bf16.msra.mxu0 %v10517_v9  ;;  %10336 = vst [vmem:[#allocation8 + $0x608] sm:$0xff] %v11658_v39  ;;  %v11674_v3 = vpack.c.bf16 %v11780_v42, %v11779_v17  ;;  %v302_v9 = vld [vmem:[#allocation5 + $0x6b8] sm:$0xff]  ;;  %v365_v10 = vld [vmem:[#allocation5 + $0x8b0] sm:$0xff] }
 0x1c5   :  { %6578 = vmatpush1.bf16.msra.mxu1 %v10519_v11  ;;  %6353 = vmatprep.subr.bf16.mxu0 %v10550_v28  ;;  %v10646_v25 = vcombine.high %v285_v26, %v301_v29  ;;  %v318_v28 = vld [vmem:[#allocation5 + $0x738] sm:$0xff]  ;;  %v10645_v17 = vcombine.low %v285_v26, %v301_v29  ;;  %v10678_v31 = vcombine.high %v317_v12, %v333_v13 }
 0x1c6   :  { %10351 = vst [vmem:[#allocation8 + $0x680] sm:$0xff] %v11673_v47  ;;  %v5208_v40 = vpop.f32.mrb[28].mxu0  ;;  %6579 = vmatprep.subr.bf16.mxu1 %v10552_v34  ;;  %6060 = vmatprep.mubr.bf16.mxu0 %v13027_v24  ;;  %10352 = vst [vmem:[#allocation8 + $0x688] sm:$0xff] %v11674_v3  ;;  %v5434_v55 = vpop.f32.mrb[28].mxu1  ;;  %v334_v15 = vld [vmem:[#allocation5 + $0x7b8] sm:$0xff]  ;;  %v10677_v43 = vcombine.low %v317_v12, %v333_v13  ;;  %v10710_v47 = vcombine.high %v349_v35, %v365_v10  ;;  %v381_v3 = vld [vmem:[#allocation5 + $0x930] sm:$0xff] }
 0x1c7   :  { %v11749_v20 = vadd.f32 %v5208_v40, %v13279_v54  ;;  %v5210_v32 = vpop.f32.mrb[29].mxu0  ;;  %6286 = vmatprep.mubr.bf16.mxu1 %v13027_v24  ;;  %v11781_v7 = vadd.f32 %v5434_v55, %v13284_v16  ;;  %v5436_v57 = vpop.f32.mrb[29].mxu1  ;;  %v10680_v34 = vcombine.high %v318_v28, %v334_v15  ;;  %v12805_v39 = vld [vmem:[#allocation2 + $0x50] ss:$12 sps:$4 sm:$0xff]   ;;  %v10679_v45 = vcombine.low %v318_v28, %v334_v15  ;;  %v12808_v15 = vld [vmem:[#allocation2 + $0x98] ss:$12 sps:$4 sm:$0xff]  }
 0x1c8   :  { %v11750_v22 = vadd.f32 %v5210_v32, %v13287_v18  ;;  %v5212_v36 = vpop.f32.mrb[30].mxu0  ;;  %6354 = vmatpush1.bf16.msra.mxu0 %v10549_v50  ;;  %v11782_v23 = vadd.f32 %v5436_v57, %v13290_v21  ;;  %v5438_v62 = vpop.f32.mrb[30].mxu1  ;;  %v350_v42 = vld [vmem:[#allocation5 + $0x838] sm:$0xff]  ;;  %v413_v55 = vld [vmem:[#allocation5 + $0xa30] sm:$0xff] }
 0x1c9   :  { %v11751_v58 = vadd.f32 %v5212_v36, %v13279_v54  ;;  %6580 = vmatpush1.bf16.msra.mxu1 %v10551_v51  ;;  %v5214_v59 = vpop.f32.mrb[31].mxu0  ;;  %6355 = vmatprep.subr.bf16.mxu0 %v10582_v52  ;;  %v11783_v63 = vadd.f32 %v5438_v62, %v13284_v16  ;;  %v5440_v2 = vpop.f32.mrb[31].mxu1  ;;  %v286_v54 = vld [vmem:[#allocation5 + $0x638] sm:$0xff]  ;;  %v397_v51 = vld [vmem:[#allocation5 + $0x9b0] sm:$0xff] }
 0x1ca   :  { %v11689_v14 = vpack.c.bf16 %v11750_v22, %v11749_v20  ;;  %v11752_v1 = vadd.f32 %v5214_v59, %v13287_v18  ;;  %6581 = vmatprep.subr.bf16.mxu1 %v10584_v60  ;;  %v11690_v5 = vpack.c.bf16 %v11782_v23, %v11781_v7  ;;  %v11784_v6 = vadd.f32 %v5440_v2, %v13290_v21  ;;  %v366_v41 = vld [vmem:[#allocation5 + $0x8b8] sm:$0xff]  ;;  %v429_v32 = vld [vmem:[#allocation5 + $0xab0] sm:$0xff] }
 0x1cb   :  { %6061 = vmatmul.mubr.bf16.gmra.mrb[72].mxu0 %v12804_v8  ;;  %v10615_v18 = vcombine.low %v254_v48, %v270_v56  ;;  %v10648_v21 = vcombine.high %v286_v54, %v302_v9  ;;  %v10647_v30 = vcombine.low %v286_v54, %v302_v9  ;;  %v10712_v50 = vcombine.high %v350_v42, %v366_v41  ;;  %v382_v52 = vld [vmem:[#allocation5 + $0x938] sm:$0xff]  ;;  %v12806_v48 = vld [vmem:[#allocation2 + $0x68] ss:$12 sps:$4 sm:$0xff]  }
 0x1cc   :  { %10367 = vst [vmem:[#allocation8 + $0x700] sm:$0xff] %v11689_v14  ;;  %v11705_v11 = vpack.c.bf16 %v11752_v1, %v11751_v58  ;;  %6287 = vmatmul.mubr.bf16.gmra.mrb[72].mxu1 %v12804_v8  ;;  %6356 = vmatpush1.bf16.msra.mxu0 %v10581_v37  ;;  %10368 = vst [vmem:[#allocation8 + $0x708] sm:$0xff] %v11690_v5  ;;  %v11706_v16 = vpack.c.bf16 %v11784_v6, %v11783_v63  ;;  %v398_v40 = vld [vmem:[#allocation5 + $0x9b8] sm:$0xff]  ;;  %v461_v23 = vld [vmem:[#allocation5 + $0xbb0] sm:$0xff] }
 0x1cd   :  { %6582 = vmatpush1.bf16.msra.mxu1 %v10583_v33  ;;  %6357 = vmatprep.subr.bf16.mxu0 %v10614_v61  ;;  %v10709_v60 = vcombine.low %v349_v35, %v365_v10  ;;  %v10711_v0 = vcombine.low %v350_v42, %v366_v41  ;;  %v10742_v19 = vcombine.high %v381_v3, %v397_v51  ;;  %v414_v56 = vld [vmem:[#allocation5 + $0xa38] sm:$0xff]  ;;  %v445_v33 = vld [vmem:[#allocation5 + $0xb30] sm:$0xff] }
 0x1ce   :  { %10383 = vst [vmem:[#allocation8 + $0x780] sm:$0xff] %v11705_v11  ;;  %6583 = vmatprep.subr.bf16.mxu1 %v10616_v4  ;;  %6070 = vmatprep.mubr.bf16.mxu0 %v13027_v24  ;;  %10384 = vst [vmem:[#allocation8 + $0x788] sm:$0xff] %v11706_v16  ;;  %v10744_v20 = vcombine.high %v382_v52, %v398_v40  ;;  %v430_v7 = vld [vmem:[#allocation5 + $0xab8] sm:$0xff]  ;;  %v10741_v22 = vcombine.low %v381_v3, %v397_v51  ;;  %v477_v1 = vld [vmem:[#allocation5 + $0xc30] sm:$0xff] }
 0x1cf   :  { %6296 = vmatprep.mubr.bf16.mxu1 %v13027_v24  ;;  %v10743_v57 = vcombine.low %v382_v52, %v398_v40  ;;  %v10774_v36 = vcombine.high %v413_v55, %v429_v32  ;;  %v10776_v37 = vcombine.high %v414_v56, %v430_v7  ;;  %v446_v58 = vld [vmem:[#allocation5 + $0xb38] sm:$0xff]  ;;  %v10773_v59 = vcombine.low %v413_v55, %v429_v32  ;;  %v493_v2 = vld [vmem:[#allocation5 + $0xcb0] sm:$0xff]  ;;  %v12807_v4 = vld [vmem:[#allocation2 + $0x80] ss:$12 sps:$4 sm:$0xff]  }
 0x1d0   :  { %6358 = vmatpush1.bf16.msra.mxu0 %v10613_v53  ;;  %v462_v62 = vld [vmem:[#allocation5 + $0xbb8] sm:$0xff]  ;;  %v10775_v61 = vcombine.low %v414_v56, %v430_v7  ;;  %v10806_v14 = vcombine.high %v445_v33, %v461_v23  ;;  %v10805_v5 = vcombine.low %v445_v33, %v461_v23  ;;  %v10838_v8 = vcombine.high %v477_v1, %v493_v2  ;;  %v509_v9 = vld [vmem:[#allocation5 + $0xd30] sm:$0xff] }
 0x1d1   :  { %6584 = vmatpush1.bf16.msra.mxu1 %v10615_v18  ;;  %6359 = vmatprep.subr.bf16.mxu0 %v10646_v25  ;;  %v10808_v63 = vcombine.high %v446_v58, %v462_v62  ;;  %v478_v26 = vld [vmem:[#allocation5 + $0xc38] sm:$0xff]  ;;  %v10807_v6 = vcombine.low %v446_v58, %v462_v62  ;;  %v525_v11 = vld [vmem:[#allocation5 + $0xdb0] sm:$0xff]  ;;  %v10837_v18 = vcombine.low %v477_v1, %v493_v2  ;;  %v12811_v62 = vld [vmem:[#allocation2] ss:$12 sps:$4 sm:$0xff]  }
 0x1d2   :  { %6585 = vmatprep.subr.bf16.mxu1 %v10648_v21  ;;  %v494_v29 = vld [vmem:[#allocation5 + $0xcb8] sm:$0xff]  ;;  %v10870_v21 = vcombine.high %v509_v9, %v525_v11  ;;  %v541_v13 = vld [vmem:[#allocation5 + $0xe30] sm:$0xff] }
 0x1d3   :  { %6071 = vmatmul.mubr.bf16.gmra.mrb[76].mxu0 %v12805_v39  ;;  %v10840_v54 = vcombine.high %v478_v26, %v494_v29  ;;  %v510_v53 = vld [vmem:[#allocation5 + $0xd38] sm:$0xff]  ;;  %v10839_v25 = vcombine.low %v478_v26, %v494_v29  ;;  %v557_v28 = vld [vmem:[#allocation5 + $0xeb0] sm:$0xff] }
 0x1d4   :  { %6297 = vmatmul.mubr.bf16.gmra.mrb[76].mxu1 %v12805_v39  ;;  %6360 = vmatpush1.bf16.msra.mxu0 %v10645_v17  ;;  %v526_v16 = vld [vmem:[#allocation5 + $0xdb8] sm:$0xff]  ;;  %v10902_v35 = vcombine.high %v541_v13, %v557_v28  ;;  %v573_v39 = vld [vmem:[#allocation5 + $0xf30] sm:$0xff] }
 0x1d5   :  { %6586 = vmatpush1.bf16.msra.mxu1 %v10647_v30  ;;  %6361 = vmatprep.subr.bf16.mxu0 %v10678_v31  ;;  %v10872_v12 = vcombine.high %v510_v53, %v526_v16  ;;  %v542_v17 = vld [vmem:[#allocation5 + $0xe38] sm:$0xff]  ;;  %v10869_v31 = vcombine.low %v509_v9, %v525_v11  ;;  %v589_v42 = vld [vmem:[#allocation5 + $0xfb0] sm:$0xff] }
 0x1d6   :  { %6587 = vmatprep.subr.bf16.mxu1 %v10680_v34  ;;  %6080 = vmatprep.mubr.bf16.mxu0 %v13027_v24  ;;  %v558_v30 = vld [vmem:[#allocation5 + $0xeb8] sm:$0xff]  ;;  %v10871_v34 = vcombine.low %v510_v53, %v526_v16  ;;  %v605_v51 = vld [vmem:[#allocation5 + $0x1030] sm:$0xff] }
 0x1d7   :  { %6306 = vmatprep.mubr.bf16.mxu1 %v13027_v24  ;;  %v10904_v10 = vcombine.high %v542_v17, %v558_v30  ;;  %v574_v41 = vld [vmem:[#allocation5 + $0xf38] sm:$0xff]  ;;  %v621_v52 = vld [vmem:[#allocation5 + $0x10b0] sm:$0xff] }
 0x1d8   :  { %6362 = vmatpush1.bf16.msra.mxu0 %v10677_v43  ;;  %v590_v43 = vld [vmem:[#allocation5 + $0xfb8] sm:$0xff]  ;;  %v10966_v55 = vcombine.high %v605_v51, %v621_v52  ;;  %v12810_v32 = vld [vmem:[#allocation2 + $0x4] ss:$12 sps:$4 sm:$0xff]  }
 0x1d9   :  { %6588 = vmatpush1.bf16.msra.mxu1 %v10679_v45  ;;  %6363 = vmatprep.subr.bf16.mxu0 %v10710_v47  ;;  %v10901_v45 = vcombine.low %v541_v13, %v557_v28  ;;  %v10903_v47 = vcombine.low %v542_v17, %v558_v30  ;;  %v10936_v3 = vcombine.high %v574_v41, %v590_v43  ;;  %v12809_v40 = vld [vmem:[#allocation2 + $0xb0] ss:$12 sps:$4 sm:$0xff]   ;;  %v12813_v53 = vld [vmem:[#allocation2 + $0x18] ss:$12 sps:$4 sm:$0xff]   ;;  %v13431_v30 = vsub.s32 4, %v13264_v27 }
 0x1da   :  { %6589 = vmatprep.subr.bf16.mxu1 %v10712_v50  ;;  %v10934_v50 = vcombine.high %v573_v39, %v589_v42  ;;  %v637_v56 = vld [vmem:[#allocation5 + $0x1130] sm:$0xff]  ;;  %v12812_v1 = vld [vmem:[#allocation2 + $0x1c] ss:$12 sps:$4 sm:$0xff]  }
 0x1db   :  { %6081 = vmatmul.mubr.bf16.gmra.mrb[80].mxu0 %v12806_v48  ;;  %v653_v7 = vld [vmem:[#allocation5 + $0x11b0] sm:$0xff]  ;;  %v750_v13 = vld [vmem:[#allocation5 + $0x14b8] sm:$0xff] }
 0x1dc   :  { %6307 = vmatmul.mubr.bf16.gmra.mrb[80].mxu1 %v12806_v48  ;;  %6364 = vmatpush1.bf16.msra.mxu0 %v10709_v60  ;;  %v606_v60 = vld [vmem:[#allocation5 + $0x1038] sm:$0xff]  ;;  %v10998_v33 = vcombine.high %v637_v56, %v653_v7  ;;  %v669_v23 = vld [vmem:[#allocation5 + $0x1230] sm:$0xff] }
 0x1dd   :  { %6590 = vmatpush1.bf16.msra.mxu1 %v10711_v0  ;;  %6365 = vmatprep.subr.bf16.mxu0 %v10742_v19  ;;  %v622_v0 = vld [vmem:[#allocation5 + $0x10b8] sm:$0xff]  ;;  %v10933_v19 = vcombine.low %v573_v39, %v589_v42  ;;  %v685_v58 = vld [vmem:[#allocation5 + $0x12b0] sm:$0xff]  ;;  %v13437_v39 = vsub.s32 5, %v13264_v27 }
 0x1de   :  { %6591 = vmatprep.subr.bf16.mxu1 %v10744_v20  ;;  %6090 = vmatprep.mubr.bf16.mxu0 %v13027_v24  ;;  %v10935_v20 = vcombine.low %v574_v41, %v590_v43  ;;  %v10968_v48 = vcombine.high %v606_v60, %v622_v0  ;;  %v701_v29 = vld [vmem:[#allocation5 + $0x1330] sm:$0xff]  ;;  %v766_v42 = vld [vmem:[#allocation5 + $0x1538] sm:$0xff]  ;;  %v13440_v43 = vsub.s32 7, %v13264_v27 }
 0x1df   :  { %6316 = vmatprep.mubr.bf16.mxu1 %v13027_v24  ;;  %v782_v41 = vld [vmem:[#allocation5 + $0x15b8] sm:$0xff] }
 0x1e0   :  { %6366 = vmatpush1.bf16.msra.mxu0 %v10741_v22  ;;  %v10965_v22 = vcombine.low %v605_v51, %v621_v52  ;;  %v12816_v51 = vld [vmem:[#allocation7] sm:$0xff] }
 0x1e1   :  { %6592 = vmatpush1.bf16.msra.mxu1 %v10743_v57  ;;  %6367 = vmatprep.subr.bf16.mxu0 %v10774_v36  ;;  %v638_v57 = vld [vmem:[#allocation5 + $0x1138] sm:$0xff]  ;;  %v13443_v52 = vrot.slane %v12816_v51, %v13431_v30 }
 0x1e2   :  { %6593 = vmatprep.subr.bf16.mxu1 %v10776_v37  ;;  %v654_v36 = vld [vmem:[#allocation5 + $0x11b8] sm:$0xff]  ;;  %v10967_v37 = vcombine.low %v606_v60, %v622_v0  ;;  %v13445_v60 = vld [vmem:[#allocation5 + $0x1630] sm:$0xff] }
 0x1e3   :  { %6091 = vmatmul.mubr.bf16.gmra.mrb[84].mxu0 %v12807_v4  ;;  %v10999_v2 = vcombine.low %v638_v57, %v654_v36  ;;  %v813_v0 = vld [vmem:[#allocation5 + $0x16b0] sm:$0xff] }
 0x1e4   :  { %6317 = vmatmul.mubr.bf16.gmra.mrb[84].mxu1 %v12807_v4  ;;  %6368 = vmatpush1.bf16.msra.mxu0 %v10773_v59  ;;  %v11000_v59 = vcombine.high %v638_v57, %v654_v36  ;;  %v11030_v4 = vcombine.high %v669_v23, %v685_v58  ;;  %v11158_v57 = vcombine.high %v13445_v60, %v813_v0  ;;  %v13457_v36 = vld [vmem:[#allocation5 + $0x1730] sm:$0xff] }
 0x1e5   :  { %6594 = vmatpush1.bf16.msra.mxu1 %v10775_v61  ;;  %6369 = vmatprep.subr.bf16.mxu0 %v10806_v14  ;;  %v670_v61 = vld [vmem:[#allocation5 + $0x1238] sm:$0xff] }
 0x1e6   :  { %6595 = vmatprep.subr.bf16.mxu1 %v10808_v63  ;;  %6100 = vmatprep.mubr.bf16.mxu0 %v13027_v24  ;;  %v686_v14 = vld [vmem:[#allocation5 + $0x12b8] sm:$0xff]  ;;  %v10997_v63 = vcombine.low %v637_v56, %v653_v7 }
 0x1e7   :  { %6326 = vmatprep.mubr.bf16.mxu1 %v13027_v24  ;;  %v11032_v26 = vcombine.high %v670_v61, %v686_v14  ;;  %v11031_v9 = vcombine.low %v670_v61, %v686_v14 }
 0x1e8   :  { %6370 = vmatpush1.bf16.msra.mxu0 %v10805_v5  ;;  %v717_v5 = vld [vmem:[#allocation5 + $0x13b0] sm:$0xff] }
 0x1e9   :  { %6596 = vmatpush1.bf16.msra.mxu1 %v10807_v6  ;;  %6371 = vmatprep.subr.bf16.mxu0 %v10838_v8  ;;  %v702_v6 = vld [vmem:[#allocation5 + $0x1338] sm:$0xff]  ;;  %v11062_v11 = vcombine.high %v701_v29, %v717_v5  ;;  %v11061_v28 = vcombine.low %v701_v29, %v717_v5 }
 0x1ea   :  { %6597 = vmatprep.subr.bf16.mxu1 %v10840_v54  ;;  %v718_v8 = vld [vmem:[#allocation5 + $0x13b8] sm:$0xff]  ;;  %v11029_v54 = vcombine.low %v669_v23, %v685_v58 }
 0x1eb   :  { %6101 = vmatmul.mubr.bf16.gmra.mrb[88].mxu0 %v12808_v15  ;;  %v11064_v16 = vcombine.high %v702_v6, %v718_v8 }
 0x1ec   :  { %6327 = vmatmul.mubr.bf16.gmra.mrb[88].mxu1 %v12808_v15  ;;  %6372 = vmatpush1.bf16.msra.mxu0 %v10837_v18  ;;  %v733_v18 = vld [vmem:[#allocation5 + $0x1430] sm:$0xff]  ;;  %v11063_v15 = vcombine.low %v702_v6, %v718_v8 }
 0x1ed   :  { %6598 = vmatpush1.bf16.msra.mxu1 %v10839_v25  ;;  %6373 = vmatprep.subr.bf16.mxu0 %v10870_v21  ;;  %v749_v25 = vld [vmem:[#allocation5 + $0x14b0] sm:$0xff] }
 0x1ee   :  { %6599 = vmatprep.subr.bf16.mxu1 %v10872_v12  ;;  %6110 = vmatprep.mubr.bf16.mxu0 %v13027_v24  ;;  %v12814_v21 = vld [vmem:[#allocation2 + $0x34] ss:$12 sps:$4 sm:$0xff]   ;;  %v734_v12 = vld [vmem:[#allocation5 + $0x1438] sm:$0xff]  ;;  %v11094_v17 = vcombine.high %v733_v18, %v749_v25 }
 0x1ef   :  { %6336 = vmatprep.mubr.bf16.mxu1 %v13027_v24 }
 0x1f0   :  { %6374 = vmatpush1.bf16.msra.mxu0 %v10869_v31  ;;  %v11096_v31 = vcombine.high %v734_v12, %v750_v13 }
 0x1f1   :  { %6600 = vmatpush1.bf16.msra.mxu1 %v10871_v34  ;;  %6375 = vmatprep.subr.bf16.mxu0 %v10902_v35  ;;  %v765_v34 = vld [vmem:[#allocation5 + $0x1530] sm:$0xff] }
 0x1f2   :  { %6601 = vmatprep.subr.bf16.mxu1 %v10904_v10  ;;  %v781_v35 = vld [vmem:[#allocation5 + $0x15b0] sm:$0xff]  ;;  %v13434_v10 = vsub.s32 6, %v13264_v27 }
 0x1f3   :  { %6111 = vmatmul.mubr.bf16.gmra.mrb[92].mxu0 %v12809_v40  ;;  %v11125_v56 = vcombine.low %v765_v34, %v781_v35 }
 0x1f4   :  { %6337 = vmatmul.mubr.bf16.gmra.mrb[92].mxu1 %v12809_v40  ;;  %6376 = vmatpush1.bf16.msra.mxu0 %v10901_v45  ;;  %v11093_v45 = vcombine.low %v733_v18, %v749_v25  ;;  %v11128_v40 = vcombine.high %v766_v42, %v782_v41  ;;  %v13448_v27 = vrot.slane %v12816_v51, %v13434_v10 }
 0x1f5   :  { %6602 = vmatpush1.bf16.msra.mxu1 %v10903_v47  ;;  %6377 = vmatprep.subr.bf16.mxu0 %v10934_v50  ;;  %v11095_v47 = vcombine.low %v734_v12, %v750_v13  ;;  %v11126_v50 = vcombine.high %v765_v34, %v781_v35  ;;  %v13472_v13 = vld [vmem:[#allocation5 + $0x40] sm:$0xff]  ;;  %v13478_v34 = vld [vmem:[#allocation5 + $0xc8] sm:$0xff] }
 0x1f6   :  { %6603 = vmatprep.subr.bf16.mxu1 %v10936_v3  ;;  %6379 = vmatprep.mubr.bf16.mxu0 %v12810_v32  ;;  %v12815_v3 = vld [vmem:[#allocation2 + $0x30] ss:$12 sps:$4 sm:$0xff]  }
 0x1f7   :  { %6605 = vmatprep.mubr.bf16.mxu1 %v12810_v32  ;;  %v814_v32 = vld [vmem:[#allocation5 + $0x16b8] sm:$0xff] }
 0x1f8   :  { %6378 = vmatpush1.bf16.msra.mxu0 %v10933_v19  ;;  %v13451_v19 = vrot.slane %v12816_v51, %v13437_v39 }
 0x1f9   :  { %6604 = vmatpush1.bf16.msra.mxu1 %v10935_v20  ;;  %6460 = vmatprep.subr.bf16.mxu0 %v10966_v55  ;;  %v12817_v20 = vld [vmem:[#allocation2 + $0x4c] ss:$12 sps:$4 sm:$0xff]  }
 0x1fa   :  { %6686 = vmatprep.subr.bf16.mxu1 %v10968_v48  ;;  %v798_v55 = vld [vmem:[#allocation5 + $0x1638] sm:$0xff]  ;;  %v13454_v48 = vrot.slane %v12816_v51, %v13440_v43 }
 0x1fb   :  { %6380 = vmatmul.mubr.bf16.vlgmr.msra.gmra.mrb[96].mxu0 %v12811_v62  ;;  %v11159_v8 = vcombine.low %v798_v55, %v814_v32 }
 0x1fc   :  { %6606 = vmatmul.mubr.bf16.vlgmr.msra.gmra.mrb[96].mxu1 %v12811_v62  ;;  %6461 = vmatpush1.bf16.msra.mxu0 %v10965_v22  ;;  %v11127_v22 = vcombine.low %v766_v42, %v782_v41  ;;  %v11160_v62 = vcombine.high %v798_v55, %v814_v32 }
 0x1fd   :  { %6687 = vmatpush1.bf16.msra.mxu1 %v10967_v37  ;;  %6389 = vmatprep.mubr.bf16.mxu0 %v12812_v1  ;;  %v13459_v37 = vld [vmem:[#allocation5 + $0x17b0] sm:$0xff] }
 0x1fe   :  { %6615 = vmatprep.mubr.bf16.mxu1 %v12812_v1  ;;  %6462 = vmatprep.subr.bf16.mxu0 %v10998_v33  ;;  %v11157_v1 = vcombine.low %v13445_v60, %v813_v0  ;;  %v11189_v42 = vcombine.low %v13457_v36, %v13459_v37 }
 0x1ff   :  { %6688 = vmatprep.subr.bf16.mxu1 %v11000_v59 }
 0x200   :  { %6463 = vmatpush1.bf16.msra.mxu0 %v10997_v63 }
 0x201   :  { %6689 = vmatpush1.bf16.msra.mxu1 %v10999_v2  ;;  %6464 = vmatprep.subr.bf16.mxu0 %v11030_v4  ;;  %v830_v2 = vld [vmem:[#allocation5 + $0x1738] sm:$0xff] }
 0x202   :  { %6690 = vmatprep.subr.bf16.mxu1 %v11032_v26  ;;  %v846_v4 = vld [vmem:[#allocation5 + $0x17b8] sm:$0xff] }
 0x203   :  { %6390 = vmatmul.mubr.bf16.gmra.mrb[100].mxu0 %v12813_v53  ;;  %v11192_v12 = vcombine.high %v830_v2, %v846_v4 }
 0x204   :  { %6616 = vmatmul.mubr.bf16.gmra.mrb[100].mxu1 %v12813_v53  ;;  %6399 = vmatprep.mubr.bf16.mxu0 %v12814_v21 }
 0x205   :  { %6625 = vmatprep.mubr.bf16.mxu1 %v12814_v21  ;;  %6465 = vmatpush1.bf16.msra.mxu0 %v11029_v54  ;;  %v11190_v54 = vcombine.high %v13457_v36, %v13459_v37  ;;  %v12818_v21 = vld [vmem:[#allocation2 + $0x48] ss:$12 sps:$4 sm:$0xff]  }
 0x206   :  { %6691 = vmatpush1.bf16.msra.mxu1 %v11031_v9  ;;  %6466 = vmatprep.subr.bf16.mxu0 %v11062_v11 }
 0x207   :  { %6692 = vmatprep.subr.bf16.mxu1 %v11064_v16 }
 0x209   :  { %6467 = vmatpush1.bf16.msra.mxu0 %v11061_v28  ;;  %v13474_v28 = vld [vmem:[#allocation5 + $0xc0] sm:$0xff] }
 0x20a   :  { %6693 = vmatpush1.bf16.msra.mxu1 %v11063_v15  ;;  %6468 = vmatprep.subr.bf16.mxu0 %v11094_v17  ;;  %v12819_v17 = vld [vmem:[#allocation2 + $0x64] ss:$12 sps:$4 sm:$0xff]  }
 0x20b   :  { %6400 = vmatmul.mubr.bf16.gmra.mrb[104].mxu0 %v12815_v3  ;;  %6694 = vmatprep.subr.bf16.mxu1 %v11096_v31  ;;  %v13476_v31 = vld [vmem:[#allocation5 + $0x48] sm:$0xff] }
 0x20c   :  { %6626 = vmatmul.mubr.bf16.gmra.mrb[104].mxu1 %v12815_v3  ;;  %6409 = vmatprep.mubr.bf16.mxu0 %v12817_v20 }
 0x20d   :  { %6635 = vmatprep.mubr.bf16.mxu1 %v12817_v20  ;;  %6469 = vmatpush1.bf16.msra.mxu0 %v11093_v45  ;;  %v11191_v45 = vcombine.low %v830_v2, %v846_v4 }
 0x20e   :  { %v5590_v7 = vpop.f32.mrb[32].mxu0  ;;  %6695 = vmatpush1.bf16.msra.mxu1 %v11095_v47  ;;  %6470 = vmatprep.subr.bf16.mxu0 %v11126_v50  ;;  %v5816_v23 = vpop.f32.mrb[32].mxu1  ;;  %v10458_v47 = vcombine.high %v13472_v13, %v13474_v28 }
 0x20f   :  { %v11785_v33 = vadd.f32 %v5590_v7, %v13443_v52  ;;  %v5592_v58 = vpop.f32.mrb[33].mxu0  ;;  %6696 = vmatprep.subr.bf16.mxu1 %v11128_v40  ;;  %v11817_v59 = vadd.f32 %v5816_v23, %v13448_v27  ;;  %v5818_v14 = vpop.f32.mrb[33].mxu1  ;;  %v10460_v40 = vcombine.high %v13476_v31, %v13478_v34 }
 0x210   :  { %v11786_v61 = vadd.f32 %v5592_v58, %v13451_v19  ;;  %v5594_v63 = vpop.f32.mrb[34].mxu0  ;;  %v11818_v26 = vadd.f32 %v5818_v14, %v13454_v48  ;;  %v5820_v5 = vpop.f32.mrb[34].mxu1 }
 0x211   :  { %v11787_v29 = vadd.f32 %v5594_v63, %v13443_v52  ;;  %v5596_v6 = vpop.f32.mrb[35].mxu0  ;;  %6471 = vmatpush1.bf16.msra.mxu0 %v11125_v56  ;;  %v11819_v11 = vadd.f32 %v5820_v5, %v13448_v27  ;;  %v5822_v16 = vpop.f32.mrb[35].mxu1 }
 0x212   :  { %v11467_v9 = vpack.c.bf16 %v11786_v61, %v11785_v33  ;;  %v11788_v53 = vadd.f32 %v5596_v6, %v13451_v19  ;;  %6697 = vmatpush1.bf16.msra.mxu1 %v11127_v22  ;;  %6472 = vmatprep.subr.bf16.mxu0 %v11158_v57  ;;  %v11468_v18 = vpack.c.bf16 %v11818_v26, %v11817_v59  ;;  %v12821_v61 = vld [vmem:[#allocation2 + $0x7c] ss:$12 sps:$4 sm:$0xff]  }
 0x213   :  { %v11820_v25 = vadd.f32 %v5822_v16, %v13454_v48  ;;  %6410 = vmatmul.mubr.bf16.gmra.mrb[108].mxu0 %v12818_v21  ;;  %6698 = vmatprep.subr.bf16.mxu1 %v11160_v62  ;;  %v12820_v62 = vld [vmem:[#allocation2 + $0x60] ss:$12 sps:$4 sm:$0xff]  }
 0x214   :  { %10145 = vst [vmem:[#allocation8 + $0x10] sm:$0xff] %v11467_v9  ;;  %v11483_v15 = vpack.c.bf16 %v11788_v53, %v11787_v29  ;;  %6636 = vmatmul.mubr.bf16.gmra.mrb[108].mxu1 %v12818_v21  ;;  %6419 = vmatprep.mubr.bf16.mxu0 %v12819_v17  ;;  %10146 = vst [vmem:[#allocation8 + $0x18] sm:$0xff] %v11468_v18 }
 0x215   :  { %v11484_v35 = vpack.c.bf16 %v11820_v25, %v11819_v11  ;;  %6645 = vmatprep.mubr.bf16.mxu1 %v12819_v17  ;;  %6473 = vmatpush1.bf16.msra.mxu0 %v11157_v1 }
 0x216   :  { %10161 = vst [vmem:[#allocation8 + $0x90] sm:$0xff] %v11483_v15  ;;  %v5600_v41 = vpop.f32.mrb[36].mxu0  ;;  %6699 = vmatpush1.bf16.msra.mxu1 %v11159_v8  ;;  %6474 = vmatprep.subr.bf16.mxu0 %v11190_v54  ;;  %v5826_v3 = vpop.f32.mrb[36].mxu1  ;;  %v12822_v15 = vld [vmem:[#allocation2 + $0x78] ss:$12 sps:$4 sm:$0xff]  }
 0x217   :  { %10162 = vst [vmem:[#allocation8 + $0x98] sm:$0xff] %v11484_v35  ;;  %v11789_v50 = vadd.f32 %v5600_v41, %v13443_v52  ;;  %v5602_v51 = vpop.f32.mrb[37].mxu0  ;;  %6700 = vmatprep.subr.bf16.mxu1 %v11192_v12  ;;  %v11821_v60 = vadd.f32 %v5826_v3, %v13448_v27  ;;  %v5828_v20 = vpop.f32.mrb[37].mxu1  ;;  %v12823_v35 = vld [vmem:[#allocation2 + $0x94] ss:$12 sps:$4 sm:$0xff]  }
 0x218   :  { %v11790_v0 = vadd.f32 %v5602_v51, %v13451_v19  ;;  %v5604_v55 = vpop.f32.mrb[38].mxu0  ;;  %v11822_v32 = vadd.f32 %v5828_v20, %v13454_v48  ;;  %v5830_v7 = vpop.f32.mrb[38].mxu1 }
 0x219   :  { %v11791_v56 = vadd.f32 %v5604_v55, %v13443_v52  ;;  %v5606_v22 = vpop.f32.mrb[39].mxu0  ;;  %6475 = vmatpush1.bf16.msra.mxu0 %v11189_v42  ;;  %v11823_v36 = vadd.f32 %v5830_v7, %v13448_v27  ;;  %v5832_v33 = vpop.f32.mrb[39].mxu1 }
 0x21a   :  { %v11499_v57 = vpack.c.bf16 %v11790_v0, %v11789_v50  ;;  %v11792_v37 = vadd.f32 %v5606_v22, %v13451_v19  ;;  %6701 = vmatpush1.bf16.msra.mxu1 %v11191_v45  ;;  %6799 = vmatprep.subr.bf16.mxu0 %v10458_v47  ;;  %v11500_v23 = vpack.c.bf16 %v11822_v32, %v11821_v60 }
 0x21b   :  { %v11824_v58 = vadd.f32 %v5832_v33, %v13454_v48  ;;  %6420 = vmatmul.mubr.bf16.gmra.mrb[112].mxu0 %v12820_v62  ;;  %7025 = vmatprep.subr.bf16.mxu1 %v10460_v40  ;;  %v12824_v33 = vld [vmem:[#allocation2 + $0x90] ss:$12 sps:$4 sm:$0xff]  }
 0x21c   :  { %10177 = vst [vmem:[#allocation8 + $0x110] sm:$0xff] %v11499_v57  ;;  %v11515_v59 = vpack.c.bf16 %v11792_v37, %v11791_v56  ;;  %6646 = vmatmul.mubr.bf16.gmra.mrb[112].mxu1 %v12820_v62  ;;  %6429 = vmatprep.mubr.bf16.mxu0 %v12821_v61  ;;  %10178 = vst [vmem:[#allocation8 + $0x118] sm:$0xff] %v11500_v23 }
 0x21d   :  { %v11516_v14 = vpack.c.bf16 %v11824_v58, %v11823_v36  ;;  %6655 = vmatprep.mubr.bf16.mxu1 %v12821_v61  ;;  %v12825_v58 = vld [vmem:[#allocation2 + $0xac] ss:$12 sps:$4 sm:$0xff]  }
 0x21e   :  { %10193 = vst [vmem:[#allocation8 + $0x190] sm:$0xff] %v11515_v59  ;;  %v5610_v63 = vpop.f32.mrb[40].mxu0  ;;  %v5836_v2 = vpop.f32.mrb[40].mxu1 }
 0x21f   :  { %10194 = vst [vmem:[#allocation8 + $0x198] sm:$0xff] %v11516_v14  ;;  %v11793_v1 = vadd.f32 %v5610_v63, %v13443_v52  ;;  %v5612_v4 = vpop.f32.mrb[41].mxu0  ;;  %v11825_v26 = vadd.f32 %v5836_v2, %v13448_v27  ;;  %v5838_v5 = vpop.f32.mrb[41].mxu1 }
 0x220   :  { %v11794_v29 = vadd.f32 %v5612_v4, %v13451_v19  ;;  %v5614_v6 = vpop.f32.mrb[42].mxu0  ;;  %v11826_v8 = vadd.f32 %v5838_v5, %v13454_v48  ;;  %v5840_v9 = vpop.f32.mrb[42].mxu1 }
 0x221   :  { %v11795_v54 = vadd.f32 %v5614_v6, %v13443_v52  ;;  %v5616_v11 = vpop.f32.mrb[43].mxu0  ;;  %v11827_v16 = vadd.f32 %v5840_v9, %v13448_v27  ;;  %v5842_v25 = vpop.f32.mrb[43].mxu1 }
 0x222   :  { %v11531_v53 = vpack.c.bf16 %v11794_v29, %v11793_v1  ;;  %v11796_v18 = vadd.f32 %v5616_v11, %v13451_v19  ;;  %v11532_v21 = vpack.c.bf16 %v11826_v8, %v11825_v26  ;;  %v11828_v12 = vadd.f32 %v5842_v25, %v13454_v48  ;;  %v12826_v25 = vld [vmem:[#allocation2 + $0xa8] ss:$12 sps:$4 sm:$0xff]  }
 0x223   :  { %6430 = vmatmul.mubr.bf16.gmra.mrb[116].mxu0 %v12822_v15 }
 0x224   :  { %10209 = vst [vmem:[#allocation8 + $0x210] sm:$0xff] %v11531_v53  ;;  %v11547_v17 = vpack.c.bf16 %v11796_v18, %v11795_v54  ;;  %6656 = vmatmul.mubr.bf16.gmra.mrb[116].mxu1 %v12822_v15  ;;  %6439 = vmatprep.mubr.bf16.mxu0 %v12823_v35  ;;  %10210 = vst [vmem:[#allocation8 + $0x218] sm:$0xff] %v11532_v21  ;;  %v11548_v42 = vpack.c.bf16 %v11828_v12, %v11827_v16 }
 0x225   :  { %6665 = vmatprep.mubr.bf16.mxu1 %v12823_v35  ;;  %v143_v35 = vld [vmem:[#allocation5 + $0x1c0] sm:$0xff] }
 0x226   :  { %10225 = vst [vmem:[#allocation8 + $0x290] sm:$0xff] %v11547_v17  ;;  %v5620_v41 = vpop.f32.mrb[44].mxu0  ;;  %10226 = vst [vmem:[#allocation8 + $0x298] sm:$0xff] %v11548_v42  ;;  %v5846_v47 = vpop.f32.mrb[44].mxu1  ;;  %v127_v17 = vld [vmem:[#allocation5 + $0x140] sm:$0xff] }
 0x227   :  { %v11797_v45 = vadd.f32 %v5620_v41, %v13443_v52  ;;  %v5622_v50 = vpop.f32.mrb[45].mxu0  ;;  %v11829_v3 = vadd.f32 %v5846_v47, %v13448_v27  ;;  %v5848_v40 = vpop.f32.mrb[45].mxu1  ;;  %v128_v47 = vld [vmem:[#allocation5 + $0x148] sm:$0xff] }
 0x228   :  { %v11798_v51 = vadd.f32 %v5622_v50, %v13451_v19  ;;  %v5624_v60 = vpop.f32.mrb[46].mxu0  ;;  %v11830_v0 = vadd.f32 %v5848_v40, %v13454_v48  ;;  %v5850_v55 = vpop.f32.mrb[46].mxu1  ;;  %v144_v50 = vld [vmem:[#allocation5 + $0x1c8] sm:$0xff] }
 0x229   :  { %v11799_v20 = vadd.f32 %v5624_v60, %v13443_v52  ;;  %v5626_v32 = vpop.f32.mrb[47].mxu0  ;;  %v11831_v7 = vadd.f32 %v5850_v55, %v13448_v27  ;;  %v5852_v57 = vpop.f32.mrb[47].mxu1 }
 0x22a   :  { %v11563_v56 = vpack.c.bf16 %v11798_v51, %v11797_v45  ;;  %v11800_v22 = vadd.f32 %v5626_v32, %v13451_v19  ;;  %v11564_v36 = vpack.c.bf16 %v11830_v0, %v11829_v3  ;;  %v11832_v37 = vadd.f32 %v5852_v57, %v13454_v48 }
 0x22b   :  { %6440 = vmatmul.mubr.bf16.gmra.mrb[120].mxu0 %v12824_v33  ;;  %v10457_v0 = vcombine.low %v13472_v13, %v13474_v28  ;;  %v13533_v13 = vld [vmem:[#allocation5 + $0x2c0] sm:$0xff] }
 0x22c   :  { %10241 = vst [vmem:[#allocation8 + $0x310] sm:$0xff] %v11563_v56  ;;  %v11579_v23 = vpack.c.bf16 %v11800_v22, %v11799_v20  ;;  %6666 = vmatmul.mubr.bf16.gmra.mrb[120].mxu1 %v12824_v33  ;;  %6449 = vmatprep.mubr.bf16.mxu0 %v12825_v58  ;;  %10242 = vst [vmem:[#allocation8 + $0x318] sm:$0xff] %v11564_v36  ;;  %v11580_v62 = vpack.c.bf16 %v11832_v37, %v11831_v7 }
 0x22d   :  { %6675 = vmatprep.mubr.bf16.mxu1 %v12825_v58  ;;  %v10459_v7 = vcombine.low %v13476_v31, %v13478_v34  ;;  %v10490_v22 = vcombine.high %v127_v17, %v143_v35  ;;  %v13531_v58 = vld [vmem:[#allocation5 + $0x240] sm:$0xff]  ;;  %v10489_v34 = vcombine.low %v127_v17, %v143_v35 }
 0x22e   :  { %10257 = vst [vmem:[#allocation8 + $0x390] sm:$0xff] %v11579_v23  ;;  %v5630_v59 = vpop.f32.mrb[48].mxu0  ;;  %10258 = vst [vmem:[#allocation8 + $0x398] sm:$0xff] %v11580_v62  ;;  %v5856_v14 = vpop.f32.mrb[48].mxu1  ;;  %v10492_v23 = vcombine.high %v128_v47, %v144_v50 }
 0x22f   :  { %v11801_v61 = vadd.f32 %v5630_v59, %v13443_v52  ;;  %v5632_v63 = vpop.f32.mrb[49].mxu0  ;;  %v11833_v1 = vadd.f32 %v5856_v14, %v13448_v27  ;;  %v5858_v4 = vpop.f32.mrb[49].mxu1  ;;  %v12827_v59 = vld [vmem:[#allocation2 + $0x8] ss:$12 sps:$4 sm:$0xff]  }
 0x230   :  { %v11802_v2 = vadd.f32 %v5632_v63, %v13451_v19  ;;  %v5634_v26 = vpop.f32.mrb[50].mxu0  ;;  %v11834_v29 = vadd.f32 %v5858_v4, %v13454_v48  ;;  %v5860_v6 = vpop.f32.mrb[50].mxu1  ;;  %v176_v14 = vld [vmem:[#allocation5 + $0x2c8] sm:$0xff] }
 0x231   :  { %v11803_v5 = vadd.f32 %v5634_v26, %v13443_v52  ;;  %v5636_v8 = vpop.f32.mrb[51].mxu0  ;;  %v11835_v9 = vadd.f32 %v5860_v6, %v13448_v27  ;;  %v5862_v53 = vpop.f32.mrb[51].mxu1 }
 0x232   :  { %v11595_v54 = vpack.c.bf16 %v11802_v2, %v11801_v61  ;;  %v11804_v11 = vadd.f32 %v5636_v8, %v13451_v19  ;;  %v11596_v16 = vpack.c.bf16 %v11834_v29, %v11833_v1  ;;  %v11836_v18 = vadd.f32 %v5862_v53, %v13454_v48  ;;  %v160_v61 = vld [vmem:[#allocation5 + $0x248] sm:$0xff]  ;;  %v13539_v29 = vld [vmem:[#allocation5 + $0x340] sm:$0xff] }
 0x233   :  { %6450 = vmatmul.mubr.bf16.gmra.mrb[124].mxu0 %v12826_v25  ;;  %v10491_v1 = vcombine.low %v128_v47, %v144_v50  ;;  %v10522_v2 = vcombine.high %v13531_v58, %v13533_v13  ;;  %v10524_v26 = vcombine.high %v160_v61, %v176_v14 }
 0x234   :  { %10273 = vst [vmem:[#allocation8 + $0x410] sm:$0xff] %v11595_v54  ;;  %v11611_v21 = vpack.c.bf16 %v11804_v11, %v11803_v5  ;;  %6676 = vmatmul.mubr.bf16.gmra.mrb[124].mxu1 %v12826_v25  ;;  %6492 = vmatprep.mubr.bf16.mxu0 %v13027_v24  ;;  %10274 = vst [vmem:[#allocation8 + $0x418] sm:$0xff] %v11596_v16  ;;  %v11612_v12 = vpack.c.bf16 %v11836_v18, %v11835_v9  ;;  %v13541_v5 = vld [vmem:[#allocation5 + $0x3c0] sm:$0xff]  ;;  %v13545_v9 = vld [vmem:[#allocation5 + $0x348] sm:$0xff] }
 0x235   :  { %6718 = vmatprep.mubr.bf16.mxu1 %v13027_v24  ;;  %v13547_v11 = vld [vmem:[#allocation5 + $0x3c8] sm:$0xff] }
 0x236   :  { %10289 = vst [vmem:[#allocation8 + $0x490] sm:$0xff] %v11611_v21  ;;  %v5640_v15 = vpop.f32.mrb[52].mxu0  ;;  %10290 = vst [vmem:[#allocation8 + $0x498] sm:$0xff] %v11612_v12  ;;  %v5866_v41 = vpop.f32.mrb[52].mxu1  ;;  %v10521_v21 = vcombine.low %v13531_v58, %v13533_v13  ;;  %v10523_v12 = vcombine.low %v160_v61, %v176_v14  ;;  %v255_v58 = vld [vmem:[#allocation5 + $0x540] sm:$0xff]  ;;  %v256_v61 = vld [vmem:[#allocation5 + $0x548] sm:$0xff] }
 0x237   :  { %v11805_v42 = vadd.f32 %v5640_v15, %v13443_v52  ;;  %v5642_v45 = vpop.f32.mrb[53].mxu0  ;;  %v11837_v3 = vadd.f32 %v5866_v41, %v13448_v27  ;;  %v5868_v40 = vpop.f32.mrb[53].mxu1  ;;  %v10554_v41 = vcombine.high %v13539_v29, %v13541_v5  ;;  %v271_v13 = vld [vmem:[#allocation5 + $0x5c0] sm:$0xff]  ;;  %v272_v14 = vld [vmem:[#allocation5 + $0x5c8] sm:$0xff] }
 0x238   :  { %v11806_v51 = vadd.f32 %v5642_v45, %v13451_v19  ;;  %v5644_v60 = vpop.f32.mrb[54].mxu0  ;;  %v11838_v20 = vadd.f32 %v5868_v40, %v13454_v48  ;;  %v5870_v32 = vpop.f32.mrb[54].mxu1  ;;  %v13561_v40 = vld [vmem:[#allocation5 + $0x440] sm:$0xff] }
 0x239   :  { %v11807_v55 = vadd.f32 %v5644_v60, %v13443_v52  ;;  %v5646_v56 = vpop.f32.mrb[55].mxu0  ;;  %v11839_v36 = vadd.f32 %v5870_v32, %v13448_v27  ;;  %v5872_v33 = vpop.f32.mrb[55].mxu1  ;;  %v13563_v60 = vld [vmem:[#allocation5 + $0x4c0] sm:$0xff]  ;;  %v224_v32 = vld [vmem:[#allocation5 + $0x448] sm:$0xff] }
 0x23a   :  { %v11627_v57 = vpack.c.bf16 %v11806_v51, %v11805_v42  ;;  %v11808_v37 = vadd.f32 %v5646_v56, %v13451_v19  ;;  %v11628_v28 = vpack.c.bf16 %v11838_v20, %v11837_v3  ;;  %v11840_v62 = vadd.f32 %v5872_v33, %v13454_v48  ;;  %v240_v56 = vld [vmem:[#allocation5 + $0x4c8] sm:$0xff] }
 0x23b   :  { %6493 = vmatmul.mubr.bf16.vlgmr.msra.gmra.mrb[96].mxu0 %v12827_v59  ;;  %v10556_v51 = vcombine.high %v13545_v9, %v13547_v11 }
 0x23c   :  { %10305 = vst [vmem:[#allocation8 + $0x510] sm:$0xff] %v11627_v57  ;;  %v11643_v31 = vpack.c.bf16 %v11808_v37, %v11807_v55  ;;  %6719 = vmatmul.mubr.bf16.vlgmr.msra.gmra.mrb[96].mxu1 %v12827_v59  ;;  %6800 = vmatpush1.bf16.msra.mxu0 %v10457_v0  ;;  %10306 = vst [vmem:[#allocation8 + $0x518] sm:$0xff] %v11628_v28  ;;  %v11644_v63 = vpack.c.bf16 %v11840_v62, %v11839_v36  ;;  %v12828_v55 = vld [vmem:[#allocation2 + $0x20] ss:$12 sps:$4 sm:$0xff]  }
 0x23d   :  { %7026 = vmatpush1.bf16.msra.mxu1 %v10459_v7  ;;  %6801 = vmatprep.subr.bf16.mxu0 %v10490_v22  ;;  %v10553_v22 = vcombine.low %v13539_v29, %v13541_v5  ;;  %v10555_v36 = vcombine.low %v13545_v9, %v13547_v11  ;;  %v10586_v37 = vcombine.high %v13561_v40, %v13563_v60 }
 0x23e   :  { %10321 = vst [vmem:[#allocation8 + $0x590] sm:$0xff] %v11643_v31  ;;  %v5650_v4 = vpop.f32.mrb[56].mxu0  ;;  %7027 = vmatprep.subr.bf16.mxu1 %v10492_v23  ;;  %6502 = vmatprep.mubr.bf16.mxu0 %v13027_v24  ;;  %10322 = vst [vmem:[#allocation8 + $0x598] sm:$0xff] %v11644_v63  ;;  %v5876_v8 = vpop.f32.mrb[56].mxu1  ;;  %v10588_v23 = vcombine.high %v224_v32, %v240_v56 }
 0x23f   :  { %v11809_v6 = vadd.f32 %v5650_v4, %v13443_v52  ;;  %v5652_v54 = vpop.f32.mrb[57].mxu0  ;;  %6728 = vmatprep.mubr.bf16.mxu1 %v13027_v24  ;;  %v11841_v53 = vadd.f32 %v5876_v8, %v13448_v27  ;;  %v5878_v18 = vpop.f32.mrb[57].mxu1  ;;  %v10587_v4 = vcombine.low %v224_v32, %v240_v56  ;;  %v10618_v8 = vcombine.high %v255_v58, %v271_v13  ;;  %v12830_v32 = vld [vmem:[#allocation2 + $0x50] ss:$12 sps:$4 sm:$0xff]   ;;  %v352_v56 = vld [vmem:[#allocation5 + $0x848] sm:$0xff] }
 0x240   :  { %v11810_v16 = vadd.f32 %v5652_v54, %v13451_v19  ;;  %v5654_v25 = vpop.f32.mrb[58].mxu0  ;;  %6802 = vmatpush1.bf16.msra.mxu0 %v10489_v34  ;;  %v11842_v15 = vadd.f32 %v5878_v18, %v13454_v48  ;;  %v5880_v35 = vpop.f32.mrb[58].mxu1  ;;  %v287_v18 = vld [vmem:[#allocation5 + $0x640] sm:$0xff] }
 0x241   :  { %v11811_v17 = vadd.f32 %v5654_v25, %v13443_v52  ;;  %7028 = vmatpush1.bf16.msra.mxu1 %v10491_v1  ;;  %v5656_v42 = vpop.f32.mrb[59].mxu0  ;;  %6803 = vmatprep.subr.bf16.mxu0 %v10522_v2  ;;  %v11843_v47 = vadd.f32 %v5880_v35, %v13448_v27  ;;  %v5882_v3 = vpop.f32.mrb[59].mxu1  ;;  %v10585_v2 = vcombine.low %v13561_v40, %v13563_v60  ;;  %v303_v25 = vld [vmem:[#allocation5 + $0x6c0] sm:$0xff] }
 0x242   :  { %v11659_v45 = vpack.c.bf16 %v11810_v16, %v11809_v6  ;;  %v11812_v50 = vadd.f32 %v5656_v42, %v13451_v19  ;;  %7029 = vmatprep.subr.bf16.mxu1 %v10524_v26  ;;  %v11660_v0 = vpack.c.bf16 %v11842_v15, %v11841_v53  ;;  %v11844_v20 = vadd.f32 %v5882_v3, %v13454_v48  ;;  %v12829_v15 = vld [vmem:[#allocation2 + $0x38] ss:$12 sps:$4 sm:$0xff]   ;;  %v336_v3 = vld [vmem:[#allocation5 + $0x7c8] sm:$0xff] }
 0x243   :  { %6503 = vmatmul.mubr.bf16.gmra.mrb[100].mxu0 %v12828_v55  ;;  %v10620_v16 = vcombine.high %v256_v61, %v272_v14  ;;  %v10617_v42 = vcombine.low %v255_v58, %v271_v13  ;;  %v384_v58 = vld [vmem:[#allocation5 + $0x948] sm:$0xff] }
 0x244   :  { %10337 = vst [vmem:[#allocation8 + $0x610] sm:$0xff] %v11659_v45  ;;  %v11675_v7 = vpack.c.bf16 %v11812_v50, %v11811_v17  ;;  %6729 = vmatmul.mubr.bf16.gmra.mrb[100].mxu1 %v12828_v55  ;;  %6804 = vmatpush1.bf16.msra.mxu0 %v10521_v21  ;;  %10338 = vst [vmem:[#allocation8 + $0x618] sm:$0xff] %v11660_v0  ;;  %v11676_v57 = vpack.c.bf16 %v11844_v20, %v11843_v47  ;;  %v304_v17 = vld [vmem:[#allocation5 + $0x6c8] sm:$0xff]  ;;  %v319_v45 = vld [vmem:[#allocation5 + $0x740] sm:$0xff] }
 0x245   :  { %7030 = vmatpush1.bf16.msra.mxu1 %v10523_v12  ;;  %6805 = vmatprep.subr.bf16.mxu0 %v10554_v41  ;;  %v10650_v41 = vcombine.high %v287_v18, %v303_v25  ;;  %v335_v47 = vld [vmem:[#allocation5 + $0x7c0] sm:$0xff]  ;;  %v320_v50 = vld [vmem:[#allocation5 + $0x748] sm:$0xff] }
 0x246   :  { %10353 = vst [vmem:[#allocation8 + $0x690] sm:$0xff] %v11675_v7  ;;  %v5660_v33 = vpop.f32.mrb[60].mxu0  ;;  %7031 = vmatprep.subr.bf16.mxu1 %v10556_v51  ;;  %6512 = vmatprep.mubr.bf16.mxu0 %v13027_v24  ;;  %10354 = vst [vmem:[#allocation8 + $0x698] sm:$0xff] %v11676_v57  ;;  %v5886_v62 = vpop.f32.mrb[60].mxu1  ;;  %v10649_v51 = vcombine.low %v287_v18, %v303_v25  ;;  %v10682_v60 = vcombine.high %v319_v45, %v335_v47  ;;  %v351_v20 = vld [vmem:[#allocation5 + $0x840] sm:$0xff]  ;;  %v368_v7 = vld [vmem:[#allocation5 + $0x8c8] sm:$0xff] }
 0x247   :  { %v11813_v28 = vadd.f32 %v5660_v33, %v13443_v52  ;;  %v5662_v59 = vpop.f32.mrb[61].mxu0  ;;  %6738 = vmatprep.mubr.bf16.mxu1 %v13027_v24  ;;  %v11845_v31 = vadd.f32 %v5886_v62, %v13448_v27  ;;  %v5888_v63 = vpop.f32.mrb[61].mxu1  ;;  %v10684_v0 = vcombine.high %v320_v50, %v336_v3  ;;  %v367_v55 = vld [vmem:[#allocation5 + $0x8c0] sm:$0xff]  ;;  %v10683_v57 = vcombine.low %v320_v50, %v336_v3  ;;  %v400_v13 = vld [vmem:[#allocation5 + $0x9c8] sm:$0xff] }
 0x248   :  { %v11814_v34 = vadd.f32 %v5662_v59, %v13451_v19  ;;  %v5664_v1 = vpop.f32.mrb[62].mxu0  ;;  %6806 = vmatpush1.bf16.msra.mxu0 %v10553_v22  ;;  %v11846_v26 = vadd.f32 %v5888_v63, %v13454_v48  ;;  %v5890_v5 = vpop.f32.mrb[62].mxu1  ;;  %v10681_v22 = vcombine.low %v319_v45, %v335_v47  ;;  %v383_v33 = vld [vmem:[#allocation5 + $0x940] sm:$0xff]  ;;  %v10715_v62 = vcombine.low %v352_v56, %v368_v7  ;;  %v416_v63 = vld [vmem:[#allocation5 + $0xa48] sm:$0xff] }
 0x249   :  { %v11815_v29 = vadd.f32 %v5664_v1, %v13443_v52  ;;  %7032 = vmatpush1.bf16.msra.mxu1 %v10555_v36  ;;  %v5666_v6 = vpop.f32.mrb[63].mxu0  ;;  %6807 = vmatprep.subr.bf16.mxu0 %v10586_v37  ;;  %v11847_v9 = vadd.f32 %v5890_v5, %v13448_v27  ;;  %v5892_v53 = vpop.f32.mrb[63].mxu1  ;;  %v288_v52 = vld [vmem:[#allocation5 + $0x648] sm:$0xff]  ;;  %v10714_v36 = vcombine.high %v351_v20, %v367_v55  ;;  %v447_v5 = vld [vmem:[#allocation5 + $0xb40] sm:$0xff] }
 0x24a   :  { %v11691_v54 = vpack.c.bf16 %v11814_v34, %v11813_v28  ;;  %v11816_v11 = vadd.f32 %v5666_v6, %v13451_v19  ;;  %7033 = vmatprep.subr.bf16.mxu1 %v10588_v23  ;;  %v11692_v21 = vpack.c.bf16 %v11846_v26, %v11845_v31  ;;  %v11848_v12 = vadd.f32 %v5892_v53, %v13454_v48  ;;  %v399_v23 = vld [vmem:[#allocation5 + $0x9c0] sm:$0xff]  ;;  %v12831_v34 = vld [vmem:[#allocation2 + $0x68] ss:$12 sps:$4 sm:$0xff]  }
 0x24b   :  { %6513 = vmatmul.mubr.bf16.gmra.mrb[104].mxu0 %v12829_v15  ;;  %v10619_v19 = vcombine.low %v256_v61, %v272_v14  ;;  %v10652_v48 = vcombine.high %v288_v52, %v304_v17  ;;  %v10651_v40 = vcombine.low %v288_v52, %v304_v17  ;;  %v10716_v37 = vcombine.high %v352_v56, %v368_v7  ;;  %v415_v14 = vld [vmem:[#allocation5 + $0xa40] sm:$0xff]  ;;  %v432_v1 = vld [vmem:[#allocation5 + $0xac8] sm:$0xff] }
 0x24c   :  { %10369 = vst [vmem:[#allocation8 + $0x710] sm:$0xff] %v11691_v54  ;;  %v11707_v35 = vpack.c.bf16 %v11816_v11, %v11815_v29  ;;  %6739 = vmatmul.mubr.bf16.gmra.mrb[104].mxu1 %v12829_v15  ;;  %6808 = vmatpush1.bf16.msra.mxu0 %v10585_v2  ;;  %10370 = vst [vmem:[#allocation8 + $0x718] sm:$0xff] %v11692_v21  ;;  %v11708_v27 = vpack.c.bf16 %v11848_v12, %v11847_v9  ;;  %v431_v31 = vld [vmem:[#allocation5 + $0xac0] sm:$0xff]  ;;  %v464_v54 = vld [vmem:[#allocation5 + $0xbc8] sm:$0xff] }
 0x24d   :  { %7034 = vmatpush1.bf16.msra.mxu1 %v10587_v4  ;;  %6809 = vmatprep.subr.bf16.mxu0 %v10618_v8  ;;  %v10713_v28 = vcombine.low %v351_v20, %v367_v55  ;;  %v10746_v59 = vcombine.high %v383_v33, %v399_v23  ;;  %v10748_v61 = vcombine.high %v384_v58, %v400_v13  ;;  %v463_v6 = vld [vmem:[#allocation5 + $0xbc0] sm:$0xff]  ;;  %v448_v8 = vld [vmem:[#allocation5 + $0xb48] sm:$0xff] }
 0x24e   :  { %10385 = vst [vmem:[#allocation8 + $0x790] sm:$0xff] %v11707_v35  ;;  %7035 = vmatprep.subr.bf16.mxu1 %v10620_v16  ;;  %6522 = vmatprep.mubr.bf16.mxu0 %v13027_v24  ;;  %10386 = vst [vmem:[#allocation8 + $0x798] sm:$0xff] %v11708_v27  ;;  %v10745_v2 = vcombine.low %v383_v33, %v399_v23  ;;  %v10747_v4 = vcombine.low %v384_v58, %v400_v13  ;;  %v479_v18 = vld [vmem:[#allocation5 + $0xc40] sm:$0xff]  ;;  %v480_v12 = vld [vmem:[#allocation5 + $0xc48] sm:$0xff] }
 0x24f   :  { %6748 = vmatprep.mubr.bf16.mxu1 %v13027_v24  ;;  %v10778_v26 = vcombine.high %v415_v14, %v431_v31  ;;  %v10780_v29 = vcombine.high %v416_v63, %v432_v1  ;;  %v10777_v9 = vcombine.low %v415_v14, %v431_v31  ;;  %v10779_v11 = vcombine.low %v416_v63, %v432_v1  ;;  %v495_v25 = vld [vmem:[#allocation5 + $0xcc0] sm:$0xff]  ;;  %v496_v15 = vld [vmem:[#allocation5 + $0xcc8] sm:$0xff] }
 0x250   :  { %6810 = vmatpush1.bf16.msra.mxu0 %v10617_v42  ;;  %v10810_v53 = vcombine.high %v447_v5, %v463_v6  ;;  %v10812_v16 = vcombine.high %v448_v8, %v464_v54  ;;  %v12832_v21 = vld [vmem:[#allocation2 + $0x80] ss:$12 sps:$4 sm:$0xff]   ;;  %v10809_v52 = vcombine.low %v447_v5, %v463_v6  ;;  %v10811_v17 = vcombine.low %v448_v8, %v464_v54  ;;  %v12835_v1 = vld [vmem:[#allocation2 + $0x4] ss:$12 sps:$4 sm:$0xff]  }
 0x251   :  { %7036 = vmatpush1.bf16.msra.mxu1 %v10619_v19  ;;  %6811 = vmatprep.subr.bf16.mxu0 %v10650_v41  ;;  %v10842_v35 = vcombine.high %v479_v18, %v495_v25  ;;  %v10844_v42 = vcombine.high %v480_v12, %v496_v15  ;;  %v511_v27 = vld [vmem:[#allocation5 + $0xd40] sm:$0xff]  ;;  %v512_v41 = vld [vmem:[#allocation5 + $0xd48] sm:$0xff]  ;;  %v10841_v45 = vcombine.low %v479_v18, %v495_v25 }
 0x252   :  { %7037 = vmatprep.subr.bf16.mxu1 %v10652_v48  ;;  %v527_v19 = vld [vmem:[#allocation5 + $0xdc0] sm:$0xff]  ;;  %v528_v48 = vld [vmem:[#allocation5 + $0xdc8] sm:$0xff]  ;;  %v10843_v47 = vcombine.low %v480_v12, %v496_v15 }
 0x253   :  { %6523 = vmatmul.mubr.bf16.gmra.mrb[108].mxu0 %v12830_v32  ;;  %v10874_v50 = vcombine.high %v511_v27, %v527_v19  ;;  %v10876_v3 = vcombine.high %v512_v41, %v528_v48  ;;  %v560_v20 = vld [vmem:[#allocation5 + $0xec8] sm:$0xff]  ;;  %v10873_v55 = vcombine.low %v511_v27, %v527_v19 }
 0x254   :  { %6749 = vmatmul.mubr.bf16.gmra.mrb[108].mxu1 %v12830_v32  ;;  %6812 = vmatpush1.bf16.msra.mxu0 %v10649_v51  ;;  %v543_v51 = vld [vmem:[#allocation5 + $0xe40] sm:$0xff]  ;;  %v10875_v32 = vcombine.low %v512_v41, %v528_v48  ;;  %v624_v14 = vld [vmem:[#allocation5 + $0x10c8] sm:$0xff] }
 0x255   :  { %7038 = vmatpush1.bf16.msra.mxu1 %v10651_v40  ;;  %6813 = vmatprep.subr.bf16.mxu0 %v10682_v60  ;;  %v559_v40 = vld [vmem:[#allocation5 + $0xec0] sm:$0xff]  ;;  %v640_v5 = vld [vmem:[#allocation5 + $0x1148] sm:$0xff] }
 0x256   :  { %7039 = vmatprep.subr.bf16.mxu1 %v10684_v0  ;;  %6532 = vmatprep.mubr.bf16.mxu0 %v13027_v24  ;;  %v12833_v60 = vld [vmem:[#allocation2 + $0x98] ss:$12 sps:$4 sm:$0xff]   ;;  %v544_v0 = vld [vmem:[#allocation5 + $0xe48] sm:$0xff]  ;;  %v10906_v56 = vcombine.high %v543_v51, %v559_v40  ;;  %v10905_v33 = vcombine.low %v543_v51, %v559_v40  ;;  %v12839_v40 = vld [vmem:[#allocation2 + $0x34] ss:$12 sps:$4 sm:$0xff]  }
 0x257   :  { %6758 = vmatprep.mubr.bf16.mxu1 %v13027_v24  ;;  %v10908_v7 = vcombine.high %v544_v0, %v560_v20  ;;  %v10907_v23 = vcombine.low %v544_v0, %v560_v20  ;;  %v656_v6 = vld [vmem:[#allocation5 + $0x11c8] sm:$0xff]  ;;  %v751_v51 = vld [vmem:[#allocation5 + $0x14c0] sm:$0xff] }
 0x258   :  { %6814 = vmatpush1.bf16.msra.mxu0 %v10681_v22  ;;  %v575_v22 = vld [vmem:[#allocation5 + $0xf40] sm:$0xff]  ;;  %v672_v18 = vld [vmem:[#allocation5 + $0x1248] sm:$0xff]  ;;  %v11003_v15 = vcombine.low %v640_v5, %v656_v6 }
 0x259   :  { %7040 = vmatpush1.bf16.msra.mxu1 %v10683_v57  ;;  %6815 = vmatprep.subr.bf16.mxu0 %v10714_v36  ;;  %v591_v57 = vld [vmem:[#allocation5 + $0xfc0] sm:$0xff]  ;;  %v576_v36 = vld [vmem:[#allocation5 + $0xf48] sm:$0xff] }
 0x25a   :  { %7041 = vmatprep.subr.bf16.mxu1 %v10716_v37  ;;  %v592_v37 = vld [vmem:[#allocation5 + $0xfc8] sm:$0xff]  ;;  %v10938_v58 = vcombine.high %v575_v22, %v591_v57  ;;  %v10937_v31 = vcombine.low %v575_v22, %v591_v57  ;;  %v783_v22 = vld [vmem:[#allocation5 + $0x15c0] sm:$0xff] }
 0x25b   :  { %6533 = vmatmul.mubr.bf16.gmra.mrb[112].mxu0 %v12831_v34  ;;  %v10940_v13 = vcombine.high %v576_v36, %v592_v37  ;;  %v688_v25 = vld [vmem:[#allocation5 + $0x12c8] sm:$0xff] }
 0x25c   :  { %6759 = vmatmul.mubr.bf16.gmra.mrb[112].mxu1 %v12831_v34  ;;  %6816 = vmatpush1.bf16.msra.mxu0 %v10713_v28  ;;  %v607_v28 = vld [vmem:[#allocation5 + $0x1040] sm:$0xff]  ;;  %v10939_v34 = vcombine.low %v576_v36, %v592_v37  ;;  %v12837_v12 = vld [vmem:[#allocation2 + $0x1c] ss:$12 sps:$4 sm:$0xff]   ;;  %v11035_v48 = vcombine.low %v672_v18, %v688_v25 }
 0x25d   :  { %7042 = vmatpush1.bf16.msra.mxu1 %v10715_v62  ;;  %6817 = vmatprep.subr.bf16.mxu0 %v10746_v59  ;;  %v623_v62 = vld [vmem:[#allocation5 + $0x10c0] sm:$0xff]  ;;  %v12834_v59 = vld [vmem:[#allocation2 + $0xb0] ss:$12 sps:$4 sm:$0xff]   ;;  %v704_v27 = vld [vmem:[#allocation5 + $0x1348] sm:$0xff] }
 0x25e   :  { %7043 = vmatprep.subr.bf16.mxu1 %v10748_v61  ;;  %6542 = vmatprep.mubr.bf16.mxu0 %v13027_v24  ;;  %v608_v61 = vld [vmem:[#allocation5 + $0x1048] sm:$0xff]  ;;  %v10970_v63 = vcombine.high %v607_v28, %v623_v62 }
 0x25f   :  { %6768 = vmatprep.mubr.bf16.mxu1 %v13027_v24  ;;  %v10971_v8 = vcombine.low %v608_v61, %v624_v14  ;;  %v720_v19 = vld [vmem:[#allocation5 + $0x13c8] sm:$0xff] }
 0x260   :  { %6818 = vmatpush1.bf16.msra.mxu0 %v10745_v2  ;;  %v10972_v2 = vcombine.high %v608_v61, %v624_v14  ;;  %v752_v0 = vld [vmem:[#allocation5 + $0x14c8] sm:$0xff]  ;;  %v815_v61 = vld [vmem:[#allocation5 + $0x16c0] sm:$0xff] }
 0x261   :  { %7044 = vmatpush1.bf16.msra.mxu1 %v10747_v4  ;;  %6819 = vmatprep.subr.bf16.mxu0 %v10778_v26  ;;  %v639_v4 = vld [vmem:[#allocation5 + $0x1140] sm:$0xff]  ;;  %v856_v57 = vld [vmem:[#allocation7 + $0x8] sm:$0xff] }
 0x262   :  { %7045 = vmatprep.subr.bf16.mxu1 %v10780_v29  ;;  %v655_v26 = vld [vmem:[#allocation5 + $0x11c0] sm:$0xff]  ;;  %v10969_v29 = vcombine.low %v607_v28, %v623_v62  ;;  %v768_v36 = vld [vmem:[#allocation5 + $0x1548] sm:$0xff]  ;;  %v13595_v28 = vrot.slane %v856_v57, %v13267_v38  ;;  %v13600_v14 = vrot.slane %v856_v57, %v13270_v46 }
 0x263   :  { %6543 = vmatmul.mubr.bf16.gmra.mrb[116].mxu0 %v12832_v21  ;;  %v11002_v54 = vcombine.high %v639_v4, %v655_v26  ;;  %v784_v37 = vld [vmem:[#allocation5 + $0x15c8] sm:$0xff] }
 0x264   :  { %6769 = vmatmul.mubr.bf16.gmra.mrb[116].mxu1 %v12832_v21  ;;  %6820 = vmatpush1.bf16.msra.mxu0 %v10777_v9  ;;  %v671_v9 = vld [vmem:[#allocation5 + $0x1240] sm:$0xff]  ;;  %v11001_v21 = vcombine.low %v639_v4, %v655_v26  ;;  %v11132_v62 = vcombine.high %v768_v36, %v784_v37 }
 0x265   :  { %7046 = vmatpush1.bf16.msra.mxu1 %v10779_v11  ;;  %6821 = vmatprep.subr.bf16.mxu0 %v10810_v53  ;;  %v687_v11 = vld [vmem:[#allocation5 + $0x12c0] sm:$0xff] }
 0x266   :  { %7047 = vmatprep.subr.bf16.mxu1 %v10812_v16  ;;  %6552 = vmatprep.mubr.bf16.mxu0 %v13027_v24  ;;  %v12836_v53 = vld [vmem:[#allocation2] ss:$12 sps:$4 sm:$0xff]   ;;  %v11004_v16 = vcombine.high %v640_v5, %v656_v6  ;;  %v11033_v41 = vcombine.low %v671_v9, %v687_v11 }
 0x267   :  { %6778 = vmatprep.mubr.bf16.mxu1 %v13027_v24  ;;  %v13609_v6 = vld [vmem:[#allocation5 + $0x1740] sm:$0xff] }
 0x268   :  { %6822 = vmatpush1.bf16.msra.mxu0 %v10809_v52  ;;  %v11034_v52 = vcombine.high %v671_v9, %v687_v11 }
 0x269   :  { %7048 = vmatpush1.bf16.msra.mxu1 %v10811_v17  ;;  %6823 = vmatprep.subr.bf16.mxu0 %v10842_v35  ;;  %v11036_v17 = vcombine.high %v672_v18, %v688_v25  ;;  %v703_v35 = vld [vmem:[#allocation5 + $0x1340] sm:$0xff] }
 0x26a   :  { %7049 = vmatprep.subr.bf16.mxu1 %v10844_v42  ;;  %v719_v42 = vld [vmem:[#allocation5 + $0x13c0] sm:$0xff] }
 0x26b   :  { %6553 = vmatmul.mubr.bf16.gmra.mrb[120].mxu0 %v12833_v60  ;;  %v11065_v20 = vcombine.low %v703_v35, %v719_v42 }
 0x26c   :  { %6779 = vmatmul.mubr.bf16.gmra.mrb[120].mxu1 %v12833_v60  ;;  %6824 = vmatpush1.bf16.msra.mxu0 %v10841_v45  ;;  %v11066_v45 = vcombine.high %v703_v35, %v719_v42  ;;  %v736_v60 = vld [vmem:[#allocation5 + $0x1448] sm:$0xff] }
 0x26d   :  { %7050 = vmatpush1.bf16.msra.mxu1 %v10843_v47  ;;  %6825 = vmatprep.subr.bf16.mxu0 %v10874_v50  ;;  %v12838_v47 = vld [vmem:[#allocation2 + $0x18] ss:$12 sps:$4 sm:$0xff]   ;;  %v11068_v50 = vcombine.high %v704_v27, %v720_v19 }
 0x26e   :  { %7051 = vmatprep.subr.bf16.mxu1 %v10876_v3  ;;  %6562 = vmatprep.mubr.bf16.mxu0 %v13027_v24  ;;  %v735_v3 = vld [vmem:[#allocation5 + $0x1440] sm:$0xff] }
 0x26f   :  { %6788 = vmatprep.mubr.bf16.mxu1 %v13027_v24 }
 0x270   :  { %6826 = vmatpush1.bf16.msra.mxu0 %v10873_v55  ;;  %v11067_v55 = vcombine.low %v704_v27, %v720_v19 }
 0x271   :  { %7052 = vmatpush1.bf16.msra.mxu1 %v10875_v32  ;;  %6827 = vmatprep.subr.bf16.mxu0 %v10906_v56  ;;  %v11098_v32 = vcombine.high %v735_v3, %v751_v51  ;;  %v11100_v56 = vcombine.high %v736_v60, %v752_v0 }
 0x272   :  { %7053 = vmatprep.subr.bf16.mxu1 %v10908_v7  ;;  %v767_v7 = vld [vmem:[#allocation5 + $0x1540] sm:$0xff] }
 0x273   :  { %6563 = vmatmul.mubr.bf16.gmra.mrb[124].mxu0 %v12834_v59  ;;  %v11129_v4 = vcombine.low %v767_v7, %v783_v22 }
 0x274   :  { %6789 = vmatmul.mubr.bf16.gmra.mrb[124].mxu1 %v12834_v59  ;;  %6828 = vmatpush1.bf16.msra.mxu0 %v10905_v33  ;;  %v11097_v33 = vcombine.low %v735_v3, %v751_v51  ;;  %v13597_v59 = vld [vmem:[#allocation5 + $0x1640] sm:$0xff] }
 0x275   :  { %7054 = vmatpush1.bf16.msra.mxu1 %v10907_v23  ;;  %6829 = vmatprep.subr.bf16.mxu0 %v10938_v58  ;;  %v11099_v23 = vcombine.low %v736_v60, %v752_v0  ;;  %v11130_v58 = vcombine.high %v767_v7, %v783_v22  ;;  %v11162_v5 = vcombine.high %v13597_v59, %v815_v61  ;;  %v13624_v0 = vld [vmem:[#allocation5 + $0x50] sm:$0xff]  ;;  %v13630_v7 = vld [vmem:[#allocation5 + $0xd8] sm:$0xff] }
 0x276   :  { %7055 = vmatprep.subr.bf16.mxu1 %v10940_v13  ;;  %6831 = vmatprep.mubr.bf16.mxu0 %v12835_v1  ;;  %v12840_v13 = vld [vmem:[#allocation2 + $0x30] ss:$12 sps:$4 sm:$0xff]  }
 0x277   :  { %7057 = vmatprep.mubr.bf16.mxu1 %v12835_v1  ;;  %v816_v1 = vld [vmem:[#allocation5 + $0x16c8] sm:$0xff] }
 0x278   :  { %6830 = vmatpush1.bf16.msra.mxu0 %v10937_v31  ;;  %v13603_v31 = vrot.slane %v856_v57, %v13273_v44 }
 0x279   :  { %7056 = vmatpush1.bf16.msra.mxu1 %v10939_v34  ;;  %6912 = vmatprep.subr.bf16.mxu0 %v10970_v63  ;;  %v12841_v34 = vld [vmem:[#allocation2 + $0x4c] ss:$12 sps:$4 sm:$0xff]  }
 0x27a   :  { %7138 = vmatprep.subr.bf16.mxu1 %v10972_v2  ;;  %v800_v63 = vld [vmem:[#allocation5 + $0x1648] sm:$0xff]  ;;  %v13606_v2 = vrot.slane %v856_v57, %v13276_v49 }
 0x27b   :  { %6832 = vmatmul.mubr.bf16.vlgmr.msra.gmra.mrb[128].mxu0 %v12836_v53  ;;  %v11163_v19 = vcombine.low %v800_v63, %v816_v1 }
 0x27c   :  { %7058 = vmatmul.mubr.bf16.vlgmr.msra.gmra.mrb[128].mxu1 %v12836_v53  ;;  %6913 = vmatpush1.bf16.msra.mxu0 %v10969_v29  ;;  %v11131_v29 = vcombine.low %v768_v36, %v784_v37  ;;  %v11164_v53 = vcombine.high %v800_v63, %v816_v1 }
 0x27d   :  { %7139 = vmatpush1.bf16.msra.mxu1 %v10971_v8  ;;  %6841 = vmatprep.mubr.bf16.mxu0 %v12837_v12  ;;  %v13611_v8 = vld [vmem:[#allocation5 + $0x17c0] sm:$0xff] }
 0x27e   :  { %7067 = vmatprep.mubr.bf16.mxu1 %v12837_v12  ;;  %6914 = vmatprep.subr.bf16.mxu0 %v11002_v54  ;;  %v11161_v12 = vcombine.low %v13597_v59, %v815_v61  ;;  %v11193_v57 = vcombine.low %v13609_v6, %v13611_v8 }
 0x27f   :  { %7140 = vmatprep.subr.bf16.mxu1 %v11004_v16 }
 0x280   :  { %6915 = vmatpush1.bf16.msra.mxu0 %v11001_v21 }
 0x281   :  { %7141 = vmatpush1.bf16.msra.mxu1 %v11003_v15  ;;  %6916 = vmatprep.subr.bf16.mxu0 %v11034_v52  ;;  %v832_v15 = vld [vmem:[#allocation5 + $0x1748] sm:$0xff] }
 0x282   :  { %7142 = vmatprep.subr.bf16.mxu1 %v11036_v17  ;;  %v848_v52 = vld [vmem:[#allocation5 + $0x17c8] sm:$0xff] }
 0x283   :  { %6842 = vmatmul.mubr.bf16.gmra.mrb[132].mxu0 %v12838_v47  ;;  %v11196_v60 = vcombine.high %v832_v15, %v848_v52  ;;  %v11195_v37 = vcombine.low %v832_v15, %v848_v52 }
 0x284   :  { %7068 = vmatmul.mubr.bf16.gmra.mrb[132].mxu1 %v12838_v47  ;;  %6851 = vmatprep.mubr.bf16.mxu0 %v12839_v40 }
 0x285   :  { %7077 = vmatprep.mubr.bf16.mxu1 %v12839_v40  ;;  %6917 = vmatpush1.bf16.msra.mxu0 %v11033_v41  ;;  %v11194_v41 = vcombine.high %v13609_v6, %v13611_v8  ;;  %v12842_v40 = vld [vmem:[#allocation2 + $0x48] ss:$12 sps:$4 sm:$0xff]  }
 0x286   :  { %7143 = vmatpush1.bf16.msra.mxu1 %v11035_v48  ;;  %6918 = vmatprep.subr.bf16.mxu0 %v11066_v45 }
 0x287   :  { %7144 = vmatprep.subr.bf16.mxu1 %v11068_v50 }
 0x289   :  { %6919 = vmatpush1.bf16.msra.mxu0 %v11065_v20  ;;  %v13626_v20 = vld [vmem:[#allocation5 + $0xd0] sm:$0xff] }
 0x28a   :  { %7145 = vmatpush1.bf16.msra.mxu1 %v11067_v55  ;;  %6920 = vmatprep.subr.bf16.mxu0 %v11098_v32  ;;  %v12843_v32 = vld [vmem:[#allocation2 + $0x64] ss:$12 sps:$4 sm:$0xff]  }
 0x28b   :  { %6852 = vmatmul.mubr.bf16.gmra.mrb[136].mxu0 %v12840_v13  ;;  %7146 = vmatprep.subr.bf16.mxu1 %v11100_v56  ;;  %v13628_v56 = vld [vmem:[#allocation5 + $0x58] sm:$0xff] }
 0x28c   :  { %7078 = vmatmul.mubr.bf16.gmra.mrb[136].mxu1 %v12840_v13  ;;  %6861 = vmatprep.mubr.bf16.mxu0 %v12841_v34 }
 0x28d   :  { %7087 = vmatprep.mubr.bf16.mxu1 %v12841_v34  ;;  %6921 = vmatpush1.bf16.msra.mxu0 %v11097_v33  ;;  %v10462_v33 = vcombine.high %v13624_v0, %v13626_v20 }
 0x28e   :  { %v6042_v26 = vpop.f32.mrb[64].mxu0  ;;  %7147 = vmatpush1.bf16.msra.mxu1 %v11099_v23  ;;  %6922 = vmatprep.subr.bf16.mxu0 %v11130_v58 }
 0x28f   :  { %v11849_v54 = vadd.f32 %v6042_v26, %v13595_v28  ;;  %v6268_v9 = vpop.f32.mrb[64].mxu1  ;;  %v6044_v11 = vpop.f32.mrb[65].mxu0  ;;  %7148 = vmatprep.subr.bf16.mxu1 %v11132_v62  ;;  %v10464_v62 = vcombine.high %v13628_v56, %v13630_v7 }
 0x290   :  { %v11881_v16 = vadd.f32 %v6268_v9, %v13600_v14  ;;  %v11850_v18 = vadd.f32 %v6044_v11, %v13603_v31  ;;  %v6270_v25 = vpop.f32.mrb[65].mxu1  ;;  %v6046_v21 = vpop.f32.mrb[66].mxu0 }
 0x291   :  { %v11882_v17 = vadd.f32 %v6270_v25, %v13606_v2  ;;  %v11851_v35 = vadd.f32 %v6046_v21, %v13595_v28  ;;  %v6272_v42 = vpop.f32.mrb[66].mxu1  ;;  %v6048_v27 = vpop.f32.mrb[67].mxu0  ;;  %6923 = vmatpush1.bf16.msra.mxu0 %v11129_v4 }
 0x292   :  { %v11469_v48 = vpack.c.bf16 %v11850_v18, %v11849_v54  ;;  %v11883_v45 = vadd.f32 %v6272_v42, %v13600_v14  ;;  %v11852_v47 = vadd.f32 %v6048_v27, %v13603_v31  ;;  %v6274_v50 = vpop.f32.mrb[67].mxu1  ;;  %7149 = vmatpush1.bf16.msra.mxu1 %v11131_v29  ;;  %6924 = vmatprep.subr.bf16.mxu0 %v11162_v5  ;;  %v12845_v18 = vld [vmem:[#allocation2 + $0x7c] ss:$12 sps:$4 sm:$0xff]  }
 0x293   :  { %v11470_v3 = vpack.c.bf16 %v11882_v17, %v11881_v16  ;;  %v11884_v51 = vadd.f32 %v6274_v50, %v13606_v2  ;;  %6862 = vmatmul.mubr.bf16.gmra.mrb[140].mxu0 %v12842_v40  ;;  %7150 = vmatprep.subr.bf16.mxu1 %v11164_v53  ;;  %v12844_v53 = vld [vmem:[#allocation2 + $0x60] ss:$12 sps:$4 sm:$0xff]  }
 0x294   :  { %10147 = vst [vmem:[#allocation8 + $0x20] sm:$0xff] %v11469_v48  ;;  %v11485_v55 = vpack.c.bf16 %v11852_v47, %v11851_v35  ;;  %7088 = vmatmul.mubr.bf16.gmra.mrb[140].mxu1 %v12842_v40  ;;  %6871 = vmatprep.mubr.bf16.mxu0 %v12843_v32 }
 0x295   :  { %10148 = vst [vmem:[#allocation8 + $0x28] sm:$0xff] %v11470_v3  ;;  %v11486_v22 = vpack.c.bf16 %v11884_v51, %v11883_v45  ;;  %7097 = vmatprep.mubr.bf16.mxu1 %v12843_v32  ;;  %6925 = vmatpush1.bf16.msra.mxu0 %v11161_v12 }
 0x296   :  { %10163 = vst [vmem:[#allocation8 + $0xa0] sm:$0xff] %v11485_v55  ;;  %v6052_v36 = vpop.f32.mrb[68].mxu0  ;;  %7151 = vmatpush1.bf16.msra.mxu1 %v11163_v19  ;;  %6926 = vmatprep.subr.bf16.mxu0 %v11194_v41  ;;  %v12846_v55 = vld [vmem:[#allocation2 + $0x78] ss:$12 sps:$4 sm:$0xff]  }
 0x297   :  { %10164 = vst [vmem:[#allocation8 + $0xa8] sm:$0xff] %v11486_v22  ;;  %v11853_v23 = vadd.f32 %v6052_v36, %v13595_v28  ;;  %v6278_v58 = vpop.f32.mrb[68].mxu1  ;;  %v6054_v13 = vpop.f32.mrb[69].mxu0  ;;  %7152 = vmatprep.subr.bf16.mxu1 %v11196_v60  ;;  %v12847_v22 = vld [vmem:[#allocation2 + $0x94] ss:$12 sps:$4 sm:$0xff]  }
 0x298   :  { %v11885_v59 = vadd.f32 %v6278_v58, %v13600_v14  ;;  %v11854_v61 = vadd.f32 %v6054_v13, %v13603_v31  ;;  %v6280_v34 = vpop.f32.mrb[69].mxu1  ;;  %v6056_v63 = vpop.f32.mrb[70].mxu0 }
 0x299   :  { %v11886_v1 = vadd.f32 %v6280_v34, %v13606_v2  ;;  %v11855_v4 = vadd.f32 %v6056_v63, %v13595_v28  ;;  %v6282_v26 = vpop.f32.mrb[70].mxu1  ;;  %v6058_v29 = vpop.f32.mrb[71].mxu0  ;;  %6927 = vmatpush1.bf16.msra.mxu0 %v11193_v57 }
 0x29a   :  { %v11501_v5 = vpack.c.bf16 %v11854_v61, %v11853_v23  ;;  %v11887_v6 = vadd.f32 %v6282_v26, %v13600_v14  ;;  %v11856_v8 = vadd.f32 %v6058_v29, %v13603_v31  ;;  %v6284_v54 = vpop.f32.mrb[71].mxu1  ;;  %7153 = vmatpush1.bf16.msra.mxu1 %v11195_v37  ;;  %7251 = vmatprep.subr.bf16.mxu0 %v10462_v33 }
 0x29b   :  { %v11502_v9 = vpack.c.bf16 %v11886_v1, %v11885_v59  ;;  %v11888_v11 = vadd.f32 %v6284_v54, %v13606_v2  ;;  %6872 = vmatmul.mubr.bf16.gmra.mrb[144].mxu0 %v12844_v53  ;;  %7477 = vmatprep.subr.bf16.mxu1 %v10464_v62  ;;  %v12848_v54 = vld [vmem:[#allocation2 + $0x90] ss:$12 sps:$4 sm:$0xff]  }
 0x29c   :  { %10179 = vst [vmem:[#allocation8 + $0x120] sm:$0xff] %v11501_v5  ;;  %v11517_v16 = vpack.c.bf16 %v11856_v8, %v11855_v4  ;;  %7098 = vmatmul.mubr.bf16.gmra.mrb[144].mxu1 %v12844_v53  ;;  %6881 = vmatprep.mubr.bf16.mxu0 %v12845_v18 }
 0x29d   :  { %10180 = vst [vmem:[#allocation8 + $0x128] sm:$0xff] %v11502_v9  ;;  %v11518_v25 = vpack.c.bf16 %v11888_v11, %v11887_v6  ;;  %7107 = vmatprep.mubr.bf16.mxu1 %v12845_v18  ;;  %v12849_v11 = vld [vmem:[#allocation2 + $0xac] ss:$12 sps:$4 sm:$0xff]  }
 0x29e   :  { %10195 = vst [vmem:[#allocation8 + $0x1a0] sm:$0xff] %v11517_v16  ;;  %v6062_v21 = vpop.f32.mrb[72].mxu0 }
 0x29f   :  { %10196 = vst [vmem:[#allocation8 + $0x1a8] sm:$0xff] %v11518_v25  ;;  %v11857_v12 = vadd.f32 %v6062_v21, %v13595_v28  ;;  %v6288_v15 = vpop.f32.mrb[72].mxu1  ;;  %v6064_v52 = vpop.f32.mrb[73].mxu0 }
 0x2a0   :  { %v11889_v17 = vadd.f32 %v6288_v15, %v13600_v14  ;;  %v11858_v35 = vadd.f32 %v6064_v52, %v13603_v31  ;;  %v6290_v42 = vpop.f32.mrb[73].mxu1  ;;  %v6066_v27 = vpop.f32.mrb[74].mxu0 }
 0x2a1   :  { %v11890_v19 = vadd.f32 %v6290_v42, %v13606_v2  ;;  %v11859_v41 = vadd.f32 %v6066_v27, %v13595_v28  ;;  %v6292_v48 = vpop.f32.mrb[74].mxu1  ;;  %v6068_v45 = vpop.f32.mrb[75].mxu0 }
 0x2a2   :  { %v11533_v47 = vpack.c.bf16 %v11858_v35, %v11857_v12  ;;  %v11891_v50 = vadd.f32 %v6292_v48, %v13600_v14  ;;  %v11860_v3 = vadd.f32 %v6068_v45, %v13603_v31  ;;  %v6294_v51 = vpop.f32.mrb[75].mxu1 }
 0x2a3   :  { %v11534_v40 = vpack.c.bf16 %v11890_v19, %v11889_v17  ;;  %v11892_v60 = vadd.f32 %v6294_v51, %v13606_v2  ;;  %6882 = vmatmul.mubr.bf16.gmra.mrb[148].mxu0 %v12846_v55  ;;  %v12850_v51 = vld [vmem:[#allocation2 + $0xa8] ss:$12 sps:$4 sm:$0xff]  }
 0x2a4   :  { %10211 = vst [vmem:[#allocation8 + $0x220] sm:$0xff] %v11533_v47  ;;  %v11549_v32 = vpack.c.bf16 %v11860_v3, %v11859_v41  ;;  %7108 = vmatmul.mubr.bf16.gmra.mrb[148].mxu1 %v12846_v55  ;;  %6891 = vmatprep.mubr.bf16.mxu0 %v12847_v22 }
 0x2a5   :  { %10212 = vst [vmem:[#allocation8 + $0x228] sm:$0xff] %v11534_v40  ;;  %v11550_v57 = vpack.c.bf16 %v11892_v60, %v11891_v50  ;;  %7117 = vmatprep.mubr.bf16.mxu1 %v12847_v22  ;;  %v145_v22 = vld [vmem:[#allocation5 + $0x1d0] sm:$0xff] }
 0x2a6   :  { %10227 = vst [vmem:[#allocation8 + $0x2a0] sm:$0xff] %v11549_v32  ;;  %v6072_v36 = vpop.f32.mrb[76].mxu0  ;;  %v129_v32 = vld [vmem:[#allocation5 + $0x150] sm:$0xff] }
 0x2a7   :  { %10228 = vst [vmem:[#allocation8 + $0x2a8] sm:$0xff] %v11550_v57  ;;  %v11861_v37 = vadd.f32 %v6072_v36, %v13595_v28  ;;  %v6298_v33 = vpop.f32.mrb[76].mxu1  ;;  %v6074_v23 = vpop.f32.mrb[77].mxu0 }
 0x2a8   :  { %v11893_v58 = vadd.f32 %v6298_v33, %v13600_v14  ;;  %v11862_v13 = vadd.f32 %v6074_v23, %v13603_v31  ;;  %v6300_v62 = vpop.f32.mrb[77].mxu1  ;;  %v6076_v59 = vpop.f32.mrb[78].mxu0  ;;  %v130_v33 = vld [vmem:[#allocation5 + $0x158] sm:$0xff] }
 0x2a9   :  { %v11894_v61 = vadd.f32 %v6300_v62, %v13606_v2  ;;  %v11863_v34 = vadd.f32 %v6076_v59, %v13595_v28  ;;  %v6302_v63 = vpop.f32.mrb[78].mxu1  ;;  %v6078_v1 = vpop.f32.mrb[79].mxu0  ;;  %v146_v23 = vld [vmem:[#allocation5 + $0x1d8] sm:$0xff] }
 0x2aa   :  { %v11565_v4 = vpack.c.bf16 %v11862_v13, %v11861_v37  ;;  %v11895_v26 = vadd.f32 %v6302_v63, %v13600_v14  ;;  %v11864_v29 = vadd.f32 %v6078_v1, %v13603_v31  ;;  %v6304_v5 = vpop.f32.mrb[79].mxu1 }
 0x2ab   :  { %v11566_v6 = vpack.c.bf16 %v11894_v61, %v11893_v58  ;;  %v11896_v8 = vadd.f32 %v6304_v5, %v13606_v2  ;;  %6892 = vmatmul.mubr.bf16.gmra.mrb[152].mxu0 %v12848_v54  ;;  %v10461_v61 = vcombine.low %v13624_v0, %v13626_v20  ;;  %v13685_v0 = vld [vmem:[#allocation5 + $0x2d0] sm:$0xff] }
 0x2ac   :  { %10243 = vst [vmem:[#allocation8 + $0x320] sm:$0xff] %v11565_v4  ;;  %v11581_v9 = vpack.c.bf16 %v11864_v29, %v11863_v34  ;;  %7118 = vmatmul.mubr.bf16.gmra.mrb[152].mxu1 %v12848_v54  ;;  %6901 = vmatprep.mubr.bf16.mxu0 %v12849_v11  ;;  %v10494_v29 = vcombine.high %v129_v32, %v145_v22 }
 0x2ad   :  { %10244 = vst [vmem:[#allocation8 + $0x328] sm:$0xff] %v11566_v6  ;;  %v11582_v53 = vpack.c.bf16 %v11896_v8, %v11895_v26  ;;  %7127 = vmatprep.mubr.bf16.mxu1 %v12849_v11  ;;  %v10463_v26 = vcombine.low %v13628_v56, %v13630_v7  ;;  %v13683_v11 = vld [vmem:[#allocation5 + $0x250] sm:$0xff]  ;;  %v10493_v7 = vcombine.low %v129_v32, %v145_v22 }
 0x2ae   :  { %10259 = vst [vmem:[#allocation8 + $0x3a0] sm:$0xff] %v11581_v9  ;;  %v6082_v16 = vpop.f32.mrb[80].mxu0  ;;  %v10496_v9 = vcombine.high %v130_v33, %v146_v23 }
 0x2af   :  { %10260 = vst [vmem:[#allocation8 + $0x3a8] sm:$0xff] %v11582_v53  ;;  %v11865_v18 = vadd.f32 %v6082_v16, %v13595_v28  ;;  %v6308_v25 = vpop.f32.mrb[80].mxu1  ;;  %v6084_v21 = vpop.f32.mrb[81].mxu0  ;;  %v12851_v16 = vld [vmem:[#allocation2 + $0x8] ss:$12 sps:$4 sm:$0xff]  }
 0x2b0   :  { %v11897_v12 = vadd.f32 %v6308_v25, %v13600_v14  ;;  %v11866_v15 = vadd.f32 %v6084_v21, %v13603_v31  ;;  %v6310_v52 = vpop.f32.mrb[81].mxu1  ;;  %v6086_v17 = vpop.f32.mrb[82].mxu0  ;;  %v178_v25 = vld [vmem:[#allocation5 + $0x2d8] sm:$0xff] }
 0x2b1   :  { %v11898_v35 = vadd.f32 %v6310_v52, %v13606_v2  ;;  %v11867_v42 = vadd.f32 %v6086_v17, %v13595_v28  ;;  %v6312_v27 = vpop.f32.mrb[82].mxu1  ;;  %v6088_v19 = vpop.f32.mrb[83].mxu0 }
 0x2b2   :  { %v11597_v41 = vpack.c.bf16 %v11866_v15, %v11865_v18  ;;  %v11899_v48 = vadd.f32 %v6312_v27, %v13600_v14  ;;  %v11868_v45 = vadd.f32 %v6088_v19, %v13603_v31  ;;  %v6314_v47 = vpop.f32.mrb[83].mxu1  ;;  %v162_v18 = vld [vmem:[#allocation5 + $0x258] sm:$0xff]  ;;  %v10526_v15 = vcombine.high %v13683_v11, %v13685_v0 }
 0x2b3   :  { %v11598_v50 = vpack.c.bf16 %v11898_v35, %v11897_v12  ;;  %v11900_v3 = vadd.f32 %v6314_v47, %v13606_v2  ;;  %6902 = vmatmul.mubr.bf16.gmra.mrb[156].mxu0 %v12850_v51  ;;  %v10495_v12 = vcombine.low %v130_v33, %v146_v23  ;;  %v10528_v17 = vcombine.high %v162_v18, %v178_v25  ;;  %v13691_v35 = vld [vmem:[#allocation5 + $0x350] sm:$0xff] }
 0x2b4   :  { %10275 = vst [vmem:[#allocation8 + $0x420] sm:$0xff] %v11597_v41  ;;  %v11613_v40 = vpack.c.bf16 %v11868_v45, %v11867_v42  ;;  %7128 = vmatmul.mubr.bf16.gmra.mrb[156].mxu1 %v12850_v51  ;;  %6944 = vmatprep.mubr.bf16.mxu0 %v13027_v24  ;;  %v13693_v42 = vld [vmem:[#allocation5 + $0x3d0] sm:$0xff]  ;;  %v13699_v45 = vld [vmem:[#allocation5 + $0x3d8] sm:$0xff] }
 0x2b5   :  { %10276 = vst [vmem:[#allocation8 + $0x428] sm:$0xff] %v11598_v50  ;;  %v11614_v60 = vpack.c.bf16 %v11900_v3, %v11899_v48  ;;  %7170 = vmatprep.mubr.bf16.mxu1 %v13027_v24  ;;  %v13697_v48 = vld [vmem:[#allocation5 + $0x358] sm:$0xff] }
 0x2b6   :  { %10291 = vst [vmem:[#allocation8 + $0x4a0] sm:$0xff] %v11613_v40  ;;  %v6092_v55 = vpop.f32.mrb[84].mxu0  ;;  %v10525_v40 = vcombine.low %v13683_v11, %v13685_v0  ;;  %v257_v11 = vld [vmem:[#allocation5 + $0x550] sm:$0xff] }
 0x2b7   :  { %10292 = vst [vmem:[#allocation8 + $0x4a8] sm:$0xff] %v11614_v60  ;;  %v11869_v57 = vadd.f32 %v6092_v55, %v13595_v28  ;;  %v6318_v36 = vpop.f32.mrb[84].mxu1  ;;  %v6094_v37 = vpop.f32.mrb[85].mxu0  ;;  %v10527_v60 = vcombine.low %v162_v18, %v178_v25  ;;  %v273_v0 = vld [vmem:[#allocation5 + $0x5d0] sm:$0xff]  ;;  %v258_v18 = vld [vmem:[#allocation5 + $0x558] sm:$0xff] }
 0x2b8   :  { %v11901_v58 = vadd.f32 %v6318_v36, %v13600_v14  ;;  %v11870_v13 = vadd.f32 %v6094_v37, %v13603_v31  ;;  %v6320_v62 = vpop.f32.mrb[85].mxu1  ;;  %v6096_v59 = vpop.f32.mrb[86].mxu0  ;;  %v10558_v36 = vcombine.high %v13691_v35, %v13693_v42  ;;  %v274_v25 = vld [vmem:[#allocation5 + $0x5d8] sm:$0xff] }
 0x2b9   :  { %v11902_v34 = vadd.f32 %v6320_v62, %v13606_v2  ;;  %v11871_v63 = vadd.f32 %v6096_v59, %v13595_v28  ;;  %v6322_v1 = vpop.f32.mrb[86].mxu1  ;;  %v6098_v4 = vpop.f32.mrb[87].mxu0  ;;  %v13713_v62 = vld [vmem:[#allocation5 + $0x450] sm:$0xff] }
 0x2ba   :  { %v11629_v5 = vpack.c.bf16 %v11870_v13, %v11869_v57  ;;  %v11903_v6 = vadd.f32 %v6322_v1, %v13600_v14  ;;  %v11872_v8 = vadd.f32 %v6098_v4, %v13603_v31  ;;  %v6324_v54 = vpop.f32.mrb[87].mxu1  ;;  %v10560_v13 = vcombine.high %v13697_v48, %v13699_v45  ;;  %v13715_v59 = vld [vmem:[#allocation5 + $0x4d0] sm:$0xff]  ;;  %v226_v1 = vld [vmem:[#allocation5 + $0x458] sm:$0xff] }
 0x2bb   :  { %v11630_v20 = vpack.c.bf16 %v11902_v34, %v11901_v58  ;;  %v11904_v53 = vadd.f32 %v6324_v54, %v13606_v2  ;;  %6945 = vmatmul.mubr.bf16.vlgmr.msra.gmra.mrb[128].mxu0 %v12851_v16  ;;  %v242_v4 = vld [vmem:[#allocation5 + $0x4d8] sm:$0xff] }
 0x2bc   :  { %10307 = vst [vmem:[#allocation8 + $0x520] sm:$0xff] %v11629_v5  ;;  %v11645_v56 = vpack.c.bf16 %v11872_v8, %v11871_v63  ;;  %7171 = vmatmul.mubr.bf16.vlgmr.msra.gmra.mrb[128].mxu1 %v12851_v16  ;;  %7252 = vmatpush1.bf16.msra.mxu0 %v10461_v61  ;;  %v12852_v63 = vld [vmem:[#allocation2 + $0x20] ss:$12 sps:$4 sm:$0xff]   ;;  %v10590_v8 = vcombine.high %v13713_v62, %v13715_v59 }
 0x2bd   :  { %10308 = vst [vmem:[#allocation8 + $0x528] sm:$0xff] %v11630_v20  ;;  %v11646_v21 = vpack.c.bf16 %v11904_v53, %v11903_v6  ;;  %7478 = vmatpush1.bf16.msra.mxu1 %v10463_v26  ;;  %7253 = vmatprep.subr.bf16.mxu0 %v10494_v29  ;;  %v10557_v29 = vcombine.low %v13691_v35, %v13693_v42 }
 0x2be   :  { %10323 = vst [vmem:[#allocation8 + $0x5a0] sm:$0xff] %v11645_v56  ;;  %v6102_v52 = vpop.f32.mrb[88].mxu0  ;;  %7479 = vmatprep.subr.bf16.mxu1 %v10496_v9  ;;  %6954 = vmatprep.mubr.bf16.mxu0 %v13027_v24  ;;  %v10559_v6 = vcombine.low %v13697_v48, %v13699_v45  ;;  %v10592_v9 = vcombine.high %v226_v1, %v242_v4 }
 0x2bf   :  { %10324 = vst [vmem:[#allocation8 + $0x5a8] sm:$0xff] %v11646_v21  ;;  %v11873_v27 = vadd.f32 %v6102_v52, %v13595_v28  ;;  %v6328_v19 = vpop.f32.mrb[88].mxu1  ;;  %v6104_v41 = vpop.f32.mrb[89].mxu0  ;;  %7180 = vmatprep.mubr.bf16.mxu1 %v13027_v24  ;;  %v10591_v52 = vcombine.low %v226_v1, %v242_v4  ;;  %v12854_v1 = vld [vmem:[#allocation2 + $0x50] ss:$12 sps:$4 sm:$0xff]  }
 0x2c0   :  { %v11905_v47 = vadd.f32 %v6328_v19, %v13600_v14  ;;  %v11874_v50 = vadd.f32 %v6104_v41, %v13603_v31  ;;  %v6330_v3 = vpop.f32.mrb[89].mxu1  ;;  %v6106_v51 = vpop.f32.mrb[90].mxu0  ;;  %7254 = vmatpush1.bf16.msra.mxu0 %v10493_v7  ;;  %v10622_v19 = vcombine.high %v257_v11, %v273_v0  ;;  %v354_v4 = vld [vmem:[#allocation5 + $0x858] sm:$0xff] }
 0x2c1   :  { %v11906_v55 = vadd.f32 %v6330_v3, %v13606_v2  ;;  %v11875_v32 = vadd.f32 %v6106_v51, %v13595_v28  ;;  %v6332_v22 = vpop.f32.mrb[90].mxu1  ;;  %7480 = vmatpush1.bf16.msra.mxu1 %v10495_v12  ;;  %v6108_v57 = vpop.f32.mrb[91].mxu0  ;;  %7255 = vmatprep.subr.bf16.mxu0 %v10526_v15  ;;  %v10589_v15 = vcombine.low %v13713_v62, %v13715_v59  ;;  %v289_v3 = vld [vmem:[#allocation5 + $0x650] sm:$0xff] }
 0x2c2   :  { %v11661_v37 = vpack.c.bf16 %v11874_v50, %v11873_v27  ;;  %v11907_v33 = vadd.f32 %v6332_v22, %v13600_v14  ;;  %v11876_v23 = vadd.f32 %v6108_v57, %v13603_v31  ;;  %v6334_v58 = vpop.f32.mrb[91].mxu1  ;;  %7481 = vmatprep.subr.bf16.mxu1 %v10528_v17  ;;  %v10624_v50 = vcombine.high %v258_v18, %v274_v25  ;;  %v305_v51 = vld [vmem:[#allocation5 + $0x6d0] sm:$0xff] }
 0x2c3   :  { %v11662_v61 = vpack.c.bf16 %v11906_v55, %v11905_v47  ;;  %v11908_v34 = vadd.f32 %v6334_v58, %v13606_v2  ;;  %6955 = vmatmul.mubr.bf16.gmra.mrb[132].mxu0 %v12852_v63  ;;  %v12853_v55 = vld [vmem:[#allocation2 + $0x38] ss:$12 sps:$4 sm:$0xff]   ;;  %v10621_v57 = vcombine.low %v257_v11, %v273_v0 }
 0x2c4   :  { %10339 = vst [vmem:[#allocation8 + $0x620] sm:$0xff] %v11661_v37  ;;  %v11677_v26 = vpack.c.bf16 %v11876_v23, %v11875_v32  ;;  %7181 = vmatmul.mubr.bf16.gmra.mrb[132].mxu1 %v12852_v63  ;;  %7256 = vmatpush1.bf16.msra.mxu0 %v10525_v40  ;;  %v306_v32 = vld [vmem:[#allocation5 + $0x6d8] sm:$0xff]  ;;  %v321_v37 = vld [vmem:[#allocation5 + $0x750] sm:$0xff] }
 0x2c5   :  { %10340 = vst [vmem:[#allocation8 + $0x628] sm:$0xff] %v11662_v61  ;;  %v11678_v5 = vpack.c.bf16 %v11908_v34, %v11907_v33  ;;  %7482 = vmatpush1.bf16.msra.mxu1 %v10527_v60  ;;  %7257 = vmatprep.subr.bf16.mxu0 %v10558_v36  ;;  %v10654_v36 = vcombine.high %v289_v3, %v305_v51  ;;  %v337_v33 = vld [vmem:[#allocation5 + $0x7d0] sm:$0xff]  ;;  %v322_v23 = vld [vmem:[#allocation5 + $0x758] sm:$0xff] }
 0x2c6   :  { %10355 = vst [vmem:[#allocation8 + $0x6a0] sm:$0xff] %v11677_v26  ;;  %v6112_v54 = vpop.f32.mrb[92].mxu0  ;;  %7483 = vmatprep.subr.bf16.mxu1 %v10560_v13  ;;  %6964 = vmatprep.mubr.bf16.mxu0 %v13027_v24  ;;  %v338_v58 = vld [vmem:[#allocation5 + $0x7d8] sm:$0xff]  ;;  %v10653_v13 = vcombine.low %v289_v3, %v305_v51  ;;  %v10686_v59 = vcombine.high %v321_v37, %v337_v33  ;;  %v353_v34 = vld [vmem:[#allocation5 + $0x850] sm:$0xff] }
 0x2c7   :  { %10356 = vst [vmem:[#allocation8 + $0x6a8] sm:$0xff] %v11678_v5  ;;  %v11877_v20 = vadd.f32 %v6112_v54, %v13595_v28  ;;  %v6338_v53 = vpop.f32.mrb[92].mxu1  ;;  %v6114_v16 = vpop.f32.mrb[93].mxu0  ;;  %7190 = vmatprep.mubr.bf16.mxu1 %v13027_v24  ;;  %v10688_v61 = vcombine.high %v322_v23, %v338_v58  ;;  %v369_v63 = vld [vmem:[#allocation5 + $0x8d0] sm:$0xff]  ;;  %v370_v26 = vld [vmem:[#allocation5 + $0x8d8] sm:$0xff]  ;;  %v10687_v5 = vcombine.low %v322_v23, %v338_v58 }
 0x2c8   :  { %v11909_v56 = vadd.f32 %v6338_v53, %v13600_v14  ;;  %v11878_v7 = vadd.f32 %v6114_v16, %v13603_v31  ;;  %v6340_v21 = vpop.f32.mrb[93].mxu1  ;;  %v6116_v12 = vpop.f32.mrb[94].mxu0  ;;  %7258 = vmatpush1.bf16.msra.mxu0 %v10557_v29  ;;  %v10685_v29 = vcombine.low %v321_v37, %v337_v33  ;;  %v385_v54 = vld [vmem:[#allocation5 + $0x950] sm:$0xff]  ;;  %v386_v11 = vld [vmem:[#allocation5 + $0x958] sm:$0xff]  ;;  %v10719_v53 = vcombine.low %v354_v4, %v370_v26 }
 0x2c9   :  { %v11910_v17 = vadd.f32 %v6340_v21, %v13606_v2  ;;  %v11879_v35 = vadd.f32 %v6116_v12, %v13595_v28  ;;  %v6342_v42 = vpop.f32.mrb[94].mxu1  ;;  %7484 = vmatpush1.bf16.msra.mxu1 %v10559_v6  ;;  %v6118_v27 = vpop.f32.mrb[95].mxu0  ;;  %7259 = vmatprep.subr.bf16.mxu0 %v10590_v8  ;;  %v290_v28 = vld [vmem:[#allocation5 + $0x658] sm:$0xff]  ;;  %v10718_v6 = vcombine.high %v353_v34, %v369_v63  ;;  %v481_v3 = vld [vmem:[#allocation5 + $0xc50] sm:$0xff] }
 0x2ca   :  { %v11693_v41 = vpack.c.bf16 %v11878_v7, %v11877_v20  ;;  %v11911_v48 = vadd.f32 %v6342_v42, %v13600_v14  ;;  %v11880_v45 = vadd.f32 %v6118_v27, %v13603_v31  ;;  %v6344_v47 = vpop.f32.mrb[95].mxu1  ;;  %7485 = vmatprep.subr.bf16.mxu1 %v10592_v9  ;;  %v10623_v31 = vcombine.low %v258_v18, %v274_v25  ;;  %v401_v9 = vld [vmem:[#allocation5 + $0x9d0] sm:$0xff]  ;;  %v402_v0 = vld [vmem:[#allocation5 + $0x9d8] sm:$0xff] }
 0x2cb   :  { %v11694_v40 = vpack.c.bf16 %v11910_v17, %v11909_v56  ;;  %v11912_v60 = vadd.f32 %v6344_v47, %v13606_v2  ;;  %6965 = vmatmul.mubr.bf16.gmra.mrb[136].mxu0 %v12853_v55  ;;  %v10656_v2 = vcombine.high %v290_v28, %v306_v32  ;;  %v10655_v62 = vcombine.low %v290_v28, %v306_v32  ;;  %v417_v25 = vld [vmem:[#allocation5 + $0xa50] sm:$0xff]  ;;  %v418_v21 = vld [vmem:[#allocation5 + $0xa58] sm:$0xff] }
 0x2cc   :  { %10371 = vst [vmem:[#allocation8 + $0x720] sm:$0xff] %v11693_v41  ;;  %v11709_v22 = vpack.c.bf16 %v11880_v45, %v11879_v35  ;;  %7191 = vmatmul.mubr.bf16.gmra.mrb[136].mxu1 %v12853_v55  ;;  %7260 = vmatpush1.bf16.msra.mxu0 %v10589_v15  ;;  %v10720_v8 = vcombine.high %v354_v4, %v370_v26  ;;  %v433_v56 = vld [vmem:[#allocation5 + $0xad0] sm:$0xff]  ;;  %v434_v12 = vld [vmem:[#allocation5 + $0xad8] sm:$0xff] }
 0x2cd   :  { %10372 = vst [vmem:[#allocation8 + $0x728] sm:$0xff] %v11694_v40  ;;  %v11710_v14 = vpack.c.bf16 %v11912_v60, %v11911_v48  ;;  %7486 = vmatpush1.bf16.msra.mxu1 %v10591_v52  ;;  %7261 = vmatprep.subr.bf16.mxu0 %v10622_v19  ;;  %v10717_v20 = vcombine.low %v353_v34, %v369_v63  ;;  %v12855_v7 = vld [vmem:[#allocation2 + $0x68] ss:$12 sps:$4 sm:$0xff]   ;;  %v450_v19 = vld [vmem:[#allocation5 + $0xb58] sm:$0xff]  ;;  %v12856_v40 = vld [vmem:[#allocation2 + $0x80] ss:$12 sps:$4 sm:$0xff]  }
 0x2ce   :  { %10387 = vst [vmem:[#allocation8 + $0x7a0] sm:$0xff] %v11709_v22  ;;  %7487 = vmatprep.subr.bf16.mxu1 %v10624_v50  ;;  %6974 = vmatprep.mubr.bf16.mxu0 %v13027_v24  ;;  %v10750_v16 = vcombine.high %v385_v54, %v401_v9  ;;  %v10752_v18 = vcombine.high %v386_v11, %v402_v0  ;;  %v449_v42 = vld [vmem:[#allocation5 + $0xb50] sm:$0xff]  ;;  %v466_v41 = vld [vmem:[#allocation5 + $0xbd8] sm:$0xff] }
 0x2cf   :  { %10388 = vst [vmem:[#allocation8 + $0x7a8] sm:$0xff] %v11710_v14  ;;  %7200 = vmatprep.mubr.bf16.mxu1 %v13027_v24  ;;  %v10749_v15 = vcombine.low %v385_v54, %v401_v9  ;;  %v10751_v52 = vcombine.low %v386_v11, %v402_v0  ;;  %v10782_v17 = vcombine.high %v417_v25, %v433_v56  ;;  %v465_v27 = vld [vmem:[#allocation5 + $0xbd0] sm:$0xff]  ;;  %v482_v60 = vld [vmem:[#allocation5 + $0xc58] sm:$0xff] }
 0x2d0   :  { %7262 = vmatpush1.bf16.msra.mxu0 %v10621_v57  ;;  %v10784_v35 = vcombine.high %v418_v21, %v434_v12  ;;  %v10781_v48 = vcombine.low %v417_v25, %v433_v56  ;;  %v10783_v45 = vcombine.low %v418_v21, %v434_v12  ;;  %v10814_v47 = vcombine.high %v449_v42, %v465_v27  ;;  %v497_v51 = vld [vmem:[#allocation5 + $0xcd0] sm:$0xff]  ;;  %v498_v55 = vld [vmem:[#allocation5 + $0xcd8] sm:$0xff] }
 0x2d1   :  { %7488 = vmatpush1.bf16.msra.mxu1 %v10623_v31  ;;  %7263 = vmatprep.subr.bf16.mxu0 %v10654_v36  ;;  %v10816_v50 = vcombine.high %v450_v19, %v466_v41  ;;  %v10813_v28 = vcombine.low %v449_v42, %v465_v27  ;;  %v10815_v32 = vcombine.low %v450_v19, %v466_v41  ;;  %v513_v14 = vld [vmem:[#allocation5 + $0xd50] sm:$0xff]  ;;  %v514_v36 = vld [vmem:[#allocation5 + $0xd58] sm:$0xff] }
 0x2d2   :  { %7489 = vmatprep.subr.bf16.mxu1 %v10656_v2  ;;  %v10846_v22 = vcombine.high %v481_v3, %v497_v51  ;;  %v10848_v57 = vcombine.high %v482_v60, %v498_v55  ;;  %v529_v31 = vld [vmem:[#allocation5 + $0xdd0] sm:$0xff]  ;;  %v530_v2 = vld [vmem:[#allocation5 + $0xdd8] sm:$0xff]  ;;  %v10845_v37 = vcombine.low %v481_v3, %v497_v51  ;;  %v10847_v33 = vcombine.low %v482_v60, %v498_v55 }
 0x2d3   :  { %6975 = vmatmul.mubr.bf16.gmra.mrb[140].mxu0 %v12854_v1  ;;  %v10878_v23 = vcombine.high %v513_v14, %v529_v31  ;;  %v10880_v58 = vcombine.high %v514_v36, %v530_v2  ;;  %v562_v34 = vld [vmem:[#allocation5 + $0xed8] sm:$0xff]  ;;  %v10877_v63 = vcombine.low %v513_v14, %v529_v31  ;;  %v12859_v12 = vld [vmem:[#allocation2 + $0x4] ss:$12 sps:$4 sm:$0xff]  }
 0x2d4   :  { %7201 = vmatmul.mubr.bf16.gmra.mrb[140].mxu1 %v12854_v1  ;;  %7264 = vmatpush1.bf16.msra.mxu0 %v10653_v13  ;;  %v545_v13 = vld [vmem:[#allocation5 + $0xe50] sm:$0xff]  ;;  %v10879_v1 = vcombine.low %v514_v36, %v530_v2  ;;  %v626_v25 = vld [vmem:[#allocation5 + $0x10d8] sm:$0xff] }
 0x2d5   :  { %7490 = vmatpush1.bf16.msra.mxu1 %v10655_v62  ;;  %7265 = vmatprep.subr.bf16.mxu0 %v10686_v59  ;;  %v561_v62 = vld [vmem:[#allocation5 + $0xed0] sm:$0xff]  ;;  %v12857_v59 = vld [vmem:[#allocation2 + $0x98] ss:$12 sps:$4 sm:$0xff]   ;;  %v12861_v60 = vld [vmem:[#allocation2 + $0x1c] ss:$12 sps:$4 sm:$0xff]  }
 0x2d6   :  { %7491 = vmatprep.subr.bf16.mxu1 %v10688_v61  ;;  %6984 = vmatprep.mubr.bf16.mxu0 %v13027_v24  ;;  %v546_v61 = vld [vmem:[#allocation5 + $0xe58] sm:$0xff]  ;;  %v10910_v4 = vcombine.high %v545_v13, %v561_v62  ;;  %v10909_v54 = vcombine.low %v545_v13, %v561_v62  ;;  %v753_v13 = vld [vmem:[#allocation5 + $0x14d0] sm:$0xff] }
 0x2d7   :  { %7210 = vmatprep.mubr.bf16.mxu1 %v13027_v24  ;;  %v10912_v26 = vcombine.high %v546_v61, %v562_v34  ;;  %v10911_v9 = vcombine.low %v546_v61, %v562_v34  ;;  %v642_v42 = vld [vmem:[#allocation5 + $0x1158] sm:$0xff]  ;;  %v12863_v62 = vld [vmem:[#allocation2 + $0x34] ss:$12 sps:$4 sm:$0xff]  }
 0x2d8   :  { %7266 = vmatpush1.bf16.msra.mxu0 %v10685_v29  ;;  %v577_v29 = vld [vmem:[#allocation5 + $0xf50] sm:$0xff]  ;;  %v658_v27 = vld [vmem:[#allocation5 + $0x11d8] sm:$0xff] }
 0x2d9   :  { %7492 = vmatpush1.bf16.msra.mxu1 %v10687_v5  ;;  %7267 = vmatprep.subr.bf16.mxu0 %v10718_v6  ;;  %v593_v5 = vld [vmem:[#allocation5 + $0xfd0] sm:$0xff]  ;;  %v578_v6 = vld [vmem:[#allocation5 + $0xf58] sm:$0xff]  ;;  %v11007_v55 = vcombine.low %v642_v42, %v658_v27 }
 0x2da   :  { %7493 = vmatprep.subr.bf16.mxu1 %v10720_v8  ;;  %v594_v8 = vld [vmem:[#allocation5 + $0xfd8] sm:$0xff]  ;;  %v10942_v11 = vcombine.high %v577_v29, %v593_v5  ;;  %v10941_v56 = vcombine.low %v577_v29, %v593_v5  ;;  %v785_v29 = vld [vmem:[#allocation5 + $0x15d0] sm:$0xff] }
 0x2db   :  { %6985 = vmatmul.mubr.bf16.gmra.mrb[144].mxu0 %v12855_v7  ;;  %v10944_v0 = vcombine.high %v578_v6, %v594_v8  ;;  %v674_v3 = vld [vmem:[#allocation5 + $0x1258] sm:$0xff] }
 0x2dc   :  { %7211 = vmatmul.mubr.bf16.gmra.mrb[144].mxu1 %v12855_v7  ;;  %7268 = vmatpush1.bf16.msra.mxu0 %v10717_v20  ;;  %v609_v20 = vld [vmem:[#allocation5 + $0x1050] sm:$0xff]  ;;  %v10943_v7 = vcombine.low %v578_v6, %v594_v8  ;;  %v690_v51 = vld [vmem:[#allocation5 + $0x12d8] sm:$0xff] }
 0x2dd   :  { %7494 = vmatpush1.bf16.msra.mxu1 %v10719_v53  ;;  %7269 = vmatprep.subr.bf16.mxu0 %v10750_v16  ;;  %v625_v53 = vld [vmem:[#allocation5 + $0x10d0] sm:$0xff]  ;;  %v706_v14 = vld [vmem:[#allocation5 + $0x1358] sm:$0xff]  ;;  %v11039_v2 = vcombine.low %v674_v3, %v690_v51 }
 0x2de   :  { %7495 = vmatprep.subr.bf16.mxu1 %v10752_v18  ;;  %6994 = vmatprep.mubr.bf16.mxu0 %v13027_v24  ;;  %v12858_v16 = vld [vmem:[#allocation2 + $0xb0] ss:$12 sps:$4 sm:$0xff]   ;;  %v10974_v21 = vcombine.high %v609_v20, %v625_v53 }
 0x2df   :  { %7220 = vmatprep.mubr.bf16.mxu1 %v13027_v24  ;;  %v610_v18 = vld [vmem:[#allocation5 + $0x1058] sm:$0xff] }
 0x2e0   :  { %7270 = vmatpush1.bf16.msra.mxu0 %v10749_v15  ;;  %v10976_v15 = vcombine.high %v610_v18, %v626_v25  ;;  %v10975_v19 = vcombine.low %v610_v18, %v626_v25  ;;  %v722_v31 = vld [vmem:[#allocation5 + $0x13d8] sm:$0xff]  ;;  %v817_v18 = vld [vmem:[#allocation5 + $0x16d0] sm:$0xff] }
 0x2e1   :  { %7496 = vmatpush1.bf16.msra.mxu1 %v10751_v52  ;;  %7271 = vmatprep.subr.bf16.mxu0 %v10782_v17  ;;  %v641_v52 = vld [vmem:[#allocation5 + $0x1150] sm:$0xff]  ;;  %v754_v61 = vld [vmem:[#allocation5 + $0x14d8] sm:$0xff] }
 0x2e2   :  { %7497 = vmatprep.subr.bf16.mxu1 %v10784_v35  ;;  %v657_v17 = vld [vmem:[#allocation5 + $0x11d0] sm:$0xff]  ;;  %v10973_v35 = vcombine.low %v609_v20, %v625_v53  ;;  %v770_v5 = vld [vmem:[#allocation5 + $0x1558] sm:$0xff] }
 0x2e3   :  { %6995 = vmatmul.mubr.bf16.gmra.mrb[148].mxu0 %v12856_v40  ;;  %v11006_v41 = vcombine.high %v641_v52, %v657_v17  ;;  %v786_v6 = vld [vmem:[#allocation5 + $0x15d8] sm:$0xff] }
 0x2e4   :  { %7221 = vmatmul.mubr.bf16.gmra.mrb[148].mxu1 %v12856_v40  ;;  %7272 = vmatpush1.bf16.msra.mxu0 %v10781_v48  ;;  %v673_v48 = vld [vmem:[#allocation5 + $0x1250] sm:$0xff]  ;;  %v11005_v40 = vcombine.low %v641_v52, %v657_v17  ;;  %v11136_v53 = vcombine.high %v770_v5, %v786_v6 }
 0x2e5   :  { %7498 = vmatpush1.bf16.msra.mxu1 %v10783_v45  ;;  %7273 = vmatprep.subr.bf16.mxu0 %v10814_v47  ;;  %v689_v45 = vld [vmem:[#allocation5 + $0x12d0] sm:$0xff]  ;;  %v12860_v47 = vld [vmem:[#allocation2] ss:$12 sps:$4 sm:$0xff]  }
 0x2e6   :  { %7499 = vmatprep.subr.bf16.mxu1 %v10816_v50  ;;  %7004 = vmatprep.mubr.bf16.mxu0 %v13027_v24  ;;  %v11008_v50 = vcombine.high %v642_v42, %v658_v27  ;;  %v11037_v36 = vcombine.low %v673_v48, %v689_v45  ;;  %v13761_v27 = vld [vmem:[#allocation5 + $0x1750] sm:$0xff] }
 0x2e7   :  { %7230 = vmatprep.mubr.bf16.mxu1 %v13027_v24 }
 0x2e8   :  { %7274 = vmatpush1.bf16.msra.mxu0 %v10813_v28  ;;  %v11038_v28 = vcombine.high %v673_v48, %v689_v45 }
 0x2e9   :  { %7500 = vmatpush1.bf16.msra.mxu1 %v10815_v32  ;;  %7275 = vmatprep.subr.bf16.mxu0 %v10846_v22  ;;  %v11040_v32 = vcombine.high %v674_v3, %v690_v51  ;;  %v705_v22 = vld [vmem:[#allocation5 + $0x1350] sm:$0xff] }
 0x2ea   :  { %7501 = vmatprep.subr.bf16.mxu1 %v10848_v57  ;;  %v721_v57 = vld [vmem:[#allocation5 + $0x13d0] sm:$0xff] }
 0x2eb   :  { %7005 = vmatmul.mubr.bf16.gmra.mrb[152].mxu0 %v12857_v59  ;;  %v11069_v34 = vcombine.low %v705_v22, %v721_v57 }
 0x2ec   :  { %7231 = vmatmul.mubr.bf16.gmra.mrb[152].mxu1 %v12857_v59  ;;  %7276 = vmatpush1.bf16.msra.mxu0 %v10845_v37  ;;  %v11070_v37 = vcombine.high %v705_v22, %v721_v57  ;;  %v738_v59 = vld [vmem:[#allocation5 + $0x1458] sm:$0xff] }
 0x2ed   :  { %7502 = vmatpush1.bf16.msra.mxu1 %v10847_v33  ;;  %7277 = vmatprep.subr.bf16.mxu0 %v10878_v23  ;;  %v12862_v33 = vld [vmem:[#allocation2 + $0x18] ss:$12 sps:$4 sm:$0xff]   ;;  %v11072_v23 = vcombine.high %v706_v14, %v722_v31 }
 0x2ee   :  { %7503 = vmatprep.subr.bf16.mxu1 %v10880_v58  ;;  %7014 = vmatprep.mubr.bf16.mxu0 %v13027_v24  ;;  %v737_v58 = vld [vmem:[#allocation5 + $0x1450] sm:$0xff] }
 0x2ef   :  { %7240 = vmatprep.mubr.bf16.mxu1 %v13027_v24  ;;  %v11101_v8 = vcombine.low %v737_v58, %v753_v13 }
 0x2f0   :  { %7278 = vmatpush1.bf16.msra.mxu0 %v10877_v63  ;;  %v11071_v63 = vcombine.low %v706_v14, %v722_v31 }
 0x2f1   :  { %7504 = vmatpush1.bf16.msra.mxu1 %v10879_v1  ;;  %7279 = vmatprep.subr.bf16.mxu0 %v10910_v4  ;;  %v11102_v1 = vcombine.high %v737_v58, %v753_v13  ;;  %v11104_v4 = vcombine.high %v738_v59, %v754_v61 }
 0x2f2   :  { %7505 = vmatprep.subr.bf16.mxu1 %v10912_v26  ;;  %v769_v26 = vld [vmem:[#allocation5 + $0x1550] sm:$0xff] }
 0x2f3   :  { %7015 = vmatmul.mubr.bf16.gmra.mrb[156].mxu0 %v12858_v16  ;;  %v11133_v52 = vcombine.low %v769_v26, %v785_v29 }
 0x2f4   :  { %7241 = vmatmul.mubr.bf16.gmra.mrb[156].mxu1 %v12858_v16  ;;  %7280 = vmatpush1.bf16.msra.mxu0 %v10909_v54  ;;  %v11103_v54 = vcombine.low %v738_v59, %v754_v61  ;;  %v13749_v16 = vld [vmem:[#allocation5 + $0x1650] sm:$0xff]  ;;  %v13776_v61 = vld [vmem:[#allocation5 + $0x60] sm:$0xff] }
 0x2f5   :  { %7506 = vmatpush1.bf16.msra.mxu1 %v10911_v9  ;;  %7281 = vmatprep.subr.bf16.mxu0 %v10942_v11  ;;  %v11134_v9 = vcombine.high %v769_v26, %v785_v29  ;;  %v12864_v11 = vld [vmem:[#allocation2 + $0x30] ss:$12 sps:$4 sm:$0xff]   ;;  %v11166_v42 = vcombine.high %v13749_v16, %v817_v18  ;;  %v13782_v26 = vld [vmem:[#allocation5 + $0xe8] sm:$0xff] }
 0x2f6   :  { %7507 = vmatprep.subr.bf16.mxu1 %v10944_v0  ;;  %7283 = vmatprep.mubr.bf16.mxu0 %v12859_v12  ;;  %v12865_v0 = vld [vmem:[#allocation7 + $0x8] sm:$0xff] }
 0x2f7   :  { %7509 = vmatprep.mubr.bf16.mxu1 %v12859_v12  ;;  %v13747_v20 = vrot.slane %v12865_v0, %v13431_v30  ;;  %v13752_v25 = vrot.slane %v12865_v0, %v13434_v10  ;;  %v818_v12 = vld [vmem:[#allocation5 + $0x16d8] sm:$0xff] }
 0x2f8   :  { %7282 = vmatpush1.bf16.msra.mxu0 %v10941_v56  ;;  %v13755_v56 = vrot.slane %v12865_v0, %v13437_v39 }
 0x2f9   :  { %7508 = vmatpush1.bf16.msra.mxu1 %v10943_v7  ;;  %7364 = vmatprep.subr.bf16.mxu0 %v10974_v21  ;;  %v12866_v7 = vld [vmem:[#allocation2 + $0x4c] ss:$12 sps:$4 sm:$0xff]  }
 0x2fa   :  { %7590 = vmatprep.subr.bf16.mxu1 %v10976_v15  ;;  %v802_v21 = vld [vmem:[#allocation5 + $0x1658] sm:$0xff]  ;;  %v13758_v15 = vrot.slane %v12865_v0, %v13440_v43 }
 0x2fb   :  { %7284 = vmatmul.mubr.bf16.vlgmr.msra.gmra.mrb[160].mxu0 %v12860_v47  ;;  %v11167_v31 = vcombine.low %v802_v21, %v818_v12 }
 0x2fc   :  { %7510 = vmatmul.mubr.bf16.vlgmr.msra.gmra.mrb[160].mxu1 %v12860_v47  ;;  %7365 = vmatpush1.bf16.msra.mxu0 %v10973_v35  ;;  %v11135_v35 = vcombine.low %v770_v5, %v786_v6  ;;  %v11168_v47 = vcombine.high %v802_v21, %v818_v12 }
 0x2fd   :  { %7591 = vmatpush1.bf16.msra.mxu1 %v10975_v19  ;;  %7293 = vmatprep.mubr.bf16.mxu0 %v12861_v60  ;;  %v13763_v19 = vld [vmem:[#allocation5 + $0x17d0] sm:$0xff] }
 0x2fe   :  { %7519 = vmatprep.mubr.bf16.mxu1 %v12861_v60  ;;  %7366 = vmatprep.subr.bf16.mxu0 %v11006_v41  ;;  %v11165_v60 = vcombine.low %v13749_v16, %v817_v18  ;;  %v11197_v5 = vcombine.low %v13761_v27, %v13763_v19 }
 0x2ff   :  { %7592 = vmatprep.subr.bf16.mxu1 %v11008_v50 }
 0x300   :  { %7367 = vmatpush1.bf16.msra.mxu0 %v11005_v40 }
 0x301   :  { %7593 = vmatpush1.bf16.msra.mxu1 %v11007_v55  ;;  %7368 = vmatprep.subr.bf16.mxu0 %v11038_v28  ;;  %v834_v55 = vld [vmem:[#allocation5 + $0x1758] sm:$0xff] }
 0x302   :  { %7594 = vmatprep.subr.bf16.mxu1 %v11040_v32  ;;  %v850_v28 = vld [vmem:[#allocation5 + $0x17d8] sm:$0xff] }
 0x303   :  { %7294 = vmatmul.mubr.bf16.gmra.mrb[164].mxu0 %v12862_v33  ;;  %v11200_v59 = vcombine.high %v834_v55, %v850_v28 }
 0x304   :  { %7520 = vmatmul.mubr.bf16.gmra.mrb[164].mxu1 %v12862_v33  ;;  %7303 = vmatprep.mubr.bf16.mxu0 %v12863_v62 }
 0x305   :  { %7529 = vmatprep.mubr.bf16.mxu1 %v12863_v62  ;;  %7369 = vmatpush1.bf16.msra.mxu0 %v11037_v36  ;;  %v11198_v36 = vcombine.high %v13761_v27, %v13763_v19  ;;  %v12867_v62 = vld [vmem:[#allocation2 + $0x48] ss:$12 sps:$4 sm:$0xff]  }
 0x306   :  { %7595 = vmatpush1.bf16.msra.mxu1 %v11039_v2  ;;  %7370 = vmatprep.subr.bf16.mxu0 %v11070_v37 }
 0x307   :  { %7596 = vmatprep.subr.bf16.mxu1 %v11072_v23 }
 0x309   :  { %7371 = vmatpush1.bf16.msra.mxu0 %v11069_v34  ;;  %v13778_v34 = vld [vmem:[#allocation5 + $0xe0] sm:$0xff] }
 0x30a   :  { %7597 = vmatpush1.bf16.msra.mxu1 %v11071_v63  ;;  %7372 = vmatprep.subr.bf16.mxu0 %v11102_v1  ;;  %v12868_v1 = vld [vmem:[#allocation2 + $0x64] ss:$12 sps:$4 sm:$0xff]  }
 0x30b   :  { %7304 = vmatmul.mubr.bf16.gmra.mrb[168].mxu0 %v12864_v11  ;;  %7598 = vmatprep.subr.bf16.mxu1 %v11104_v4  ;;  %v13780_v4 = vld [vmem:[#allocation5 + $0x68] sm:$0xff] }
 0x30c   :  { %7530 = vmatmul.mubr.bf16.gmra.mrb[168].mxu1 %v12864_v11  ;;  %7313 = vmatprep.mubr.bf16.mxu0 %v12866_v7 }
 0x30d   :  { %7539 = vmatprep.mubr.bf16.mxu1 %v12866_v7  ;;  %7373 = vmatpush1.bf16.msra.mxu0 %v11101_v8  ;;  %v11199_v8 = vcombine.low %v834_v55, %v850_v28 }
 0x30e   :  { %v6494_v17 = vpop.f32.mrb[96].mxu0  ;;  %7599 = vmatpush1.bf16.msra.mxu1 %v11103_v54  ;;  %7374 = vmatprep.subr.bf16.mxu0 %v11134_v9  ;;  %v10466_v54 = vcombine.high %v13776_v61, %v13778_v34 }
 0x30f   :  { %v11913_v41 = vadd.f32 %v6494_v17, %v13747_v20  ;;  %v6720_v48 = vpop.f32.mrb[96].mxu1  ;;  %v6496_v45 = vpop.f32.mrb[97].mxu0  ;;  %7600 = vmatprep.subr.bf16.mxu1 %v11136_v53  ;;  %v10468_v53 = vcombine.high %v13780_v4, %v13782_v26 }
 0x310   :  { %v11945_v50 = vadd.f32 %v6720_v48, %v13752_v25  ;;  %v11914_v3 = vadd.f32 %v6496_v45, %v13755_v56  ;;  %v6722_v51 = vpop.f32.mrb[97].mxu1  ;;  %v6498_v40 = vpop.f32.mrb[98].mxu0 }
 0x311   :  { %v11946_v32 = vadd.f32 %v6722_v51, %v13758_v15  ;;  %v11915_v22 = vadd.f32 %v6498_v40, %v13747_v20  ;;  %v6724_v57 = vpop.f32.mrb[98].mxu1  ;;  %v6500_v14 = vpop.f32.mrb[99].mxu0  ;;  %7375 = vmatpush1.bf16.msra.mxu0 %v11133_v52 }
 0x312   :  { %v11471_v2 = vpack.c.bf16 %v11914_v3, %v11913_v41  ;;  %v11947_v37 = vadd.f32 %v6724_v57, %v13752_v25  ;;  %v11916_v33 = vadd.f32 %v6500_v14, %v13755_v56  ;;  %v6726_v23 = vpop.f32.mrb[99].mxu1  ;;  %7601 = vmatpush1.bf16.msra.mxu1 %v11135_v35  ;;  %7376 = vmatprep.subr.bf16.mxu0 %v11166_v42  ;;  %v12870_v3 = vld [vmem:[#allocation2 + $0x7c] ss:$12 sps:$4 sm:$0xff]  }
 0x313   :  { %v11472_v58 = vpack.c.bf16 %v11946_v32, %v11945_v50  ;;  %v11948_v13 = vadd.f32 %v6726_v23, %v13758_v15  ;;  %7314 = vmatmul.mubr.bf16.gmra.mrb[172].mxu0 %v12867_v62  ;;  %7602 = vmatprep.subr.bf16.mxu1 %v11168_v47  ;;  %v12869_v47 = vld [vmem:[#allocation2 + $0x60] ss:$12 sps:$4 sm:$0xff]  }
 0x314   :  { %10149 = vst [vmem:[#allocation8 + $0x30] sm:$0xff] %v11471_v2  ;;  %v11487_v63 = vpack.c.bf16 %v11916_v33, %v11915_v22  ;;  %7540 = vmatmul.mubr.bf16.gmra.mrb[172].mxu1 %v12867_v62  ;;  %7323 = vmatprep.mubr.bf16.mxu0 %v12868_v1 }
 0x315   :  { %10150 = vst [vmem:[#allocation8 + $0x38] sm:$0xff] %v11472_v58  ;;  %v11488_v29 = vpack.c.bf16 %v11948_v13, %v11947_v37  ;;  %7549 = vmatprep.mubr.bf16.mxu1 %v12868_v1  ;;  %7377 = vmatpush1.bf16.msra.mxu0 %v11165_v60 }
 0x316   :  { %10165 = vst [vmem:[#allocation8 + $0xb0] sm:$0xff] %v11487_v63  ;;  %v6504_v6 = vpop.f32.mrb[100].mxu0  ;;  %7603 = vmatpush1.bf16.msra.mxu1 %v11167_v31  ;;  %7378 = vmatprep.subr.bf16.mxu0 %v11198_v36  ;;  %v12871_v63 = vld [vmem:[#allocation2 + $0x78] ss:$12 sps:$4 sm:$0xff]  }
 0x317   :  { %10166 = vst [vmem:[#allocation8 + $0xb8] sm:$0xff] %v11488_v29  ;;  %v11917_v9 = vadd.f32 %v6504_v6, %v13747_v20  ;;  %v6730_v11 = vpop.f32.mrb[100].mxu1  ;;  %v6506_v0 = vpop.f32.mrb[101].mxu0  ;;  %7604 = vmatprep.subr.bf16.mxu1 %v11200_v59  ;;  %v12872_v29 = vld [vmem:[#allocation2 + $0x94] ss:$12 sps:$4 sm:$0xff]  }
 0x318   :  { %v11949_v16 = vadd.f32 %v6730_v11, %v13752_v25  ;;  %v11918_v18 = vadd.f32 %v6506_v0, %v13755_v56  ;;  %v6732_v7 = vpop.f32.mrb[101].mxu1  ;;  %v6508_v21 = vpop.f32.mrb[102].mxu0 }
 0x319   :  { %v11950_v12 = vadd.f32 %v6732_v7, %v13758_v15  ;;  %v11919_v52 = vadd.f32 %v6508_v21, %v13747_v20  ;;  %v6734_v17 = vpop.f32.mrb[102].mxu1  ;;  %v6510_v35 = vpop.f32.mrb[103].mxu0  ;;  %7379 = vmatpush1.bf16.msra.mxu0 %v11197_v5 }
 0x31a   :  { %v11503_v42 = vpack.c.bf16 %v11918_v18, %v11917_v9  ;;  %v11951_v27 = vadd.f32 %v6734_v17, %v13752_v25  ;;  %v11920_v19 = vadd.f32 %v6510_v35, %v13755_v56  ;;  %v6736_v41 = vpop.f32.mrb[103].mxu1  ;;  %7605 = vmatpush1.bf16.msra.mxu1 %v11199_v8  ;;  %7703 = vmatprep.subr.bf16.mxu0 %v10466_v54 }
 0x31b   :  { %v11504_v48 = vpack.c.bf16 %v11950_v12, %v11949_v16  ;;  %v11952_v45 = vadd.f32 %v6736_v41, %v13758_v15  ;;  %7324 = vmatmul.mubr.bf16.gmra.mrb[176].mxu0 %v12869_v47  ;;  %7929 = vmatprep.subr.bf16.mxu1 %v10468_v53  ;;  %v12873_v41 = vld [vmem:[#allocation2 + $0x90] ss:$12 sps:$4 sm:$0xff]  }
 0x31c   :  { %10181 = vst [vmem:[#allocation8 + $0x130] sm:$0xff] %v11503_v42  ;;  %v11519_v50 = vpack.c.bf16 %v11920_v19, %v11919_v52  ;;  %7550 = vmatmul.mubr.bf16.gmra.mrb[176].mxu1 %v12869_v47  ;;  %7333 = vmatprep.mubr.bf16.mxu0 %v12870_v3 }
 0x31d   :  { %10182 = vst [vmem:[#allocation8 + $0x138] sm:$0xff] %v11504_v48  ;;  %v11520_v51 = vpack.c.bf16 %v11952_v45, %v11951_v27  ;;  %7559 = vmatprep.mubr.bf16.mxu1 %v12870_v3  ;;  %v12874_v45 = vld [vmem:[#allocation2 + $0xac] ss:$12 sps:$4 sm:$0xff]  }
 0x31e   :  { %10197 = vst [vmem:[#allocation8 + $0x1b0] sm:$0xff] %v11519_v50  ;;  %v6514_v40 = vpop.f32.mrb[104].mxu0 }
 0x31f   :  { %10198 = vst [vmem:[#allocation8 + $0x1b8] sm:$0xff] %v11520_v51  ;;  %v11921_v60 = vadd.f32 %v6514_v40, %v13747_v20  ;;  %v6740_v55 = vpop.f32.mrb[104].mxu1  ;;  %v6516_v28 = vpop.f32.mrb[105].mxu0 }
 0x320   :  { %v11953_v32 = vadd.f32 %v6740_v55, %v13752_v25  ;;  %v11922_v22 = vadd.f32 %v6516_v28, %v13755_v56  ;;  %v6742_v57 = vpop.f32.mrb[105].mxu1  ;;  %v6518_v14 = vpop.f32.mrb[106].mxu0 }
 0x321   :  { %v11954_v31 = vadd.f32 %v6742_v57, %v13758_v15  ;;  %v11923_v36 = vadd.f32 %v6518_v14, %v13747_v20  ;;  %v6744_v2 = vpop.f32.mrb[106].mxu1  ;;  %v6520_v37 = vpop.f32.mrb[107].mxu0 }
 0x322   :  { %v11535_v33 = vpack.c.bf16 %v11922_v22, %v11921_v60  ;;  %v11955_v23 = vadd.f32 %v6744_v2, %v13752_v25  ;;  %v11924_v58 = vadd.f32 %v6520_v37, %v13755_v56  ;;  %v6746_v13 = vpop.f32.mrb[107].mxu1 }
 0x323   :  { %v11536_v62 = vpack.c.bf16 %v11954_v31, %v11953_v32  ;;  %v11956_v59 = vadd.f32 %v6746_v13, %v13758_v15  ;;  %7334 = vmatmul.mubr.bf16.gmra.mrb[180].mxu0 %v12871_v63  ;;  %v12875_v13 = vld [vmem:[#allocation2 + $0xa8] ss:$12 sps:$4 sm:$0xff]  }
 0x324   :  { %10213 = vst [vmem:[#allocation8 + $0x230] sm:$0xff] %v11535_v33  ;;  %v11551_v1 = vpack.c.bf16 %v11924_v58, %v11923_v36  ;;  %7560 = vmatmul.mubr.bf16.gmra.mrb[180].mxu1 %v12871_v63  ;;  %7343 = vmatprep.mubr.bf16.mxu0 %v12872_v29 }
 0x325   :  { %10214 = vst [vmem:[#allocation8 + $0x238] sm:$0xff] %v11536_v62  ;;  %v11552_v5 = vpack.c.bf16 %v11956_v59, %v11955_v23  ;;  %7569 = vmatprep.mubr.bf16.mxu1 %v12872_v29  ;;  %v147_v29 = vld [vmem:[#allocation5 + $0x1e0] sm:$0xff] }
 0x326   :  { %10229 = vst [vmem:[#allocation8 + $0x2b0] sm:$0xff] %v11551_v1  ;;  %v6524_v6 = vpop.f32.mrb[108].mxu0  ;;  %v131_v1 = vld [vmem:[#allocation5 + $0x160] sm:$0xff] }
 0x327   :  { %10230 = vst [vmem:[#allocation8 + $0x2b8] sm:$0xff] %v11552_v5  ;;  %v11925_v8 = vadd.f32 %v6524_v6, %v13747_v20  ;;  %v6750_v54 = vpop.f32.mrb[108].mxu1  ;;  %v6526_v9 = vpop.f32.mrb[109].mxu0 }
 0x328   :  { %v11957_v11 = vadd.f32 %v6750_v54, %v13752_v25  ;;  %v11926_v0 = vadd.f32 %v6526_v9, %v13755_v56  ;;  %v6752_v53 = vpop.f32.mrb[109].mxu1  ;;  %v6528_v16 = vpop.f32.mrb[110].mxu0  ;;  %v132_v54 = vld [vmem:[#allocation5 + $0x168] sm:$0xff] }
 0x329   :  { %v11958_v18 = vadd.f32 %v6752_v53, %v13758_v15  ;;  %v11927_v7 = vadd.f32 %v6528_v16, %v13747_v20  ;;  %v6754_v21 = vpop.f32.mrb[110].mxu1  ;;  %v6530_v12 = vpop.f32.mrb[111].mxu0  ;;  %v148_v9 = vld [vmem:[#allocation5 + $0x1e8] sm:$0xff] }
 0x32a   :  { %v11567_v52 = vpack.c.bf16 %v11926_v0, %v11925_v8  ;;  %v11959_v17 = vadd.f32 %v6754_v21, %v13752_v25  ;;  %v11928_v35 = vadd.f32 %v6530_v12, %v13755_v56  ;;  %v6756_v42 = vpop.f32.mrb[111].mxu1 }
 0x32b   :  { %v11568_v27 = vpack.c.bf16 %v11958_v18, %v11957_v11  ;;  %v11960_v19 = vadd.f32 %v6756_v42, %v13758_v15  ;;  %7344 = vmatmul.mubr.bf16.gmra.mrb[184].mxu0 %v12873_v41  ;;  %v10465_v18 = vcombine.low %v13776_v61, %v13778_v34  ;;  %v13837_v61 = vld [vmem:[#allocation5 + $0x2e0] sm:$0xff] }
 0x32c   :  { %10245 = vst [vmem:[#allocation8 + $0x330] sm:$0xff] %v11567_v52  ;;  %v11583_v48 = vpack.c.bf16 %v11928_v35, %v11927_v7  ;;  %7570 = vmatmul.mubr.bf16.gmra.mrb[184].mxu1 %v12873_v41  ;;  %7353 = vmatprep.mubr.bf16.mxu0 %v12874_v45  ;;  %v10498_v35 = vcombine.high %v131_v1, %v147_v29 }
 0x32d   :  { %10246 = vst [vmem:[#allocation8 + $0x338] sm:$0xff] %v11568_v27  ;;  %v11584_v47 = vpack.c.bf16 %v11960_v19, %v11959_v17  ;;  %7579 = vmatprep.mubr.bf16.mxu1 %v12874_v45  ;;  %v10467_v17 = vcombine.low %v13780_v4, %v13782_v26  ;;  %v13835_v45 = vld [vmem:[#allocation5 + $0x260] sm:$0xff]  ;;  %v10497_v26 = vcombine.low %v131_v1, %v147_v29 }
 0x32e   :  { %10261 = vst [vmem:[#allocation8 + $0x3b0] sm:$0xff] %v11583_v48  ;;  %v6534_v50 = vpop.f32.mrb[112].mxu0  ;;  %v10500_v48 = vcombine.high %v132_v54, %v148_v9 }
 0x32f   :  { %10262 = vst [vmem:[#allocation8 + $0x3b8] sm:$0xff] %v11584_v47  ;;  %v11929_v3 = vadd.f32 %v6534_v50, %v13747_v20  ;;  %v6760_v51 = vpop.f32.mrb[112].mxu1  ;;  %v6536_v40 = vpop.f32.mrb[113].mxu0  ;;  %v12876_v50 = vld [vmem:[#allocation2 + $0x8] ss:$12 sps:$4 sm:$0xff]  }
 0x330   :  { %v11961_v60 = vadd.f32 %v6760_v51, %v13752_v25  ;;  %v11930_v55 = vadd.f32 %v6536_v40, %v13755_v56  ;;  %v6762_v28 = vpop.f32.mrb[113].mxu1  ;;  %v6538_v32 = vpop.f32.mrb[114].mxu0  ;;  %v180_v51 = vld [vmem:[#allocation5 + $0x2e8] sm:$0xff] }
 0x331   :  { %v11962_v22 = vadd.f32 %v6762_v28, %v13758_v15  ;;  %v11931_v57 = vadd.f32 %v6538_v32, %v13747_v20  ;;  %v6764_v14 = vpop.f32.mrb[114].mxu1  ;;  %v6540_v31 = vpop.f32.mrb[115].mxu0 }
 0x332   :  { %v11599_v36 = vpack.c.bf16 %v11930_v55, %v11929_v3  ;;  %v11963_v2 = vadd.f32 %v6764_v14, %v13752_v25  ;;  %v11932_v37 = vadd.f32 %v6540_v31, %v13755_v56  ;;  %v6766_v33 = vpop.f32.mrb[115].mxu1  ;;  %v164_v3 = vld [vmem:[#allocation5 + $0x268] sm:$0xff]  ;;  %v10530_v55 = vcombine.high %v13835_v45, %v13837_v61 }
 0x333   :  { %v11600_v23 = vpack.c.bf16 %v11962_v22, %v11961_v60  ;;  %v11964_v58 = vadd.f32 %v6766_v33, %v13758_v15  ;;  %7354 = vmatmul.mubr.bf16.gmra.mrb[188].mxu0 %v12875_v13  ;;  %v10499_v60 = vcombine.low %v132_v54, %v148_v9  ;;  %v10532_v32 = vcombine.high %v164_v3, %v180_v51  ;;  %v13843_v22 = vld [vmem:[#allocation5 + $0x360] sm:$0xff] }
 0x334   :  { %10277 = vst [vmem:[#allocation8 + $0x430] sm:$0xff] %v11599_v36  ;;  %v11615_v62 = vpack.c.bf16 %v11932_v37, %v11931_v57  ;;  %7580 = vmatmul.mubr.bf16.gmra.mrb[188].mxu1 %v12875_v13  ;;  %7396 = vmatprep.mubr.bf16.mxu0 %v13027_v24  ;;  %v13845_v57 = vld [vmem:[#allocation5 + $0x3e0] sm:$0xff]  ;;  %v13851_v37 = vld [vmem:[#allocation5 + $0x3e8] sm:$0xff] }
 0x335   :  { %10278 = vst [vmem:[#allocation8 + $0x438] sm:$0xff] %v11600_v23  ;;  %v11616_v59 = vpack.c.bf16 %v11964_v58, %v11963_v2  ;;  %7622 = vmatprep.mubr.bf16.mxu1 %v13027_v24  ;;  %v13849_v2 = vld [vmem:[#allocation5 + $0x368] sm:$0xff] }
 0x336   :  { %10293 = vst [vmem:[#allocation8 + $0x4b0] sm:$0xff] %v11615_v62  ;;  %v6544_v63 = vpop.f32.mrb[116].mxu0  ;;  %v10529_v62 = vcombine.low %v13835_v45, %v13837_v61  ;;  %v259_v45 = vld [vmem:[#allocation5 + $0x560] sm:$0xff] }
 0x337   :  { %10294 = vst [vmem:[#allocation8 + $0x4b8] sm:$0xff] %v11616_v59  ;;  %v11933_v5 = vadd.f32 %v6544_v63, %v13747_v20  ;;  %v6770_v6 = vpop.f32.mrb[116].mxu1  ;;  %v6546_v8 = vpop.f32.mrb[117].mxu0  ;;  %v10531_v59 = vcombine.low %v164_v3, %v180_v51  ;;  %v275_v61 = vld [vmem:[#allocation5 + $0x5e0] sm:$0xff]  ;;  %v260_v3 = vld [vmem:[#allocation5 + $0x568] sm:$0xff] }
 0x338   :  { %v11965_v11 = vadd.f32 %v6770_v6, %v13752_v25  ;;  %v11934_v0 = vadd.f32 %v6546_v8, %v13755_v56  ;;  %v6772_v53 = vpop.f32.mrb[117].mxu1  ;;  %v6548_v16 = vpop.f32.mrb[118].mxu0  ;;  %v10562_v6 = vcombine.high %v13843_v22, %v13845_v57  ;;  %v276_v51 = vld [vmem:[#allocation5 + $0x5e8] sm:$0xff] }
 0x339   :  { %v11966_v7 = vadd.f32 %v6772_v53, %v13758_v15  ;;  %v11935_v21 = vadd.f32 %v6548_v16, %v13747_v20  ;;  %v6774_v12 = vpop.f32.mrb[118].mxu1  ;;  %v6550_v52 = vpop.f32.mrb[119].mxu0  ;;  %v13865_v53 = vld [vmem:[#allocation5 + $0x460] sm:$0xff] }
 0x33a   :  { %v11631_v42 = vpack.c.bf16 %v11934_v0, %v11933_v5  ;;  %v11967_v27 = vadd.f32 %v6774_v12, %v13752_v25  ;;  %v11936_v19 = vadd.f32 %v6550_v52, %v13755_v56  ;;  %v6776_v41 = vpop.f32.mrb[119].mxu1  ;;  %v10564_v0 = vcombine.high %v13849_v2, %v13851_v37  ;;  %v13867_v16 = vld [vmem:[#allocation5 + $0x4e0] sm:$0xff]  ;;  %v228_v12 = vld [vmem:[#allocation5 + $0x468] sm:$0xff] }
 0x33b   :  { %v11632_v34 = vpack.c.bf16 %v11966_v7, %v11965_v11  ;;  %v11968_v47 = vadd.f32 %v6776_v41, %v13758_v15  ;;  %7397 = vmatmul.mubr.bf16.vlgmr.msra.gmra.mrb[160].mxu0 %v12876_v50  ;;  %v244_v52 = vld [vmem:[#allocation5 + $0x4e8] sm:$0xff] }
 0x33c   :  { %10309 = vst [vmem:[#allocation8 + $0x530] sm:$0xff] %v11631_v42  ;;  %v11647_v4 = vpack.c.bf16 %v11936_v19, %v11935_v21  ;;  %7623 = vmatmul.mubr.bf16.vlgmr.msra.gmra.mrb[160].mxu1 %v12876_v50  ;;  %7704 = vmatpush1.bf16.msra.mxu0 %v10465_v18  ;;  %v12877_v21 = vld [vmem:[#allocation2 + $0x20] ss:$12 sps:$4 sm:$0xff]   ;;  %v10594_v19 = vcombine.high %v13865_v53, %v13867_v16 }
 0x33d   :  { %10310 = vst [vmem:[#allocation8 + $0x538] sm:$0xff] %v11632_v34  ;;  %v11648_v40 = vpack.c.bf16 %v11968_v47, %v11967_v27  ;;  %7930 = vmatpush1.bf16.msra.mxu1 %v10467_v17  ;;  %7705 = vmatprep.subr.bf16.mxu0 %v10498_v35  ;;  %v10561_v35 = vcombine.low %v13843_v22, %v13845_v57 }
 0x33e   :  { %10325 = vst [vmem:[#allocation8 + $0x5b0] sm:$0xff] %v11647_v4  ;;  %v6554_v28 = vpop.f32.mrb[120].mxu0  ;;  %7931 = vmatprep.subr.bf16.mxu1 %v10500_v48  ;;  %7406 = vmatprep.mubr.bf16.mxu0 %v13027_v24  ;;  %v10563_v27 = vcombine.low %v13849_v2, %v13851_v37  ;;  %v10596_v48 = vcombine.high %v228_v12, %v244_v52 }
 0x33f   :  { %10326 = vst [vmem:[#allocation8 + $0x5b8] sm:$0xff] %v11648_v40  ;;  %v11937_v14 = vadd.f32 %v6554_v28, %v13747_v20  ;;  %v6780_v31 = vpop.f32.mrb[120].mxu1  ;;  %v6556_v36 = vpop.f32.mrb[121].mxu0  ;;  %7632 = vmatprep.mubr.bf16.mxu1 %v13027_v24  ;;  %v10595_v28 = vcombine.low %v228_v12, %v244_v52  ;;  %v12879_v12 = vld [vmem:[#allocation2 + $0x50] ss:$12 sps:$4 sm:$0xff]   ;;  %v356_v52 = vld [vmem:[#allocation5 + $0x868] sm:$0xff] }
 0x340   :  { %v11969_v33 = vadd.f32 %v6780_v31, %v13752_v25  ;;  %v11938_v23 = vadd.f32 %v6556_v36, %v13755_v56  ;;  %v6782_v58 = vpop.f32.mrb[121].mxu1  ;;  %v6558_v13 = vpop.f32.mrb[122].mxu0  ;;  %7706 = vmatpush1.bf16.msra.mxu0 %v10497_v26  ;;  %v10626_v31 = vcombine.high %v259_v45, %v275_v61 }
 0x341   :  { %v11970_v63 = vadd.f32 %v6782_v58, %v13758_v15  ;;  %v11939_v1 = vadd.f32 %v6558_v13, %v13747_v20  ;;  %v6784_v29 = vpop.f32.mrb[122].mxu1  ;;  %7932 = vmatpush1.bf16.msra.mxu1 %v10499_v60  ;;  %v6560_v5 = vpop.f32.mrb[123].mxu0  ;;  %7707 = vmatprep.subr.bf16.mxu0 %v10530_v55  ;;  %v10593_v55 = vcombine.low %v13865_v53, %v13867_v16  ;;  %v291_v58 = vld [vmem:[#allocation5 + $0x660] sm:$0xff] }
 0x342   :  { %v11663_v8 = vpack.c.bf16 %v11938_v23, %v11937_v14  ;;  %v11971_v54 = vadd.f32 %v6784_v29, %v13752_v25  ;;  %v11940_v9 = vadd.f32 %v6560_v5, %v13755_v56  ;;  %v6786_v11 = vpop.f32.mrb[123].mxu1  ;;  %7933 = vmatprep.subr.bf16.mxu1 %v10532_v32  ;;  %v10628_v23 = vcombine.high %v260_v3, %v276_v51  ;;  %v307_v13 = vld [vmem:[#allocation5 + $0x6e0] sm:$0xff] }
 0x343   :  { %v11664_v18 = vpack.c.bf16 %v11970_v63, %v11969_v33  ;;  %v11972_v7 = vadd.f32 %v6786_v11, %v13758_v15  ;;  %7407 = vmatmul.mubr.bf16.gmra.mrb[164].mxu0 %v12877_v21  ;;  %v12878_v63 = vld [vmem:[#allocation2 + $0x38] ss:$12 sps:$4 sm:$0xff]   ;;  %v10625_v5 = vcombine.low %v259_v45, %v275_v61  ;;  %v340_v11 = vld [vmem:[#allocation5 + $0x7e8] sm:$0xff] }
 0x344   :  { %10341 = vst [vmem:[#allocation8 + $0x630] sm:$0xff] %v11663_v8  ;;  %v11679_v17 = vpack.c.bf16 %v11940_v9, %v11939_v1  ;;  %7633 = vmatmul.mubr.bf16.gmra.mrb[164].mxu1 %v12877_v21  ;;  %7708 = vmatpush1.bf16.msra.mxu0 %v10529_v62  ;;  %v308_v1 = vld [vmem:[#allocation5 + $0x6e8] sm:$0xff]  ;;  %v323_v8 = vld [vmem:[#allocation5 + $0x760] sm:$0xff] }
 0x345   :  { %10342 = vst [vmem:[#allocation8 + $0x638] sm:$0xff] %v11664_v18  ;;  %v11680_v42 = vpack.c.bf16 %v11972_v7, %v11971_v54  ;;  %7934 = vmatpush1.bf16.msra.mxu1 %v10531_v59  ;;  %7709 = vmatprep.subr.bf16.mxu0 %v10562_v6  ;;  %v10658_v6 = vcombine.high %v291_v58, %v307_v13  ;;  %v339_v54 = vld [vmem:[#allocation5 + $0x7e0] sm:$0xff]  ;;  %v324_v9 = vld [vmem:[#allocation5 + $0x768] sm:$0xff] }
 0x346   :  { %10357 = vst [vmem:[#allocation8 + $0x6b0] sm:$0xff] %v11679_v17  ;;  %v6564_v41 = vpop.f32.mrb[124].mxu0  ;;  %7935 = vmatprep.subr.bf16.mxu1 %v10564_v0  ;;  %7416 = vmatprep.mubr.bf16.mxu0 %v13027_v24  ;;  %v10657_v0 = vcombine.low %v291_v58, %v307_v13  ;;  %v10690_v16 = vcombine.high %v323_v8, %v339_v54  ;;  %v355_v7 = vld [vmem:[#allocation5 + $0x860] sm:$0xff]  ;;  %v372_v17 = vld [vmem:[#allocation5 + $0x8e8] sm:$0xff] }
 0x347   :  { %10358 = vst [vmem:[#allocation8 + $0x6b8] sm:$0xff] %v11680_v42  ;;  %v11941_v34 = vadd.f32 %v6564_v41, %v13747_v20  ;;  %v6790_v47 = vpop.f32.mrb[124].mxu1  ;;  %v6566_v50 = vpop.f32.mrb[125].mxu0  ;;  %7642 = vmatprep.mubr.bf16.mxu1 %v13027_v24  ;;  %v10692_v18 = vcombine.high %v324_v9, %v340_v11  ;;  %v371_v21 = vld [vmem:[#allocation5 + $0x8e0] sm:$0xff]  ;;  %v10691_v42 = vcombine.low %v324_v9, %v340_v11  ;;  %v388_v45 = vld [vmem:[#allocation5 + $0x968] sm:$0xff] }
 0x348   :  { %v11973_v4 = vadd.f32 %v6790_v47, %v13752_v25  ;;  %v11942_v26 = vadd.f32 %v6566_v50, %v13755_v56  ;;  %v6792_v40 = vpop.f32.mrb[125].mxu1  ;;  %v6568_v60 = vpop.f32.mrb[126].mxu0  ;;  %7710 = vmatpush1.bf16.msra.mxu0 %v10561_v35  ;;  %v10689_v35 = vcombine.low %v323_v8, %v339_v54  ;;  %v387_v41 = vld [vmem:[#allocation5 + $0x960] sm:$0xff]  ;;  %v404_v61 = vld [vmem:[#allocation5 + $0x9e8] sm:$0xff]  ;;  %v10723_v47 = vcombine.low %v356_v52, %v372_v17 }
 0x349   :  { %v11974_v32 = vadd.f32 %v6792_v40, %v13758_v15  ;;  %v11943_v22 = vadd.f32 %v6568_v60, %v13747_v20  ;;  %v6794_v57 = vpop.f32.mrb[126].mxu1  ;;  %7936 = vmatpush1.bf16.msra.mxu1 %v10563_v27  ;;  %v6570_v14 = vpop.f32.mrb[127].mxu0  ;;  %7711 = vmatprep.subr.bf16.mxu0 %v10594_v19  ;;  %v292_v20 = vld [vmem:[#allocation5 + $0x668] sm:$0xff]  ;;  %v10722_v27 = vcombine.high %v355_v7, %v371_v21  ;;  %v483_v58 = vld [vmem:[#allocation5 + $0xc60] sm:$0xff] }
 0x34a   :  { %v11695_v36 = vpack.c.bf16 %v11942_v26, %v11941_v34  ;;  %v11975_v2 = vadd.f32 %v6794_v57, %v13752_v25  ;;  %v11944_v37 = vadd.f32 %v6570_v14, %v13755_v56  ;;  %v6796_v33 = vpop.f32.mrb[127].mxu1  ;;  %7937 = vmatprep.subr.bf16.mxu1 %v10596_v48  ;;  %v10627_v56 = vcombine.low %v260_v3, %v276_v51  ;;  %v403_v48 = vld [vmem:[#allocation5 + $0x9e0] sm:$0xff]  ;;  %v12880_v26 = vld [vmem:[#allocation2 + $0x68] ss:$12 sps:$4 sm:$0xff]  }
 0x34b   :  { %v11696_v62 = vpack.c.bf16 %v11974_v32, %v11973_v4  ;;  %v11976_v59 = vadd.f32 %v6796_v33, %v13758_v15  ;;  %7417 = vmatmul.mubr.bf16.gmra.mrb[168].mxu0 %v12878_v63  ;;  %v10660_v15 = vcombine.high %v292_v20, %v308_v1  ;;  %v10659_v53 = vcombine.low %v292_v20, %v308_v1  ;;  %v419_v51 = vld [vmem:[#allocation5 + $0xa60] sm:$0xff]  ;;  %v420_v40 = vld [vmem:[#allocation5 + $0xa68] sm:$0xff] }
 0x34c   :  { %10373 = vst [vmem:[#allocation8 + $0x730] sm:$0xff] %v11695_v36  ;;  %v11711_v29 = vpack.c.bf16 %v11944_v37, %v11943_v22  ;;  %7643 = vmatmul.mubr.bf16.gmra.mrb[168].mxu1 %v12878_v63  ;;  %7712 = vmatpush1.bf16.msra.mxu0 %v10593_v55  ;;  %v10724_v19 = vcombine.high %v356_v52, %v372_v17  ;;  %v435_v4 = vld [vmem:[#allocation5 + $0xae0] sm:$0xff]  ;;  %v436_v60 = vld [vmem:[#allocation5 + $0xae8] sm:$0xff] }
 0x34d   :  { %10374 = vst [vmem:[#allocation8 + $0x738] sm:$0xff] %v11696_v62  ;;  %v11712_v25 = vpack.c.bf16 %v11976_v59, %v11975_v2  ;;  %7938 = vmatpush1.bf16.msra.mxu1 %v10595_v28  ;;  %7713 = vmatprep.subr.bf16.mxu0 %v10626_v31  ;;  %v10721_v34 = vcombine.low %v355_v7, %v371_v21  ;;  %v451_v57 = vld [vmem:[#allocation5 + $0xb60] sm:$0xff]  ;;  %v452_v31 = vld [vmem:[#allocation5 + $0xb68] sm:$0xff] }
 0x34e   :  { %10389 = vst [vmem:[#allocation8 + $0x7b0] sm:$0xff] %v11711_v29  ;;  %7939 = vmatprep.subr.bf16.mxu1 %v10628_v23  ;;  %7426 = vmatprep.mubr.bf16.mxu0 %v13027_v24  ;;  %v10754_v50 = vcombine.high %v387_v41, %v403_v48  ;;  %v10756_v3 = vcombine.high %v388_v45, %v404_v61  ;;  %v467_v14 = vld [vmem:[#allocation5 + $0xbe0] sm:$0xff]  ;;  %v468_v36 = vld [vmem:[#allocation5 + $0xbe8] sm:$0xff] }
 0x34f   :  { %10390 = vst [vmem:[#allocation8 + $0x7b8] sm:$0xff] %v11712_v25  ;;  %7652 = vmatprep.mubr.bf16.mxu1 %v13027_v24  ;;  %v10753_v55 = vcombine.low %v387_v41, %v403_v48  ;;  %v10755_v28 = vcombine.low %v388_v45, %v404_v61  ;;  %v10786_v32 = vcombine.high %v419_v51, %v435_v4  ;;  %v499_v13 = vld [vmem:[#allocation5 + $0xce0] sm:$0xff]  ;;  %v484_v59 = vld [vmem:[#allocation5 + $0xc68] sm:$0xff] }
 0x350   :  { %7714 = vmatpush1.bf16.msra.mxu0 %v10625_v5  ;;  %v10788_v22 = vcombine.high %v420_v40, %v436_v60  ;;  %v10785_v2 = vcombine.low %v419_v51, %v435_v4  ;;  %v10787_v37 = vcombine.low %v420_v40, %v436_v60  ;;  %v10818_v33 = vcombine.high %v451_v57, %v467_v14  ;;  %v12881_v62 = vld [vmem:[#allocation2 + $0x80] ss:$12 sps:$4 sm:$0xff]   ;;  %v12884_v60 = vld [vmem:[#allocation2 + $0x4] ss:$12 sps:$4 sm:$0xff]  }
 0x351   :  { %7940 = vmatpush1.bf16.msra.mxu1 %v10627_v56  ;;  %7715 = vmatprep.subr.bf16.mxu0 %v10658_v6  ;;  %v10820_v23 = vcombine.high %v452_v31, %v468_v36  ;;  %v500_v63 = vld [vmem:[#allocation5 + $0xce8] sm:$0xff]  ;;  %v10817_v20 = vcombine.low %v451_v57, %v467_v14  ;;  %v10819_v1 = vcombine.low %v452_v31, %v468_v36  ;;  %v515_v25 = vld [vmem:[#allocation5 + $0xd60] sm:$0xff] }
 0x352   :  { %7941 = vmatprep.subr.bf16.mxu1 %v10660_v15  ;;  %v10850_v29 = vcombine.high %v483_v58, %v499_v13  ;;  %v10852_v5 = vcombine.high %v484_v59, %v500_v63  ;;  %v531_v56 = vld [vmem:[#allocation5 + $0xde0] sm:$0xff]  ;;  %v516_v6 = vld [vmem:[#allocation5 + $0xd68] sm:$0xff]  ;;  %v10849_v8 = vcombine.low %v483_v58, %v499_v13  ;;  %v10851_v54 = vcombine.low %v484_v59, %v500_v63 }
 0x353   :  { %7427 = vmatmul.mubr.bf16.gmra.mrb[172].mxu0 %v12879_v12  ;;  %v532_v15 = vld [vmem:[#allocation5 + $0xde8] sm:$0xff]  ;;  %v10882_v9 = vcombine.high %v515_v25, %v531_v56  ;;  %v10881_v21 = vcombine.low %v515_v25, %v531_v56 }
 0x354   :  { %7653 = vmatmul.mubr.bf16.gmra.mrb[172].mxu1 %v12879_v12  ;;  %7716 = vmatpush1.bf16.msra.mxu0 %v10657_v0  ;;  %v10884_v11 = vcombine.high %v516_v6, %v532_v15  ;;  %v547_v0 = vld [vmem:[#allocation5 + $0xe60] sm:$0xff]  ;;  %v564_v7 = vld [vmem:[#allocation5 + $0xee8] sm:$0xff]  ;;  %v10883_v12 = vcombine.low %v516_v6, %v532_v15 }
 0x355   :  { %7942 = vmatpush1.bf16.msra.mxu1 %v10659_v53  ;;  %7717 = vmatprep.subr.bf16.mxu0 %v10690_v16  ;;  %v563_v53 = vld [vmem:[#allocation5 + $0xee0] sm:$0xff]  ;;  %v628_v51 = vld [vmem:[#allocation5 + $0x10e8] sm:$0xff] }
 0x356   :  { %7943 = vmatprep.subr.bf16.mxu1 %v10692_v18  ;;  %7436 = vmatprep.mubr.bf16.mxu0 %v13027_v24  ;;  %v12882_v16 = vld [vmem:[#allocation2 + $0x98] ss:$12 sps:$4 sm:$0xff]   ;;  %v548_v18 = vld [vmem:[#allocation5 + $0xe68] sm:$0xff]  ;;  %v10914_v52 = vcombine.high %v547_v0, %v563_v53  ;;  %v10913_v41 = vcombine.low %v547_v0, %v563_v53  ;;  %v12888_v53 = vld [vmem:[#allocation2 + $0x34] ss:$12 sps:$4 sm:$0xff]  }
 0x357   :  { %7662 = vmatprep.mubr.bf16.mxu1 %v13027_v24  ;;  %v10916_v17 = vcombine.high %v548_v18, %v564_v7  ;;  %v10915_v48 = vcombine.low %v548_v18, %v564_v7  ;;  %v644_v57 = vld [vmem:[#allocation5 + $0x1168] sm:$0xff]  ;;  %v755_v0 = vld [vmem:[#allocation5 + $0x14e0] sm:$0xff] }
 0x358   :  { %7718 = vmatpush1.bf16.msra.mxu0 %v10689_v35  ;;  %v579_v35 = vld [vmem:[#allocation5 + $0xf60] sm:$0xff]  ;;  %v660_v14 = vld [vmem:[#allocation5 + $0x11e8] sm:$0xff] }
 0x359   :  { %7944 = vmatpush1.bf16.msra.mxu1 %v10691_v42  ;;  %7719 = vmatprep.subr.bf16.mxu0 %v10722_v27  ;;  %v595_v42 = vld [vmem:[#allocation5 + $0xfe0] sm:$0xff]  ;;  %v580_v27 = vld [vmem:[#allocation5 + $0xf68] sm:$0xff]  ;;  %v11011_v63 = vcombine.low %v644_v57, %v660_v14 }
 0x35a   :  { %7945 = vmatprep.subr.bf16.mxu1 %v10724_v19  ;;  %v596_v19 = vld [vmem:[#allocation5 + $0xfe8] sm:$0xff]  ;;  %v10946_v45 = vcombine.high %v579_v35, %v595_v42  ;;  %v10945_v4 = vcombine.low %v579_v35, %v595_v42  ;;  %v787_v35 = vld [vmem:[#allocation5 + $0x15e0] sm:$0xff]  ;;  %v857_v42 = vld [vmem:[#allocation7 + $0x10] sm:$0xff] }
 0x35b   :  { %7437 = vmatmul.mubr.bf16.gmra.mrb[176].mxu0 %v12880_v26  ;;  %v10948_v61 = vcombine.high %v580_v27, %v596_v19  ;;  %v676_v58 = vld [vmem:[#allocation5 + $0x1268] sm:$0xff] }
 0x35c   :  { %7663 = vmatmul.mubr.bf16.gmra.mrb[176].mxu1 %v12880_v26  ;;  %7720 = vmatpush1.bf16.msra.mxu0 %v10721_v34  ;;  %v611_v34 = vld [vmem:[#allocation5 + $0x1060] sm:$0xff]  ;;  %v10947_v26 = vcombine.low %v580_v27, %v596_v19  ;;  %v692_v13 = vld [vmem:[#allocation5 + $0x12e8] sm:$0xff] }
 0x35d   :  { %7946 = vmatpush1.bf16.msra.mxu1 %v10723_v47  ;;  %7721 = vmatprep.subr.bf16.mxu0 %v10754_v50  ;;  %v627_v47 = vld [vmem:[#allocation5 + $0x10e0] sm:$0xff]  ;;  %v12883_v50 = vld [vmem:[#allocation2 + $0xb0] ss:$12 sps:$4 sm:$0xff]   ;;  %v708_v25 = vld [vmem:[#allocation5 + $0x1368] sm:$0xff]  ;;  %v11043_v15 = vcombine.low %v676_v58, %v692_v13 }
 0x35e   :  { %7947 = vmatprep.subr.bf16.mxu1 %v10756_v3  ;;  %7446 = vmatprep.mubr.bf16.mxu0 %v13027_v24  ;;  %v612_v3 = vld [vmem:[#allocation5 + $0x1068] sm:$0xff]  ;;  %v10978_v40 = vcombine.high %v611_v34, %v627_v47 }
 0x35f   :  { %7672 = vmatprep.mubr.bf16.mxu1 %v13027_v24  ;;  %v10979_v31 = vcombine.low %v612_v3, %v628_v51  ;;  %v12886_v59 = vld [vmem:[#allocation2 + $0x1c] ss:$12 sps:$4 sm:$0xff]  }
 0x360   :  { %7722 = vmatpush1.bf16.msra.mxu0 %v10753_v55  ;;  %v10980_v55 = vcombine.high %v612_v3, %v628_v51  ;;  %v724_v56 = vld [vmem:[#allocation5 + $0x13e8] sm:$0xff]  ;;  %v819_v3 = vld [vmem:[#allocation5 + $0x16e0] sm:$0xff]  ;;  %v13904_v51 = vrot.slane %v857_v42, %v13270_v46 }
 0x361   :  { %7948 = vmatpush1.bf16.msra.mxu1 %v10755_v28  ;;  %7723 = vmatprep.subr.bf16.mxu0 %v10786_v32  ;;  %v643_v28 = vld [vmem:[#allocation5 + $0x1160] sm:$0xff]  ;;  %v756_v18 = vld [vmem:[#allocation5 + $0x14e8] sm:$0xff] }
 0x362   :  { %7949 = vmatprep.subr.bf16.mxu1 %v10788_v22  ;;  %v659_v32 = vld [vmem:[#allocation5 + $0x11e0] sm:$0xff]  ;;  %v10977_v22 = vcombine.low %v611_v34, %v627_v47  ;;  %v772_v27 = vld [vmem:[#allocation5 + $0x1568] sm:$0xff]  ;;  %v13899_v34 = vrot.slane %v857_v42, %v13267_v38 }
 0x363   :  { %7447 = vmatmul.mubr.bf16.gmra.mrb[180].mxu0 %v12881_v62  ;;  %v11010_v36 = vcombine.high %v643_v28, %v659_v32  ;;  %v788_v19 = vld [vmem:[#allocation5 + $0x15e8] sm:$0xff] }
 0x364   :  { %7673 = vmatmul.mubr.bf16.gmra.mrb[180].mxu1 %v12881_v62  ;;  %7724 = vmatpush1.bf16.msra.mxu0 %v10785_v2  ;;  %v675_v2 = vld [vmem:[#allocation5 + $0x1260] sm:$0xff]  ;;  %v11009_v62 = vcombine.low %v643_v28, %v659_v32  ;;  %v11140_v47 = vcombine.high %v772_v27, %v788_v19 }
 0x365   :  { %7950 = vmatpush1.bf16.msra.mxu1 %v10787_v37  ;;  %7725 = vmatprep.subr.bf16.mxu0 %v10818_v33  ;;  %v691_v37 = vld [vmem:[#allocation5 + $0x12e0] sm:$0xff] }
 0x366   :  { %7951 = vmatprep.subr.bf16.mxu1 %v10820_v23  ;;  %7456 = vmatprep.mubr.bf16.mxu0 %v13027_v24  ;;  %v12885_v33 = vld [vmem:[#allocation2] ss:$12 sps:$4 sm:$0xff]   ;;  %v11012_v23 = vcombine.high %v644_v57, %v660_v14  ;;  %v11041_v6 = vcombine.low %v675_v2, %v691_v37 }
 0x367   :  { %7682 = vmatprep.mubr.bf16.mxu1 %v13027_v24  ;;  %v13913_v14 = vld [vmem:[#allocation5 + $0x1760] sm:$0xff] }
 0x368   :  { %7726 = vmatpush1.bf16.msra.mxu0 %v10817_v20  ;;  %v11042_v20 = vcombine.high %v675_v2, %v691_v37 }
 0x369   :  { %7952 = vmatpush1.bf16.msra.mxu1 %v10819_v1  ;;  %7727 = vmatprep.subr.bf16.mxu0 %v10850_v29  ;;  %v11044_v1 = vcombine.high %v676_v58, %v692_v13  ;;  %v707_v29 = vld [vmem:[#allocation5 + $0x1360] sm:$0xff] }
 0x36a   :  { %7953 = vmatprep.subr.bf16.mxu1 %v10852_v5  ;;  %v723_v5 = vld [vmem:[#allocation5 + $0x13e0] sm:$0xff] }
 0x36b   :  { %7457 = vmatmul.mubr.bf16.gmra.mrb[184].mxu0 %v12882_v16  ;;  %v11073_v7 = vcombine.low %v707_v29, %v723_v5 }
 0x36c   :  { %7683 = vmatmul.mubr.bf16.gmra.mrb[184].mxu1 %v12882_v16  ;;  %7728 = vmatpush1.bf16.msra.mxu0 %v10849_v8  ;;  %v11074_v8 = vcombine.high %v707_v29, %v723_v5  ;;  %v740_v16 = vld [vmem:[#allocation5 + $0x1468] sm:$0xff] }
 0x36d   :  { %7954 = vmatpush1.bf16.msra.mxu1 %v10851_v54  ;;  %7729 = vmatprep.subr.bf16.mxu0 %v10882_v9  ;;  %v12887_v54 = vld [vmem:[#allocation2 + $0x18] ss:$12 sps:$4 sm:$0xff]   ;;  %v11076_v9 = vcombine.high %v708_v25, %v724_v56 }
 0x36e   :  { %7955 = vmatprep.subr.bf16.mxu1 %v10884_v11  ;;  %7466 = vmatprep.mubr.bf16.mxu0 %v13027_v24  ;;  %v739_v11 = vld [vmem:[#allocation5 + $0x1460] sm:$0xff] }
 0x36f   :  { %7692 = vmatprep.mubr.bf16.mxu1 %v13027_v24 }
 0x370   :  { %7730 = vmatpush1.bf16.msra.mxu0 %v10881_v21  ;;  %v11075_v21 = vcombine.low %v708_v25, %v724_v56 }
 0x371   :  { %7956 = vmatpush1.bf16.msra.mxu1 %v10883_v12  ;;  %7731 = vmatprep.subr.bf16.mxu0 %v10914_v52  ;;  %v11106_v12 = vcombine.high %v739_v11, %v755_v0  ;;  %v11108_v52 = vcombine.high %v740_v16, %v756_v18 }
 0x372   :  { %7957 = vmatprep.subr.bf16.mxu1 %v10916_v17  ;;  %v771_v17 = vld [vmem:[#allocation5 + $0x1560] sm:$0xff] }
 0x373   :  { %7467 = vmatmul.mubr.bf16.gmra.mrb[188].mxu0 %v12883_v50  ;;  %v11137_v28 = vcombine.low %v771_v17, %v787_v35 }
 0x374   :  { %7693 = vmatmul.mubr.bf16.gmra.mrb[188].mxu1 %v12883_v50  ;;  %7732 = vmatpush1.bf16.msra.mxu0 %v10913_v41  ;;  %v11105_v41 = vcombine.low %v739_v11, %v755_v0  ;;  %v13901_v50 = vld [vmem:[#allocation5 + $0x1660] sm:$0xff] }
 0x375   :  { %7958 = vmatpush1.bf16.msra.mxu1 %v10915_v48  ;;  %7733 = vmatprep.subr.bf16.mxu0 %v10946_v45  ;;  %v11107_v48 = vcombine.low %v740_v16, %v756_v18  ;;  %v11138_v45 = vcombine.high %v771_v17, %v787_v35  ;;  %v11170_v57 = vcombine.high %v13901_v50, %v819_v3  ;;  %v13928_v18 = vld [vmem:[#allocation5 + $0x70] sm:$0xff]  ;;  %v13934_v17 = vld [vmem:[#allocation5 + $0xf8] sm:$0xff] }
 0x376   :  { %7959 = vmatprep.subr.bf16.mxu1 %v10948_v61  ;;  %7735 = vmatprep.mubr.bf16.mxu0 %v12884_v60  ;;  %v12889_v61 = vld [vmem:[#allocation2 + $0x30] ss:$12 sps:$4 sm:$0xff]  }
 0x377   :  { %7961 = vmatprep.mubr.bf16.mxu1 %v12884_v60  ;;  %v820_v60 = vld [vmem:[#allocation5 + $0x16e8] sm:$0xff] }
 0x378   :  { %7734 = vmatpush1.bf16.msra.mxu0 %v10945_v4  ;;  %v13907_v4 = vrot.slane %v857_v42, %v13273_v44 }
 0x379   :  { %7960 = vmatpush1.bf16.msra.mxu1 %v10947_v26  ;;  %7816 = vmatprep.subr.bf16.mxu0 %v10978_v40  ;;  %v12890_v26 = vld [vmem:[#allocation2 + $0x4c] ss:$12 sps:$4 sm:$0xff]  }
 0x37a   :  { %8042 = vmatprep.subr.bf16.mxu1 %v10980_v55  ;;  %v804_v40 = vld [vmem:[#allocation5 + $0x1668] sm:$0xff]  ;;  %v13910_v55 = vrot.slane %v857_v42, %v13276_v49 }
 0x37b   :  { %7736 = vmatmul.mubr.bf16.vlgmr.msra.gmra.mrb[192].mxu0 %v12885_v33  ;;  %v11171_v56 = vcombine.low %v804_v40, %v820_v60 }
 0x37c   :  { %7962 = vmatmul.mubr.bf16.vlgmr.msra.gmra.mrb[192].mxu1 %v12885_v33  ;;  %7817 = vmatpush1.bf16.msra.mxu0 %v10977_v22  ;;  %v11139_v22 = vcombine.low %v772_v27, %v788_v19  ;;  %v11172_v33 = vcombine.high %v804_v40, %v820_v60 }
 0x37d   :  { %8043 = vmatpush1.bf16.msra.mxu1 %v10979_v31  ;;  %7745 = vmatprep.mubr.bf16.mxu0 %v12886_v59  ;;  %v13915_v31 = vld [vmem:[#allocation5 + $0x17e0] sm:$0xff] }
 0x37e   :  { %7971 = vmatprep.mubr.bf16.mxu1 %v12886_v59  ;;  %7818 = vmatprep.subr.bf16.mxu0 %v11010_v36  ;;  %v11169_v59 = vcombine.low %v13901_v50, %v819_v3  ;;  %v11201_v42 = vcombine.low %v13913_v14, %v13915_v31 }
 0x37f   :  { %8044 = vmatprep.subr.bf16.mxu1 %v11012_v23 }
 0x380   :  { %7819 = vmatpush1.bf16.msra.mxu0 %v11009_v62 }
 0x381   :  { %8045 = vmatpush1.bf16.msra.mxu1 %v11011_v63  ;;  %7820 = vmatprep.subr.bf16.mxu0 %v11042_v20  ;;  %v836_v63 = vld [vmem:[#allocation5 + $0x1768] sm:$0xff] }
 0x382   :  { %8046 = vmatprep.subr.bf16.mxu1 %v11044_v1  ;;  %v852_v20 = vld [vmem:[#allocation5 + $0x17e8] sm:$0xff] }
 0x383   :  { %7746 = vmatmul.mubr.bf16.gmra.mrb[196].mxu0 %v12887_v54  ;;  %v11204_v16 = vcombine.high %v836_v63, %v852_v20  ;;  %v11203_v19 = vcombine.low %v836_v63, %v852_v20 }
 0x384   :  { %7972 = vmatmul.mubr.bf16.gmra.mrb[196].mxu1 %v12887_v54  ;;  %7755 = vmatprep.mubr.bf16.mxu0 %v12888_v53 }
 0x385   :  { %7981 = vmatprep.mubr.bf16.mxu1 %v12888_v53  ;;  %7821 = vmatpush1.bf16.msra.mxu0 %v11041_v6  ;;  %v11202_v6 = vcombine.high %v13913_v14, %v13915_v31  ;;  %v12891_v53 = vld [vmem:[#allocation2 + $0x48] ss:$12 sps:$4 sm:$0xff]  }
 0x386   :  { %8047 = vmatpush1.bf16.msra.mxu1 %v11043_v15  ;;  %7822 = vmatprep.subr.bf16.mxu0 %v11074_v8 }
 0x387   :  { %8048 = vmatprep.subr.bf16.mxu1 %v11076_v9 }
 0x389   :  { %7823 = vmatpush1.bf16.msra.mxu0 %v11073_v7  ;;  %v13930_v7 = vld [vmem:[#allocation5 + $0xf0] sm:$0xff] }
 0x38a   :  { %8049 = vmatpush1.bf16.msra.mxu1 %v11075_v21  ;;  %7824 = vmatprep.subr.bf16.mxu0 %v11106_v12  ;;  %v12892_v12 = vld [vmem:[#allocation2 + $0x64] ss:$12 sps:$4 sm:$0xff]  }
 0x38b   :  { %7756 = vmatmul.mubr.bf16.gmra.mrb[200].mxu0 %v12889_v61  ;;  %8050 = vmatprep.subr.bf16.mxu1 %v11108_v52  ;;  %v13932_v52 = vld [vmem:[#allocation5 + $0x78] sm:$0xff] }
 0x38c   :  { %7982 = vmatmul.mubr.bf16.gmra.mrb[200].mxu1 %v12889_v61  ;;  %7765 = vmatprep.mubr.bf16.mxu0 %v12890_v26 }
 0x38d   :  { %7991 = vmatprep.mubr.bf16.mxu1 %v12890_v26  ;;  %7825 = vmatpush1.bf16.msra.mxu0 %v11105_v41  ;;  %v10470_v41 = vcombine.high %v13928_v18, %v13930_v7 }
 0x38e   :  { %v6946_v32 = vpop.f32.mrb[128].mxu0  ;;  %8051 = vmatpush1.bf16.msra.mxu1 %v11107_v48  ;;  %7826 = vmatprep.subr.bf16.mxu0 %v11138_v45 }
 0x38f   :  { %v11977_v36 = vadd.f32 %v6946_v32, %v13899_v34  ;;  %v7172_v2 = vpop.f32.mrb[128].mxu1  ;;  %v6948_v37 = vpop.f32.mrb[129].mxu0  ;;  %8052 = vmatprep.subr.bf16.mxu1 %v11140_v47  ;;  %v10472_v47 = vcombine.high %v13932_v52, %v13934_v17 }
 0x390   :  { %v12009_v23 = vadd.f32 %v7172_v2, %v13904_v51  ;;  %v11978_v58 = vadd.f32 %v6948_v37, %v13907_v4  ;;  %v7174_v13 = vpop.f32.mrb[129].mxu1  ;;  %v6950_v62 = vpop.f32.mrb[130].mxu0 }
 0x391   :  { %v12010_v1 = vadd.f32 %v7174_v13, %v13910_v55  ;;  %v11979_v29 = vadd.f32 %v6950_v62, %v13899_v34  ;;  %v7176_v5 = vpop.f32.mrb[130].mxu1  ;;  %v6952_v25 = vpop.f32.mrb[131].mxu0  ;;  %7827 = vmatpush1.bf16.msra.mxu0 %v11137_v28 }
 0x392   :  { %v11473_v15 = vpack.c.bf16 %v11978_v58, %v11977_v36  ;;  %v12011_v8 = vadd.f32 %v7176_v5, %v13904_v51  ;;  %v11980_v54 = vadd.f32 %v6952_v25, %v13907_v4  ;;  %v7178_v9 = vpop.f32.mrb[131].mxu1  ;;  %8053 = vmatpush1.bf16.msra.mxu1 %v11139_v22  ;;  %7828 = vmatprep.subr.bf16.mxu0 %v11170_v57  ;;  %v12894_v58 = vld [vmem:[#allocation2 + $0x7c] ss:$12 sps:$4 sm:$0xff]  }
 0x393   :  { %v11474_v11 = vpack.c.bf16 %v12010_v1, %v12009_v23  ;;  %v12012_v0 = vadd.f32 %v7178_v9, %v13910_v55  ;;  %7766 = vmatmul.mubr.bf16.gmra.mrb[204].mxu0 %v12891_v53  ;;  %8054 = vmatprep.subr.bf16.mxu1 %v11172_v33  ;;  %v12893_v33 = vld [vmem:[#allocation2 + $0x60] ss:$12 sps:$4 sm:$0xff]  }
 0x394   :  { %10151 = vst [vmem:[#allocation8 + $0x40] sm:$0xff] %v11473_v15  ;;  %v11489_v21 = vpack.c.bf16 %v11980_v54, %v11979_v29  ;;  %7992 = vmatmul.mubr.bf16.gmra.mrb[204].mxu1 %v12891_v53  ;;  %7775 = vmatprep.mubr.bf16.mxu0 %v12892_v12 }
 0x395   :  { %10152 = vst [vmem:[#allocation8 + $0x48] sm:$0xff] %v11474_v11  ;;  %v11490_v35 = vpack.c.bf16 %v12012_v0, %v12011_v8  ;;  %8001 = vmatprep.mubr.bf16.mxu1 %v12892_v12  ;;  %7829 = vmatpush1.bf16.msra.mxu0 %v11169_v59 }
 0x396   :  { %10167 = vst [vmem:[#allocation8 + $0xc0] sm:$0xff] %v11489_v21  ;;  %v6956_v27 = vpop.f32.mrb[132].mxu0  ;;  %8055 = vmatpush1.bf16.msra.mxu1 %v11171_v56  ;;  %7830 = vmatprep.subr.bf16.mxu0 %v11202_v6  ;;  %v12895_v21 = vld [vmem:[#allocation2 + $0x78] ss:$12 sps:$4 sm:$0xff]  }
 0x397   :  { %10168 = vst [vmem:[#allocation8 + $0xc8] sm:$0xff] %v11490_v35  ;;  %v11981_v48 = vadd.f32 %v6956_v27, %v13899_v34  ;;  %v7182_v45 = vpop.f32.mrb[132].mxu1  ;;  %v6958_v61 = vpop.f32.mrb[133].mxu0  ;;  %8056 = vmatprep.subr.bf16.mxu1 %v11204_v16  ;;  %v12896_v35 = vld [vmem:[#allocation2 + $0x94] ss:$12 sps:$4 sm:$0xff]  }
 0x398   :  { %v12013_v50 = vadd.f32 %v7182_v45, %v13904_v51  ;;  %v11982_v3 = vadd.f32 %v6958_v61, %v13907_v4  ;;  %v7184_v26 = vpop.f32.mrb[133].mxu1  ;;  %v6960_v40 = vpop.f32.mrb[134].mxu0 }
 0x399   :  { %v12014_v60 = vadd.f32 %v7184_v26, %v13910_v55  ;;  %v11983_v28 = vadd.f32 %v6960_v40, %v13899_v34  ;;  %v7186_v32 = vpop.f32.mrb[134].mxu1  ;;  %v6962_v22 = vpop.f32.mrb[135].mxu0  ;;  %7831 = vmatpush1.bf16.msra.mxu0 %v11201_v42 }
 0x39a   :  { %v11505_v57 = vpack.c.bf16 %v11982_v3, %v11981_v48  ;;  %v12015_v14 = vadd.f32 %v7186_v32, %v13904_v51  ;;  %v11984_v31 = vadd.f32 %v6962_v22, %v13907_v4  ;;  %v7188_v36 = vpop.f32.mrb[135].mxu1  ;;  %8057 = vmatpush1.bf16.msra.mxu1 %v11203_v19  ;;  %8155 = vmatprep.subr.bf16.mxu0 %v10470_v41 }
 0x39b   :  { %v11506_v2 = vpack.c.bf16 %v12014_v60, %v12013_v50  ;;  %v12016_v37 = vadd.f32 %v7188_v36, %v13910_v55  ;;  %7776 = vmatmul.mubr.bf16.gmra.mrb[208].mxu0 %v12893_v33  ;;  %8381 = vmatprep.subr.bf16.mxu1 %v10472_v47  ;;  %v12897_v36 = vld [vmem:[#allocation2 + $0x90] ss:$12 sps:$4 sm:$0xff]  }
 0x39c   :  { %10183 = vst [vmem:[#allocation8 + $0x140] sm:$0xff] %v11505_v57  ;;  %v11521_v23 = vpack.c.bf16 %v11984_v31, %v11983_v28  ;;  %8002 = vmatmul.mubr.bf16.gmra.mrb[208].mxu1 %v12893_v33  ;;  %7785 = vmatprep.mubr.bf16.mxu0 %v12894_v58 }
 0x39d   :  { %10184 = vst [vmem:[#allocation8 + $0x148] sm:$0xff] %v11506_v2  ;;  %v11522_v13 = vpack.c.bf16 %v12016_v37, %v12015_v14  ;;  %8011 = vmatprep.mubr.bf16.mxu1 %v12894_v58  ;;  %v12898_v37 = vld [vmem:[#allocation2 + $0xac] ss:$12 sps:$4 sm:$0xff]  }
 0x39e   :  { %10199 = vst [vmem:[#allocation8 + $0x1c0] sm:$0xff] %v11521_v23  ;;  %v6966_v62 = vpop.f32.mrb[136].mxu0 }
 0x39f   :  { %10200 = vst [vmem:[#allocation8 + $0x1c8] sm:$0xff] %v11522_v13  ;;  %v11985_v59 = vadd.f32 %v6966_v62, %v13899_v34  ;;  %v7192_v63 = vpop.f32.mrb[136].mxu1  ;;  %v6968_v20 = vpop.f32.mrb[137].mxu0 }
 0x3a0   :  { %v12017_v1 = vadd.f32 %v7192_v63, %v13904_v51  ;;  %v11986_v29 = vadd.f32 %v6968_v20, %v13907_v4  ;;  %v7194_v5 = vpop.f32.mrb[137].mxu1  ;;  %v6970_v25 = vpop.f32.mrb[138].mxu0 }
 0x3a1   :  { %v12018_v56 = vadd.f32 %v7194_v5, %v13910_v55  ;;  %v11987_v6 = vadd.f32 %v6970_v25, %v13899_v34  ;;  %v7196_v15 = vpop.f32.mrb[138].mxu1  ;;  %v6972_v8 = vpop.f32.mrb[139].mxu0 }
 0x3a2   :  { %v11537_v54 = vpack.c.bf16 %v11986_v29, %v11985_v59  ;;  %v12019_v9 = vadd.f32 %v7196_v15, %v13904_v51  ;;  %v11988_v11 = vadd.f32 %v6972_v8, %v13907_v4  ;;  %v7198_v0 = vpop.f32.mrb[139].mxu1 }
 0x3a3   :  { %v11538_v53 = vpack.c.bf16 %v12018_v56, %v12017_v1  ;;  %v12020_v16 = vadd.f32 %v7198_v0, %v13910_v55  ;;  %7786 = vmatmul.mubr.bf16.gmra.mrb[212].mxu0 %v12895_v21  ;;  %v12899_v0 = vld [vmem:[#allocation2 + $0xa8] ss:$12 sps:$4 sm:$0xff]  }
 0x3a4   :  { %10215 = vst [vmem:[#allocation8 + $0x240] sm:$0xff] %v11537_v54  ;;  %v11553_v12 = vpack.c.bf16 %v11988_v11, %v11987_v6  ;;  %8012 = vmatmul.mubr.bf16.gmra.mrb[212].mxu1 %v12895_v21  ;;  %7795 = vmatprep.mubr.bf16.mxu0 %v12896_v35 }
 0x3a5   :  { %10216 = vst [vmem:[#allocation8 + $0x248] sm:$0xff] %v11538_v53  ;;  %v11554_v42 = vpack.c.bf16 %v12020_v16, %v12019_v9  ;;  %8021 = vmatprep.mubr.bf16.mxu1 %v12896_v35  ;;  %v149_v35 = vld [vmem:[#allocation5 + $0x1f0] sm:$0xff] }
 0x3a6   :  { %10231 = vst [vmem:[#allocation8 + $0x2c0] sm:$0xff] %v11553_v12  ;;  %v6976_v27 = vpop.f32.mrb[140].mxu0  ;;  %v133_v12 = vld [vmem:[#allocation5 + $0x170] sm:$0xff] }
 0x3a7   :  { %10232 = vst [vmem:[#allocation8 + $0x2c8] sm:$0xff] %v11554_v42  ;;  %v11989_v19 = vadd.f32 %v6976_v27, %v13899_v34  ;;  %v7202_v41 = vpop.f32.mrb[140].mxu1  ;;  %v6978_v48 = vpop.f32.mrb[141].mxu0 }
 0x3a8   :  { %v12021_v45 = vadd.f32 %v7202_v41, %v13904_v51  ;;  %v11990_v61 = vadd.f32 %v6978_v48, %v13907_v4  ;;  %v7204_v47 = vpop.f32.mrb[141].mxu1  ;;  %v6980_v50 = vpop.f32.mrb[142].mxu0  ;;  %v134_v41 = vld [vmem:[#allocation5 + $0x178] sm:$0xff] }
 0x3a9   :  { %v12022_v3 = vadd.f32 %v7204_v47, %v13910_v55  ;;  %v11991_v26 = vadd.f32 %v6980_v50, %v13899_v34  ;;  %v7206_v40 = vpop.f32.mrb[142].mxu1  ;;  %v6982_v60 = vpop.f32.mrb[143].mxu0  ;;  %v150_v48 = vld [vmem:[#allocation5 + $0x1f8] sm:$0xff] }
 0x3aa   :  { %v11569_v28 = vpack.c.bf16 %v11990_v61, %v11989_v19  ;;  %v12023_v32 = vadd.f32 %v7206_v40, %v13904_v51  ;;  %v11992_v22 = vadd.f32 %v6982_v60, %v13907_v4  ;;  %v7208_v57 = vpop.f32.mrb[143].mxu1 }
 0x3ab   :  { %v11570_v14 = vpack.c.bf16 %v12022_v3, %v12021_v45  ;;  %v12024_v31 = vadd.f32 %v7208_v57, %v13910_v55  ;;  %7796 = vmatmul.mubr.bf16.gmra.mrb[216].mxu0 %v12897_v36  ;;  %v10469_v3 = vcombine.low %v13928_v18, %v13930_v7  ;;  %v13989_v18 = vld [vmem:[#allocation5 + $0x2f0] sm:$0xff] }
 0x3ac   :  { %10247 = vst [vmem:[#allocation8 + $0x340] sm:$0xff] %v11569_v28  ;;  %v11585_v2 = vpack.c.bf16 %v11992_v22, %v11991_v26  ;;  %8022 = vmatmul.mubr.bf16.gmra.mrb[216].mxu1 %v12897_v36  ;;  %7805 = vmatprep.mubr.bf16.mxu0 %v12898_v37  ;;  %v10502_v22 = vcombine.high %v133_v12, %v149_v35 }
 0x3ad   :  { %10248 = vst [vmem:[#allocation8 + $0x348] sm:$0xff] %v11570_v14  ;;  %v11586_v33 = vpack.c.bf16 %v12024_v31, %v12023_v32  ;;  %8031 = vmatprep.mubr.bf16.mxu1 %v12898_v37  ;;  %v10471_v32 = vcombine.low %v13932_v52, %v13934_v17  ;;  %v13987_v37 = vld [vmem:[#allocation5 + $0x270] sm:$0xff]  ;;  %v10501_v17 = vcombine.low %v133_v12, %v149_v35 }
 0x3ae   :  { %10263 = vst [vmem:[#allocation8 + $0x3c0] sm:$0xff] %v11585_v2  ;;  %v6986_v23 = vpop.f32.mrb[144].mxu0  ;;  %v10504_v2 = vcombine.high %v134_v41, %v150_v48 }
 0x3af   :  { %10264 = vst [vmem:[#allocation8 + $0x3c8] sm:$0xff] %v11586_v33  ;;  %v11993_v58 = vadd.f32 %v6986_v23, %v13899_v34  ;;  %v7212_v13 = vpop.f32.mrb[144].mxu1  ;;  %v6988_v62 = vpop.f32.mrb[145].mxu0  ;;  %v12900_v23 = vld [vmem:[#allocation2 + $0x8] ss:$12 sps:$4 sm:$0xff]  }
 0x3b0   :  { %v12025_v59 = vadd.f32 %v7212_v13, %v13904_v51  ;;  %v11994_v63 = vadd.f32 %v6988_v62, %v13907_v4  ;;  %v7214_v20 = vpop.f32.mrb[145].mxu1  ;;  %v6990_v1 = vpop.f32.mrb[146].mxu0  ;;  %v182_v13 = vld [vmem:[#allocation5 + $0x2f8] sm:$0xff] }
 0x3b1   :  { %v12026_v29 = vadd.f32 %v7214_v20, %v13910_v55  ;;  %v11995_v5 = vadd.f32 %v6990_v1, %v13899_v34  ;;  %v7216_v25 = vpop.f32.mrb[146].mxu1  ;;  %v6992_v56 = vpop.f32.mrb[147].mxu0 }
 0x3b2   :  { %v11601_v6 = vpack.c.bf16 %v11994_v63, %v11993_v58  ;;  %v12027_v15 = vadd.f32 %v7216_v25, %v13904_v51  ;;  %v11996_v8 = vadd.f32 %v6992_v56, %v13907_v4  ;;  %v7218_v54 = vpop.f32.mrb[147].mxu1  ;;  %v166_v58 = vld [vmem:[#allocation5 + $0x278] sm:$0xff]  ;;  %v10534_v63 = vcombine.high %v13987_v37, %v13989_v18 }
 0x3b3   :  { %v11602_v9 = vpack.c.bf16 %v12026_v29, %v12025_v59  ;;  %v12028_v11 = vadd.f32 %v7218_v54, %v13910_v55  ;;  %7806 = vmatmul.mubr.bf16.gmra.mrb[220].mxu0 %v12899_v0  ;;  %v10503_v59 = vcombine.low %v134_v41, %v150_v48  ;;  %v10536_v1 = vcombine.high %v166_v58, %v182_v13  ;;  %v13995_v29 = vld [vmem:[#allocation5 + $0x370] sm:$0xff] }
 0x3b4   :  { %10279 = vst [vmem:[#allocation8 + $0x440] sm:$0xff] %v11601_v6  ;;  %v11617_v53 = vpack.c.bf16 %v11996_v8, %v11995_v5  ;;  %8032 = vmatmul.mubr.bf16.gmra.mrb[220].mxu1 %v12899_v0  ;;  %7848 = vmatprep.mubr.bf16.mxu0 %v13027_v24  ;;  %v13997_v5 = vld [vmem:[#allocation5 + $0x3f0] sm:$0xff]  ;;  %v14003_v8 = vld [vmem:[#allocation5 + $0x3f8] sm:$0xff] }
 0x3b5   :  { %10280 = vst [vmem:[#allocation8 + $0x448] sm:$0xff] %v11602_v9  ;;  %v11618_v16 = vpack.c.bf16 %v12028_v11, %v12027_v15  ;;  %8074 = vmatprep.mubr.bf16.mxu1 %v13027_v24  ;;  %v14001_v15 = vld [vmem:[#allocation5 + $0x378] sm:$0xff] }
 0x3b6   :  { %10295 = vst [vmem:[#allocation8 + $0x4c0] sm:$0xff] %v11617_v53  ;;  %v6996_v21 = vpop.f32.mrb[148].mxu0  ;;  %v10533_v53 = vcombine.low %v13987_v37, %v13989_v18  ;;  %v261_v37 = vld [vmem:[#allocation5 + $0x570] sm:$0xff] }
 0x3b7   :  { %10296 = vst [vmem:[#allocation8 + $0x4c8] sm:$0xff] %v11618_v16  ;;  %v11997_v42 = vadd.f32 %v6996_v21, %v13899_v34  ;;  %v7222_v27 = vpop.f32.mrb[148].mxu1  ;;  %v6998_v19 = vpop.f32.mrb[149].mxu0  ;;  %v10535_v16 = vcombine.low %v166_v58, %v182_v13  ;;  %v277_v18 = vld [vmem:[#allocation5 + $0x5f0] sm:$0xff]  ;;  %v262_v58 = vld [vmem:[#allocation5 + $0x578] sm:$0xff] }
 0x3b8   :  { %v12029_v45 = vadd.f32 %v7222_v27, %v13904_v51  ;;  %v11998_v61 = vadd.f32 %v6998_v19, %v13907_v4  ;;  %v7224_v47 = vpop.f32.mrb[149].mxu1  ;;  %v7000_v50 = vpop.f32.mrb[150].mxu0  ;;  %v10566_v27 = vcombine.high %v13995_v29, %v13997_v5  ;;  %v278_v13 = vld [vmem:[#allocation5 + $0x5f8] sm:$0xff] }
 0x3b9   :  { %v12030_v26 = vadd.f32 %v7224_v47, %v13910_v55  ;;  %v11999_v40 = vadd.f32 %v7000_v50, %v13899_v34  ;;  %v7226_v60 = vpop.f32.mrb[150].mxu1  ;;  %v7002_v28 = vpop.f32.mrb[151].mxu0  ;;  %v14017_v47 = vld [vmem:[#allocation5 + $0x470] sm:$0xff] }
 0x3ba   :  { %v11633_v57 = vpack.c.bf16 %v11998_v61, %v11997_v42  ;;  %v12031_v14 = vadd.f32 %v7226_v60, %v13904_v51  ;;  %v12000_v31 = vadd.f32 %v7002_v28, %v13907_v4  ;;  %v7228_v36 = vpop.f32.mrb[151].mxu1  ;;  %v10568_v61 = vcombine.high %v14001_v15, %v14003_v8  ;;  %v14019_v50 = vld [vmem:[#allocation5 + $0x4f0] sm:$0xff]  ;;  %v230_v60 = vld [vmem:[#allocation5 + $0x478] sm:$0xff] }
 0x3bb   :  { %v11634_v7 = vpack.c.bf16 %v12030_v26, %v12029_v45  ;;  %v12032_v33 = vadd.f32 %v7228_v36, %v13910_v55  ;;  %7849 = vmatmul.mubr.bf16.vlgmr.msra.gmra.mrb[192].mxu0 %v12900_v23  ;;  %v246_v28 = vld [vmem:[#allocation5 + $0x4f8] sm:$0xff] }
 0x3bc   :  { %10311 = vst [vmem:[#allocation8 + $0x540] sm:$0xff] %v11633_v57  ;;  %v11649_v52 = vpack.c.bf16 %v12000_v31, %v11999_v40  ;;  %8075 = vmatmul.mubr.bf16.vlgmr.msra.gmra.mrb[192].mxu1 %v12900_v23  ;;  %8156 = vmatpush1.bf16.msra.mxu0 %v10469_v3  ;;  %v14022_v40 = vld [vmem:[#allocation2 + $0x20] ss:$12 sps:$4 sm:$0xff]   ;;  %v10598_v31 = vcombine.high %v14017_v47, %v14019_v50 }
 0x3bd   :  { %10312 = vst [vmem:[#allocation8 + $0x548] sm:$0xff] %v11634_v7  ;;  %v11650_v62 = vpack.c.bf16 %v12032_v33, %v12031_v14  ;;  %8382 = vmatpush1.bf16.msra.mxu1 %v10471_v32  ;;  %8157 = vmatprep.subr.bf16.mxu0 %v10502_v22  ;;  %v10565_v22 = vcombine.low %v13995_v29, %v13997_v5 }
 0x3be   :  { %10327 = vst [vmem:[#allocation8 + $0x5c0] sm:$0xff] %v11649_v52  ;;  %v7006_v20 = vpop.f32.mrb[152].mxu0  ;;  %8383 = vmatprep.subr.bf16.mxu1 %v10504_v2  ;;  %7858 = vmatprep.mubr.bf16.mxu0 %v13027_v24  ;;  %v10567_v14 = vcombine.low %v14001_v15, %v14003_v8  ;;  %v10600_v2 = vcombine.high %v230_v60, %v246_v28 }
 0x3bf   :  { %10328 = vst [vmem:[#allocation8 + $0x5c8] sm:$0xff] %v11650_v62  ;;  %v12001_v25 = vadd.f32 %v7006_v20, %v13899_v34  ;;  %v7232_v56 = vpop.f32.mrb[152].mxu1  ;;  %v7008_v6 = vpop.f32.mrb[153].mxu0  ;;  %8084 = vmatprep.mubr.bf16.mxu1 %v13027_v24  ;;  %v10599_v20 = vcombine.low %v230_v60, %v246_v28  ;;  %v373_v60 = vld [vmem:[#allocation5 + $0x8f0] sm:$0xff] }
 0x3c0   :  { %v12033_v54 = vadd.f32 %v7232_v56, %v13904_v51  ;;  %v12002_v9 = vadd.f32 %v7008_v6, %v13907_v4  ;;  %v7234_v11 = vpop.f32.mrb[153].mxu1  ;;  %v7010_v0 = vpop.f32.mrb[154].mxu0  ;;  %8158 = vmatpush1.bf16.msra.mxu0 %v10501_v17  ;;  %v10630_v56 = vcombine.high %v261_v37, %v277_v18  ;;  %v14050_v28 = vld [vmem:[#allocation2 + $0x50] ss:$12 sps:$4 sm:$0xff]  }
 0x3c1   :  { %v12034_v21 = vadd.f32 %v7234_v11, %v13910_v55  ;;  %v12003_v12 = vadd.f32 %v7010_v0, %v13899_v34  ;;  %v7236_v35 = vpop.f32.mrb[154].mxu1  ;;  %8384 = vmatpush1.bf16.msra.mxu1 %v10503_v59  ;;  %v7012_v42 = vpop.f32.mrb[155].mxu0  ;;  %8159 = vmatprep.subr.bf16.mxu0 %v10534_v63  ;;  %v10597_v63 = vcombine.low %v14017_v47, %v14019_v50  ;;  %v293_v11 = vld [vmem:[#allocation5 + $0x670] sm:$0xff] }
 0x3c2   :  { %v11665_v19 = vpack.c.bf16 %v12002_v9, %v12001_v25  ;;  %v12035_v41 = vadd.f32 %v7236_v35, %v13904_v51  ;;  %v12004_v48 = vadd.f32 %v7012_v42, %v13907_v4  ;;  %v7238_v45 = vpop.f32.mrb[155].mxu1  ;;  %8385 = vmatprep.subr.bf16.mxu1 %v10536_v1  ;;  %v10632_v9 = vcombine.high %v262_v58, %v278_v13  ;;  %v309_v0 = vld [vmem:[#allocation5 + $0x6f0] sm:$0xff] }
 0x3c3   :  { %v11666_v3 = vpack.c.bf16 %v12034_v21, %v12033_v54  ;;  %v12036_v26 = vadd.f32 %v7238_v45, %v13910_v55  ;;  %7859 = vmatmul.mubr.bf16.gmra.mrb[196].mxu0 %v14022_v40  ;;  %v14044_v21 = vld [vmem:[#allocation2 + $0x38] ss:$12 sps:$4 sm:$0xff]   ;;  %v10631_v42 = vcombine.low %v262_v58, %v278_v13 }
 0x3c4   :  { %10343 = vst [vmem:[#allocation8 + $0x640] sm:$0xff] %v11665_v19  ;;  %v11681_v32 = vpack.c.bf16 %v12004_v48, %v12003_v12  ;;  %8085 = vmatmul.mubr.bf16.gmra.mrb[196].mxu1 %v14022_v40  ;;  %8160 = vmatpush1.bf16.msra.mxu0 %v10533_v53  ;;  %v310_v12 = vld [vmem:[#allocation5 + $0x6f8] sm:$0xff]  ;;  %v325_v19 = vld [vmem:[#allocation5 + $0x770] sm:$0xff] }
 0x3c5   :  { %10344 = vst [vmem:[#allocation8 + $0x648] sm:$0xff] %v11666_v3  ;;  %v11682_v57 = vpack.c.bf16 %v12036_v26, %v12035_v41  ;;  %8386 = vmatpush1.bf16.msra.mxu1 %v10535_v16  ;;  %8161 = vmatprep.subr.bf16.mxu0 %v10566_v27  ;;  %v10662_v27 = vcombine.high %v293_v11, %v309_v0  ;;  %v341_v41 = vld [vmem:[#allocation5 + $0x7f0] sm:$0xff]  ;;  %v326_v48 = vld [vmem:[#allocation5 + $0x778] sm:$0xff] }
 0x3c6   :  { %10359 = vst [vmem:[#allocation8 + $0x6c0] sm:$0xff] %v11681_v32  ;;  %v7016_v36 = vpop.f32.mrb[156].mxu0  ;;  %8387 = vmatprep.subr.bf16.mxu1 %v10568_v61  ;;  %7868 = vmatprep.mubr.bf16.mxu0 %v13027_v24  ;;  %v342_v45 = vld [vmem:[#allocation5 + $0x7f8] sm:$0xff]  ;;  %v10661_v61 = vcombine.low %v293_v11, %v309_v0  ;;  %v10694_v50 = vcombine.high %v325_v19, %v341_v41  ;;  %v357_v26 = vld [vmem:[#allocation5 + $0x870] sm:$0xff] }
 0x3c7   :  { %10360 = vst [vmem:[#allocation8 + $0x6c8] sm:$0xff] %v11682_v57  ;;  %v12005_v7 = vadd.f32 %v7016_v36, %v13899_v34  ;;  %v7242_v33 = vpop.f32.mrb[156].mxu1  ;;  %v7018_v23 = vpop.f32.mrb[157].mxu0  ;;  %8094 = vmatprep.mubr.bf16.mxu1 %v13027_v24  ;;  %v10696_v3 = vcombine.high %v326_v48, %v342_v45  ;;  %v358_v32 = vld [vmem:[#allocation5 + $0x878] sm:$0xff]  ;;  %v10693_v57 = vcombine.low %v325_v19, %v341_v41  ;;  %v485_v0 = vld [vmem:[#allocation5 + $0xc70] sm:$0xff] }
 0x3c8   :  { %v12037_v52 = vadd.f32 %v7242_v33, %v13904_v51  ;;  %v12006_v17 = vadd.f32 %v7018_v23, %v13907_v4  ;;  %v7244_v62 = vpop.f32.mrb[157].mxu1  ;;  %v7020_v59 = vpop.f32.mrb[158].mxu0  ;;  %8162 = vmatpush1.bf16.msra.mxu0 %v10565_v22  ;;  %v374_v22 = vld [vmem:[#allocation5 + $0x8f8] sm:$0xff]  ;;  %v10725_v33 = vcombine.low %v357_v26, %v373_v60 }
 0x3c9   :  { %v12038_v1 = vadd.f32 %v7244_v62, %v13910_v55  ;;  %v12007_v29 = vadd.f32 %v7020_v59, %v13899_v34  ;;  %v7246_v5 = vpop.f32.mrb[158].mxu1  ;;  %8388 = vmatpush1.bf16.msra.mxu1 %v10567_v14  ;;  %v7022_v25 = vpop.f32.mrb[159].mxu0  ;;  %8163 = vmatprep.subr.bf16.mxu0 %v10598_v31  ;;  %v294_v34 = vld [vmem:[#allocation5 + $0x678] sm:$0xff]  ;;  %v10695_v14 = vcombine.low %v326_v48, %v342_v45  ;;  %v14056_v62 = vld [vmem:[#allocation2 + $0x68] ss:$12 sps:$4 sm:$0xff]  }
 0x3ca   :  { %v11697_v6 = vpack.c.bf16 %v12006_v17, %v12005_v7  ;;  %v12039_v15 = vadd.f32 %v7246_v5, %v13904_v51  ;;  %v12008_v8 = vadd.f32 %v7022_v25, %v13907_v4  ;;  %v7248_v54 = vpop.f32.mrb[159].mxu1  ;;  %8389 = vmatprep.subr.bf16.mxu1 %v10600_v2  ;;  %v10629_v51 = vcombine.low %v261_v37, %v277_v18  ;;  %v389_v2 = vld [vmem:[#allocation5 + $0x970] sm:$0xff]  ;;  %v390_v18 = vld [vmem:[#allocation5 + $0x978] sm:$0xff] }
 0x3cb   :  { %v11698_v53 = vpack.c.bf16 %v12038_v1, %v12037_v52  ;;  %v12040_v16 = vadd.f32 %v7248_v54, %v13910_v55  ;;  %7869 = vmatmul.mubr.bf16.gmra.mrb[200].mxu0 %v14044_v21  ;;  %v10664_v55 = vcombine.high %v294_v34, %v310_v12  ;;  %v10663_v47 = vcombine.low %v294_v34, %v310_v12  ;;  %v405_v37 = vld [vmem:[#allocation5 + $0x9f0] sm:$0xff]  ;;  %v406_v7 = vld [vmem:[#allocation5 + $0x9f8] sm:$0xff] }
 0x3cc   :  { %10375 = vst [vmem:[#allocation8 + $0x740] sm:$0xff] %v11697_v6  ;;  %v11713_v35 = vpack.c.bf16 %v12008_v8, %v12007_v29  ;;  %8095 = vmatmul.mubr.bf16.gmra.mrb[200].mxu1 %v14044_v21  ;;  %8164 = vmatpush1.bf16.msra.mxu0 %v10597_v63  ;;  %v10726_v31 = vcombine.high %v357_v26, %v373_v60  ;;  %v421_v52 = vld [vmem:[#allocation5 + $0xa70] sm:$0xff]  ;;  %v422_v59 = vld [vmem:[#allocation5 + $0xa78] sm:$0xff] }
 0x3cd   :  { %10376 = vst [vmem:[#allocation8 + $0x748] sm:$0xff] %v11698_v53  ;;  %v11714_v4 = vpack.c.bf16 %v12040_v16, %v12039_v15  ;;  %8390 = vmatpush1.bf16.msra.mxu1 %v10599_v20  ;;  %8165 = vmatprep.subr.bf16.mxu0 %v10630_v56  ;;  %v10728_v36 = vcombine.high %v358_v32, %v374_v22  ;;  %v437_v17 = vld [vmem:[#allocation5 + $0xaf0] sm:$0xff]  ;;  %v438_v63 = vld [vmem:[#allocation5 + $0xaf8] sm:$0xff]  ;;  %v14062_v16 = vld [vmem:[#allocation2 + $0x80] ss:$12 sps:$4 sm:$0xff]  }
 0x3ce   :  { %10391 = vst [vmem:[#allocation8 + $0x7c0] sm:$0xff] %v11713_v35  ;;  %8391 = vmatprep.subr.bf16.mxu1 %v10632_v9  ;;  %7878 = vmatprep.mubr.bf16.mxu0 %v13027_v24  ;;  %v10727_v23 = vcombine.low %v358_v32, %v374_v22  ;;  %v10758_v58 = vcombine.high %v389_v2, %v405_v37  ;;  %v453_v25 = vld [vmem:[#allocation5 + $0xb70] sm:$0xff]  ;;  %v454_v6 = vld [vmem:[#allocation5 + $0xb78] sm:$0xff] }
 0x3cf   :  { %10392 = vst [vmem:[#allocation8 + $0x7c8] sm:$0xff] %v11714_v4  ;;  %8104 = vmatprep.mubr.bf16.mxu1 %v13027_v24  ;;  %v10760_v13 = vcombine.high %v390_v18, %v406_v7  ;;  %v10757_v20 = vcombine.low %v389_v2, %v405_v37  ;;  %v10759_v1 = vcombine.low %v390_v18, %v406_v7  ;;  %v469_v56 = vld [vmem:[#allocation5 + $0xbf0] sm:$0xff]  ;;  %v470_v15 = vld [vmem:[#allocation5 + $0xbf8] sm:$0xff] }
 0x3d0   :  { %8166 = vmatpush1.bf16.msra.mxu0 %v10629_v51  ;;  %v10790_v29 = vcombine.high %v421_v52, %v437_v17  ;;  %v10792_v5 = vcombine.high %v422_v59, %v438_v63  ;;  %v10789_v8 = vcombine.low %v421_v52, %v437_v17  ;;  %v10791_v54 = vcombine.low %v422_v59, %v438_v63  ;;  %v501_v53 = vld [vmem:[#allocation5 + $0xcf0] sm:$0xff]  ;;  %v486_v34 = vld [vmem:[#allocation5 + $0xc78] sm:$0xff] }
 0x3d1   :  { %8392 = vmatpush1.bf16.msra.mxu1 %v10631_v42  ;;  %8167 = vmatprep.subr.bf16.mxu0 %v10662_v27  ;;  %v10822_v9 = vcombine.high %v453_v25, %v469_v56  ;;  %v10824_v11 = vcombine.high %v454_v6, %v470_v15  ;;  %v502_v12 = vld [vmem:[#allocation5 + $0xcf8] sm:$0xff]  ;;  %v10821_v35 = vcombine.low %v453_v25, %v469_v56  ;;  %v517_v27 = vld [vmem:[#allocation5 + $0xd70] sm:$0xff] }
 0x3d2   :  { %8393 = vmatprep.subr.bf16.mxu1 %v10664_v55  ;;  %v10823_v51 = vcombine.low %v454_v6, %v470_v15  ;;  %v10854_v4 = vcombine.high %v485_v0, %v501_v53  ;;  %v10856_v42 = vcombine.high %v486_v34, %v502_v12  ;;  %v533_v55 = vld [vmem:[#allocation5 + $0xdf0] sm:$0xff]  ;;  %v518_v19 = vld [vmem:[#allocation5 + $0xd78] sm:$0xff]  ;;  %v10853_v48 = vcombine.low %v485_v0, %v501_v53 }
 0x3d3   :  { %7879 = vmatmul.mubr.bf16.gmra.mrb[204].mxu0 %v14050_v28  ;;  %v534_v41 = vld [vmem:[#allocation5 + $0xdf8] sm:$0xff]  ;;  %v10855_v45 = vcombine.low %v486_v34, %v502_v12  ;;  %v10885_v22 = vcombine.low %v517_v27, %v533_v55  ;;  %v597_v2 = vld [vmem:[#allocation5 + $0xff0] sm:$0xff]  ;;  %v12909_v34 = vld [vmem:[#allocation2] ss:$12 sps:$4 sm:$0xff]  }
 0x3d4   :  { %8105 = vmatmul.mubr.bf16.gmra.mrb[204].mxu1 %v14050_v28  ;;  %8168 = vmatpush1.bf16.msra.mxu0 %v10661_v61  ;;  %v10886_v61 = vcombine.high %v517_v27, %v533_v55  ;;  %v14068_v26 = vld [vmem:[#allocation2 + $0x98] ss:$12 sps:$4 sm:$0xff]   ;;  %v629_v52 = vld [vmem:[#allocation5 + $0x10f0] sm:$0xff] }
 0x3d5   :  { %8394 = vmatpush1.bf16.msra.mxu1 %v10663_v47  ;;  %8169 = vmatprep.subr.bf16.mxu0 %v10694_v50  ;;  %v10888_v47 = vcombine.high %v518_v19, %v534_v41  ;;  %v549_v50 = vld [vmem:[#allocation5 + $0xe70] sm:$0xff]  ;;  %v550_v60 = vld [vmem:[#allocation5 + $0xe78] sm:$0xff] }
 0x3d6   :  { %8395 = vmatprep.subr.bf16.mxu1 %v10696_v3  ;;  %7888 = vmatprep.mubr.bf16.mxu0 %v13027_v24  ;;  %v565_v3 = vld [vmem:[#allocation5 + $0xef0] sm:$0xff]  ;;  %v566_v32 = vld [vmem:[#allocation5 + $0xef8] sm:$0xff] }
 0x3d7   :  { %8114 = vmatprep.mubr.bf16.mxu1 %v13027_v24  ;;  %v582_v37 = vld [vmem:[#allocation5 + $0xf78] sm:$0xff]  ;;  %v10917_v7 = vcombine.low %v549_v50, %v565_v3  ;;  %v645_v56 = vld [vmem:[#allocation5 + $0x1170] sm:$0xff] }
 0x3d8   :  { %8170 = vmatpush1.bf16.msra.mxu0 %v10693_v57  ;;  %v10887_v57 = vcombine.low %v518_v19, %v534_v41  ;;  %v598_v18 = vld [vmem:[#allocation5 + $0xff8] sm:$0xff]  ;;  %v661_v6 = vld [vmem:[#allocation5 + $0x11f0] sm:$0xff] }
 0x3d9   :  { %8396 = vmatpush1.bf16.msra.mxu1 %v10695_v14  ;;  %8171 = vmatprep.subr.bf16.mxu0 %v10726_v31  ;;  %v10918_v14 = vcombine.high %v549_v50, %v565_v3  ;;  %v10920_v31 = vcombine.high %v550_v60, %v566_v32  ;;  %v14074_v17 = vld [vmem:[#allocation2 + $0xb0] ss:$12 sps:$4 sm:$0xff]  }
 0x3da   :  { %8397 = vmatprep.subr.bf16.mxu1 %v10728_v36  ;;  %v581_v36 = vld [vmem:[#allocation5 + $0xf70] sm:$0xff]  ;;  %v614_v59 = vld [vmem:[#allocation5 + $0x1078] sm:$0xff] }
 0x3db   :  { %7889 = vmatmul.mubr.bf16.gmra.mrb[208].mxu0 %v14056_v62  ;;  %v630_v63 = vld [vmem:[#allocation5 + $0x10f8] sm:$0xff]  ;;  %v677_v0 = vld [vmem:[#allocation5 + $0x1270] sm:$0xff] }
 0x3dc   :  { %8115 = vmatmul.mubr.bf16.gmra.mrb[208].mxu1 %v14056_v62  ;;  %8172 = vmatpush1.bf16.msra.mxu0 %v10725_v33  ;;  %v10919_v33 = vcombine.low %v550_v60, %v566_v32  ;;  %v10984_v25 = vcombine.high %v614_v59, %v630_v63  ;;  %v693_v53 = vld [vmem:[#allocation5 + $0x12f0] sm:$0xff]  ;;  %v12911_v60 = vld [vmem:[#allocation2 + $0x18] ss:$12 sps:$4 sm:$0xff]  }
 0x3dd   :  { %8398 = vmatpush1.bf16.msra.mxu1 %v10727_v23  ;;  %8173 = vmatprep.subr.bf16.mxu0 %v10758_v58  ;;  %v10950_v23 = vcombine.high %v581_v36, %v597_v2  ;;  %v10952_v58 = vcombine.high %v582_v37, %v598_v18  ;;  %v11046_v55 = vcombine.high %v677_v0, %v693_v53  ;;  %v709_v41 = vld [vmem:[#allocation5 + $0x1370] sm:$0xff] }
 0x3de   :  { %8399 = vmatprep.subr.bf16.mxu1 %v10760_v13  ;;  %7898 = vmatprep.mubr.bf16.mxu0 %v13027_v24  ;;  %v613_v13 = vld [vmem:[#allocation5 + $0x1070] sm:$0xff] }
 0x3df   :  { %8124 = vmatprep.mubr.bf16.mxu1 %v13027_v24  ;;  %v10981_v15 = vcombine.low %v613_v13, %v629_v52 }
 0x3e0   :  { %8174 = vmatpush1.bf16.msra.mxu0 %v10757_v20  ;;  %v10949_v20 = vcombine.low %v581_v36, %v597_v2  ;;  %v758_v36 = vld [vmem:[#allocation5 + $0x14f8] sm:$0xff] }
 0x3e1   :  { %8400 = vmatpush1.bf16.msra.mxu1 %v10759_v1  ;;  %8175 = vmatprep.subr.bf16.mxu0 %v10790_v29  ;;  %v10951_v1 = vcombine.low %v582_v37, %v598_v18  ;;  %v10982_v29 = vcombine.high %v613_v13, %v629_v52  ;;  %v790_v13 = vld [vmem:[#allocation5 + $0x15f8] sm:$0xff] }
 0x3e2   :  { %8401 = vmatprep.subr.bf16.mxu1 %v10792_v5  ;;  %v12908_v5 = vld [vmem:[#allocation2 + $0x4] ss:$12 sps:$4 sm:$0xff]  }
 0x3e3   :  { %7899 = vmatmul.mubr.bf16.gmra.mrb[212].mxu0 %v14062_v16 }
 0x3e4   :  { %8125 = vmatmul.mubr.bf16.gmra.mrb[212].mxu1 %v14062_v16  ;;  %8176 = vmatpush1.bf16.msra.mxu0 %v10789_v8  ;;  %v646_v8 = vld [vmem:[#allocation5 + $0x1178] sm:$0xff] }
 0x3e5   :  { %8402 = vmatpush1.bf16.msra.mxu1 %v10791_v54  ;;  %8177 = vmatprep.subr.bf16.mxu0 %v10822_v9  ;;  %v662_v54 = vld [vmem:[#allocation5 + $0x11f8] sm:$0xff]  ;;  %v10983_v9 = vcombine.low %v614_v59, %v630_v63 }
 0x3e6   :  { %8403 = vmatprep.subr.bf16.mxu1 %v10824_v11  ;;  %7908 = vmatprep.mubr.bf16.mxu0 %v13027_v24  ;;  %v11014_v11 = vcombine.high %v645_v56, %v661_v6  ;;  %v11016_v12 = vcombine.high %v646_v8, %v662_v54  ;;  %v11015_v27 = vcombine.low %v646_v8, %v662_v54  ;;  %v12915_v8 = vld [vmem:[#allocation2 + $0x4c] ss:$12 sps:$4 sm:$0xff]  }
 0x3e7   :  { %8134 = vmatprep.mubr.bf16.mxu1 %v13027_v24  ;;  %v806_v54 = vld [vmem:[#allocation5 + $0x1678] sm:$0xff] }
 0x3e8   :  { %8178 = vmatpush1.bf16.msra.mxu0 %v10821_v35  ;;  %v678_v35 = vld [vmem:[#allocation5 + $0x1278] sm:$0xff] }
 0x3e9   :  { %8404 = vmatpush1.bf16.msra.mxu1 %v10823_v51  ;;  %8179 = vmatprep.subr.bf16.mxu0 %v10854_v4  ;;  %v694_v51 = vld [vmem:[#allocation5 + $0x12f8] sm:$0xff]  ;;  %v11013_v4 = vcombine.low %v645_v56, %v661_v6  ;;  %v821_v56 = vld [vmem:[#allocation5 + $0x16f0] sm:$0xff] }
 0x3ea   :  { %8405 = vmatprep.subr.bf16.mxu1 %v10856_v42  ;;  %v12910_v42 = vld [vmem:[#allocation2 + $0x1c] ss:$12 sps:$4 sm:$0xff]   ;;  %v11048_v19 = vcombine.high %v678_v35, %v694_v51  ;;  %v11047_v50 = vcombine.low %v678_v35, %v694_v51  ;;  %v837_v35 = vld [vmem:[#allocation5 + $0x1770] sm:$0xff] }
 0x3eb   :  { %7909 = vmatmul.mubr.bf16.gmra.mrb[216].mxu0 %v14068_v26  ;;  %v853_v51 = vld [vmem:[#allocation5 + $0x17f0] sm:$0xff] }
 0x3ec   :  { %8135 = vmatmul.mubr.bf16.gmra.mrb[216].mxu1 %v14068_v26  ;;  %8180 = vmatpush1.bf16.msra.mxu0 %v10853_v48  ;;  %v725_v48 = vld [vmem:[#allocation5 + $0x13f0] sm:$0xff] }
 0x3ed   :  { %8406 = vmatpush1.bf16.msra.mxu1 %v10855_v45  ;;  %8181 = vmatprep.subr.bf16.mxu0 %v10886_v61  ;;  %v710_v45 = vld [vmem:[#allocation5 + $0x1378] sm:$0xff]  ;;  %v11078_v3 = vcombine.high %v709_v41, %v725_v48  ;;  %v11077_v2 = vcombine.low %v709_v41, %v725_v48 }
 0x3ee   :  { %8407 = vmatprep.subr.bf16.mxu1 %v10888_v47  ;;  %7918 = vmatprep.mubr.bf16.mxu0 %v13027_v24  ;;  %v726_v61 = vld [vmem:[#allocation5 + $0x13f8] sm:$0xff]  ;;  %v11045_v47 = vcombine.low %v677_v0, %v693_v53 }
 0x3ef   :  { %8144 = vmatprep.mubr.bf16.mxu1 %v13027_v24  ;;  %v11080_v32 = vcombine.high %v710_v45, %v726_v61  ;;  %v11079_v37 = vcombine.low %v710_v45, %v726_v61 }
 0x3f0   :  { %8182 = vmatpush1.bf16.msra.mxu0 %v10885_v22  ;;  %v741_v22 = vld [vmem:[#allocation5 + $0x1470] sm:$0xff] }
 0x3f1   :  { %8408 = vmatpush1.bf16.msra.mxu1 %v10887_v57  ;;  %8183 = vmatprep.subr.bf16.mxu0 %v10918_v14  ;;  %v757_v57 = vld [vmem:[#allocation5 + $0x14f0] sm:$0xff] }
 0x3f2   :  { %8409 = vmatprep.subr.bf16.mxu1 %v10920_v31  ;;  %v12912_v14 = vld [vmem:[#allocation2 + $0x34] ss:$12 sps:$4 sm:$0xff]   ;;  %v742_v31 = vld [vmem:[#allocation5 + $0x1478] sm:$0xff]  ;;  %v11110_v18 = vcombine.high %v741_v22, %v757_v57  ;;  %v11109_v52 = vcombine.low %v741_v22, %v757_v57 }
 0x3f3   :  { %7919 = vmatmul.mubr.bf16.gmra.mrb[220].mxu0 %v14074_v17  ;;  %v11111_v59 = vcombine.low %v742_v31, %v758_v36 }
 0x3f4   :  { %8145 = vmatmul.mubr.bf16.gmra.mrb[220].mxu1 %v14074_v17  ;;  %8184 = vmatpush1.bf16.msra.mxu0 %v10917_v7  ;;  %v11112_v7 = vcombine.high %v742_v31, %v758_v36 }
 0x3f5   :  { %8410 = vmatpush1.bf16.msra.mxu1 %v10919_v33  ;;  %8185 = vmatprep.subr.bf16.mxu0 %v10950_v23  ;;  %v773_v33 = vld [vmem:[#allocation5 + $0x1570] sm:$0xff] }
 0x3f6   :  { %8411 = vmatprep.subr.bf16.mxu1 %v10952_v58  ;;  %8187 = vmatprep.mubr.bf16.mxu0 %v12908_v5  ;;  %v789_v23 = vld [vmem:[#allocation5 + $0x15f0] sm:$0xff]  ;;  %v774_v58 = vld [vmem:[#allocation5 + $0x1578] sm:$0xff] }
 0x3f7   :  { %8413 = vmatprep.mubr.bf16.mxu1 %v12908_v5  ;;  %v11142_v63 = vcombine.high %v773_v33, %v789_v23  ;;  %v11144_v5 = vcombine.high %v774_v58, %v790_v13  ;;  %v11141_v0 = vcombine.low %v773_v33, %v789_v23  ;;  %v12916_v33 = vld [vmem:[#allocation2 + $0x48] ss:$12 sps:$4 sm:$0xff]  }
 0x3f8   :  { %8186 = vmatpush1.bf16.msra.mxu0 %v10949_v20  ;;  %v12913_v20 = vld [vmem:[#allocation2 + $0x30] ss:$12 sps:$4 sm:$0xff]  }
 0x3f9   :  { %8412 = vmatpush1.bf16.msra.mxu1 %v10951_v1  ;;  %8268 = vmatprep.subr.bf16.mxu0 %v10982_v29  ;;  %v12914_v1 = vld [vmem:[#allocation7 + $0x10] sm:$0xff] }
 0x3fa   :  { %8494 = vmatprep.subr.bf16.mxu1 %v10984_v25  ;;  %v14079_v29 = vrot.slane %v12914_v1, %v13431_v30  ;;  %v805_v25 = vld [vmem:[#allocation5 + $0x1670] sm:$0xff]  ;;  %v14082_v6 = vrot.slane %v12914_v1, %v13434_v10 }
 0x3fb   :  { %8188 = vmatmul.mubr.bf16.vlgmr.msra.gmra.mrb[224].mxu0 %v12909_v34  ;;  %v11173_v61 = vcombine.low %v805_v25, %v821_v56 }
 0x3fc   :  { %8414 = vmatmul.mubr.bf16.vlgmr.msra.gmra.mrb[224].mxu1 %v12909_v34  ;;  %8269 = vmatpush1.bf16.msra.mxu0 %v10981_v15  ;;  %v14085_v15 = vrot.slane %v12914_v1, %v13437_v39  ;;  %v11143_v34 = vcombine.low %v774_v58, %v790_v13  ;;  %v12917_v13 = vld [vmem:[#allocation2 + $0x64] ss:$12 sps:$4 sm:$0xff]  }
 0x3fd   :  { %8495 = vmatpush1.bf16.msra.mxu1 %v10983_v9  ;;  %8197 = vmatprep.mubr.bf16.mxu0 %v12910_v42  ;;  %v822_v9 = vld [vmem:[#allocation5 + $0x16f8] sm:$0xff] }
 0x3fe   :  { %8423 = vmatprep.mubr.bf16.mxu1 %v12910_v42  ;;  %8270 = vmatprep.subr.bf16.mxu0 %v11014_v11  ;;  %v14088_v11 = vrot.slane %v12914_v1, %v13440_v43  ;;  %v11175_v57 = vcombine.low %v806_v54, %v822_v9 }
 0x3ff   :  { %8496 = vmatprep.subr.bf16.mxu1 %v11016_v12  ;;  %v11174_v12 = vcombine.high %v805_v25, %v821_v56 }
 0x400   :  { %8271 = vmatpush1.bf16.msra.mxu0 %v11013_v4 }
 0x401   :  { %8497 = vmatpush1.bf16.msra.mxu1 %v11015_v27  ;;  %8272 = vmatprep.subr.bf16.mxu0 %v11046_v55  ;;  %v11176_v55 = vcombine.high %v806_v54, %v822_v9 }
 0x402   :  { %8498 = vmatprep.subr.bf16.mxu1 %v11048_v19 }
 0x403   :  { %8198 = vmatmul.mubr.bf16.gmra.mrb[228].mxu0 %v12911_v60 }
 0x404   :  { %8424 = vmatmul.mubr.bf16.gmra.mrb[228].mxu1 %v12911_v60  ;;  %8207 = vmatprep.mubr.bf16.mxu0 %v12912_v14 }
 0x405   :  { %8433 = vmatprep.mubr.bf16.mxu1 %v12912_v14  ;;  %8273 = vmatpush1.bf16.msra.mxu0 %v11045_v47  ;;  %v838_v47 = vld [vmem:[#allocation5 + $0x1778] sm:$0xff]  ;;  %v11206_v14 = vcombine.high %v837_v35, %v853_v51 }
 0x406   :  { %8499 = vmatpush1.bf16.msra.mxu1 %v11047_v50  ;;  %8274 = vmatprep.subr.bf16.mxu0 %v11078_v3  ;;  %v854_v50 = vld [vmem:[#allocation5 + $0x17f8] sm:$0xff] }
 0x407   :  { %8500 = vmatprep.subr.bf16.mxu1 %v11080_v32  ;;  %v11208_v23 = vcombine.high %v838_v47, %v854_v50 }
 0x409   :  { %8275 = vmatpush1.bf16.msra.mxu0 %v11077_v2 }
 0x40a   :  { %8501 = vmatpush1.bf16.msra.mxu1 %v11079_v37  ;;  %8276 = vmatprep.subr.bf16.mxu0 %v11110_v18 }
 0x40b   :  { %8208 = vmatmul.mubr.bf16.gmra.mrb[232].mxu0 %v12913_v20  ;;  %8502 = vmatprep.subr.bf16.mxu1 %v11112_v7 }
 0x40c   :  { %8434 = vmatmul.mubr.bf16.gmra.mrb[232].mxu1 %v12913_v20  ;;  %8217 = vmatprep.mubr.bf16.mxu0 %v12915_v8  ;;  %v11207_v20 = vcombine.low %v838_v47, %v854_v50 }
 0x40d   :  { %8443 = vmatprep.mubr.bf16.mxu1 %v12915_v8  ;;  %8277 = vmatpush1.bf16.msra.mxu0 %v11109_v52 }
 0x40e   :  { %v7398_v53 = vpop.f32.mrb[160].mxu0  ;;  %8503 = vmatpush1.bf16.msra.mxu1 %v11111_v59  ;;  %8278 = vmatprep.subr.bf16.mxu0 %v11142_v63  ;;  %v11205_v59 = vcombine.low %v837_v35, %v853_v51 }
 0x40f   :  { %v12041_v4 = vadd.f32 %v7398_v53, %v14079_v29  ;;  %v7624_v42 = vpop.f32.mrb[160].mxu1  ;;  %v7400_v27 = vpop.f32.mrb[161].mxu0  ;;  %8504 = vmatprep.subr.bf16.mxu1 %v11144_v5 }
 0x410   :  { %v12073_v19 = vadd.f32 %v7624_v42, %v14082_v6  ;;  %v12042_v41 = vadd.f32 %v7400_v27, %v14085_v15  ;;  %v7626_v48 = vpop.f32.mrb[161].mxu1  ;;  %v7402_v45 = vpop.f32.mrb[162].mxu0 }
 0x411   :  { %v12074_v3 = vadd.f32 %v7626_v48, %v14088_v11  ;;  %v12043_v60 = vadd.f32 %v7402_v45, %v14079_v29  ;;  %v7628_v32 = vpop.f32.mrb[162].mxu1  ;;  %v7404_v22 = vpop.f32.mrb[163].mxu0  ;;  %8279 = vmatpush1.bf16.msra.mxu0 %v11141_v0  ;;  %v12919_v48 = vld [vmem:[#allocation2 + $0x7c] ss:$12 sps:$4 sm:$0xff]  }
 0x412   :  { %v11475_v31 = vpack.c.bf16 %v12042_v41, %v12041_v4  ;;  %v12075_v36 = vadd.f32 %v7628_v32, %v14082_v6  ;;  %v12044_v2 = vadd.f32 %v7404_v22, %v14085_v15  ;;  %v7630_v37 = vpop.f32.mrb[163].mxu1  ;;  %8505 = vmatpush1.bf16.msra.mxu1 %v11143_v34  ;;  %8280 = vmatprep.subr.bf16.mxu0 %v11174_v12 }
 0x413   :  { %v11476_v18 = vpack.c.bf16 %v12074_v3, %v12073_v19  ;;  %v12076_v7 = vadd.f32 %v7630_v37, %v14088_v11  ;;  %8218 = vmatmul.mubr.bf16.gmra.mrb[236].mxu0 %v12916_v33  ;;  %8506 = vmatprep.subr.bf16.mxu1 %v11176_v55  ;;  %v12918_v19 = vld [vmem:[#allocation2 + $0x60] ss:$12 sps:$4 sm:$0xff]  }
 0x414   :  { %10153 = vst [vmem:[#allocation8 + $0x50] sm:$0xff] %v11475_v31  ;;  %v11491_v58 = vpack.c.bf16 %v12044_v2, %v12043_v60  ;;  %8444 = vmatmul.mubr.bf16.gmra.mrb[236].mxu1 %v12916_v33  ;;  %8227 = vmatprep.mubr.bf16.mxu0 %v12917_v13 }
 0x415   :  { %10154 = vst [vmem:[#allocation8 + $0x58] sm:$0xff] %v11476_v18  ;;  %v11492_v52 = vpack.c.bf16 %v12076_v7, %v12075_v36  ;;  %8453 = vmatprep.mubr.bf16.mxu1 %v12917_v13  ;;  %8281 = vmatpush1.bf16.msra.mxu0 %v11173_v61  ;;  %v12920_v13 = vld [vmem:[#allocation2 + $0x78] ss:$12 sps:$4 sm:$0xff]  }
 0x416   :  { %10169 = vst [vmem:[#allocation8 + $0xd0] sm:$0xff] %v11491_v58  ;;  %v7408_v63 = vpop.f32.mrb[164].mxu0  ;;  %8507 = vmatpush1.bf16.msra.mxu1 %v11175_v57  ;;  %8282 = vmatprep.subr.bf16.mxu0 %v11206_v14 }
 0x417   :  { %10170 = vst [vmem:[#allocation8 + $0xd8] sm:$0xff] %v11492_v52  ;;  %v12045_v1 = vadd.f32 %v7408_v63, %v14079_v29  ;;  %v7634_v5 = vpop.f32.mrb[164].mxu1  ;;  %v7410_v25 = vpop.f32.mrb[165].mxu0  ;;  %8508 = vmatprep.subr.bf16.mxu1 %v11208_v23 }
 0x418   :  { %v12077_v56 = vadd.f32 %v7634_v5, %v14082_v6  ;;  %v12046_v8 = vadd.f32 %v7410_v25, %v14085_v15  ;;  %v7636_v54 = vpop.f32.mrb[165].mxu1  ;;  %v7412_v9 = vpop.f32.mrb[166].mxu0 }
 0x419   :  { %v12078_v0 = vadd.f32 %v7636_v54, %v14088_v11  ;;  %v12047_v53 = vadd.f32 %v7412_v9, %v14079_v29  ;;  %v7638_v34 = vpop.f32.mrb[166].mxu1  ;;  %v7414_v12 = vpop.f32.mrb[167].mxu0  ;;  %8283 = vmatpush1.bf16.msra.mxu0 %v11205_v59  ;;  %v12921_v59 = vld [vmem:[#allocation2 + $0x94] ss:$12 sps:$4 sm:$0xff]  }
 0x41a   :  { %v11507_v35 = vpack.c.bf16 %v12046_v8, %v12045_v1  ;;  %v12079_v51 = vadd.f32 %v7638_v34, %v14082_v6  ;;  %v12048_v4 = vadd.f32 %v7414_v12, %v14085_v15  ;;  %v7640_v42 = vpop.f32.mrb[167].mxu1  ;;  %8509 = vmatpush1.bf16.msra.mxu1 %v11207_v20 }
 0x41b   :  { %v11508_v27 = vpack.c.bf16 %v12078_v0, %v12077_v56  ;;  %v12080_v55 = vadd.f32 %v7640_v42, %v14088_v11  ;;  %8228 = vmatmul.mubr.bf16.gmra.mrb[240].mxu0 %v12918_v19 }
 0x41c   :  { %10185 = vst [vmem:[#allocation8 + $0x150] sm:$0xff] %v11507_v35  ;;  %v11523_v41 = vpack.c.bf16 %v12048_v4, %v12047_v53  ;;  %8454 = vmatmul.mubr.bf16.gmra.mrb[240].mxu1 %v12918_v19  ;;  %8237 = vmatprep.mubr.bf16.mxu0 %v12919_v48  ;;  %v12922_v19 = vld [vmem:[#allocation2 + $0x90] ss:$12 sps:$4 sm:$0xff]  }
 0x41d   :  { %10186 = vst [vmem:[#allocation8 + $0x158] sm:$0xff] %v11508_v27  ;;  %v11524_v45 = vpack.c.bf16 %v12080_v55, %v12079_v51  ;;  %8463 = vmatprep.mubr.bf16.mxu1 %v12919_v48  ;;  %v12923_v48 = vld [vmem:[#allocation2 + $0xac] ss:$12 sps:$4 sm:$0xff]  }
 0x41e   :  { %10201 = vst [vmem:[#allocation8 + $0x1d0] sm:$0xff] %v11523_v41  ;;  %v7418_v61 = vpop.f32.mrb[168].mxu0 }
 0x41f   :  { %10202 = vst [vmem:[#allocation8 + $0x1d8] sm:$0xff] %v11524_v45  ;;  %v12049_v47 = vadd.f32 %v7418_v61, %v14079_v29  ;;  %v7644_v50 = vpop.f32.mrb[168].mxu1  ;;  %v7420_v3 = vpop.f32.mrb[169].mxu0 }
 0x420   :  { %v12081_v60 = vadd.f32 %v7644_v50, %v14082_v6  ;;  %v12050_v32 = vadd.f32 %v7420_v3, %v14085_v15  ;;  %v7646_v22 = vpop.f32.mrb[169].mxu1  ;;  %v7422_v57 = vpop.f32.mrb[170].mxu0 }
 0x421   :  { %v12082_v14 = vadd.f32 %v7646_v22, %v14088_v11  ;;  %v12051_v31 = vadd.f32 %v7422_v57, %v14079_v29  ;;  %v7648_v36 = vpop.f32.mrb[170].mxu1  ;;  %v7424_v2 = vpop.f32.mrb[171].mxu0 }
 0x422   :  { %v11539_v37 = vpack.c.bf16 %v12050_v32, %v12049_v47  ;;  %v12083_v18 = vadd.f32 %v7648_v36, %v14082_v6  ;;  %v12052_v7 = vadd.f32 %v7424_v2, %v14085_v15  ;;  %v7650_v33 = vpop.f32.mrb[171].mxu1 }
 0x423   :  { %v11540_v23 = vpack.c.bf16 %v12082_v14, %v12081_v60  ;;  %v12084_v58 = vadd.f32 %v7650_v33, %v14088_v11  ;;  %8238 = vmatmul.mubr.bf16.gmra.mrb[244].mxu0 %v12920_v13 }
 0x424   :  { %10217 = vst [vmem:[#allocation8 + $0x250] sm:$0xff] %v11539_v37  ;;  %v11555_v52 = vpack.c.bf16 %v12052_v7, %v12051_v31  ;;  %8464 = vmatmul.mubr.bf16.gmra.mrb[244].mxu1 %v12920_v13  ;;  %8247 = vmatprep.mubr.bf16.mxu0 %v12921_v59  ;;  %v12924_v13 = vld [vmem:[#allocation2 + $0xa8] ss:$12 sps:$4 sm:$0xff]  }
 0x425   :  { %10218 = vst [vmem:[#allocation8 + $0x258] sm:$0xff] %v11540_v23  ;;  %v11556_v63 = vpack.c.bf16 %v12084_v58, %v12083_v18  ;;  %8473 = vmatprep.mubr.bf16.mxu1 %v12921_v59 }
 0x426   :  { %10233 = vst [vmem:[#allocation8 + $0x2d0] sm:$0xff] %v11555_v52  ;;  %v7428_v20 = vpop.f32.mrb[172].mxu0 }
 0x427   :  { %10234 = vst [vmem:[#allocation8 + $0x2d8] sm:$0xff] %v11556_v63  ;;  %v12053_v1 = vadd.f32 %v7428_v20, %v14079_v29  ;;  %v7654_v5 = vpop.f32.mrb[172].mxu1  ;;  %v7430_v25 = vpop.f32.mrb[173].mxu0 }
 0x428   :  { %v12085_v56 = vadd.f32 %v7654_v5, %v14082_v6  ;;  %v12054_v8 = vadd.f32 %v7430_v25, %v14085_v15  ;;  %v7656_v54 = vpop.f32.mrb[173].mxu1  ;;  %v7432_v9 = vpop.f32.mrb[174].mxu0 }
 0x429   :  { %v12086_v0 = vadd.f32 %v7656_v54, %v14088_v11  ;;  %v12055_v53 = vadd.f32 %v7432_v9, %v14079_v29  ;;  %v7658_v34 = vpop.f32.mrb[174].mxu1  ;;  %v7434_v12 = vpop.f32.mrb[175].mxu0 }
 0x42a   :  { %v11571_v35 = vpack.c.bf16 %v12054_v8, %v12053_v1  ;;  %v12087_v51 = vadd.f32 %v7658_v34, %v14082_v6  ;;  %v12056_v4 = vadd.f32 %v7434_v12, %v14085_v15  ;;  %v7660_v42 = vpop.f32.mrb[175].mxu1 }
 0x42b   :  { %v11572_v27 = vpack.c.bf16 %v12086_v0, %v12085_v56  ;;  %v12088_v55 = vadd.f32 %v7660_v42, %v14088_v11  ;;  %8248 = vmatmul.mubr.bf16.gmra.mrb[248].mxu0 %v12922_v19 }
 0x42c   :  { %10249 = vst [vmem:[#allocation8 + $0x350] sm:$0xff] %v11571_v35  ;;  %v11587_v41 = vpack.c.bf16 %v12056_v4, %v12055_v53  ;;  %8474 = vmatmul.mubr.bf16.gmra.mrb[248].mxu1 %v12922_v19  ;;  %8257 = vmatprep.mubr.bf16.mxu0 %v12923_v48 }
 0x42d   :  { %10250 = vst [vmem:[#allocation8 + $0x358] sm:$0xff] %v11572_v27  ;;  %v11588_v45 = vpack.c.bf16 %v12088_v55, %v12087_v51  ;;  %8483 = vmatprep.mubr.bf16.mxu1 %v12923_v48  ;;  %v12925_v55 = vld [vmem:[#allocation2 + $0x8] ss:$12 sps:$4 sm:$0xff]  }
 0x42e   :  { %10265 = vst [vmem:[#allocation8 + $0x3d0] sm:$0xff] %v11587_v41  ;;  %v7438_v61 = vpop.f32.mrb[176].mxu0 }
 0x42f   :  { %10266 = vst [vmem:[#allocation8 + $0x3d8] sm:$0xff] %v11588_v45  ;;  %v12057_v47 = vadd.f32 %v7438_v61, %v14079_v29  ;;  %v7664_v50 = vpop.f32.mrb[176].mxu1  ;;  %v7440_v3 = vpop.f32.mrb[177].mxu0 }
 0x430   :  { %v12089_v60 = vadd.f32 %v7664_v50, %v14082_v6  ;;  %v12058_v32 = vadd.f32 %v7440_v3, %v14085_v15  ;;  %v7666_v22 = vpop.f32.mrb[177].mxu1  ;;  %v7442_v57 = vpop.f32.mrb[178].mxu0 }
 0x431   :  { %v12090_v14 = vadd.f32 %v7666_v22, %v14088_v11  ;;  %v12059_v31 = vadd.f32 %v7442_v57, %v14079_v29  ;;  %v7668_v36 = vpop.f32.mrb[178].mxu1  ;;  %v7444_v2 = vpop.f32.mrb[179].mxu0 }
 0x432   :  { %v11603_v37 = vpack.c.bf16 %v12058_v32, %v12057_v47  ;;  %v12091_v18 = vadd.f32 %v7668_v36, %v14082_v6  ;;  %v12060_v7 = vadd.f32 %v7444_v2, %v14085_v15  ;;  %v7670_v33 = vpop.f32.mrb[179].mxu1 }
 0x433   :  { %v11604_v23 = vpack.c.bf16 %v12090_v14, %v12089_v60  ;;  %v12092_v58 = vadd.f32 %v7670_v33, %v14088_v11  ;;  %8258 = vmatmul.mubr.bf16.gmra.mrb[252].mxu0 %v12924_v13 }
 0x434   :  { %10281 = vst [vmem:[#allocation8 + $0x450] sm:$0xff] %v11603_v37  ;;  %v11619_v52 = vpack.c.bf16 %v12060_v7, %v12059_v31  ;;  %8484 = vmatmul.mubr.bf16.gmra.mrb[252].mxu1 %v12924_v13  ;;  %8300 = vmatprep.mubr.bf16.mxu0 %v13027_v24 }
 0x435   :  { %10282 = vst [vmem:[#allocation8 + $0x458] sm:$0xff] %v11604_v23  ;;  %v11620_v59 = vpack.c.bf16 %v12092_v58, %v12091_v18  ;;  %8526 = vmatprep.mubr.bf16.mxu1 %v13027_v24 }
 0x436   :  { %10297 = vst [vmem:[#allocation8 + $0x4d0] sm:$0xff] %v11619_v52  ;;  %v7448_v63 = vpop.f32.mrb[180].mxu0 }
 0x437   :  { %10298 = vst [vmem:[#allocation8 + $0x4d8] sm:$0xff] %v11620_v59  ;;  %v12061_v20 = vadd.f32 %v7448_v63, %v14079_v29  ;;  %v7674_v1 = vpop.f32.mrb[180].mxu1  ;;  %v7450_v5 = vpop.f32.mrb[181].mxu0 }
 0x438   :  { %v12093_v25 = vadd.f32 %v7674_v1, %v14082_v6  ;;  %v12062_v56 = vadd.f32 %v7450_v5, %v14085_v15  ;;  %v7676_v8 = vpop.f32.mrb[181].mxu1  ;;  %v7452_v54 = vpop.f32.mrb[182].mxu0 }
 0x439   :  { %v12094_v9 = vadd.f32 %v7676_v8, %v14088_v11  ;;  %v12063_v0 = vadd.f32 %v7452_v54, %v14079_v29  ;;  %v7678_v53 = vpop.f32.mrb[182].mxu1  ;;  %v7454_v34 = vpop.f32.mrb[183].mxu0 }
 0x43a   :  { %v11635_v12 = vpack.c.bf16 %v12062_v56, %v12061_v20  ;;  %v12095_v35 = vadd.f32 %v7678_v53, %v14082_v6  ;;  %v12064_v51 = vadd.f32 %v7454_v34, %v14085_v15  ;;  %v7680_v4 = vpop.f32.mrb[183].mxu1 }
 0x43b   :  { %v11636_v42 = vpack.c.bf16 %v12094_v9, %v12093_v25  ;;  %v12096_v27 = vadd.f32 %v7680_v4, %v14088_v11  ;;  %8301 = vmatmul.mubr.bf16.vlgmr.msra.gmra.mrb[224].mxu0 %v12925_v55 }
 0x43c   :  { %10313 = vst [vmem:[#allocation8 + $0x550] sm:$0xff] %v11635_v12  ;;  %v11651_v19 = vpack.c.bf16 %v12064_v51, %v12063_v0  ;;  %8527 = vmatmul.mubr.bf16.vlgmr.msra.gmra.mrb[224].mxu1 %v12925_v55  ;;  %8310 = vmatprep.mubr.bf16.mxu0 %v13027_v24 }
 0x43d   :  { %10314 = vst [vmem:[#allocation8 + $0x558] sm:$0xff] %v11636_v42  ;;  %v11652_v41 = vpack.c.bf16 %v12096_v27, %v12095_v35  ;;  %8536 = vmatprep.mubr.bf16.mxu1 %v13027_v24 }
 0x43e   :  { %10329 = vst [vmem:[#allocation8 + $0x5d0] sm:$0xff] %v11651_v19  ;;  %v7458_v48 = vpop.f32.mrb[184].mxu0 }
 0x43f   :  { %10330 = vst [vmem:[#allocation8 + $0x5d8] sm:$0xff] %v11652_v41  ;;  %v12065_v45 = vadd.f32 %v7458_v48, %v14079_v29  ;;  %v7684_v61 = vpop.f32.mrb[184].mxu1  ;;  %v7460_v47 = vpop.f32.mrb[185].mxu0 }
 0x440   :  { %v12097_v50 = vadd.f32 %v7684_v61, %v14082_v6  ;;  %v12066_v3 = vadd.f32 %v7460_v47, %v14085_v15  ;;  %v7686_v60 = vpop.f32.mrb[185].mxu1  ;;  %v7462_v32 = vpop.f32.mrb[186].mxu0 }
 0x441   :  { %v12098_v22 = vadd.f32 %v7686_v60, %v14088_v11  ;;  %v12067_v57 = vadd.f32 %v7462_v32, %v14079_v29  ;;  %v7688_v14 = vpop.f32.mrb[186].mxu1  ;;  %v7464_v31 = vpop.f32.mrb[187].mxu0 }
 0x442   :  { %v11667_v36 = vpack.c.bf16 %v12066_v3, %v12065_v45  ;;  %v12099_v2 = vadd.f32 %v7688_v14, %v14082_v6  ;;  %v12068_v37 = vadd.f32 %v7464_v31, %v14085_v15  ;;  %v7690_v18 = vpop.f32.mrb[187].mxu1 }
 0x443   :  { %v11668_v7 = vpack.c.bf16 %v12098_v22, %v12097_v50  ;;  %v12100_v33 = vadd.f32 %v7690_v18, %v14088_v11  ;;  %8311 = vmatmul.mubr.bf16.gmra.mrb[228].mxu0 %v14022_v40 }
 0x444   :  { %10345 = vst [vmem:[#allocation8 + $0x650] sm:$0xff] %v11667_v36  ;;  %v11683_v23 = vpack.c.bf16 %v12068_v37, %v12067_v57  ;;  %8537 = vmatmul.mubr.bf16.gmra.mrb[228].mxu1 %v14022_v40  ;;  %8320 = vmatprep.mubr.bf16.mxu0 %v13027_v24 }
 0x445   :  { %10346 = vst [vmem:[#allocation8 + $0x658] sm:$0xff] %v11668_v7  ;;  %v11684_v58 = vpack.c.bf16 %v12100_v33, %v12099_v2  ;;  %8546 = vmatprep.mubr.bf16.mxu1 %v13027_v24 }
 0x446   :  { %10361 = vst [vmem:[#allocation8 + $0x6d0] sm:$0xff] %v11683_v23  ;;  %v7468_v13 = vpop.f32.mrb[188].mxu0 }
 0x447   :  { %10362 = vst [vmem:[#allocation8 + $0x6d8] sm:$0xff] %v11684_v58  ;;  %v12069_v52 = vadd.f32 %v7468_v13, %v14079_v29  ;;  %v7694_v59 = vpop.f32.mrb[188].mxu1  ;;  %v7470_v63 = vpop.f32.mrb[189].mxu0 }
 0x448   :  { %v12101_v20 = vadd.f32 %v7694_v59, %v14082_v6  ;;  %v12070_v1 = vadd.f32 %v7470_v63, %v14085_v15  ;;  %v7696_v5 = vpop.f32.mrb[189].mxu1  ;;  %v7472_v25 = vpop.f32.mrb[190].mxu0 }
 0x449   :  { %v12102_v40 = vadd.f32 %v7696_v5, %v14088_v11  ;;  %v12071_v56 = vadd.f32 %v7472_v25, %v14079_v29  ;;  %v7698_v8 = vpop.f32.mrb[190].mxu1  ;;  %v7474_v54 = vpop.f32.mrb[191].mxu0 }
 0x44a   :  { %v11699_v9 = vpack.c.bf16 %v12070_v1, %v12069_v52  ;;  %v12103_v0 = vadd.f32 %v7698_v8, %v14082_v6  ;;  %v12072_v53 = vadd.f32 %v7474_v54, %v14085_v15  ;;  %v7700_v34 = vpop.f32.mrb[191].mxu1 }
 0x44b   :  { %v11700_v12 = vpack.c.bf16 %v12102_v40, %v12101_v20  ;;  %v12104_v35 = vadd.f32 %v7700_v34, %v14088_v11  ;;  %8321 = vmatmul.mubr.bf16.gmra.mrb[232].mxu0 %v14044_v21 }
 0x44c   :  { %10377 = vst [vmem:[#allocation8 + $0x750] sm:$0xff] %v11699_v9  ;;  %v11715_v51 = vpack.c.bf16 %v12072_v53, %v12071_v56  ;;  %8547 = vmatmul.mubr.bf16.gmra.mrb[232].mxu1 %v14044_v21  ;;  %8330 = vmatprep.mubr.bf16.mxu0 %v13027_v24  ;;  %v14184_v21 = vld [vmem:[#allocation7 + $0x18] sm:$0xff] }
 0x44d   :  { %10378 = vst [vmem:[#allocation8 + $0x758] sm:$0xff] %v11700_v12  ;;  %v11716_v29 = vpack.c.bf16 %v12104_v35, %v12103_v0  ;;  %8556 = vmatprep.mubr.bf16.mxu1 %v13027_v24 }
 0x44e   :  { %10393 = vst [vmem:[#allocation8 + $0x7d0] sm:$0xff] %v11715_v51 }
 0x44f   :  { %10394 = vst [vmem:[#allocation8 + $0x7d8] sm:$0xff] %v11716_v29 }
 0x453   :  { %8331 = vmatmul.mubr.bf16.gmra.mrb[236].mxu0 %v14050_v28 }
 0x454   :  { %8557 = vmatmul.mubr.bf16.gmra.mrb[236].mxu1 %v14050_v28  ;;  %8340 = vmatprep.mubr.bf16.mxu0 %v13027_v24  ;;  %v14188_v28 = vrot.slane %v14184_v21, %v13267_v38 }
 0x455   :  { %8566 = vmatprep.mubr.bf16.mxu1 %v13027_v24 }
 0x45b   :  { %8341 = vmatmul.mubr.bf16.gmra.mrb[240].mxu0 %v14056_v62 }
 0x45c   :  { %8567 = vmatmul.mubr.bf16.gmra.mrb[240].mxu1 %v14056_v62  ;;  %8350 = vmatprep.mubr.bf16.mxu0 %v13027_v24  ;;  %v14192_v62 = vrot.slane %v14184_v21, %v13270_v46 }
 0x45d   :  { %8576 = vmatprep.mubr.bf16.mxu1 %v13027_v24 }
 0x463   :  { %8351 = vmatmul.mubr.bf16.gmra.mrb[244].mxu0 %v14062_v16 }
 0x464   :  { %8577 = vmatmul.mubr.bf16.gmra.mrb[244].mxu1 %v14062_v16  ;;  %8360 = vmatprep.mubr.bf16.mxu0 %v13027_v24  ;;  %v14196_v16 = vrot.slane %v14184_v21, %v13273_v44 }
 0x465   :  { %8586 = vmatprep.mubr.bf16.mxu1 %v13027_v24 }
 0x46b   :  { %8361 = vmatmul.mubr.bf16.gmra.mrb[248].mxu0 %v14068_v26 }
 0x46c   :  { %8587 = vmatmul.mubr.bf16.gmra.mrb[248].mxu1 %v14068_v26  ;;  %8370 = vmatprep.mubr.bf16.mxu0 %v13027_v24 }
 0x46d   :  { %8596 = vmatprep.mubr.bf16.mxu1 %v13027_v24  ;;  %v14200_v24 = vrot.slane %v14184_v21, %v13276_v49 }
 0x473   :  { %8371 = vmatmul.mubr.bf16.gmra.mrb[252].mxu0 %v14074_v17 }
 0x474   :  { %8597 = vmatmul.mubr.bf16.gmra.mrb[252].mxu1 %v14074_v17 }
 0x48e   :  { %v7850_v26 = vpop.f32.mrb[192].mxu0 }
 0x48f   :  { %v12105_v17 = vadd.f32 %v7850_v26, %v14188_v28  ;;  %v8076_v6 = vpop.f32.mrb[192].mxu1  ;;  %v7852_v15 = vpop.f32.mrb[193].mxu0 }
 0x490   :  { %v12137_v38 = vadd.f32 %v8076_v6, %v14192_v62  ;;  %v12106_v11 = vadd.f32 %v7852_v15, %v14196_v16  ;;  %v8078_v4 = vpop.f32.mrb[193].mxu1  ;;  %v7854_v46 = vpop.f32.mrb[194].mxu0 }
 0x491   :  { %v12138_v42 = vadd.f32 %v8078_v4, %v14200_v24  ;;  %v12107_v44 = vadd.f32 %v7854_v46, %v14188_v28  ;;  %v8080_v27 = vpop.f32.mrb[194].mxu1  ;;  %v7856_v55 = vpop.f32.mrb[195].mxu0 }
 0x492   :  { %v11477_v19 = vpack.c.bf16 %v12106_v11, %v12105_v17  ;;  %v12139_v49 = vadd.f32 %v8080_v27, %v14192_v62  ;;  %v12108_v41 = vadd.f32 %v7856_v55, %v14196_v16  ;;  %v8082_v48 = vpop.f32.mrb[195].mxu1 }
 0x493   :  { %v11478_v45 = vpack.c.bf16 %v12138_v42, %v12137_v38  ;;  %v12140_v61 = vadd.f32 %v8082_v48, %v14200_v24 }
 0x494   :  { %10155 = vst [vmem:[#allocation8 + $0x60] sm:$0xff] %v11477_v19  ;;  %v11493_v47 = vpack.c.bf16 %v12108_v41, %v12107_v44 }
 0x495   :  { %10156 = vst [vmem:[#allocation8 + $0x68] sm:$0xff] %v11478_v45  ;;  %v11494_v50 = vpack.c.bf16 %v12140_v61, %v12139_v49 }
 0x496   :  { %10171 = vst [vmem:[#allocation8 + $0xe0] sm:$0xff] %v11493_v47  ;;  %v7860_v3 = vpop.f32.mrb[196].mxu0 }
 0x497   :  { %10172 = vst [vmem:[#allocation8 + $0xe8] sm:$0xff] %v11494_v50  ;;  %v12109_v60 = vadd.f32 %v7860_v3, %v14188_v28  ;;  %v8086_v32 = vpop.f32.mrb[196].mxu1  ;;  %v7862_v22 = vpop.f32.mrb[197].mxu0 }
 0x498   :  { %v12141_v57 = vadd.f32 %v8086_v32, %v14192_v62  ;;  %v12110_v14 = vadd.f32 %v7862_v22, %v14196_v16  ;;  %v8088_v31 = vpop.f32.mrb[197].mxu1  ;;  %v7864_v36 = vpop.f32.mrb[198].mxu0 }
 0x499   :  { %v12142_v2 = vadd.f32 %v8088_v31, %v14200_v24  ;;  %v12111_v37 = vadd.f32 %v7864_v36, %v14188_v28  ;;  %v8090_v18 = vpop.f32.mrb[198].mxu1  ;;  %v7866_v7 = vpop.f32.mrb[199].mxu0 }
 0x49a   :  { %v11509_v33 = vpack.c.bf16 %v12110_v14, %v12109_v60  ;;  %v12143_v23 = vadd.f32 %v8090_v18, %v14192_v62  ;;  %v12112_v58 = vadd.f32 %v7866_v7, %v14196_v16  ;;  %v8092_v13 = vpop.f32.mrb[199].mxu1 }
 0x49b   :  { %v11510_v52 = vpack.c.bf16 %v12142_v2, %v12141_v57  ;;  %v12144_v59 = vadd.f32 %v8092_v13, %v14200_v24 }
 0x49c   :  { %10187 = vst [vmem:[#allocation8 + $0x160] sm:$0xff] %v11509_v33  ;;  %v11525_v63 = vpack.c.bf16 %v12112_v58, %v12111_v37 }
 0x49d   :  { %10188 = vst [vmem:[#allocation8 + $0x168] sm:$0xff] %v11510_v52  ;;  %v11526_v20 = vpack.c.bf16 %v12144_v59, %v12143_v23 }
 0x49e   :  { %10203 = vst [vmem:[#allocation8 + $0x1e0] sm:$0xff] %v11525_v63  ;;  %v7870_v1 = vpop.f32.mrb[200].mxu0 }
 0x49f   :  { %10204 = vst [vmem:[#allocation8 + $0x1e8] sm:$0xff] %v11526_v20  ;;  %v12113_v5 = vadd.f32 %v7870_v1, %v14188_v28  ;;  %v8096_v25 = vpop.f32.mrb[200].mxu1  ;;  %v7872_v40 = vpop.f32.mrb[201].mxu0 }
 0x4a0   :  { %v12145_v56 = vadd.f32 %v8096_v25, %v14192_v62  ;;  %v12114_v8 = vadd.f32 %v7872_v40, %v14196_v16  ;;  %v8098_v54 = vpop.f32.mrb[201].mxu1  ;;  %v7874_v9 = vpop.f32.mrb[202].mxu0 }
 0x4a1   :  { %v12146_v0 = vadd.f32 %v8098_v54, %v14200_v24  ;;  %v12115_v53 = vadd.f32 %v7874_v9, %v14188_v28  ;;  %v8100_v34 = vpop.f32.mrb[202].mxu1  ;;  %v7876_v12 = vpop.f32.mrb[203].mxu0 }
 0x4a2   :  { %v11541_v35 = vpack.c.bf16 %v12114_v8, %v12113_v5  ;;  %v12147_v51 = vadd.f32 %v8100_v34, %v14192_v62  ;;  %v12116_v29 = vadd.f32 %v7876_v12, %v14196_v16  ;;  %v8102_v26 = vpop.f32.mrb[203].mxu1 }
 0x4a3   :  { %v11542_v17 = vpack.c.bf16 %v12146_v0, %v12145_v56  ;;  %v12148_v6 = vadd.f32 %v8102_v26, %v14200_v24 }
 0x4a4   :  { %10219 = vst [vmem:[#allocation8 + $0x260] sm:$0xff] %v11541_v35  ;;  %v11557_v15 = vpack.c.bf16 %v12116_v29, %v12115_v53 }
 0x4a5   :  { %10220 = vst [vmem:[#allocation8 + $0x268] sm:$0xff] %v11542_v17  ;;  %v11558_v38 = vpack.c.bf16 %v12148_v6, %v12147_v51 }
 0x4a6   :  { %10235 = vst [vmem:[#allocation8 + $0x2e0] sm:$0xff] %v11557_v15  ;;  %v7880_v11 = vpop.f32.mrb[204].mxu0 }
 0x4a7   :  { %10236 = vst [vmem:[#allocation8 + $0x2e8] sm:$0xff] %v11558_v38  ;;  %v12117_v4 = vadd.f32 %v7880_v11, %v14188_v28  ;;  %v8106_v46 = vpop.f32.mrb[204].mxu1  ;;  %v7882_v42 = vpop.f32.mrb[205].mxu0 }
 0x4a8   :  { %v12149_v44 = vadd.f32 %v8106_v46, %v14192_v62  ;;  %v12118_v27 = vadd.f32 %v7882_v42, %v14196_v16  ;;  %v8108_v55 = vpop.f32.mrb[205].mxu1  ;;  %v7884_v19 = vpop.f32.mrb[206].mxu0 }
 0x4a9   :  { %v12150_v49 = vadd.f32 %v8108_v55, %v14200_v24  ;;  %v12119_v41 = vadd.f32 %v7884_v19, %v14188_v28  ;;  %v8110_v48 = vpop.f32.mrb[206].mxu1  ;;  %v7886_v45 = vpop.f32.mrb[207].mxu0 }
 0x4aa   :  { %v11573_v61 = vpack.c.bf16 %v12118_v27, %v12117_v4  ;;  %v12151_v47 = vadd.f32 %v8110_v48, %v14192_v62  ;;  %v12120_v50 = vadd.f32 %v7886_v45, %v14196_v16  ;;  %v8112_v3 = vpop.f32.mrb[207].mxu1 }
 0x4ab   :  { %v11574_v60 = vpack.c.bf16 %v12150_v49, %v12149_v44  ;;  %v12152_v32 = vadd.f32 %v8112_v3, %v14200_v24 }
 0x4ac   :  { %10251 = vst [vmem:[#allocation8 + $0x360] sm:$0xff] %v11573_v61  ;;  %v11589_v22 = vpack.c.bf16 %v12120_v50, %v12119_v41 }
 0x4ad   :  { %10252 = vst [vmem:[#allocation8 + $0x368] sm:$0xff] %v11574_v60  ;;  %v11590_v57 = vpack.c.bf16 %v12152_v32, %v12151_v47 }
 0x4ae   :  { %10267 = vst [vmem:[#allocation8 + $0x3e0] sm:$0xff] %v11589_v22  ;;  %v7890_v14 = vpop.f32.mrb[208].mxu0 }
 0x4af   :  { %10268 = vst [vmem:[#allocation8 + $0x3e8] sm:$0xff] %v11590_v57  ;;  %v12121_v31 = vadd.f32 %v7890_v14, %v14188_v28  ;;  %v8116_v36 = vpop.f32.mrb[208].mxu1  ;;  %v7892_v2 = vpop.f32.mrb[209].mxu0 }
 0x4b0   :  { %v12153_v37 = vadd.f32 %v8116_v36, %v14192_v62  ;;  %v12122_v18 = vadd.f32 %v7892_v2, %v14196_v16  ;;  %v8118_v7 = vpop.f32.mrb[209].mxu1  ;;  %v7894_v33 = vpop.f32.mrb[210].mxu0 }
 0x4b1   :  { %v12154_v23 = vadd.f32 %v8118_v7, %v14200_v24  ;;  %v12123_v58 = vadd.f32 %v7894_v33, %v14188_v28  ;;  %v8120_v13 = vpop.f32.mrb[210].mxu1  ;;  %v7896_v52 = vpop.f32.mrb[211].mxu0 }
 0x4b2   :  { %v11605_v59 = vpack.c.bf16 %v12122_v18, %v12121_v31  ;;  %v12155_v63 = vadd.f32 %v8120_v13, %v14192_v62  ;;  %v12124_v20 = vadd.f32 %v7896_v52, %v14196_v16  ;;  %v8122_v1 = vpop.f32.mrb[211].mxu1 }
 0x4b3   :  { %v11606_v5 = vpack.c.bf16 %v12154_v23, %v12153_v37  ;;  %v12156_v25 = vadd.f32 %v8122_v1, %v14200_v24 }
 0x4b4   :  { %10283 = vst [vmem:[#allocation8 + $0x460] sm:$0xff] %v11605_v59  ;;  %v11621_v40 = vpack.c.bf16 %v12124_v20, %v12123_v58 }
 0x4b5   :  { %10284 = vst [vmem:[#allocation8 + $0x468] sm:$0xff] %v11606_v5  ;;  %v11622_v56 = vpack.c.bf16 %v12156_v25, %v12155_v63 }
 0x4b6   :  { %10299 = vst [vmem:[#allocation8 + $0x4e0] sm:$0xff] %v11621_v40  ;;  %v7900_v8 = vpop.f32.mrb[212].mxu0 }
 0x4b7   :  { %10300 = vst [vmem:[#allocation8 + $0x4e8] sm:$0xff] %v11622_v56  ;;  %v12125_v54 = vadd.f32 %v7900_v8, %v14188_v28  ;;  %v8126_v9 = vpop.f32.mrb[212].mxu1  ;;  %v7902_v0 = vpop.f32.mrb[213].mxu0 }
 0x4b8   :  { %v12157_v53 = vadd.f32 %v8126_v9, %v14192_v62  ;;  %v12126_v34 = vadd.f32 %v7902_v0, %v14196_v16  ;;  %v8128_v12 = vpop.f32.mrb[213].mxu1  ;;  %v7904_v35 = vpop.f32.mrb[214].mxu0 }
 0x4b9   :  { %v12158_v51 = vadd.f32 %v8128_v12, %v14200_v24  ;;  %v12127_v29 = vadd.f32 %v7904_v35, %v14188_v28  ;;  %v8130_v26 = vpop.f32.mrb[214].mxu1  ;;  %v7906_v17 = vpop.f32.mrb[215].mxu0 }
 0x4ba   :  { %v11637_v6 = vpack.c.bf16 %v12126_v34, %v12125_v54  ;;  %v12159_v15 = vadd.f32 %v8130_v26, %v14192_v62  ;;  %v12128_v38 = vadd.f32 %v7906_v17, %v14196_v16  ;;  %v8132_v11 = vpop.f32.mrb[215].mxu1  ;;  %v14272_v34 = vrot.slane %v14184_v21, %v13434_v10 }
 0x4bb   :  { %v11638_v4 = vpack.c.bf16 %v12158_v51, %v12157_v53  ;;  %v12160_v46 = vadd.f32 %v8132_v11, %v14200_v24 }
 0x4bc   :  { %10315 = vst [vmem:[#allocation8 + $0x560] sm:$0xff] %v11637_v6  ;;  %v11653_v42 = vpack.c.bf16 %v12128_v38, %v12127_v29 }
 0x4bd   :  { %10316 = vst [vmem:[#allocation8 + $0x568] sm:$0xff] %v11638_v4  ;;  %v11654_v44 = vpack.c.bf16 %v12160_v46, %v12159_v15 }
 0x4be   :  { %10331 = vst [vmem:[#allocation8 + $0x5e0] sm:$0xff] %v11653_v42  ;;  %v7910_v27 = vpop.f32.mrb[216].mxu0 }
 0x4bf   :  { %10332 = vst [vmem:[#allocation8 + $0x5e8] sm:$0xff] %v11654_v44  ;;  %v12129_v55 = vadd.f32 %v7910_v27, %v14188_v28  ;;  %v8136_v19 = vpop.f32.mrb[216].mxu1  ;;  %v7912_v49 = vpop.f32.mrb[217].mxu0 }
 0x4c0   :  { %v12161_v41 = vadd.f32 %v8136_v19, %v14192_v62  ;;  %v12130_v48 = vadd.f32 %v7912_v49, %v14196_v16  ;;  %v8138_v45 = vpop.f32.mrb[217].mxu1  ;;  %v7914_v61 = vpop.f32.mrb[218].mxu0 }
 0x4c1   :  { %v12162_v47 = vadd.f32 %v8138_v45, %v14200_v24  ;;  %v12131_v50 = vadd.f32 %v7914_v61, %v14188_v28  ;;  %v8140_v3 = vpop.f32.mrb[218].mxu1  ;;  %v7916_v60 = vpop.f32.mrb[219].mxu0 }
 0x4c2   :  { %v11669_v32 = vpack.c.bf16 %v12130_v48, %v12129_v55  ;;  %v12163_v22 = vadd.f32 %v8140_v3, %v14192_v62  ;;  %v12132_v57 = vadd.f32 %v7916_v60, %v14196_v16  ;;  %v8142_v14 = vpop.f32.mrb[219].mxu1 }
 0x4c3   :  { %v11670_v31 = vpack.c.bf16 %v12162_v47, %v12161_v41  ;;  %v12164_v36 = vadd.f32 %v8142_v14, %v14200_v24 }
 0x4c4   :  { %10347 = vst [vmem:[#allocation8 + $0x660] sm:$0xff] %v11669_v32  ;;  %v11685_v2 = vpack.c.bf16 %v12132_v57, %v12131_v50 }
 0x4c5   :  { %10348 = vst [vmem:[#allocation8 + $0x668] sm:$0xff] %v11670_v31  ;;  %v11686_v37 = vpack.c.bf16 %v12164_v36, %v12163_v22 }
 0x4c6   :  { %10363 = vst [vmem:[#allocation8 + $0x6e0] sm:$0xff] %v11685_v2  ;;  %v7920_v18 = vpop.f32.mrb[220].mxu0 }
 0x4c7   :  { %10364 = vst [vmem:[#allocation8 + $0x6e8] sm:$0xff] %v11686_v37  ;;  %v12133_v7 = vadd.f32 %v7920_v18, %v14188_v28  ;;  %v8146_v33 = vpop.f32.mrb[220].mxu1  ;;  %v7922_v23 = vpop.f32.mrb[221].mxu0 }
 0x4c8   :  { %v12165_v58 = vadd.f32 %v8146_v33, %v14192_v62  ;;  %v12134_v13 = vadd.f32 %v7922_v23, %v14196_v16  ;;  %v8148_v52 = vpop.f32.mrb[221].mxu1  ;;  %v7924_v59 = vpop.f32.mrb[222].mxu0 }
 0x4c9   :  { %v12166_v63 = vadd.f32 %v8148_v52, %v14200_v24  ;;  %v12135_v20 = vadd.f32 %v7924_v59, %v14188_v28  ;;  %v8150_v1 = vpop.f32.mrb[222].mxu1  ;;  %v7926_v5 = vpop.f32.mrb[223].mxu0  ;;  %v14268_v28 = vrot.slane %v14184_v21, %v13431_v30 }
 0x4ca   :  { %v11701_v25 = vpack.c.bf16 %v12134_v13, %v12133_v7  ;;  %v12167_v40 = vadd.f32 %v8150_v1, %v14192_v62  ;;  %v12136_v56 = vadd.f32 %v7926_v5, %v14196_v16  ;;  %v8152_v8 = vpop.f32.mrb[223].mxu1  ;;  %v14276_v62 = vrot.slane %v14184_v21, %v13437_v39 }
 0x4cb   :  { %v11702_v54 = vpack.c.bf16 %v12166_v63, %v12165_v58  ;;  %v12168_v9 = vadd.f32 %v8152_v8, %v14200_v24  ;;  %v14280_v16 = vrot.slane %v14184_v21, %v13440_v43 }
 0x4cc   :  { %10379 = vst [vmem:[#allocation8 + $0x760] sm:$0xff] %v11701_v25  ;;  %v11717_v0 = vpack.c.bf16 %v12136_v56, %v12135_v20 }
 0x4cd   :  { %10380 = vst [vmem:[#allocation8 + $0x768] sm:$0xff] %v11702_v54  ;;  %v11718_v53 = vpack.c.bf16 %v12168_v9, %v12167_v40 }
 0x4ce   :  { %10395 = vst [vmem:[#allocation8 + $0x7e0] sm:$0xff] %v11717_v0 }
 0x4cf   :  { %10396 = vst [vmem:[#allocation8 + $0x7e8] sm:$0xff] %v11718_v53 }
 0x50e   :  { %v8302_v24 = vpop.f32.mrb[224].mxu0 }
 0x50f   :  { %v12169_v12 = vadd.f32 %v8302_v24, %v14268_v28  ;;  %v8528_v35 = vpop.f32.mrb[224].mxu1  ;;  %v8304_v51 = vpop.f32.mrb[225].mxu0 }
 0x510   :  { %v12201_v30 = vadd.f32 %v8528_v35, %v14272_v34  ;;  %v12170_v29 = vadd.f32 %v8304_v51, %v14276_v62  ;;  %v8530_v26 = vpop.f32.mrb[225].mxu1  ;;  %v8306_v10 = vpop.f32.mrb[226].mxu0 }
 0x511   :  { %v12202_v17 = vadd.f32 %v8530_v26, %v14280_v16  ;;  %v12171_v39 = vadd.f32 %v8306_v10, %v14268_v28  ;;  %v8532_v6 = vpop.f32.mrb[226].mxu1  ;;  %v8308_v15 = vpop.f32.mrb[227].mxu0 }
 0x512   :  { %v11479_v38 = vpack.c.bf16 %v12170_v29, %v12169_v12  ;;  %v12203_v43 = vadd.f32 %v8532_v6, %v14272_v34  ;;  %v12172_v21 = vadd.f32 %v8308_v15, %v14276_v62  ;;  %v8534_v11 = vpop.f32.mrb[227].mxu1 }
 0x513   :  { %v11480_v4 = vpack.c.bf16 %v12202_v17, %v12201_v30  ;;  %v12204_v46 = vadd.f32 %v8534_v11, %v14280_v16 }
 0x514   :  { %10157 = vst [vmem:[#allocation8 + $0x70] sm:$0xff] %v11479_v38  ;;  %v11495_v42 = vpack.c.bf16 %v12172_v21, %v12171_v39 }
 0x515   :  { %10158 = vst [vmem:[#allocation8 + $0x78] sm:$0xff] %v11480_v4  ;;  %v11496_v44 = vpack.c.bf16 %v12204_v46, %v12203_v43 }
 0x516   :  { %10173 = vst [vmem:[#allocation8 + $0xf0] sm:$0xff] %v11495_v42  ;;  %v8312_v27 = vpop.f32.mrb[228].mxu0 }
 0x517   :  { %10174 = vst [vmem:[#allocation8 + $0xf8] sm:$0xff] %v11496_v44  ;;  %v12173_v55 = vadd.f32 %v8312_v27, %v14268_v28  ;;  %v8538_v19 = vpop.f32.mrb[228].mxu1  ;;  %v8314_v49 = vpop.f32.mrb[229].mxu0 }
 0x518   :  { %v12205_v41 = vadd.f32 %v8538_v19, %v14272_v34  ;;  %v12174_v48 = vadd.f32 %v8314_v49, %v14276_v62  ;;  %v8540_v45 = vpop.f32.mrb[229].mxu1  ;;  %v8316_v61 = vpop.f32.mrb[230].mxu0 }
 0x519   :  { %v12206_v47 = vadd.f32 %v8540_v45, %v14280_v16  ;;  %v12175_v50 = vadd.f32 %v8316_v61, %v14268_v28  ;;  %v8542_v3 = vpop.f32.mrb[230].mxu1  ;;  %v8318_v60 = vpop.f32.mrb[231].mxu0 }
 0x51a   :  { %v11511_v32 = vpack.c.bf16 %v12174_v48, %v12173_v55  ;;  %v12207_v22 = vadd.f32 %v8542_v3, %v14272_v34  ;;  %v12176_v57 = vadd.f32 %v8318_v60, %v14276_v62  ;;  %v8544_v14 = vpop.f32.mrb[231].mxu1 }
 0x51b   :  { %v11512_v31 = vpack.c.bf16 %v12206_v47, %v12205_v41  ;;  %v12208_v36 = vadd.f32 %v8544_v14, %v14280_v16 }
 0x51c   :  { %10189 = vst [vmem:[#allocation8 + $0x170] sm:$0xff] %v11511_v32  ;;  %v11527_v2 = vpack.c.bf16 %v12176_v57, %v12175_v50 }
 0x51d   :  { %10190 = vst [vmem:[#allocation8 + $0x178] sm:$0xff] %v11512_v31  ;;  %v11528_v37 = vpack.c.bf16 %v12208_v36, %v12207_v22 }
 0x51e   :  { %10205 = vst [vmem:[#allocation8 + $0x1f0] sm:$0xff] %v11527_v2  ;;  %v8322_v18 = vpop.f32.mrb[232].mxu0 }
 0x51f   :  { %10206 = vst [vmem:[#allocation8 + $0x1f8] sm:$0xff] %v11528_v37  ;;  %v12177_v7 = vadd.f32 %v8322_v18, %v14268_v28  ;;  %v8548_v33 = vpop.f32.mrb[232].mxu1  ;;  %v8324_v23 = vpop.f32.mrb[233].mxu0 }
 0x520   :  { %v12209_v58 = vadd.f32 %v8548_v33, %v14272_v34  ;;  %v12178_v13 = vadd.f32 %v8324_v23, %v14276_v62  ;;  %v8550_v52 = vpop.f32.mrb[233].mxu1  ;;  %v8326_v59 = vpop.f32.mrb[234].mxu0 }
 0x521   :  { %v12210_v63 = vadd.f32 %v8550_v52, %v14280_v16  ;;  %v12179_v20 = vadd.f32 %v8326_v59, %v14268_v28  ;;  %v8552_v1 = vpop.f32.mrb[234].mxu1  ;;  %v8328_v5 = vpop.f32.mrb[235].mxu0 }
 0x522   :  { %v11543_v25 = vpack.c.bf16 %v12178_v13, %v12177_v7  ;;  %v12211_v40 = vadd.f32 %v8552_v1, %v14272_v34  ;;  %v12180_v56 = vadd.f32 %v8328_v5, %v14276_v62  ;;  %v8554_v8 = vpop.f32.mrb[235].mxu1 }
 0x523   :  { %v11544_v54 = vpack.c.bf16 %v12210_v63, %v12209_v58  ;;  %v12212_v9 = vadd.f32 %v8554_v8, %v14280_v16 }
 0x524   :  { %10221 = vst [vmem:[#allocation8 + $0x270] sm:$0xff] %v11543_v25  ;;  %v11559_v0 = vpack.c.bf16 %v12180_v56, %v12179_v20 }
 0x525   :  { %10222 = vst [vmem:[#allocation8 + $0x278] sm:$0xff] %v11544_v54  ;;  %v11560_v53 = vpack.c.bf16 %v12212_v9, %v12211_v40 }
 0x526   :  { %10237 = vst [vmem:[#allocation8 + $0x2f0] sm:$0xff] %v11559_v0  ;;  %v8332_v24 = vpop.f32.mrb[236].mxu0 }
 0x527   :  { %10238 = vst [vmem:[#allocation8 + $0x2f8] sm:$0xff] %v11560_v53  ;;  %v12181_v12 = vadd.f32 %v8332_v24, %v14268_v28  ;;  %v8558_v35 = vpop.f32.mrb[236].mxu1  ;;  %v8334_v51 = vpop.f32.mrb[237].mxu0 }
 0x528   :  { %v12213_v30 = vadd.f32 %v8558_v35, %v14272_v34  ;;  %v12182_v29 = vadd.f32 %v8334_v51, %v14276_v62  ;;  %v8560_v26 = vpop.f32.mrb[237].mxu1  ;;  %v8336_v10 = vpop.f32.mrb[238].mxu0 }
 0x529   :  { %v12214_v17 = vadd.f32 %v8560_v26, %v14280_v16  ;;  %v12183_v39 = vadd.f32 %v8336_v10, %v14268_v28  ;;  %v8562_v6 = vpop.f32.mrb[238].mxu1  ;;  %v8338_v15 = vpop.f32.mrb[239].mxu0 }
 0x52a   :  { %v11575_v38 = vpack.c.bf16 %v12182_v29, %v12181_v12  ;;  %v12215_v43 = vadd.f32 %v8562_v6, %v14272_v34  ;;  %v12184_v21 = vadd.f32 %v8338_v15, %v14276_v62  ;;  %v8564_v11 = vpop.f32.mrb[239].mxu1 }
 0x52b   :  { %v11576_v4 = vpack.c.bf16 %v12214_v17, %v12213_v30  ;;  %v12216_v46 = vadd.f32 %v8564_v11, %v14280_v16 }
 0x52c   :  { %10253 = vst [vmem:[#allocation8 + $0x370] sm:$0xff] %v11575_v38  ;;  %v11591_v42 = vpack.c.bf16 %v12184_v21, %v12183_v39 }
 0x52d   :  { %10254 = vst [vmem:[#allocation8 + $0x378] sm:$0xff] %v11576_v4  ;;  %v11592_v44 = vpack.c.bf16 %v12216_v46, %v12215_v43 }
 0x52e   :  { %10269 = vst [vmem:[#allocation8 + $0x3f0] sm:$0xff] %v11591_v42  ;;  %v8342_v27 = vpop.f32.mrb[240].mxu0 }
 0x52f   :  { %10270 = vst [vmem:[#allocation8 + $0x3f8] sm:$0xff] %v11592_v44  ;;  %v12185_v55 = vadd.f32 %v8342_v27, %v14268_v28  ;;  %v8568_v19 = vpop.f32.mrb[240].mxu1  ;;  %v8344_v49 = vpop.f32.mrb[241].mxu0 }
 0x530   :  { %v12217_v41 = vadd.f32 %v8568_v19, %v14272_v34  ;;  %v12186_v48 = vadd.f32 %v8344_v49, %v14276_v62  ;;  %v8570_v45 = vpop.f32.mrb[241].mxu1  ;;  %v8346_v61 = vpop.f32.mrb[242].mxu0 }
 0x531   :  { %v12218_v47 = vadd.f32 %v8570_v45, %v14280_v16  ;;  %v12187_v50 = vadd.f32 %v8346_v61, %v14268_v28  ;;  %v8572_v3 = vpop.f32.mrb[242].mxu1  ;;  %v8348_v60 = vpop.f32.mrb[243].mxu0 }
 0x532   :  { %v11607_v32 = vpack.c.bf16 %v12186_v48, %v12185_v55  ;;  %v12219_v22 = vadd.f32 %v8572_v3, %v14272_v34  ;;  %v12188_v57 = vadd.f32 %v8348_v60, %v14276_v62  ;;  %v8574_v14 = vpop.f32.mrb[243].mxu1 }
 0x533   :  { %v11608_v31 = vpack.c.bf16 %v12218_v47, %v12217_v41  ;;  %v12220_v36 = vadd.f32 %v8574_v14, %v14280_v16 }
 0x534   :  { %10285 = vst [vmem:[#allocation8 + $0x470] sm:$0xff] %v11607_v32  ;;  %v11623_v2 = vpack.c.bf16 %v12188_v57, %v12187_v50 }
 0x535   :  { %10286 = vst [vmem:[#allocation8 + $0x478] sm:$0xff] %v11608_v31  ;;  %v11624_v37 = vpack.c.bf16 %v12220_v36, %v12219_v22 }
 0x536   :  { %10301 = vst [vmem:[#allocation8 + $0x4f0] sm:$0xff] %v11623_v2  ;;  %v8352_v18 = vpop.f32.mrb[244].mxu0 }
 0x537   :  { %10302 = vst [vmem:[#allocation8 + $0x4f8] sm:$0xff] %v11624_v37  ;;  %v12189_v7 = vadd.f32 %v8352_v18, %v14268_v28  ;;  %v8578_v33 = vpop.f32.mrb[244].mxu1  ;;  %v8354_v23 = vpop.f32.mrb[245].mxu0 }
 0x538   :  { %v12221_v58 = vadd.f32 %v8578_v33, %v14272_v34  ;;  %v12190_v13 = vadd.f32 %v8354_v23, %v14276_v62  ;;  %v8580_v52 = vpop.f32.mrb[245].mxu1  ;;  %v8356_v59 = vpop.f32.mrb[246].mxu0 }
 0x539   :  { %v12222_v63 = vadd.f32 %v8580_v52, %v14280_v16  ;;  %v12191_v20 = vadd.f32 %v8356_v59, %v14268_v28  ;;  %v8582_v1 = vpop.f32.mrb[246].mxu1  ;;  %v8358_v5 = vpop.f32.mrb[247].mxu0 }
 0x53a   :  { %v11639_v25 = vpack.c.bf16 %v12190_v13, %v12189_v7  ;;  %v12223_v40 = vadd.f32 %v8582_v1, %v14272_v34  ;;  %v12192_v56 = vadd.f32 %v8358_v5, %v14276_v62  ;;  %v8584_v8 = vpop.f32.mrb[247].mxu1 }
 0x53b   :  { %v11640_v54 = vpack.c.bf16 %v12222_v63, %v12221_v58  ;;  %v12224_v9 = vadd.f32 %v8584_v8, %v14280_v16 }
 0x53c   :  { %10317 = vst [vmem:[#allocation8 + $0x570] sm:$0xff] %v11639_v25  ;;  %v11655_v0 = vpack.c.bf16 %v12192_v56, %v12191_v20 }
 0x53d   :  { %10318 = vst [vmem:[#allocation8 + $0x578] sm:$0xff] %v11640_v54  ;;  %v11656_v53 = vpack.c.bf16 %v12224_v9, %v12223_v40 }
 0x53e   :  { %10333 = vst [vmem:[#allocation8 + $0x5f0] sm:$0xff] %v11655_v0  ;;  %v8362_v24 = vpop.f32.mrb[248].mxu0 }
 0x53f   :  { %10334 = vst [vmem:[#allocation8 + $0x5f8] sm:$0xff] %v11656_v53  ;;  %v12193_v12 = vadd.f32 %v8362_v24, %v14268_v28  ;;  %v8588_v35 = vpop.f32.mrb[248].mxu1  ;;  %v8364_v51 = vpop.f32.mrb[249].mxu0 }
 0x540   :  { %v12225_v30 = vadd.f32 %v8588_v35, %v14272_v34  ;;  %v12194_v29 = vadd.f32 %v8364_v51, %v14276_v62  ;;  %v8590_v26 = vpop.f32.mrb[249].mxu1  ;;  %v8366_v10 = vpop.f32.mrb[250].mxu0 }
 0x541   :  { %v12226_v17 = vadd.f32 %v8590_v26, %v14280_v16  ;;  %v12195_v39 = vadd.f32 %v8366_v10, %v14268_v28  ;;  %v8592_v6 = vpop.f32.mrb[250].mxu1  ;;  %v8368_v15 = vpop.f32.mrb[251].mxu0 }
 0x542   :  { %v11671_v38 = vpack.c.bf16 %v12194_v29, %v12193_v12  ;;  %v12227_v43 = vadd.f32 %v8592_v6, %v14272_v34  ;;  %v12196_v21 = vadd.f32 %v8368_v15, %v14276_v62  ;;  %v8594_v11 = vpop.f32.mrb[251].mxu1 }
 0x543   :  { %v11672_v4 = vpack.c.bf16 %v12226_v17, %v12225_v30  ;;  %v12228_v46 = vadd.f32 %v8594_v11, %v14280_v16 }
 0x544   :  { %10349 = vst [vmem:[#allocation8 + $0x670] sm:$0xff] %v11671_v38  ;;  %v11687_v42 = vpack.c.bf16 %v12196_v21, %v12195_v39 }
 0x545   :  { %10350 = vst [vmem:[#allocation8 + $0x678] sm:$0xff] %v11672_v4  ;;  %v11688_v44 = vpack.c.bf16 %v12228_v46, %v12227_v43 }
 0x546   :  { %10365 = vst [vmem:[#allocation8 + $0x6f0] sm:$0xff] %v11687_v42  ;;  %v8372_v27 = vpop.f32.mrb[252].mxu0 }
 0x547   :  { %10366 = vst [vmem:[#allocation8 + $0x6f8] sm:$0xff] %v11688_v44  ;;  %v12197_v55 = vadd.f32 %v8372_v27, %v14268_v28  ;;  %v8598_v19 = vpop.f32.mrb[252].mxu1  ;;  %v8374_v49 = vpop.f32.mrb[253].mxu0 }
 0x548   :  { %v12229_v41 = vadd.f32 %v8598_v19, %v14272_v34  ;;  %v12198_v48 = vadd.f32 %v8374_v49, %v14276_v62  ;;  %v8600_v45 = vpop.f32.mrb[253].mxu1  ;;  %v8376_v61 = vpop.f32.mrb[254].mxu0 }
 0x549   :  { %v12230_v47 = vadd.f32 %v8600_v45, %v14280_v16  ;;  %v12199_v50 = vadd.f32 %v8376_v61, %v14268_v28  ;;  %v8602_v3 = vpop.f32.mrb[254].mxu1  ;;  %v8378_v60 = vpop.f32.mrb[255].mxu0 }
 0x54a   :  { %v11703_v32 = vpack.c.bf16 %v12198_v48, %v12197_v55  ;;  %v12231_v22 = vadd.f32 %v8602_v3, %v14272_v34  ;;  %v12200_v57 = vadd.f32 %v8378_v60, %v14276_v62  ;;  %v8604_v14 = vpop.f32.mrb[255].mxu1 }
 0x54b   :  { %v11704_v31 = vpack.c.bf16 %v12230_v47, %v12229_v41  ;;  %v12232_v36 = vadd.f32 %v8604_v14, %v14280_v16 }
 0x54c   :  { %10381 = vst [vmem:[#allocation8 + $0x770] sm:$0xff] %v11703_v32  ;;  %v11719_v2 = vpack.c.bf16 %v12200_v57, %v12199_v50 }
 0x54d   :  { %10382 = vst [vmem:[#allocation8 + $0x778] sm:$0xff] %v11704_v31  ;;  %v11720_v37 = vpack.c.bf16 %v12232_v36, %v12231_v22 }
 0x54e   :  { %10397 = vst [vmem:[#allocation8 + $0x7f0] sm:$0xff] %v11719_v2 }
 0x54f   :  { %10398 = vst [vmem:[#allocation8 + $0x7f8] sm:$0xff] %v11720_v37 }
 0x550   :  { %13003 = shalt.err (!%p13000_p0)
}
 0x551   :  { %s13004_s29 = scalar_lea.hbm %s14364_s3, 32768 }
 0x552   :  { %p13005_p1 = scmp.ne.s32.totalorder %s14364_s3, %s13004_s29  ;;  %p13008_p2 = scmp.lt.u32.totalorder %s13004_s29, %s14364_s3 }
 0x554   :  { %p13010_p3 = pnand %p13008_p2, %p13005_p1 }
 0x556   :  { %13013 = shalt.err (!%p13010_p3)
}
 0x557   :  { %10410 = dma.vmem_to_hbm [thread:$0]  %s10405_s25, 32768, %s14364_s3, [#allocation4], %s13021_s22, %s13021_s22, %s13022_s23  }
 0x558   :  { %13018 = dma.done.wait [#allocation4], 32768  }
 0x559   :  { %13019 = vsyncadd [#allocation4], 4294934528 }
 0x55a   :  { %10414 = vsyncpa [#allocation3], 1 }
 0x55b   :  { %10415 = vsyncpa [#allocation6], 1 }
 0x55c   :  { %10416 = vsyncpa [#allocation4], 1 }

</bundles_post_ra>
